<compile_context>
chip_gen: v5e
topology: v5e:2x2
jax: 0.10.0
libtpu: 0.0.40
codegen_flags: <defaults>
</compile_context>

<pallas_src>
import functools

import jax
import jax.numpy as jnp
from jax.experimental import pallas as pl
from jax.experimental.pallas import tpu as pltpu

_BN_EPS = 1e-5
_LRELU_SLOPE = 0.2
_VMEM_LIMIT = 32 * 1024 * 1024  # generous headroom; safe on v5e/v6e/v7x


def _full_spec(shape):
    """BlockSpec covering the whole array as a single block (grid=(1,))."""
    nd = len(shape)
    return pl.BlockSpec(shape, lambda i: (0,) * nd)


# ----------------------------------------------------------------------------
# Pallas kernels
# ----------------------------------------------------------------------------
def _bn_lrelu(y, gamma, beta):
    """Training-mode BatchNorm (per-channel batch stats over all M = N*H*W
    rows) + LeakyReLU(0.2).  y: (M, C) f32, gamma/beta: (1, C) f32."""
    mean = jnp.mean(y, axis=0, keepdims=True)
    diff = y - mean
    var = jnp.mean(diff * diff, axis=0, keepdims=True)
    z = diff * jax.lax.rsqrt(var + _BN_EPS) * gamma + beta
    return jnp.where(z > 0, z, _LRELU_SLOPE * z)


def _conv_bn_lrelu_kernel(cols_ref, w_ref, gamma_ref, beta_ref, o_ref):
    # Single full-K block: one MXU pass, BN + LeakyReLU fused in the epilogue.
    # (No conv bias: BatchNorm's mean subtraction cancels it exactly.)
    y = jnp.dot(cols_ref[...], w_ref[...], preferred_element_type=jnp.float32)
    o_ref[...] = _bn_lrelu(y, gamma_ref[...], beta_ref[...]).astype(o_ref.dtype)


def _conv_bn_lrelu_heads_kernel(n_batch, n_taps,
                                cols_ref, w_ref, gamma_ref, beta_ref,
                                wh_ref, bh_ref, o_ref):
    # conv3 + BN + LeakyReLU + both 4x4/s1/p0 heads, fully fused.
    # cols rows are ordered (ho, wo, n) -> row = s * n_batch + n, so the
    # activation rows belonging to spatial tap s are a contiguous static
    # slice and the head logits are n_taps accumulated (N, C) @ (C, 2) dots.
    # Only the (N, 2) logits leave the kernel; the conv3 activation never
    # touches HBM.
    y = jnp.dot(cols_ref[...], w_ref[...], preferred_element_type=jnp.float32)
    act = _bn_lrelu(y, gamma_ref[...], beta_ref[...])     # (n_taps * N, C) f32

    logits = jnp.zeros((n_batch, o_ref.shape[1]), jnp.float32)
    for s in range(n_taps):                               # static unroll (16)
        a_s = act[s * n_batch:(s + 1) * n_batch, :]       # (N, C) f32
        logits = logits + jnp.dot(a_s, wh_ref[s],
                                  preferred_element_type=jnp.float32)
    o_ref[...] = logits + bh_ref[...]


# ----------------------------------------------------------------------------
# pallas_call wrappers (single full block, grid=(1,))
# ----------------------------------------------------------------------------
def fused_conv_bn_lrelu(cols, w2, gamma, beta, out_dtype=jnp.bfloat16):
    M, K = cols.shape
    C = w2.shape[1]
    return pl.pallas_call(
        _conv_bn_lrelu_kernel,
        out_shape=jax.ShapeDtypeStruct((M, C), out_dtype),
        grid=(1,),
        in_specs=[_full_spec((M, K)), _full_spec((K, C)),
                  _full_spec((1, C)), _full_spec((1, C))],
        out_specs=_full_spec((M, C)),
        compiler_params=pltpu.CompilerParams(
            dimension_semantics=("arbitrary",),
            vmem_limit_bytes=_VMEM_LIMIT),
    )(cols, w2, gamma, beta)


def fused_conv_bn_lrelu_heads(cols, w2, gamma, beta, wh3, bh, n_batch):
    M, K = cols.shape
    C = w2.shape[1]
    n_taps, _, n_heads = wh3.shape
    kernel = functools.partial(_conv_bn_lrelu_heads_kernel, n_batch, n_taps)
    return pl.pallas_call(
        kernel,
        out_shape=jax.ShapeDtypeStruct((n_batch, n_heads), jnp.float32),
        grid=(1,),
        in_specs=[_full_spec((M, K)), _full_spec((K, C)),
                  _full_spec((1, C)), _full_spec((1, C)),
                  _full_spec((n_taps, C, n_heads)), _full_spec((1, n_heads))],
        out_specs=_full_spec((n_batch, n_heads)),
        compiler_params=pltpu.CompilerParams(
            dimension_semantics=("arbitrary",),
            vmem_limit_bytes=_VMEM_LIMIT),
    )(cols, w2, gamma, beta, wh3, bh)


# ----------------------------------------------------------------------------
# Glue: NHWC im2col (pad / strided slice / stack only; contiguous reshape)
# TODO(synk): at production sizes, replace the XLA-side im2col with in-kernel
#             (kh, kw) tap accumulation to avoid the 4x HBM round trip.
# ----------------------------------------------------------------------------
def im2col_nhwc(x_nhwc, k, stride, pad, batch_minor=False):
    # x: (N, H, W, C) -> cols: (rows, k*k*C), column order (kh, kw, c).
    # Row order: (n, ho, wo) by default, (ho, wo, n) if batch_minor=True.
    N, H, W, C = x_nhwc.shape
    if pad > 0:
        x_nhwc = jnp.pad(x_nhwc, ((0, 0), (pad, pad), (pad, pad), (0, 0)))
    Ho = (H + 2 * pad - k) // stride + 1
    Wo = (W + 2 * pad - k) // stride + 1
    slabs = []
    for i in range(k):
        for j in range(k):
            slabs.append(
                x_nhwc[:, i:i + stride * Ho:stride, j:j + stride * Wo:stride, :])
    stacked = jnp.stack(slabs, axis=3)                   # (N, Ho, Wo, k*k, C)
    if batch_minor:
        stacked = stacked.transpose(1, 2, 0, 3, 4)       # (Ho, Wo, N, k*k, C)
    cols = stacked.reshape(-1, k * k * C)
    return cols, Ho, Wo


def _reorder_weight(w):
    # (Cout, Cin, KH, KW) -> (KH*KW*Cin, Cout), matching (kh, kw, c) col order.
    Cout, Cin, KH, KW = w.shape
    return w.transpose(2, 3, 1, 0).reshape(KH * KW * Cin, Cout)


def _heads_weight(w_real, w_clean):
    # Two (1, Cin, KH, KW) head filters -> (KH*KW, Cin, 2), tap s = kh*KW + kw.
    w = jnp.concatenate([w_real, w_clean], axis=0)       # (2, Cin, KH, KW)
    w = jnp.transpose(w, (2, 3, 1, 0))                   # (KH, KW, Cin, 2)
    return w.reshape(-1, w.shape[2], 2)


def conv_block(x_nhwc, w, gamma, beta, stride, pad):
    # Conv(k, s, p) [bias dropped: cancelled by BN] + BatchNorm + LeakyReLU.
    N = x_nhwc.shape[0]
    Cout, Cin, k, _ = w.shape
    cols, Ho, Wo = im2col_nhwc(x_nhwc, k, stride, pad)
    w2 = _reorder_weight(w).astype(jnp.bfloat16)
    out = fused_conv_bn_lrelu(
        cols, w2,
        gamma.reshape(1, Cout).astype(jnp.float32),
        beta.reshape(1, Cout).astype(jnp.float32))
    return out.reshape(N, Ho, Wo, Cout)


def conv3_heads_block(x_nhwc, w3, g3, b3, w_real, b_real, w_clean, b_clean):
    # conv3 block + both heads in ONE pallas_call.
    N = x_nhwc.shape[0]
    Cout, Cin, k, _ = w3.shape
    cols, Ho, Wo = im2col_nhwc(x_nhwc, k, stride=2, pad=1, batch_minor=True)
    kh, kw = w_real.shape[2], w_real.shape[3]
    assert (Ho, Wo) == (kh, kw), (
        "fused heads assume the conv3 feature map equals the 4x4 head kernel")
    w2 = _reorder_weight(w3).astype(jnp.bfloat16)
    wh3 = _heads_weight(w_real, w_clean).astype(jnp.float32)   # (16, Cout, 2)
    bh = jnp.concatenate([b_real, b_clean]).reshape(1, 2).astype(jnp.float32)
    logits = fused_conv_bn_lrelu_heads(
        cols, w2,
        g3.reshape(1, Cout).astype(jnp.float32),
        b3.reshape(1, Cout).astype(jnp.float32),
        wh3, bh, N)                                            # (N, 2) f32
    out_real = logits[:, 0].reshape(N, 1, 1, 1)
    out_clean = logits[:, 1].reshape(N, 1, 1, 1)
    return out_real, out_clean


# ----------------------------------------------------------------------------
# Discriminator forward
# ----------------------------------------------------------------------------
def init_params(key, channels):
    keys = jax.random.split(key, 10)

    def conv_init(k, cout, cin, ksz):
        fan_in = cin * ksz * ksz
        bound = 1.0 / jnp.sqrt(fan_in)
        kw, kb = jax.random.split(k)
        w = jax.random.uniform(kw, (cout, cin, ksz, ksz), jnp.float32, -bound, bound)
        b = jax.random.uniform(kb, (cout,), jnp.float32, -bound, bound)
        return w, b

    p = {}
    p["conv1_w"], p["conv1_b"] = conv_init(keys[0], 64, channels, 4)
    p["bn1_g"], p["bn1_b"] = jnp.ones((64,), jnp.float32), jnp.zeros((64,), jnp.float32)
    p["conv2_w"], p["conv2_b"] = conv_init(keys[1], 128, 64, 4)
    p["bn2_g"], p["bn2_b"] = jnp.ones((128,), jnp.float32), jnp.zeros((128,), jnp.float32)
    p["conv3_w"], p["conv3_b"] = conv_init(keys[2], 256, 128, 4)
    p["bn3_g"], p["bn3_b"] = jnp.ones((256,), jnp.float32), jnp.zeros((256,), jnp.float32)
    p["real_w"], p["real_b"] = conv_init(keys[3], 1, 256, 4)
    p["clean_w"], p["clean_b"] = conv_init(keys[4], 1, 256, 4)
    return p


@jax.jit
def discriminator_forward(params, x):
    # x: (N, C, H, W) float32 (PyTorch NCHW interface).  Single NCHW->NHWC
    # transpose + bf16 cast; activations stay in flattened-NHWC bf16 matrices
    # until the final (N, 1, 1, 1) head outputs.
    x = jnp.transpose(x, (0, 2, 3, 1)).astype(jnp.bfloat16)

    x = conv_block(x, params["conv1_w"], params["bn1_g"], params["bn1_b"],
                   stride=2, pad=1)
    x = conv_block(x, params["conv2_w"], params["bn2_g"], params["bn2_b"],
                   stride=2, pad=1)
    return conv3_heads_block(x, params["conv3_w"], params["bn3_g"],
                             params["bn3_b"], params["real_w"],
                             params["real_b"], params["clean_w"],
                             params["clean_b"])


# ----------------------------------------------------------------------------
# Pure-JAX f32 reference (correctness sanity check; keeps the conv biases,
# which BatchNorm cancels, so it matches the PyTorch module literally)
# ----------------------------------------------------------------------------
def _conv_ref(x, w, b, stride, pad):
    y = jax.lax.conv_general_dilated(
        x, w, (stride, stride), [(pad, pad), (pad, pad)],
        dimension_numbers=("NCHW", "OIHW", "NCHW"))
    return y + b.reshape(1, -1, 1, 1)


def _bn_lrelu_ref(x, g, b):
    mean = jnp.mean(x, axis=(0, 2, 3), keepdims=True)
    var = jnp.mean((x - mean) ** 2, axis=(0, 2, 3), keepdims=True)
    y = (x - mean) * jax.lax.rsqrt(var + _BN_EPS)
    y = y * g.reshape(1, -1, 1, 1) + b.reshape(1, -1, 1, 1)
    return jnp.where(y > 0, y, _LRELU_SLOPE * y)


def _forward_ref(p, x):
    x = _bn_lrelu_ref(_conv_ref(x, p["conv1_w"], p["conv1_b"], 2, 1), p["bn1_g"], p["bn1_b"])
    x = _bn_lrelu_ref(_conv_ref(x, p["conv2_w"], p["conv2_b"], 2, 1), p["bn2_g"], p["bn2_b"])
    x = _bn_lrelu_ref(_conv_ref(x, p["conv3_w"], p["conv3_b"], 2, 1), p["bn3_g"], p["bn3_b"])
    return (_conv_ref(x, p["real_w"], p["real_b"], 1, 0),
            _conv_ref(x, p["clean_w"], p["clean_b"], 1, 0))


if __name__ == "__main__":
    key = jax.random.PRNGKey(0)
    channels = 3
    # Spatial 32x32 (DCGAN): 32 -> 16 -> 8 -> 4 -> (k4, s1, p0) heads -> 1x1.
    x = jax.random.normal(jax.random.fold_in(key, 1), (2, channels, 32, 32), jnp.float32)
    params = init_params(key, channels)

    out_real, out_clean = discriminator_forward(params, x)
    jax.block_until_ready((out_real, out_clean))

    assert out_real.shape == (2, 1, 1, 1) and out_clean.shape == (2, 1, 1, 1)

    # bf16 GEMM operands (f32 accumulation / BN / heads) -> relaxed tolerance.
    ref_real, ref_clean = _forward_ref(params, x)
    assert jnp.allclose(out_real, ref_real, atol=5e-2, rtol=5e-2), (
        float(jnp.max(jnp.abs(out_real - ref_real))))
    assert jnp.allclose(out_clean, ref_clean, atol=5e-2, rtol=5e-2), (
        float(jnp.max(jnp.abs(out_clean - ref_clean))))

    print("KERNEL_OK")
</pallas_src>

<mosaic_0001>
module attributes {stable_mosaic.version = 11 : i64} {
  func.func @_conv_bn_lrelu_kernel(%arg0: i32, %arg1: memref<512x48xbf16, #tpu.memory_space<vmem>>, %arg2: memref<48x64xbf16, #tpu.memory_space<vmem>>, %arg3: memref<1x64xf32, #tpu.memory_space<vmem>>, %arg4: memref<1x64xf32, #tpu.memory_space<vmem>>, %arg5: memref<512x64xbf16, #tpu.memory_space<vmem>>) attributes {dimension_semantics = [#tpu.dimension_semantics<arbitrary>], iteration_bounds = array<i64: 1>, scalar_prefetch = 0 : i64, scratch_operands = 0 : i64, tpu.core_type = #tpu.core_type<tc>, window_params = [{pipeline_mode = #tpu.pipeline_mode<synchronous>, transform_indices = @transform_0, window_bounds = array<i64: 512, 48>}, {pipeline_mode = #tpu.pipeline_mode<synchronous>, transform_indices = @transform_1, window_bounds = array<i64: 48, 64>}, {pipeline_mode = #tpu.pipeline_mode<synchronous>, transform_indices = @transform_2, window_bounds = array<i64: 1, 64>}, {pipeline_mode = #tpu.pipeline_mode<synchronous>, transform_indices = @transform_3, window_bounds = array<i64: 1, 64>}, {pipeline_mode = #tpu.pipeline_mode<synchronous>, transform_indices = @transform_4, window_bounds = array<i64: 512, 64>}]} {
    %c0 = arith.constant 0 : index
    %c0_0 = arith.constant 0 : index
    %0 = vector.load %arg1[%c0, %c0_0] : memref<512x48xbf16, #tpu.memory_space<vmem>>, vector<512x48xbf16>
    %c0_1 = arith.constant 0 : index
    %c0_2 = arith.constant 0 : index
    %1 = vector.load %arg2[%c0_1, %c0_2] : memref<48x64xbf16, #tpu.memory_space<vmem>>, vector<48x64xbf16>
    %cst = arith.constant dense<0.000000e+00> : vector<512x64xf32>
    %2 = tpu.matmul %0, %1, %cst {dimension_numbers = #tpu.dot_dimension_numbers<[1], [0], [0], [1], [0, 0, 1, 1], [], []>} : vector<512x48xbf16>, vector<48x64xbf16>, vector<512x64xf32> -> vector<512x64xf32>
    %c0_3 = arith.constant 0 : index
    %c0_4 = arith.constant 0 : index
    %3 = vector.load %arg3[%c0_3, %c0_4] : memref<1x64xf32, #tpu.memory_space<vmem>>, vector<1x64xf32>
    %c0_5 = arith.constant 0 : index
    %c0_6 = arith.constant 0 : index
    %4 = vector.load %arg4[%c0_5, %c0_6] : memref<1x64xf32, #tpu.memory_space<vmem>>, vector<1x64xf32>
    %cst_7 = arith.constant dense<0.000000e+00> : vector<64xf32>
    %5 = vector.multi_reduction <add>, %2, %cst_7 [0] : vector<512x64xf32> to vector<64xf32>
    %6 = vector.shape_cast %5 : vector<64xf32> to vector<1x64xf32>
    %cst_8 = arith.constant 5.120000e+02 : f32
    %7 = vector.broadcast %cst_8 : f32 to vector<1x64xf32>
    %8 = arith.divf %6, %7 : vector<1x64xf32>
    %9 = vector.broadcast %8 : vector<1x64xf32> to vector<512x64xf32>
    %10 = arith.subf %2, %9 : vector<512x64xf32>
    %11 = arith.mulf %10, %10 : vector<512x64xf32>
    %cst_9 = arith.constant dense<0.000000e+00> : vector<64xf32>
    %12 = vector.multi_reduction <add>, %11, %cst_9 [0] : vector<512x64xf32> to vector<64xf32>
    %13 = vector.shape_cast %12 : vector<64xf32> to vector<1x64xf32>
    %cst_10 = arith.constant 5.120000e+02 : f32
    %14 = vector.broadcast %cst_10 : f32 to vector<1x64xf32>
    %15 = arith.divf %13, %14 : vector<1x64xf32>
    %cst_11 = arith.constant 9.99999974E-6 : f32
    %16 = vector.broadcast %cst_11 : f32 to vector<1x64xf32>
    %17 = arith.addf %15, %16 : vector<1x64xf32>
    %18 = math.rsqrt %17 : vector<1x64xf32>
    %19 = vector.broadcast %18 : vector<1x64xf32> to vector<512x64xf32>
    %20 = arith.mulf %10, %19 : vector<512x64xf32>
    %21 = vector.broadcast %3 : vector<1x64xf32> to vector<512x64xf32>
    %22 = arith.mulf %20, %21 : vector<512x64xf32>
    %23 = vector.broadcast %4 : vector<1x64xf32> to vector<512x64xf32>
    %24 = arith.addf %22, %23 : vector<512x64xf32>
    %cst_12 = arith.constant 0.000000e+00 : f32
    %25 = vector.broadcast %cst_12 : f32 to vector<512x64xf32>
    %26 = arith.cmpf ogt, %24, %25 : vector<512x64xf32>
    %cst_13 = arith.constant 2.000000e-01 : f32
    %27 = vector.broadcast %cst_13 : f32 to vector<512x64xf32>
    %28 = arith.mulf %27, %24 : vector<512x64xf32>
    %29 = arith.select %26, %24, %28 : vector<512x64xi1>, vector<512x64xf32>
    %30 = arith.truncf %29 : vector<512x64xf32> to vector<512x64xbf16>
    %c0_14 = arith.constant 0 : index
    %c0_15 = arith.constant 0 : index
    %31 = vector.load %arg5[%c0_14, %c0_15] : memref<512x64xbf16, #tpu.memory_space<vmem>>, vector<512x64xbf16>
    tpu.vector_store %arg5[%c0_14, %c0_15], %30 {strides = array<i32>} : memref<512x64xbf16, #tpu.memory_space<vmem>>, vector<512x64xbf16>,
    return
  }
  func.func @transform_0(%arg0: i32) -> (i32, i32) {
    %c0_i32 = arith.constant 0 : i32
    %c0_i32_0 = arith.constant 0 : i32
    %c0_i32_1 = arith.constant 0 : i32
    return %c0_i32, %c0_i32_0 : i32, i32
  }
  func.func @transform_1(%arg0: i32) -> (i32, i32) {
    %c0_i32 = arith.constant 0 : i32
    %c0_i32_0 = arith.constant 0 : i32
    %c0_i32_1 = arith.constant 0 : i32
    return %c0_i32, %c0_i32_0 : i32, i32
  }
  func.func @transform_2(%arg0: i32) -> (i32, i32) {
    %c0_i32 = arith.constant 0 : i32
    %c0_i32_0 = arith.constant 0 : i32
    %c0_i32_1 = arith.constant 0 : i32
    return %c0_i32, %c0_i32_0 : i32, i32
  }
  func.func @transform_3(%arg0: i32) -> (i32, i32) {
    %c0_i32 = arith.constant 0 : i32
    %c0_i32_0 = arith.constant 0 : i32
    %c0_i32_1 = arith.constant 0 : i32
    return %c0_i32, %c0_i32_0 : i32, i32
  }
  func.func @transform_4(%arg0: i32) -> (i32, i32) {
    %c0_i32 = arith.constant 0 : i32
    %c0_i32_0 = arith.constant 0 : i32
    %c0_i32_1 = arith.constant 0 : i32
    return %c0_i32, %c0_i32_0 : i32, i32
  }
}

module attributes {stable_mosaic.version = 11 : i64} {
  func.func @_conv_bn_lrelu_kernel(%arg0: i32, %arg1: memref<128x1024xbf16, #tpu.memory_space<vmem>>, %arg2: memref<1024x128xbf16, #tpu.memory_space<vmem>>, %arg3: memref<1x128xf32, #tpu.memory_space<vmem>>, %arg4: memref<1x128xf32, #tpu.memory_space<vmem>>, %arg5: memref<128x128xbf16, #tpu.memory_space<vmem>>) attributes {dimension_semantics = [#tpu.dimension_semantics<arbitrary>], iteration_bounds = array<i64: 1>, scalar_prefetch = 0 : i64, scratch_operands = 0 : i64, tpu.core_type = #tpu.core_type<tc>, window_params = [{pipeline_mode = #tpu.pipeline_mode<synchronous>, transform_indices = @transform_0, window_bounds = array<i64: 128, 1024>}, {pipeline_mode = #tpu.pipeline_mode<synchronous>, transform_indices = @transform_1, window_bounds = array<i64: 1024, 128>}, {pipeline_mode = #tpu.pipeline_mode<synchronous>, transform_indices = @transform_2, window_bounds = array<i64: 1, 128>}, {pipeline_mode = #tpu.pipeline_mode<synchronous>, transform_indices = @transform_3, window_bounds = array<i64: 1, 128>}, {pipeline_mode = #tpu.pipeline_mode<synchronous>, transform_indices = @transform_4, window_bounds = array<i64: 128, 128>}]} {
    %c0 = arith.constant 0 : index
    %c0_0 = arith.constant 0 : index
    %0 = vector.load %arg1[%c0, %c0_0] : memref<128x1024xbf16, #tpu.memory_space<vmem>>, vector<128x1024xbf16>
    %c0_1 = arith.constant 0 : index
    %c0_2 = arith.constant 0 : index
    %1 = vector.load %arg2[%c0_1, %c0_2] : memref<1024x128xbf16, #tpu.memory_space<vmem>>, vector<1024x128xbf16>
    %cst = arith.constant dense<0.000000e+00> : vector<128x128xf32>
    %2 = tpu.matmul %0, %1, %cst {dimension_numbers = #tpu.dot_dimension_numbers<[1], [0], [0], [1], [0, 0, 1, 1], [], []>} : vector<128x1024xbf16>, vector<1024x128xbf16>, vector<128x128xf32> -> vector<128x128xf32>
    %c0_3 = arith.constant 0 : index
    %c0_4 = arith.constant 0 : index
    %3 = vector.load %arg3[%c0_3, %c0_4] : memref<1x128xf32, #tpu.memory_space<vmem>>, vector<1x128xf32>
    %c0_5 = arith.constant 0 : index
    %c0_6 = arith.constant 0 : index
    %4 = vector.load %arg4[%c0_5, %c0_6] : memref<1x128xf32, #tpu.memory_space<vmem>>, vector<1x128xf32>
    %cst_7 = arith.constant dense<0.000000e+00> : vector<128xf32>
    %5 = vector.multi_reduction <add>, %2, %cst_7 [0] : vector<128x128xf32> to vector<128xf32>
    %6 = vector.shape_cast %5 : vector<128xf32> to vector<1x128xf32>
    %cst_8 = arith.constant 1.280000e+02 : f32
    %7 = vector.broadcast %cst_8 : f32 to vector<1x128xf32>
    %8 = arith.divf %6, %7 : vector<1x128xf32>
    %9 = vector.broadcast %8 : vector<1x128xf32> to vector<128x128xf32>
    %10 = arith.subf %2, %9 : vector<128x128xf32>
    %11 = arith.mulf %10, %10 : vector<128x128xf32>
    %cst_9 = arith.constant dense<0.000000e+00> : vector<128xf32>
    %12 = vector.multi_reduction <add>, %11, %cst_9 [0] : vector<128x128xf32> to vector<128xf32>
    %13 = vector.shape_cast %12 : vector<128xf32> to vector<1x128xf32>
    %cst_10 = arith.constant 1.280000e+02 : f32
    %14 = vector.broadcast %cst_10 : f32 to vector<1x128xf32>
    %15 = arith.divf %13, %14 : vector<1x128xf32>
    %cst_11 = arith.constant 9.99999974E-6 : f32
    %16 = vector.broadcast %cst_11 : f32 to vector<1x128xf32>
    %17 = arith.addf %15, %16 : vector<1x128xf32>
    %18 = math.rsqrt %17 : vector<1x128xf32>
    %19 = vector.broadcast %18 : vector<1x128xf32> to vector<128x128xf32>
    %20 = arith.mulf %10, %19 : vector<128x128xf32>
    %21 = vector.broadcast %3 : vector<1x128xf32> to vector<128x128xf32>
    %22 = arith.mulf %20, %21 : vector<128x128xf32>
    %23 = vector.broadcast %4 : vector<1x128xf32> to vector<128x128xf32>
    %24 = arith.addf %22, %23 : vector<128x128xf32>
    %cst_12 = arith.constant 0.000000e+00 : f32
    %25 = vector.broadcast %cst_12 : f32 to vector<128x128xf32>
    %26 = arith.cmpf ogt, %24, %25 : vector<128x128xf32>
    %cst_13 = arith.constant 2.000000e-01 : f32
    %27 = vector.broadcast %cst_13 : f32 to vector<128x128xf32>
    %28 = arith.mulf %27, %24 : vector<128x128xf32>
    %29 = arith.select %26, %24, %28 : vector<128x128xi1>, vector<128x128xf32>
    %30 = arith.truncf %29 : vector<128x128xf32> to vector<128x128xbf16>
    %c0_14 = arith.constant 0 : index
    %c0_15 = arith.constant 0 : index
    %31 = vector.load %arg5[%c0_14, %c0_15] : memref<128x128xbf16, #tpu.memory_space<vmem>>, vector<128x128xbf16>
    tpu.vector_store %arg5[%c0_14, %c0_15], %30 {strides = array<i32>} : memref<128x128xbf16, #tpu.memory_space<vmem>>, vector<128x128xbf16>,
    return
  }
  func.func @transform_0(%arg0: i32) -> (i32, i32) {
    %c0_i32 = arith.constant 0 : i32
    %c0_i32_0 = arith.constant 0 : i32
    %c0_i32_1 = arith.constant 0 : i32
    return %c0_i32, %c0_i32_0 : i32, i32
  }
  func.func @transform_1(%arg0: i32) -> (i32, i32) {
    %c0_i32 = arith.constant 0 : i32
    %c0_i32_0 = arith.constant 0 : i32
    %c0_i32_1 = arith.constant 0 : i32
    return %c0_i32, %c0_i32_0 : i32, i32
  }
  func.func @transform_2(%arg0: i32) -> (i32, i32) {
    %c0_i32 = arith.constant 0 : i32
    %c0_i32_0 = arith.constant 0 : i32
    %c0_i32_1 = arith.constant 0 : i32
    return %c0_i32, %c0_i32_0 : i32, i32
  }
  func.func @transform_3(%arg0: i32) -> (i32, i32) {
    %c0_i32 = arith.constant 0 : i32
    %c0_i32_0 = arith.constant 0 : i32
    %c0_i32_1 = arith.constant 0 : i32
    return %c0_i32, %c0_i32_0 : i32, i32
  }
  func.func @transform_4(%arg0: i32) -> (i32, i32) {
    %c0_i32 = arith.constant 0 : i32
    %c0_i32_0 = arith.constant 0 : i32
    %c0_i32_1 = arith.constant 0 : i32
    return %c0_i32, %c0_i32_0 : i32, i32
  }
}

module attributes {stable_mosaic.version = 11 : i64} {
  func.func @_conv_bn_lrelu_heads_kernel(%arg0: i32, %arg1: memref<32x2048xbf16, #tpu.memory_space<vmem>>, %arg2: memref<2048x256xbf16, #tpu.memory_space<vmem>>, %arg3: memref<1x256xf32, #tpu.memory_space<vmem>>, %arg4: memref<1x256xf32, #tpu.memory_space<vmem>>, %arg5: memref<16x256x2xf32, #tpu.memory_space<vmem>>, %arg6: memref<1x2xf32, #tpu.memory_space<vmem>>, %arg7: memref<2x2xf32, #tpu.memory_space<vmem>>) attributes {dimension_semantics = [#tpu.dimension_semantics<arbitrary>], iteration_bounds = array<i64: 1>, scalar_prefetch = 0 : i64, scratch_operands = 0 : i64, tpu.core_type = #tpu.core_type<tc>, window_params = [{pipeline_mode = #tpu.pipeline_mode<synchronous>, transform_indices = @transform_0, window_bounds = array<i64: 32, 2048>}, {pipeline_mode = #tpu.pipeline_mode<synchronous>, transform_indices = @transform_1, window_bounds = array<i64: 2048, 256>}, {pipeline_mode = #tpu.pipeline_mode<synchronous>, transform_indices = @transform_2, window_bounds = array<i64: 1, 256>}, {pipeline_mode = #tpu.pipeline_mode<synchronous>, transform_indices = @transform_3, window_bounds = array<i64: 1, 256>}, {pipeline_mode = #tpu.pipeline_mode<synchronous>, transform_indices = @transform_4, window_bounds = array<i64: 16, 256, 2>}, {pipeline_mode = #tpu.pipeline_mode<synchronous>, transform_indices = @transform_5, window_bounds = array<i64: 1, 2>}, {pipeline_mode = #tpu.pipeline_mode<synchronous>, transform_indices = @transform_6, window_bounds = array<i64: 2, 2>}]} {
    %c0 = arith.constant 0 : index
    %c0_0 = arith.constant 0 : index
    %0 = vector.load %arg1[%c0, %c0_0] : memref<32x2048xbf16, #tpu.memory_space<vmem>>, vector<32x2048xbf16>
    %c0_1 = arith.constant 0 : index
    %c0_2 = arith.constant 0 : index
    %1 = vector.load %arg2[%c0_1, %c0_2] : memref<2048x256xbf16, #tpu.memory_space<vmem>>, vector<2048x256xbf16>
    %cst = arith.constant dense<0.000000e+00> : vector<32x256xf32>
    %2 = tpu.matmul %0, %1, %cst {dimension_numbers = #tpu.dot_dimension_numbers<[1], [0], [0], [1], [0, 0, 1, 1], [], []>} : vector<32x2048xbf16>, vector<2048x256xbf16>, vector<32x256xf32> -> vector<32x256xf32>
    %c0_3 = arith.constant 0 : index
    %c0_4 = arith.constant 0 : index
    %3 = vector.load %arg3[%c0_3, %c0_4] : memref<1x256xf32, #tpu.memory_space<vmem>>, vector<1x256xf32>
    %c0_5 = arith.constant 0 : index
    %c0_6 = arith.constant 0 : index
    %4 = vector.load %arg4[%c0_5, %c0_6] : memref<1x256xf32, #tpu.memory_space<vmem>>, vector<1x256xf32>
    %cst_7 = arith.constant dense<0.000000e+00> : vector<256xf32>
    %5 = vector.multi_reduction <add>, %2, %cst_7 [0] : vector<32x256xf32> to vector<256xf32>
    %6 = vector.shape_cast %5 : vector<256xf32> to vector<1x256xf32>
    %cst_8 = arith.constant 3.200000e+01 : f32
    %7 = vector.broadcast %cst_8 : f32 to vector<1x256xf32>
    %8 = arith.divf %6, %7 : vector<1x256xf32>
    %9 = vector.broadcast %8 : vector<1x256xf32> to vector<32x256xf32>
    %10 = arith.subf %2, %9 : vector<32x256xf32>
    %11 = arith.mulf %10, %10 : vector<32x256xf32>
    %cst_9 = arith.constant dense<0.000000e+00> : vector<256xf32>
    %12 = vector.multi_reduction <add>, %11, %cst_9 [0] : vector<32x256xf32> to vector<256xf32>
    %13 = vector.shape_cast %12 : vector<256xf32> to vector<1x256xf32>
    %cst_10 = arith.constant 3.200000e+01 : f32
    %14 = vector.broadcast %cst_10 : f32 to vector<1x256xf32>
    %15 = arith.divf %13, %14 : vector<1x256xf32>
    %cst_11 = arith.constant 9.99999974E-6 : f32
    %16 = vector.broadcast %cst_11 : f32 to vector<1x256xf32>
    %17 = arith.addf %15, %16 : vector<1x256xf32>
    %18 = math.rsqrt %17 : vector<1x256xf32>
    %19 = vector.broadcast %18 : vector<1x256xf32> to vector<32x256xf32>
    %20 = arith.mulf %10, %19 : vector<32x256xf32>
    %21 = vector.broadcast %3 : vector<1x256xf32> to vector<32x256xf32>
    %22 = arith.mulf %20, %21 : vector<32x256xf32>
    %23 = vector.broadcast %4 : vector<1x256xf32> to vector<32x256xf32>
    %24 = arith.addf %22, %23 : vector<32x256xf32>
    %cst_12 = arith.constant 0.000000e+00 : f32
    %25 = vector.broadcast %cst_12 : f32 to vector<32x256xf32>
    %26 = arith.cmpf ogt, %24, %25 : vector<32x256xf32>
    %cst_13 = arith.constant 2.000000e-01 : f32
    %27 = vector.broadcast %cst_13 : f32 to vector<32x256xf32>
    %28 = arith.mulf %27, %24 : vector<32x256xf32>
    %29 = arith.select %26, %24, %28 : vector<32x256xi1>, vector<32x256xf32>
    %cst_14 = arith.constant 0.000000e+00 : f32
    %30 = vector.broadcast %cst_14 : f32 to vector<2x2xf32>
    %31 = vector.extract_strided_slice %29 {offsets = [0, 0], sizes = [2, 256], strides = [1, 1]} : vector<32x256xf32> to vector<2x256xf32>
    %c0_15 = arith.constant 0 : index
    %c0_16 = arith.constant 0 : index
    %c0_17 = arith.constant 0 : index
    %32 = vector.load %arg5[%c0_15, %c0_16, %c0_17] : memref<16x256x2xf32, #tpu.memory_space<vmem>>, vector<1x256x2xf32>
    %33 = vector.shape_cast %32 : vector<1x256x2xf32> to vector<256x2xf32>
    %cst_18 = arith.constant dense<0.000000e+00> : vector<2x2xf32>
    %34 = tpu.matmul %31, %33, %cst_18 {dimension_numbers = #tpu.dot_dimension_numbers<[1], [0], [0], [1], [0, 0, 1, 1], [], []>} : vector<2x256xf32>, vector<256x2xf32>, vector<2x2xf32> -> vector<2x2xf32>
    %35 = arith.addf %30, %34 : vector<2x2xf32>
    %36 = vector.extract_strided_slice %29 {offsets = [2, 0], sizes = [2, 256], strides = [1, 1]} : vector<32x256xf32> to vector<2x256xf32>
    %c1 = arith.constant 1 : index
    %c0_19 = arith.constant 0 : index
    %c0_20 = arith.constant 0 : index
    %37 = vector.load %arg5[%c1, %c0_19, %c0_20] : memref<16x256x2xf32, #tpu.memory_space<vmem>>, vector<1x256x2xf32>
    %38 = vector.shape_cast %37 : vector<1x256x2xf32> to vector<256x2xf32>
    %cst_21 = arith.constant dense<0.000000e+00> : vector<2x2xf32>
    %39 = tpu.matmul %36, %38, %cst_21 {dimension_numbers = #tpu.dot_dimension_numbers<[1], [0], [0], [1], [0, 0, 1, 1], [], []>} : vector<2x256xf32>, vector<256x2xf32>, vector<2x2xf32> -> vector<2x2xf32>
    %40 = arith.addf %35, %39 : vector<2x2xf32>
    %41 = vector.extract_strided_slice %29 {offsets = [4, 0], sizes = [2, 256], strides = [1, 1]} : vector<32x256xf32> to vector<2x256xf32>
    %c2 = arith.constant 2 : index
    %c0_22 = arith.constant 0 : index
    %c0_23 = arith.constant 0 : index
    %42 = vector.load %arg5[%c2, %c0_22, %c0_23] : memref<16x256x2xf32, #tpu.memory_space<vmem>>, vector<1x256x2xf32>
    %43 = vector.shape_cast %42 : vector<1x256x2xf32> to vector<256x2xf32>
    %cst_24 = arith.constant dense<0.000000e+00> : vector<2x2xf32>
    %44 = tpu.matmul %41, %43, %cst_24 {dimension_numbers = #tpu.dot_dimension_numbers<[1], [0], [0], [1], [0, 0, 1, 1], [], []>} : vector<2x256xf32>, vector<256x2xf32>, vector<2x2xf32> -> vector<2x2xf32>
    %45 = arith.addf %40, %44 : vector<2x2xf32>
    %46 = vector.extract_strided_slice %29 {offsets = [6, 0], sizes = [2, 256], strides = [1, 1]} : vector<32x256xf32> to vector<2x256xf32>
    %c3 = arith.constant 3 : index
    %c0_25 = arith.constant 0 : index
    %c0_26 = arith.constant 0 : index
    %47 = vector.load %arg5[%c3, %c0_25, %c0_26] : memref<16x256x2xf32, #tpu.memory_space<vmem>>, vector<1x256x2xf32>
    %48 = vector.shape_cast %47 : vector<1x256x2xf32> to vector<256x2xf32>
    %cst_27 = arith.constant dense<0.000000e+00> : vector<2x2xf32>
    %49 = tpu.matmul %46, %48, %cst_27 {dimension_numbers = #tpu.dot_dimension_numbers<[1], [0], [0], [1], [0, 0, 1, 1], [], []>} : vector<2x256xf32>, vector<256x2xf32>, vector<2x2xf32> -> vector<2x2xf32>
    %50 = arith.addf %45, %49 : vector<2x2xf32>
    %51 = vector.extract_strided_slice %29 {offsets = [8, 0], sizes = [2, 256], strides = [1, 1]} : vector<32x256xf32> to vector<2x256xf32>
    %c4 = arith.constant 4 : index
    %c0_28 = arith.constant 0 : index
    %c0_29 = arith.constant 0 : index
    %52 = vector.load %arg5[%c4, %c0_28, %c0_29] : memref<16x256x2xf32, #tpu.memory_space<vmem>>, vector<1x256x2xf32>
    %53 = vector.shape_cast %52 : vector<1x256x2xf32> to vector<256x2xf32>
    %cst_30 = arith.constant dense<0.000000e+00> : vector<2x2xf32>
    %54 = tpu.matmul %51, %53, %cst_30 {dimension_numbers = #tpu.dot_dimension_numbers<[1], [0], [0], [1], [0, 0, 1, 1], [], []>} : vector<2x256xf32>, vector<256x2xf32>, vector<2x2xf32> -> vector<2x2xf32>
    %55 = arith.addf %50, %54 : vector<2x2xf32>
    %56 = vector.extract_strided_slice %29 {offsets = [10, 0], sizes = [2, 256], strides = [1, 1]} : vector<32x256xf32> to vector<2x256xf32>
    %c5 = arith.constant 5 : index
    %c0_31 = arith.constant 0 : index
    %c0_32 = arith.constant 0 : index
    %57 = vector.load %arg5[%c5, %c0_31, %c0_32] : memref<16x256x2xf32, #tpu.memory_space<vmem>>, vector<1x256x2xf32>
    %58 = vector.shape_cast %57 : vector<1x256x2xf32> to vector<256x2xf32>
    %cst_33 = arith.constant dense<0.000000e+00> : vector<2x2xf32>
    %59 = tpu.matmul %56, %58, %cst_33 {dimension_numbers = #tpu.dot_dimension_numbers<[1], [0], [0], [1], [0, 0, 1, 1], [], []>} : vector<2x256xf32>, vector<256x2xf32>, vector<2x2xf32> -> vector<2x2xf32>
    %60 = arith.addf %55, %59 : vector<2x2xf32>
    %61 = vector.extract_strided_slice %29 {offsets = [12, 0], sizes = [2, 256], strides = [1, 1]} : vector<32x256xf32> to vector<2x256xf32>
    %c6 = arith.constant 6 : index
    %c0_34 = arith.constant 0 : index
    %c0_35 = arith.constant 0 : index
    %62 = vector.load %arg5[%c6, %c0_34, %c0_35] : memref<16x256x2xf32, #tpu.memory_space<vmem>>, vector<1x256x2xf32>
    %63 = vector.shape_cast %62 : vector<1x256x2xf32> to vector<256x2xf32>
    %cst_36 = arith.constant dense<0.000000e+00> : vector<2x2xf32>
    %64 = tpu.matmul %61, %63, %cst_36 {dimension_numbers = #tpu.dot_dimension_numbers<[1], [0], [0], [1], [0, 0, 1, 1], [], []>} : vector<2x256xf32>, vector<256x2xf32>, vector<2x2xf32> -> vector<2x2xf32>
    %65 = arith.addf %60, %64 : vector<2x2xf32>
    %66 = vector.extract_strided_slice %29 {offsets = [14, 0], sizes = [2, 256], strides = [1, 1]} : vector<32x256xf32> to vector<2x256xf32>
    %c7 = arith.constant 7 : index
    %c0_37 = arith.constant 0 : index
    %c0_38 = arith.constant 0 : index
    %67 = vector.load %arg5[%c7, %c0_37, %c0_38] : memref<16x256x2xf32, #tpu.memory_space<vmem>>, vector<1x256x2xf32>
    %68 = vector.shape_cast %67 : vector<1x256x2xf32> to vector<256x2xf32>
    %cst_39 = arith.constant dense<0.000000e+00> : vector<2x2xf32>
    %69 = tpu.matmul %66, %68, %cst_39 {dimension_numbers = #tpu.dot_dimension_numbers<[1], [0], [0], [1], [0, 0, 1, 1], [], []>} : vector<2x256xf32>, vector<256x2xf32>, vector<2x2xf32> -> vector<2x2xf32>
    %70 = arith.addf %65, %69 : vector<2x2xf32>
    %71 = vector.extract_strided_slice %29 {offsets = [16, 0], sizes = [2, 256], strides = [1, 1]} : vector<32x256xf32> to vector<2x256xf32>
    %c8 = arith.constant 8 : index
    %c0_40 = arith.constant 0 : index
    %c0_41 = arith.constant 0 : index
    %72 = vector.load %arg5[%c8, %c0_40, %c0_41] : memref<16x256x2xf32, #tpu.memory_space<vmem>>, vector<1x256x2xf32>
    %73 = vector.shape_cast %72 : vector<1x256x2xf32> to vector<256x2xf32>
    %cst_42 = arith.constant dense<0.000000e+00> : vector<2x2xf32>
    %74 = tpu.matmul %71, %73, %cst_42 {dimension_numbers = #tpu.dot_dimension_numbers<[1], [0], [0], [1], [0, 0, 1, 1], [], []>} : vector<2x256xf32>, vector<256x2xf32>, vector<2x2xf32> -> vector<2x2xf32>
    %75 = arith.addf %70, %74 : vector<2x2xf32>
    %76 = vector.extract_strided_slice %29 {offsets = [18, 0], sizes = [2, 256], strides = [1, 1]} : vector<32x256xf32> to vector<2x256xf32>
    %c9 = arith.constant 9 : index
    %c0_43 = arith.constant 0 : index
    %c0_44 = arith.constant 0 : index
    %77 = vector.load %arg5[%c9, %c0_43, %c0_44] : memref<16x256x2xf32, #tpu.memory_space<vmem>>, vector<1x256x2xf32>
    %78 = vector.shape_cast %77 : vector<1x256x2xf32> to vector<256x2xf32>
    %cst_45 = arith.constant dense<0.000000e+00> : vector<2x2xf32>
    %79 = tpu.matmul %76, %78, %cst_45 {dimension_numbers = #tpu.dot_dimension_numbers<[1], [0], [0], [1], [0, 0, 1, 1], [], []>} : vector<2x256xf32>, vector<256x2xf32>, vector<2x2xf32> -> vector<2x2xf32>
    %80 = arith.addf %75, %79 : vector<2x2xf32>
    %81 = vector.extract_strided_slice %29 {offsets = [20, 0], sizes = [2, 256], strides = [1, 1]} : vector<32x256xf32> to vector<2x256xf32>
    %c10 = arith.constant 10 : index
    %c0_46 = arith.constant 0 : index
    %c0_47 = arith.constant 0 : index
    %82 = vector.load %arg5[%c10, %c0_46, %c0_47] : memref<16x256x2xf32, #tpu.memory_space<vmem>>, vector<1x256x2xf32>
    %83 = vector.shape_cast %82 : vector<1x256x2xf32> to vector<256x2xf32>
    %cst_48 = arith.constant dense<0.000000e+00> : vector<2x2xf32>
    %84 = tpu.matmul %81, %83, %cst_48 {dimension_numbers = #tpu.dot_dimension_numbers<[1], [0], [0], [1], [0, 0, 1, 1], [], []>} : vector<2x256xf32>, vector<256x2xf32>, vector<2x2xf32> -> vector<2x2xf32>
    %85 = arith.addf %80, %84 : vector<2x2xf32>
    %86 = vector.extract_strided_slice %29 {offsets = [22, 0], sizes = [2, 256], strides = [1, 1]} : vector<32x256xf32> to vector<2x256xf32>
    %c11 = arith.constant 11 : index
    %c0_49 = arith.constant 0 : index
    %c0_50 = arith.constant 0 : index
    %87 = vector.load %arg5[%c11, %c0_49, %c0_50] : memref<16x256x2xf32, #tpu.memory_space<vmem>>, vector<1x256x2xf32>
    %88 = vector.shape_cast %87 : vector<1x256x2xf32> to vector<256x2xf32>
    %cst_51 = arith.constant dense<0.000000e+00> : vector<2x2xf32>
    %89 = tpu.matmul %86, %88, %cst_51 {dimension_numbers = #tpu.dot_dimension_numbers<[1], [0], [0], [1], [0, 0, 1, 1], [], []>} : vector<2x256xf32>, vector<256x2xf32>, vector<2x2xf32> -> vector<2x2xf32>
    %90 = arith.addf %85, %89 : vector<2x2xf32>
    %91 = vector.extract_strided_slice %29 {offsets = [24, 0], sizes = [2, 256], strides = [1, 1]} : vector<32x256xf32> to vector<2x256xf32>
    %c12 = arith.constant 12 : index
    %c0_52 = arith.constant 0 : index
    %c0_53 = arith.constant 0 : index
    %92 = vector.load %arg5[%c12, %c0_52, %c0_53] : memref<16x256x2xf32, #tpu.memory_space<vmem>>, vector<1x256x2xf32>
    %93 = vector.shape_cast %92 : vector<1x256x2xf32> to vector<256x2xf32>
    %cst_54 = arith.constant dense<0.000000e+00> : vector<2x2xf32>
    %94 = tpu.matmul %91, %93, %cst_54 {dimension_numbers = #tpu.dot_dimension_numbers<[1], [0], [0], [1], [0, 0, 1, 1], [], []>} : vector<2x256xf32>, vector<256x2xf32>, vector<2x2xf32> -> vector<2x2xf32>
    %95 = arith.addf %90, %94 : vector<2x2xf32>
    %96 = vector.extract_strided_slice %29 {offsets = [26, 0], sizes = [2, 256], strides = [1, 1]} : vector<32x256xf32> to vector<2x256xf32>
    %c13 = arith.constant 13 : index
    %c0_55 = arith.constant 0 : index
    %c0_56 = arith.constant 0 : index
    %97 = vector.load %arg5[%c13, %c0_55, %c0_56] : memref<16x256x2xf32, #tpu.memory_space<vmem>>, vector<1x256x2xf32>
    %98 = vector.shape_cast %97 : vector<1x256x2xf32> to vector<256x2xf32>
    %cst_57 = arith.constant dense<0.000000e+00> : vector<2x2xf32>
    %99 = tpu.matmul %96, %98, %cst_57 {dimension_numbers = #tpu.dot_dimension_numbers<[1], [0], [0], [1], [0, 0, 1, 1], [], []>} : vector<2x256xf32>, vector<256x2xf32>, vector<2x2xf32> -> vector<2x2xf32>
    %100 = arith.addf %95, %99 : vector<2x2xf32>
    %101 = vector.extract_strided_slice %29 {offsets = [28, 0], sizes = [2, 256], strides = [1, 1]} : vector<32x256xf32> to vector<2x256xf32>
    %c14 = arith.constant 14 : index
    %c0_58 = arith.constant 0 : index
    %c0_59 = arith.constant 0 : index
    %102 = vector.load %arg5[%c14, %c0_58, %c0_59] : memref<16x256x2xf32, #tpu.memory_space<vmem>>, vector<1x256x2xf32>
    %103 = vector.shape_cast %102 : vector<1x256x2xf32> to vector<256x2xf32>
    %cst_60 = arith.constant dense<0.000000e+00> : vector<2x2xf32>
    %104 = tpu.matmul %101, %103, %cst_60 {dimension_numbers = #tpu.dot_dimension_numbers<[1], [0], [0], [1], [0, 0, 1, 1], [], []>} : vector<2x256xf32>, vector<256x2xf32>, vector<2x2xf32> -> vector<2x2xf32>
    %105 = arith.addf %100, %104 : vector<2x2xf32>
    %106 = vector.extract_strided_slice %29 {offsets = [30, 0], sizes = [2, 256], strides = [1, 1]} : vector<32x256xf32> to vector<2x256xf32>
    %c15 = arith.constant 15 : index
    %c0_61 = arith.constant 0 : index
    %c0_62 = arith.constant 0 : index
    %107 = vector.load %arg5[%c15, %c0_61, %c0_62] : memref<16x256x2xf32, #tpu.memory_space<vmem>>, vector<1x256x2xf32>
    %108 = vector.shape_cast %107 : vector<1x256x2xf32> to vector<256x2xf32>
    %cst_63 = arith.constant dense<0.000000e+00> : vector<2x2xf32>
    %109 = tpu.matmul %106, %108, %cst_63 {dimension_numbers = #tpu.dot_dimension_numbers<[1], [0], [0], [1], [0, 0, 1, 1], [], []>} : vector<2x256xf32>, vector<256x2xf32>, vector<2x2xf32> -> vector<2x2xf32>
    %110 = arith.addf %105, %109 : vector<2x2xf32>
    %c0_64 = arith.constant 0 : index
    %c0_65 = arith.constant 0 : index
    %111 = vector.load %arg6[%c0_64, %c0_65] : memref<1x2xf32, #tpu.memory_space<vmem>>, vector<1x2xf32>
    %112 = vector.broadcast %111 : vector<1x2xf32> to vector<2x2xf32>
    %113 = arith.addf %110, %112 : vector<2x2xf32>
    %c0_66 = arith.constant 0 : index
    %c0_67 = arith.constant 0 : index
    %114 = vector.load %arg7[%c0_66, %c0_67] : memref<2x2xf32, #tpu.memory_space<vmem>>, vector<2x2xf32>
    tpu.vector_store %arg7[%c0_66, %c0_67], %113 {strides = array<i32>} : memref<2x2xf32, #tpu.memory_space<vmem>>, vector<2x2xf32>,
    return
  }
  func.func @transform_0(%arg0: i32) -> (i32, i32) {
    %c0_i32 = arith.constant 0 : i32
    %c0_i32_0 = arith.constant 0 : i32
    %c0_i32_1 = arith.constant 0 : i32
    return %c0_i32, %c0_i32_0 : i32, i32
  }
  func.func @transform_1(%arg0: i32) -> (i32, i32) {
    %c0_i32 = arith.constant 0 : i32
    %c0_i32_0 = arith.constant 0 : i32
    %c0_i32_1 = arith.constant 0 : i32
    return %c0_i32, %c0_i32_0 : i32, i32
  }
  func.func @transform_2(%arg0: i32) -> (i32, i32) {
    %c0_i32 = arith.constant 0 : i32
    %c0_i32_0 = arith.constant 0 : i32
    %c0_i32_1 = arith.constant 0 : i32
    return %c0_i32, %c0_i32_0 : i32, i32
  }
  func.func @transform_3(%arg0: i32) -> (i32, i32) {
    %c0_i32 = arith.constant 0 : i32
    %c0_i32_0 = arith.constant 0 : i32
    %c0_i32_1 = arith.constant 0 : i32
    return %c0_i32, %c0_i32_0 : i32, i32
  }
  func.func @transform_4(%arg0: i32) -> (i32, i32, i32) {
    %c0_i32 = arith.constant 0 : i32
    %c0_i32_0 = arith.constant 0 : i32
    %c0_i32_1 = arith.constant 0 : i32
    %c0_i32_2 = arith.constant 0 : i32
    return %c0_i32, %c0_i32_0, %c0_i32_1 : i32, i32, i32
  }
  func.func @transform_5(%arg0: i32) -> (i32, i32) {
    %c0_i32 = arith.constant 0 : i32
    %c0_i32_0 = arith.constant 0 : i32
    %c0_i32_1 = arith.constant 0 : i32
    return %c0_i32, %c0_i32_0 : i32, i32
  }
  func.func @transform_6(%arg0: i32) -> (i32, i32) {
    %c0_i32 = arith.constant 0 : i32
    %c0_i32_0 = arith.constant 0 : i32
    %c0_i32_1 = arith.constant 0 : i32
    return %c0_i32, %c0_i32_0 : i32, i32
  }
}

</mosaic_0001>

<bundles_post_ra>
// kernel: discriminator_forward.3
= control target key start
LH: loop header
LB: loop body
LE: loop exit
PB: predicated region body
PF: predicated region fallthrough
CT: control target
= control target key end

     0   :  { %vm266_vm0 = vcmask 392192   ;;  %vm534_vm1 = vcmask 523264   ;;  %s3895_s1 = inlined_call_operand.vmem [shape: bf16[48,64], index: 1, kind: input, shape index: {}]   ;;  %s3896_s0 = inlined_call_operand.vmem [shape: bf16[512,48], index: 0, kind: input, shape index: {}]   ;;  %s3897_s2 = inlined_call_operand.vmem [shape: f32[1,64], index: 2, kind: input, shape index: {}]   ;;  %s3898_s3 = inlined_call_operand.vmem [shape: f32[1,64], index: 3, kind: input, shape index: {}]   ;;  %s3899_s4 = inlined_call_operand.vmem [shape: bf16[512,64], index: 4, kind: output, shape index: {}]  }
   0x1   :  { %v1678_v0 = vld [vmem:[%s3895_s1 + $0x10] sm:$0xff]  ;;  %v1677_v1 = vld [vmem:[%s3895_s1 + $0x8] sm:$0xff]  ;;  %v1676_v2 = vld [vmem:[%s3895_s1] sm:$0xff] }
   0x2   :  { %368 = vmatpush.bf16.msra.mxu0 %v1678_v0  ;;  %1679 = vmatpush.bf16.msra.mxu1 %v1678_v0  ;;  %v1644_v3 = vld [vmem:[%s3896_s0] sm:$0xff]  ;;  %v1645_v5 = vld [vmem:[%s3896_s0 + $0x8] sm:$0xff]  ;;  %v1646_v8 = vld [vmem:[%s3896_s0 + $0x10] sm:$0xff] }
   0x3   :  { %1680 = vmatpush.bf16.msra.mxu2 %v1678_v0  ;;  %1681 = vmatpush.bf16.msra.mxu3 %v1678_v0  ;;  %v1652_v4 = vld [vmem:[%s3896_s0 + $0x40] sm:$0xff]  ;;  %v1653_v6 = vld [vmem:[%s3896_s0 + $0x48] sm:$0xff]  ;;  %v1654_v9 = vld [vmem:[%s3896_s0 + $0x50] sm:$0xff] }
   0x4   :  { %v1660_v7 = vld [vmem:[%s3896_s0 + $0x80] sm:$0xff]  ;;  %v1661_v10 = vld [vmem:[%s3896_s0 + $0x88] sm:$0xff]  ;;  %v1647_v11 = vld [vmem:[%s3896_s0 + $0x18] sm:$0xff] }
   0x5   :  { %v1655_v12 = vld [vmem:[%s3896_s0 + $0x58] sm:$0xff]  ;;  %v1662_v13 = vld [vmem:[%s3896_s0 + $0x90] sm:$0xff]  ;;  %v1668_v14 = vld [vmem:[%s3896_s0 + $0xc0] sm:$0xff] }
   0x6   :  { %369 = vmatpush.bf16.msra.mxu0 %v1677_v1  ;;  %1682 = vmatpush.bf16.msra.mxu1 %v1677_v1  ;;  %v1648_v15 = vld [vmem:[%s3896_s0 + $0x20] sm:$0xff]  ;;  %v1663_v17 = vld [vmem:[%s3896_s0 + $0x98] sm:$0xff]  ;;  %v1669_v18 = vld [vmem:[%s3896_s0 + $0xc8] sm:$0xff] }
   0x7   :  { %1683 = vmatpush.bf16.msra.mxu2 %v1677_v1  ;;  %1684 = vmatpush.bf16.msra.mxu3 %v1677_v1  ;;  %v1656_v16 = vld [vmem:[%s3896_s0 + $0x60] sm:$0xff]  ;;  %v1649_v19 = vld [vmem:[%s3896_s0 + $0x28] sm:$0xff]  ;;  %v1670_v22 = vld [vmem:[%s3896_s0 + $0xd0] sm:$0xff] }
   0x8   :  { %v1657_v20 = vld [vmem:[%s3896_s0 + $0x68] sm:$0xff]  ;;  %v1664_v21 = vld [vmem:[%s3896_s0 + $0xa0] sm:$0xff]  ;;  %v1650_v23 = vld [vmem:[%s3896_s0 + $0x30] sm:$0xff] }
   0x9   :  { %v1658_v24 = vld [vmem:[%s3896_s0 + $0x70] sm:$0xff]  ;;  %v1665_v25 = vld [vmem:[%s3896_s0 + $0xa8] sm:$0xff]  ;;  %v1671_v26 = vld [vmem:[%s3896_s0 + $0xd8] sm:$0xff] }
   0xa   :  { %370 = vmatpush.bf16.msra.mxu0 %v1676_v2  ;;  %1685 = vmatpush.bf16.msra.mxu1 %v1676_v2  ;;  %v1651_v27 = vld [vmem:[%s3896_s0 + $0x38] sm:$0xff]  ;;  %v1666_v29 = vld [vmem:[%s3896_s0 + $0xb0] sm:$0xff]  ;;  %v1672_v30 = vld [vmem:[%s3896_s0 + $0xe0] sm:$0xff] }
   0xb   :  { %1686 = vmatpush.bf16.msra.mxu2 %v1676_v2  ;;  %1687 = vmatpush.bf16.msra.mxu3 %v1676_v2  ;;  %v1659_v28 = vld [vmem:[%s3896_s0 + $0x78] sm:$0xff]  ;;  %v1673_v34 = vld [vmem:[%s3896_s0 + $0xe8] sm:$0xff]  ;;  %v1674_v38 = vld [vmem:[%s3896_s0 + $0xf0] sm:$0xff] }
   0xc   :  { %v1667_v33 = vld [vmem:[%s3896_s0 + $0xb8] sm:$0xff] }
   0xd   :  { %1612 = vmatmul.msk.bf16.vlgmr.msra.gmra.mxu0 %vm266_vm0, %v1644_v3  ;;  %1620 = vmatmul.msk.bf16.vlgmr.msra.gmra.mxu1 %vm266_vm0, %v1652_v4  ;;  %v1675_v44 = vld [vmem:[%s3896_s0 + $0xf8] sm:$0xff] }
   0xe   :  { %1628 = vmatmul.msk.bf16.vlgmr.msra.gmra.mxu2 %vm266_vm0, %v1660_v7  ;;  %1636 = vmatmul.msk.bf16.vlgmr.msra.gmra.mxu3 %vm266_vm0, %v1668_v14 }
  0x1d   :  { %1613 = vmatmul.msk.bf16.gmra.mxu0 %vm266_vm0, %v1645_v5  ;;  %1621 = vmatmul.msk.bf16.gmra.mxu1 %vm266_vm0, %v1653_v6 }
  0x1e   :  { %1629 = vmatmul.msk.bf16.gmra.mxu2 %vm266_vm0, %v1661_v10  ;;  %1637 = vmatmul.msk.bf16.gmra.mxu3 %vm266_vm0, %v1669_v18 }
  0x2d   :  { %1614 = vmatmul.msk.bf16.gmra.mxu0 %vm266_vm0, %v1646_v8  ;;  %1622 = vmatmul.msk.bf16.gmra.mxu1 %vm266_vm0, %v1654_v9 }
  0x2e   :  { %1630 = vmatmul.msk.bf16.gmra.mxu2 %vm266_vm0, %v1662_v13  ;;  %1638 = vmatmul.msk.bf16.gmra.mxu3 %vm266_vm0, %v1670_v22 }
  0x3d   :  { %1615 = vmatmul.msk.bf16.gmra.mxu0 %vm266_vm0, %v1647_v11  ;;  %1623 = vmatmul.msk.bf16.gmra.mxu1 %vm266_vm0, %v1655_v12 }
  0x3e   :  { %1631 = vmatmul.msk.bf16.gmra.mxu2 %vm266_vm0, %v1663_v17  ;;  %1639 = vmatmul.msk.bf16.gmra.mxu3 %vm266_vm0, %v1671_v26 }
  0x4d   :  { %1616 = vmatmul.msk.bf16.gmra.mxu0 %vm266_vm0, %v1648_v15  ;;  %1624 = vmatmul.msk.bf16.gmra.mxu1 %vm266_vm0, %v1656_v16 }
  0x4e   :  { %1632 = vmatmul.msk.bf16.gmra.mxu2 %vm266_vm0, %v1664_v21  ;;  %1640 = vmatmul.msk.bf16.gmra.mxu3 %vm266_vm0, %v1672_v30 }
  0x5d   :  { %1617 = vmatmul.msk.bf16.gmra.mxu0 %vm266_vm0, %v1649_v19  ;;  %1625 = vmatmul.msk.bf16.gmra.mxu1 %vm266_vm0, %v1657_v20 }
  0x5e   :  { %1633 = vmatmul.msk.bf16.gmra.mxu2 %vm266_vm0, %v1665_v25  ;;  %1641 = vmatmul.msk.bf16.gmra.mxu3 %vm266_vm0, %v1673_v34 }
  0x6d   :  { %1618 = vmatmul.msk.bf16.gmra.mxu0 %vm266_vm0, %v1650_v23  ;;  %1626 = vmatmul.msk.bf16.gmra.mxu1 %vm266_vm0, %v1658_v24 }
  0x6e   :  { %1634 = vmatmul.msk.bf16.gmra.mxu2 %vm266_vm0, %v1666_v29  ;;  %1642 = vmatmul.msk.bf16.gmra.mxu3 %vm266_vm0, %v1674_v38 }
  0x7d   :  { %1619 = vmatmul.msk.bf16.gmra.mxu0 %vm266_vm0, %v1651_v27  ;;  %1627 = vmatmul.msk.bf16.gmra.mxu1 %vm266_vm0, %v1659_v28 }
  0x7e   :  { %1635 = vmatmul.msk.bf16.gmra.mxu2 %vm266_vm0, %v1667_v33  ;;  %1643 = vmatmul.msk.bf16.gmra.mxu3 %vm266_vm0, %v1675_v44  ;;  %vm1403_vm0 = vcmask 519168  }
  0x8a   :  { %v1842_v31 = vpop.f32.mrf.mxu0  ;;  %v1844_v32 = vpop.f32.mrf.mxu1 }
  0x8b   :  { %v535_v4 = vsel %vm534_vm1, %v1842_v31, 0.0 }
  0x91   :  { %v1870_v42 = vpop.f32.mrf.mxu2  ;;  %v1904_v58 = vpop.f32.mrf.mxu3 }
  0x92   :  { %v1854_v35 = vpop.f32.mrf.mxu0  ;;  %v1856_v36 = vpop.f32.mrf.mxu1 }
  0x93   :  { %v536_v1 = vsel %vm534_vm1, %v1854_v35, 0.0 }
  0x94   :  { %v537_v6 = vadd.f32 %v536_v1, %v535_v4 }
  0x99   :  { %v1882_v47 = vpop.f32.mrf.mxu2  ;;  %v1912_v62 = vpop.f32.mrf.mxu3 }
  0x9a   :  { %v1858_v37 = vpop.f32.mrf.mxu0  ;;  %v1863_v39 = vpop.f32.mrf.mxu1 }
  0x9b   :  { %v538_v5 = vsel %vm534_vm1, %v1858_v37, 0.0 }
  0x9c   :  { %v539_v8 = vadd.f32 %v538_v5, %v537_v6 }
  0xa1   :  { %v1888_v50 = vpop.f32.mrf.mxu2  ;;  %v1922_v3 = vpop.f32.mrf.mxu3 }
  0xa2   :  { %v1866_v40 = vpop.f32.mrf.mxu0  ;;  %v1868_v41 = vpop.f32.mrf.mxu1  ;;  %3956 = vst [vmem:[#allocation4_spill] sm:$0xff] %v1922_v3 }
  0xa3   :  { %v540_v7 = vsel %vm534_vm1, %v1866_v40, 0.0 }
  0xa4   :  { %v541_v11 = vadd.f32 %v540_v7, %v539_v8 }
  0xa9   :  { %v1894_v53 = vpop.f32.mrf.mxu2  ;;  %v1942_v18 = vpop.f32.mrf.mxu3 }
  0xaa   :  { %v1872_v43 = vpop.f32.mrf.mxu0  ;;  %v1880_v46 = vpop.f32.mrf.mxu1  ;;  %3954 = vst [vmem:[#allocation2_spill] sm:$0xff] %v1894_v53 }
  0xab   :  { %v542_v10 = vsel %vm534_vm1, %v1872_v43, 0.0 }
  0xac   :  { %v543_v13 = vadd.f32 %v542_v10, %v541_v11 }
  0xb1   :  { %v1900_v56 = vpop.f32.mrf.mxu2  ;;  %v1962_v38 = vpop.f32.mrf.mxu3 }
  0xb2   :  { %v1878_v45 = vpop.f32.mrf.mxu0  ;;  %v1886_v49 = vpop.f32.mrf.mxu1  ;;  %3955 = vst [vmem:[#allocation3_spill] sm:$0xff] %v1900_v56 }
  0xb3   :  { %v544_v12 = vsel %vm534_vm1, %v1878_v45, 0.0 }
  0xb4   :  { %v545_v17 = vadd.f32 %v544_v12, %v543_v13 }
  0xb9   :  { %v1910_v61 = vpop.f32.mrf.mxu2 }
  0xba   :  { %v1884_v48 = vpop.f32.mrf.mxu0  ;;  %v1892_v52 = vpop.f32.mrf.mxu1 }
  0xbb   :  { %v546_v15 = vsel %vm534_vm1, %v1884_v48, 0.0 }
  0xbc   :  { %v547_v20 = vadd.f32 %v546_v15, %v545_v17  ;;  %v1978_v17 = vpop.f32.mrf.mxu3 }
  0xc1   :  { %v1920_v2 = vpop.f32.mrf.mxu2 }
  0xc2   :  { %v1890_v51 = vpop.f32.mrf.mxu0  ;;  %v1898_v55 = vpop.f32.mrf.mxu1 }
  0xc3   :  { %v548_v19 = vsel %vm534_vm1, %v1890_v51, 0.0 }
  0xc4   :  { %v549_v23 = vadd.f32 %v548_v19, %v547_v20  ;;  %v566_v19 = vsel %vm534_vm1, %v1844_v32, 0.0 }
  0xc9   :  { %v1940_v16 = vpop.f32.mrf.mxu2 }
  0xca   :  { %v1896_v54 = vpop.f32.mrf.mxu0  ;;  %v1908_v60 = vpop.f32.mrf.mxu1 }
  0xcb   :  { %v550_v22 = vsel %vm534_vm1, %v1896_v54, 0.0 }
  0xcc   :  { %v551_v25 = vadd.f32 %v550_v22, %v549_v23  ;;  %v568_v22 = vsel %vm534_vm1, %v1856_v36, 0.0 }
  0xd1   :  { %v1958_v30 = vpop.f32.mrf.mxu2 }
  0xd2   :  { %v1902_v57 = vpop.f32.mrf.mxu0  ;;  %v1916_v0 = vpop.f32.mrf.mxu1  ;;  %3957 = vst [vmem:[#allocation5_spill] sm:$0xff] %v1958_v30 }
  0xd3   :  { %v552_v24 = vsel %vm534_vm1, %v1902_v57, 0.0 }
  0xd4   :  { %v553_v27 = vadd.f32 %v552_v24, %v551_v25  ;;  %v570_v24 = vsel %vm534_vm1, %v1863_v39, 0.0 }
  0xd9   :  { %v1976_v15 = vpop.f32.mrf.mxu2 }
  0xda   :  { %v1906_v59 = vpop.f32.mrf.mxu0  ;;  %v1936_v14 = vpop.f32.mrf.mxu1  ;;  %3958 = vst [vmem:[#allocation6_spill] sm:$0xff] %v1976_v15 }
  0xdb   :  { %v554_v26 = vsel %vm534_vm1, %v1906_v59, 0.0 }
  0xdc   :  { %v555_v33 = vadd.f32 %v554_v26, %v553_v27  ;;  %v572_v26 = vsel %vm534_vm1, %v1868_v41, 0.0 }
  0xe2   :  { %v1914_v63 = vpop.f32.mrf.mxu0  ;;  %v1954_v28 = vpop.f32.mrf.mxu1 }
  0xe3   :  { %v556_v29 = vsel %vm534_vm1, %v1914_v63, 0.0 }
  0xe4   :  { %v557_v1 = vadd.f32 %v556_v29, %v555_v33  ;;  %v574_v33 = vsel %vm534_vm1, %v1880_v46, 0.0 }
  0xea   :  { %v1930_v9 = vpop.f32.mrf.mxu0  ;;  %v1972_v11 = vpop.f32.mrf.mxu1 }
  0xeb   :  { %v558_v44 = vsel %vm534_vm1, %v1930_v9, 0.0 }
  0xec   :  { %v559_v5 = vadd.f32 %v558_v44, %v557_v1  ;;  %v1992_v1 = vpop.f32.mrf.mxu2 }
  0xf2   :  { %v1946_v21 = vpop.f32.mrf.mxu0  ;;  %v1988_v29 = vpop.f32.mrf.mxu1 }
  0xf3   :  { %v560_v4 = vsel %vm534_vm1, %v1946_v21, 0.0  ;;  %3959 = vst [vmem:[#allocation7_spill] sm:$0xff] %v1988_v29 }
  0xf4   :  { %v561_v7 = vadd.f32 %v560_v4, %v559_v5  ;;  %v1994_v4 = vpop.f32.mrf.mxu3  ;;  %v576_v5 = vsel %vm534_vm1, %v1886_v49, 0.0 }
  0xfa   :  { %v1960_v34 = vpop.f32.mrf.mxu0 }
  0xfb   :  { %v562_v6 = vsel %vm534_vm1, %v1960_v34, 0.0 }
  0xfc   :  { %v563_v8 = vadd.f32 %v562_v6, %v561_v7  ;;  %v578_v7 = vsel %vm534_vm1, %v1892_v52, 0.0 }
 0x102   :  { %v1970_v10 = vpop.f32.mrf.mxu0 }
 0x103   :  { %v564_v12 = vsel %vm534_vm1, %v1970_v10, 0.0 }
 0x104   :  { %v565_v13 = vadd.f32 %v564_v12, %v563_v8  ;;  %v580_v12 = vsel %vm534_vm1, %v1898_v55, 0.0 }
 0x106   :  { %v567_v20 = vadd.f32 %v566_v19, %v565_v13  ;;  %v582_v19 = vsel %vm534_vm1, %v1908_v60, 0.0 }
 0x108   :  { %v569_v23 = vadd.f32 %v568_v22, %v567_v20  ;;  %v2004_v22 = vpop.f32.mrf.mxu1 }
 0x109   :  { %3960 = vst [vmem:[#allocation8_spill] sm:$0xff] %v2004_v22 }
 0x10a   :  { %v571_v25 = vadd.f32 %v570_v24, %v569_v23  ;;  %v584_v23 = vsel %vm534_vm1, %v1916_v0, 0.0 }
 0x10c   :  { %v573_v27 = vadd.f32 %v572_v26, %v571_v25  ;;  %v2008_v25 = vpop.f32.mrf.mxu2  ;;  %v2010_v26 = vpop.f32.mrf.mxu3 }
 0x10d   :  { %3961 = vst [vmem:[#allocation9_spill] sm:$0xff] %v2010_v26 }
 0x10e   :  { %v575_v44 = vadd.f32 %v574_v33, %v573_v27  ;;  %v586_v27 = vsel %vm534_vm1, %v1936_v14, 0.0 }
 0x110   :  { %v577_v6 = vadd.f32 %v576_v5, %v575_v44  ;;  %v588_v44 = vsel %vm534_vm1, %v1954_v28, 0.0 }
 0x112   :  { %v579_v8 = vadd.f32 %v578_v7, %v577_v6  ;;  %v590_v6 = vsel %vm534_vm1, %v1972_v11, 0.0 }
 0x114   :  { %v581_v13 = vadd.f32 %v580_v12, %v579_v8  ;;  %v592_v8 = vsel %vm534_vm1, %v1988_v29, 0.0 }
 0x116   :  { %v583_v20 = vadd.f32 %v582_v19, %v581_v13  ;;  %v2020_v13 = vpop.f32.mrf.mxu1  ;;  %v594_v19 = vsel %vm534_vm1, %v2004_v22, 0.0 }
 0x117   :  { %3962 = vst [vmem:[#allocation10_spill] sm:$0xff] %v2020_v13 }
 0x118   :  { %v585_v24 = vadd.f32 %v584_v23, %v583_v20  ;;  %v2024_v23 = vpop.f32.mrf.mxu2 }
 0x11a   :  { %v587_v33 = vadd.f32 %v586_v27, %v585_v24  ;;  %v2026_v24 = vpop.f32.mrf.mxu3  ;;  %v596_v27 = vsel %vm534_vm1, %v2020_v13, 0.0 }
 0x11b   :  { %3963 = vst [vmem:[#allocation11_spill] sm:$0xff] %v2026_v24 }
 0x11c   :  { %v589_v5 = vadd.f32 %v588_v44, %v587_v33  ;;  %v598_v44 = vsel %vm534_vm1, %v1870_v42, 0.0 }
 0x11e   :  { %v591_v7 = vadd.f32 %v590_v6, %v589_v5  ;;  %v600_v6 = vsel %vm534_vm1, %v1882_v47, 0.0 }
 0x120   :  { %v593_v12 = vadd.f32 %v592_v8, %v591_v7  ;;  %v602_v8 = vsel %vm534_vm1, %v1888_v50, 0.0  ;;  %v2038_v29 = vpop.f32.mrf.mxu2 }
 0x121   :  { %3964 = vst [vmem:[#allocation12_spill] sm:$0xff] %v2038_v29 }
 0x122   :  { %v595_v20 = vadd.f32 %v594_v19, %v593_v12  ;;  %v604_v19 = vsel %vm534_vm1, %v1894_v53, 0.0  ;;  %v2040_v13 = vpop.f32.mrf.mxu3 }
 0x123   :  { %3965 = vst [vmem:[#allocation13_spill] sm:$0xff] %v2040_v13 }
 0x124   :  { %v597_v33 = vadd.f32 %v596_v27, %v595_v20  ;;  %v606_v20 = vsel %vm534_vm1, %v1900_v56, 0.0 }
 0x126   :  { %v599_v5 = vadd.f32 %v598_v44, %v597_v33  ;;  %v608_v33 = vsel %vm534_vm1, %v1910_v61, 0.0 }
 0x128   :  { %v601_v7 = vadd.f32 %v600_v6, %v599_v5  ;;  %v610_v5 = vsel %vm534_vm1, %v1920_v2, 0.0  ;;  %v2052_v53 = vpop.f32.mrf.mxu2 }
 0x12a   :  { %v603_v12 = vadd.f32 %v602_v8, %v601_v7  ;;  %v612_v7 = vsel %vm534_vm1, %v1940_v16, 0.0  ;;  %v2054_v56 = vpop.f32.mrf.mxu3 }
 0x12b   :  { %3966 = vst [vmem:[#allocation14_spill] sm:$0xff] %v2054_v56 }
 0x12c   :  { %v605_v22 = vadd.f32 %v604_v19, %v603_v12  ;;  %v614_v12 = vsel %vm534_vm1, %v1958_v30, 0.0 }
 0x12e   :  { %v607_v27 = vadd.f32 %v606_v20, %v605_v22  ;;  %v616_v22 = vsel %vm534_vm1, %v1976_v15, 0.0 }
 0x130   :  { %v609_v44 = vadd.f32 %v608_v33, %v607_v27  ;;  %v618_v27 = vsel %vm534_vm1, %v1992_v1, 0.0  ;;  %v2066_v30 = vpop.f32.mrf.mxu2 }
 0x132   :  { %v611_v6 = vadd.f32 %v610_v5, %v609_v44  ;;  %v620_v44 = vsel %vm534_vm1, %v2008_v25, 0.0  ;;  %v2068_v15 = vpop.f32.mrf.mxu3 }
 0x133   :  { %3967 = vst [vmem:[#allocation15_spill] sm:$0xff] %v2068_v15 }
 0x134   :  { %v613_v8 = vadd.f32 %v612_v7, %v611_v6  ;;  %v622_v6 = vsel %vm534_vm1, %v2024_v23, 0.0 }
 0x136   :  { %v615_v19 = vadd.f32 %v614_v12, %v613_v8  ;;  %v624_v8 = vsel %vm534_vm1, %v2038_v29, 0.0 }
 0x138   :  { %v617_v20 = vadd.f32 %v616_v22, %v615_v19  ;;  %v626_v19 = vsel %vm534_vm1, %v2052_v53, 0.0 }
 0x13a   :  { %v619_v33 = vadd.f32 %v618_v27, %v617_v20  ;;  %v628_v20 = vsel %vm534_vm1, %v2066_v30, 0.0  ;;  %v2080_v29 = vpop.f32.mrf.mxu3 }
 0x13b   :  { %3968 = vst [vmem:[#allocation16_spill] sm:$0xff] %v2080_v29 }
 0x13c   :  { %v621_v5 = vadd.f32 %v620_v44, %v619_v33  ;;  %v630_v33 = vsel %vm534_vm1, %v1904_v58, 0.0 }
 0x13e   :  { %v623_v7 = vadd.f32 %v622_v6, %v621_v5  ;;  %v632_v5 = vsel %vm534_vm1, %v1912_v62, 0.0 }
 0x140   :  { %v625_v12 = vadd.f32 %v624_v8, %v623_v7  ;;  %v634_v7 = vsel %vm534_vm1, %v1922_v3, 0.0 }
 0x142   :  { %v627_v22 = vadd.f32 %v626_v19, %v625_v12  ;;  %v636_v12 = vsel %vm534_vm1, %v1942_v18, 0.0  ;;  %v2092_v3 = vpop.f32.mrf.mxu3 }
 0x143   :  { %3969 = vst [vmem:[#allocation17_spill] sm:$0xff] %v2092_v3 }
 0x144   :  { %v629_v27 = vadd.f32 %v628_v20, %v627_v22  ;;  %v638_v22 = vsel %vm534_vm1, %v1962_v38, 0.0 }
 0x146   :  { %v631_v44 = vadd.f32 %v630_v33, %v629_v27  ;;  %v640_v27 = vsel %vm534_vm1, %v1978_v17, 0.0 }
 0x148   :  { %v633_v6 = vadd.f32 %v632_v5, %v631_v44  ;;  %v642_v44 = vsel %vm534_vm1, %v1994_v4, 0.0 }
 0x14a   :  { %v635_v8 = vadd.f32 %v634_v7, %v633_v6  ;;  %v644_v6 = vsel %vm534_vm1, %v2010_v26, 0.0  ;;  %v2102_v26 = vpop.f32.mrf.mxu3 }
 0x14b   :  { %3970 = vst [vmem:[#allocation18_spill] sm:$0xff] %v2102_v26 }
 0x14c   :  { %v637_v19 = vadd.f32 %v636_v12, %v635_v8  ;;  %v646_v8 = vsel %vm534_vm1, %v2026_v24, 0.0 }
 0x14e   :  { %v639_v20 = vadd.f32 %v638_v22, %v637_v19  ;;  %v648_v19 = vsel %vm534_vm1, %v2040_v13, 0.0 }
 0x150   :  { %v641_v33 = vadd.f32 %v640_v27, %v639_v20  ;;  %v650_v20 = vsel %vm534_vm1, %v2054_v56, 0.0 }
 0x152   :  { %v643_v5 = vadd.f32 %v642_v44, %v641_v33  ;;  %v652_v33 = vsel %vm534_vm1, %v2068_v15, 0.0  ;;  %v2110_v56 = vpop.f32.mrf.mxu3 }
 0x154   :  { %v645_v7 = vadd.f32 %v644_v6, %v643_v5  ;;  %v654_v5 = vsel %vm534_vm1, %v2080_v29, 0.0 }
 0x156   :  { %v647_v12 = vadd.f32 %v646_v8, %v645_v7  ;;  %v656_v7 = vsel %vm534_vm1, %v2092_v3, 0.0 }
 0x158   :  { %v649_v22 = vadd.f32 %v648_v19, %v647_v12  ;;  %v658_v12 = vsel %vm534_vm1, %v2102_v26, 0.0 }
 0x15a   :  { %v651_v27 = vadd.f32 %v650_v20, %v649_v22  ;;  %v660_v22 = vsel %vm534_vm1, %v2110_v56, 0.0 }
 0x15c   :  { %v653_v44 = vadd.f32 %v652_v33, %v651_v27  ;;  %v1695_v27 = vmov 512.0  }
 0x15d   :  { %1691 = vrcp.f32 %v1695_v27 }
 0x15e   :  { %v655_v6 = vadd.f32 %v654_v5, %v653_v44 }
 0x160   :  { %v657_v8 = vadd.f32 %v656_v7, %v655_v6 }
 0x162   :  { %v659_v19 = vadd.f32 %v658_v12, %v657_v8 }
 0x163   :  { %v1692_v15 = vpop.eup %1691 }
 0x164   :  { %v661_v20 = vadd.f32 %v660_v22, %v659_v19  ;;  %v669_v44 = vmul.f32 512.0, %v1692_v15  ;;  %vm673_vm2 = vweird.f32 %v1692_v15 }
 0x166   :  { %v662_v33 = vrot.slane %v661_v20, 4  ;;  %v670_v13 = vsub.f32 1.0, %v669_v44 }
 0x168   :  { %v663_v29 = vadd.f32 %v662_v33, %v661_v20  ;;  %v671_v6 = vmul.f32 %v1692_v15, %v670_v13 }
 0x16a   :  { %v664_v5 = vrot.slane %v663_v29, 2  ;;  %v672_v24 = vadd.f32 %v1692_v15, %v671_v6 }
 0x16c   :  { %v665_v3 = vadd.f32 %v664_v5, %v663_v29  ;;  %v2114_v12 = vsel %vm673_vm2, %v1692_v15, %v672_v24 }
 0x16e   :  { %v666_v7 = vrot.slane %v665_v3, 1 }
 0x170   :  { %v667_v8 = vadd.f32 %v666_v7, %v665_v3 }
 0x172   :  { %v2117_v26 = vmul.f32 %v2114_v12, %v667_v8 }
 0x174   :  { %v2121_v19 = vsub.f32 %v1842_v31, %v2117_v26  ;;  %v2125_v22 = vsub.f32 %v1854_v35, %v2117_v26  ;;  %v2129_v29 = vsub.f32 %v1858_v37, %v2117_v26  ;;  %v2133_v3 = vsub.f32 %v1866_v40, %v2117_v26 }
 0x175   :  { %v2141_v31 = vsub.f32 %v1872_v43, %v2117_v26  ;;  %v2147_v37 = vsub.f32 %v1878_v45, %v2117_v26  ;;  %v2155_v33 = vsub.f32 %v1884_v48, %v2117_v26  ;;  %v2162_v45 = vsub.f32 %v1890_v51, %v2117_v26 }
 0x176   :  { %v740_v15 = vmul.f32 %v2121_v19, %v2121_v19  ;;  %v741_v13 = vmul.f32 %v2125_v22, %v2125_v22  ;;  %v742_v35 = vmul.f32 %v2129_v29, %v2129_v29  ;;  %v743_v40 = vmul.f32 %v2133_v3, %v2133_v3 }
 0x177   :  { %v744_v43 = vmul.f32 %v2141_v31, %v2141_v31  ;;  %v745_v6 = vmul.f32 %v2147_v37, %v2147_v37  ;;  %v2169_v48 = vsub.f32 %v1896_v54, %v2117_v26  ;;  %v2176_v51 = vsub.f32 %v1902_v57, %v2117_v26 }
 0x178   :  { %v804_v24 = vsel %vm534_vm1, %v740_v15, 0.0  ;;  %v805_v20 = vsel %vm534_vm1, %v741_v13, 0.0  ;;  %v807_v44 = vsel %vm534_vm1, %v742_v35, 0.0  ;;  %v809_v7 = vsel %vm534_vm1, %v743_v40, 0.0 }
 0x179   :  { %v806_v27 = vadd.f32 %v805_v20, %v804_v24  ;;  %v746_v15 = vmul.f32 %v2155_v33, %v2155_v33  ;;  %v811_v13 = vsel %vm534_vm1, %v744_v43, 0.0  ;;  %v747_v24 = vmul.f32 %v2162_v45, %v2162_v45 }
 0x17a   :  { %v813_v40 = vsel %vm534_vm1, %v745_v6, 0.0  ;;  %v2183_v54 = vsub.f32 %v1906_v59, %v2117_v26  ;;  %v2190_v57 = vsub.f32 %v1914_v63, %v2117_v26  ;;  %v2197_v59 = vsub.f32 %v1930_v9, %v2117_v26 }
 0x17b   :  { %v808_v5 = vadd.f32 %v807_v44, %v806_v27  ;;  %v748_v27 = vmul.f32 %v2169_v48, %v2169_v48  ;;  %v815_v43 = vsel %vm534_vm1, %v746_v15, 0.0  ;;  %v817_v6 = vsel %vm534_vm1, %v747_v24, 0.0 }
 0x17c   :  { %v2204_v63 = vsub.f32 %v1946_v21, %v2117_v26  ;;  %v2211_v9 = vsub.f32 %v1960_v34, %v2117_v26  ;;  %v2218_v21 = vsub.f32 %v1970_v10, %v2117_v26  ;;  %v2225_v34 = vsub.f32 %v1844_v32, %v2117_v26 }
 0x17d   :  { %v810_v8 = vadd.f32 %v809_v7, %v808_v5  ;;  %v749_v5 = vmul.f32 %v2176_v51, %v2176_v51  ;;  %v819_v15 = vsel %vm534_vm1, %v748_v27, 0.0  ;;  %v2232_v10 = vsub.f32 %v1856_v36, %v2117_v26 }
 0x17e   :  { %v2239_v32 = vsub.f32 %v1863_v39, %v2117_v26  ;;  %v2246_v36 = vsub.f32 %v1868_v41, %v2117_v26  ;;  %v2253_v39 = vsub.f32 %v1880_v46, %v2117_v26  ;;  %v2260_v41 = vsub.f32 %v1886_v49, %v2117_v26 }
 0x17f   :  { %v812_v35 = vadd.f32 %v811_v13, %v810_v8  ;;  %v750_v8 = vmul.f32 %v2183_v54, %v2183_v54  ;;  %v821_v24 = vsel %vm534_vm1, %v749_v5, 0.0  ;;  %v2267_v46 = vsub.f32 %v1892_v52, %v2117_v26 }
 0x180   :  { %v2274_v49 = vsub.f32 %v1898_v55, %v2117_v26  ;;  %v2281_v52 = vsub.f32 %v1908_v60, %v2117_v26  ;;  %v2288_v55 = vsub.f32 %v1916_v0, %v2117_v26  ;;  %v2295_v60 = vsub.f32 %v1936_v14, %v2117_v26 }
 0x181   :  { %v814_v20 = vadd.f32 %v813_v40, %v812_v35  ;;  %v751_v35 = vmul.f32 %v2190_v57, %v2190_v57  ;;  %v823_v27 = vsel %vm534_vm1, %v750_v8, 0.0  ;;  %v2302_v0 = vsub.f32 %v1954_v28, %v2117_v26 }
 0x182   :  { %v2309_v14 = vsub.f32 %v1972_v11, %v2117_v26 }
 0x183   :  { %v816_v44 = vadd.f32 %v815_v43, %v814_v20  ;;  %v752_v20 = vmul.f32 %v2197_v59, %v2197_v59  ;;  %v825_v5 = vsel %vm534_vm1, %v751_v35, 0.0 }
 0x185   :  { %v818_v7 = vadd.f32 %v817_v6, %v816_v44  ;;  %v753_v44 = vmul.f32 %v2204_v63, %v2204_v63  ;;  %v827_v8 = vsel %vm534_vm1, %v752_v20, 0.0 }
 0x187   :  { %v820_v13 = vadd.f32 %v819_v15, %v818_v7  ;;  %v754_v7 = vmul.f32 %v2211_v9, %v2211_v9  ;;  %v829_v35 = vsel %vm534_vm1, %v753_v44, 0.0 }
 0x189   :  { %v822_v40 = vadd.f32 %v821_v24, %v820_v13  ;;  %v755_v13 = vmul.f32 %v2218_v21, %v2218_v21  ;;  %v831_v20 = vsel %vm534_vm1, %v754_v7, 0.0 }
 0x18b   :  { %v824_v43 = vadd.f32 %v823_v27, %v822_v40  ;;  %v756_v40 = vmul.f32 %v2225_v34, %v2225_v34  ;;  %v833_v44 = vsel %vm534_vm1, %v755_v13, 0.0 }
 0x18d   :  { %v826_v6 = vadd.f32 %v825_v5, %v824_v43  ;;  %v757_v43 = vmul.f32 %v2232_v10, %v2232_v10  ;;  %v835_v7 = vsel %vm534_vm1, %v756_v40, 0.0 }
 0x18f   :  { %v828_v15 = vadd.f32 %v827_v8, %v826_v6  ;;  %v758_v6 = vmul.f32 %v2239_v32, %v2239_v32  ;;  %v837_v13 = vsel %vm534_vm1, %v757_v43, 0.0 }
 0x191   :  { %v830_v24 = vadd.f32 %v829_v35, %v828_v15  ;;  %v759_v15 = vmul.f32 %v2246_v36, %v2246_v36  ;;  %v839_v40 = vsel %vm534_vm1, %v758_v6, 0.0 }
 0x193   :  { %v832_v27 = vadd.f32 %v831_v20, %v830_v24  ;;  %v760_v24 = vmul.f32 %v2253_v39, %v2253_v39  ;;  %v841_v43 = vsel %vm534_vm1, %v759_v15, 0.0 }
 0x195   :  { %v834_v5 = vadd.f32 %v833_v44, %v832_v27  ;;  %v761_v27 = vmul.f32 %v2260_v41, %v2260_v41  ;;  %v843_v6 = vsel %vm534_vm1, %v760_v24, 0.0 }
 0x197   :  { %v836_v8 = vadd.f32 %v835_v7, %v834_v5  ;;  %v762_v5 = vmul.f32 %v2267_v46, %v2267_v46  ;;  %v845_v15 = vsel %vm534_vm1, %v761_v27, 0.0 }
 0x199   :  { %v838_v35 = vadd.f32 %v837_v13, %v836_v8  ;;  %v763_v8 = vmul.f32 %v2274_v49, %v2274_v49  ;;  %v847_v24 = vsel %vm534_vm1, %v762_v5, 0.0 }
 0x19b   :  { %v840_v20 = vadd.f32 %v839_v40, %v838_v35  ;;  %v764_v35 = vmul.f32 %v2281_v52, %v2281_v52  ;;  %v849_v27 = vsel %vm534_vm1, %v763_v8, 0.0 }
 0x19d   :  { %v842_v44 = vadd.f32 %v841_v43, %v840_v20  ;;  %v765_v20 = vmul.f32 %v2288_v55, %v2288_v55  ;;  %v851_v5 = vsel %vm534_vm1, %v764_v35, 0.0 }
 0x19f   :  { %v844_v7 = vadd.f32 %v843_v6, %v842_v44  ;;  %v766_v44 = vmul.f32 %v2295_v60, %v2295_v60  ;;  %v853_v8 = vsel %vm534_vm1, %v765_v20, 0.0 }
 0x1a1   :  { %v846_v13 = vadd.f32 %v845_v15, %v844_v7  ;;  %v3971_v7 = vld [vmem:[#allocation7_spill] sm:$0xff]  ;;  %v767_v15 = vmul.f32 %v2302_v0, %v2302_v0  ;;  %v855_v35 = vsel %vm534_vm1, %v766_v44, 0.0 }
 0x1a2   :  { %v2316_v28 = vsub.f32 %v3971_v7, %v2117_v26 }
 0x1a3   :  { %v848_v40 = vadd.f32 %v847_v24, %v846_v13  ;;  %v3972_v24 = vld [vmem:[#allocation8_spill] sm:$0xff]  ;;  %v857_v20 = vsel %vm534_vm1, %v767_v15, 0.0 }
 0x1a4   :  { %v2323_v11 = vsub.f32 %v3972_v24, %v2117_v26  ;;  %v769_v7 = vmul.f32 %v2316_v28, %v2316_v28 }
 0x1a5   :  { %v850_v43 = vadd.f32 %v849_v27, %v848_v40  ;;  %v768_v40 = vmul.f32 %v2309_v14, %v2309_v14 }
 0x1a6   :  { %v770_v24 = vmul.f32 %v2323_v11, %v2323_v11  ;;  %v861_v15 = vsel %vm534_vm1, %v769_v7, 0.0 }
 0x1a7   :  { %v852_v6 = vadd.f32 %v851_v5, %v850_v43  ;;  %v3973_v43 = vld [vmem:[#allocation10_spill] sm:$0xff]  ;;  %v859_v44 = vsel %vm534_vm1, %v768_v40, 0.0 }
 0x1a8   :  { %v2330_v5 = vsub.f32 %v3973_v43, %v2117_v26  ;;  %v863_v40 = vsel %vm534_vm1, %v770_v24, 0.0 }
 0x1a9   :  { %v854_v13 = vadd.f32 %v853_v8, %v852_v6  ;;  %v2337_v8 = vsub.f32 %v1870_v42, %v2117_v26  ;;  %v2351_v42 = vsub.f32 %v1888_v50, %v2117_v26 }
 0x1aa   :  { %3974 = vst [vmem:[#allocation7_spill] sm:$0xff] %v2330_v5  ;;  %v771_v43 = vmul.f32 %v2330_v5, %v2330_v5 }
 0x1ab   :  { %v856_v27 = vadd.f32 %v855_v35, %v854_v13  ;;  %3975 = vst [vmem:[#allocation8_spill] sm:$0xff] %v2337_v8  ;;  %v2344_v35 = vsub.f32 %v1882_v47, %v2117_v26 }
 0x1ac   :  { %v865_v7 = vsel %vm534_vm1, %v771_v43, 0.0 }
 0x1ad   :  { %v858_v6 = vadd.f32 %v857_v20, %v856_v27  ;;  %v772_v20 = vmul.f32 %v2337_v8, %v2337_v8  ;;  %v773_v5 = vmul.f32 %v2344_v35, %v2344_v35  ;;  %v774_v8 = vmul.f32 %v2351_v42, %v2351_v42 }
 0x1af   :  { %v860_v13 = vadd.f32 %v859_v44, %v858_v6  ;;  %v3976_v44 = vld [vmem:[#allocation2_spill] sm:$0xff]  ;;  %v867_v24 = vsel %vm534_vm1, %v772_v20, 0.0  ;;  %v869_v43 = vsel %vm534_vm1, %v773_v5, 0.0  ;;  %v871_v20 = vsel %vm534_vm1, %v774_v8, 0.0 }
 0x1b0   :  { %v2358_v47 = vsub.f32 %v3976_v44, %v2117_v26 }
 0x1b1   :  { %v862_v27 = vadd.f32 %v861_v15, %v860_v13  ;;  %v3977_v15 = vld [vmem:[#allocation3_spill] sm:$0xff] }
 0x1b2   :  { %v2365_v50 = vsub.f32 %v3977_v15, %v2117_v26  ;;  %v775_v44 = vmul.f32 %v2358_v47, %v2358_v47 }
 0x1b3   :  { %v864_v6 = vadd.f32 %v863_v40, %v862_v27  ;;  %v2372_v40 = vsub.f32 %v1910_v61, %v2117_v26  ;;  %v2386_v61 = vsub.f32 %v1940_v16, %v2117_v26 }
 0x1b4   :  { %3978 = vst [vmem:[#allocation10_spill] sm:$0xff] %v2365_v50  ;;  %v776_v15 = vmul.f32 %v2365_v50, %v2365_v50  ;;  %v873_v5 = vsel %vm534_vm1, %v775_v44, 0.0 }
 0x1b5   :  { %v866_v13 = vadd.f32 %v865_v7, %v864_v6  ;;  %3979 = vst [vmem:[#allocation2_spill] sm:$0xff] %v2372_v40  ;;  %v2379_v7 = vsub.f32 %v1920_v2, %v2117_v26 }
 0x1b6   :  { %v875_v8 = vsel %vm534_vm1, %v776_v15, 0.0 }
 0x1b7   :  { %v868_v27 = vadd.f32 %v867_v24, %v866_v13  ;;  %v777_v24 = vmul.f32 %v2372_v40, %v2372_v40  ;;  %v778_v50 = vmul.f32 %v2379_v7, %v2379_v7  ;;  %v779_v40 = vmul.f32 %v2386_v61, %v2386_v61 }
 0x1b9   :  { %v870_v6 = vadd.f32 %v869_v43, %v868_v27  ;;  %v3980_v43 = vld [vmem:[#allocation5_spill] sm:$0xff]  ;;  %v877_v44 = vsel %vm534_vm1, %v777_v24, 0.0  ;;  %v879_v15 = vsel %vm534_vm1, %v778_v50, 0.0  ;;  %v881_v24 = vsel %vm534_vm1, %v779_v40, 0.0 }
 0x1ba   :  { %v2393_v2 = vsub.f32 %v3980_v43, %v2117_v26 }
 0x1bb   :  { %v872_v13 = vadd.f32 %v871_v20, %v870_v6  ;;  %v3981_v20 = vld [vmem:[#allocation6_spill] sm:$0xff] }
 0x1bc   :  { %v2400_v16 = vsub.f32 %v3981_v20, %v2117_v26  ;;  %v780_v43 = vmul.f32 %v2393_v2, %v2393_v2 }
 0x1bd   :  { %v874_v27 = vadd.f32 %v873_v5, %v872_v13  ;;  %v2407_v5 = vsub.f32 %v1992_v1, %v2117_v26  ;;  %v2421_v1 = vsub.f32 %v2024_v23, %v2117_v26  ;;  %v2435_v23 = vsub.f32 %v2052_v53, %v2117_v26 }
 0x1be   :  { %3982 = vst [vmem:[#allocation3_spill] sm:$0xff] %v2400_v16  ;;  %v781_v20 = vmul.f32 %v2400_v16, %v2400_v16  ;;  %v883_v50 = vsel %vm534_vm1, %v780_v43, 0.0  ;;  %v2449_v53 = vsub.f32 %v1904_v58, %v2117_v26 }
 0x1bf   :  { %v876_v6 = vadd.f32 %v875_v8, %v874_v27  ;;  %v2414_v8 = vsub.f32 %v2008_v25, %v2117_v26  ;;  %3984 = vst [vmem:[#allocation5_spill] sm:$0xff] %v2435_v23 }
 0x1c0   :  { %v885_v40 = vsel %vm534_vm1, %v781_v20, 0.0  ;;  %3985 = vst [vmem:[#allocation6_spill] sm:$0xff] %v2449_v53 }
 0x1c1   :  { %v878_v13 = vadd.f32 %v877_v44, %v876_v6  ;;  %v782_v44 = vmul.f32 %v2407_v5, %v2407_v5  ;;  %v783_v16 = vmul.f32 %v2414_v8, %v2414_v8 }
 0x1c3   :  { %v880_v27 = vadd.f32 %v879_v15, %v878_v13  ;;  %v3983_v15 = vld [vmem:[#allocation12_spill] sm:$0xff]  ;;  %v887_v43 = vsel %vm534_vm1, %v782_v44, 0.0  ;;  %v889_v20 = vsel %vm534_vm1, %v783_v16, 0.0 }
 0x1c4   :  { %v2428_v25 = vsub.f32 %v3983_v15, %v2117_v26 }
 0x1c5   :  { %v882_v6 = vadd.f32 %v881_v24, %v880_v27  ;;  %v784_v24 = vmul.f32 %v2421_v1, %v2421_v1 }
 0x1c6   :  { %v785_v15 = vmul.f32 %v2428_v25, %v2428_v25 }
 0x1c7   :  { %v884_v13 = vadd.f32 %v883_v50, %v882_v6  ;;  %v2442_v50 = vsub.f32 %v2066_v30, %v2117_v26  ;;  %v891_v44 = vsel %vm534_vm1, %v784_v24, 0.0  ;;  %v2456_v30 = vsub.f32 %v1912_v62, %v2117_v26 }
 0x1c8   :  { %v893_v16 = vsel %vm534_vm1, %v785_v15, 0.0  ;;  %v2470_v62 = vsub.f32 %v1942_v18, %v2117_v26  ;;  %v2484_v18 = vsub.f32 %v1978_v17, %v2117_v26 }
 0x1c9   :  { %v886_v27 = vadd.f32 %v885_v40, %v884_v13  ;;  %v786_v40 = vmul.f32 %v2435_v23, %v2435_v23  ;;  %3986 = vst [vmem:[#allocation12_spill] sm:$0xff] %v2456_v30  ;;  %v788_v23 = vmul.f32 %v2449_v53, %v2449_v53 }
 0x1ca   :  { %3989 = vst [vmem:[#allocation19_spill] sm:$0xff] %v2470_v62 }
 0x1cb   :  { %v888_v6 = vadd.f32 %v887_v43, %v886_v27  ;;  %v787_v43 = vmul.f32 %v2442_v50, %v2442_v50  ;;  %v895_v24 = vsel %vm534_vm1, %v786_v40, 0.0  ;;  %v899_v40 = vsel %vm534_vm1, %v788_v23, 0.0  ;;  %3991 = vst [vmem:[#allocation21_spill] sm:$0xff] %v2484_v18 }
 0x1cd   :  { %v890_v13 = vadd.f32 %v889_v20, %v888_v6  ;;  %v3987_v20 = vld [vmem:[#allocation4_spill] sm:$0xff]  ;;  %v897_v15 = vsel %vm534_vm1, %v787_v43, 0.0 }
 0x1ce   :  { %v2463_v58 = vsub.f32 %v3987_v20, %v2117_v26 }
 0x1cf   :  { %v892_v27 = vadd.f32 %v891_v44, %v890_v13  ;;  %v789_v44 = vmul.f32 %v2456_v30, %v2456_v30 }
 0x1d0   :  { %3988 = vst [vmem:[#allocation4_spill] sm:$0xff] %v2463_v58  ;;  %v790_v20 = vmul.f32 %v2463_v58, %v2463_v58 }
 0x1d1   :  { %v894_v6 = vadd.f32 %v893_v16, %v892_v27  ;;  %v2477_v16 = vsub.f32 %v1962_v38, %v2117_v26  ;;  %v901_v43 = vsel %vm534_vm1, %v789_v44, 0.0  ;;  %v2491_v38 = vsub.f32 %v1994_v4, %v2117_v26 }
 0x1d2   :  { %v903_v23 = vsel %vm534_vm1, %v790_v20, 0.0 }
 0x1d3   :  { %v896_v13 = vadd.f32 %v895_v24, %v894_v6  ;;  %3990 = vst [vmem:[#allocation20_spill] sm:$0xff] %v2477_v16  ;;  %v791_v24 = vmul.f32 %v2470_v62, %v2470_v62  ;;  %v793_v62 = vmul.f32 %v2484_v18, %v2484_v18 }
 0x1d4   :  { %3992 = vst [vmem:[#allocation22_spill] sm:$0xff] %v2491_v38 }
 0x1d5   :  { %v898_v27 = vadd.f32 %v897_v15, %v896_v13  ;;  %v792_v15 = vmul.f32 %v2477_v16, %v2477_v16  ;;  %v905_v44 = vsel %vm534_vm1, %v791_v24, 0.0  ;;  %v794_v16 = vmul.f32 %v2491_v38, %v2491_v38 }
 0x1d6   :  { %v909_v24 = vsel %vm534_vm1, %v793_v62, 0.0 }
 0x1d7   :  { %v900_v6 = vadd.f32 %v899_v40, %v898_v27  ;;  %v3993_v40 = vld [vmem:[#allocation9_spill] sm:$0xff]  ;;  %v907_v20 = vsel %vm534_vm1, %v792_v15, 0.0  ;;  %v911_v15 = vsel %vm534_vm1, %v794_v16, 0.0 }
 0x1d8   :  { %v2498_v17 = vsub.f32 %v3993_v40, %v2117_v26 }
 0x1d9   :  { %v902_v13 = vadd.f32 %v901_v43, %v900_v6  ;;  %v3995_v43 = vld [vmem:[#allocation11_spill] sm:$0xff] }
 0x1da   :  { %3994 = vst [vmem:[#allocation9_spill] sm:$0xff] %v2498_v17  ;;  %v2505_v4 = vsub.f32 %v3995_v43, %v2117_v26  ;;  %v795_v18 = vmul.f32 %v2498_v17, %v2498_v17 }
 0x1db   :  { %v904_v27 = vadd.f32 %v903_v23, %v902_v13  ;;  %v3997_v23 = vld [vmem:[#allocation13_spill] sm:$0xff] }
 0x1dc   :  { %3996 = vst [vmem:[#allocation11_spill] sm:$0xff] %v2505_v4  ;;  %v2512_v40 = vsub.f32 %v3997_v23, %v2117_v26  ;;  %v796_v38 = vmul.f32 %v2505_v4, %v2505_v4  ;;  %v913_v62 = vsel %vm534_vm1, %v795_v18, 0.0  ;;  %v4003_v4 = vld [vmem:[#allocation16_spill] sm:$0xff]  ;;  %v4005_v18 = vld [vmem:[#allocation17_spill] sm:$0xff] }
 0x1dd   :  { %v906_v6 = vadd.f32 %v905_v44, %v904_v27  ;;  %v3999_v44 = vld [vmem:[#allocation14_spill] sm:$0xff]  ;;  %v2536_v58 = vsub.f32 %v4003_v4, %v2117_v26 }
 0x1de   :  { %3998 = vst [vmem:[#allocation13_spill] sm:$0xff] %v2512_v40  ;;  %v2519_v43 = vsub.f32 %v3999_v44, %v2117_v26  ;;  %v797_v17 = vmul.f32 %v2512_v40, %v2512_v40  ;;  %v915_v44 = vsel %vm534_vm1, %v796_v38, 0.0 }
 0x1df   :  { %v908_v13 = vadd.f32 %v907_v20, %v906_v6  ;;  %v4001_v20 = vld [vmem:[#allocation15_spill] sm:$0xff]  ;;  %4004 = vst [vmem:[#allocation16_spill] sm:$0xff] %v2536_v58  ;;  %v800_v38 = vmul.f32 %v2536_v58, %v2536_v58 }
 0x1e0   :  { %4000 = vst [vmem:[#allocation14_spill] sm:$0xff] %v2519_v43  ;;  %v2526_v23 = vsub.f32 %v4001_v20, %v2117_v26 }
 0x1e1   :  { %v910_v27 = vadd.f32 %v909_v24, %v908_v13  ;;  %v798_v24 = vmul.f32 %v2519_v43, %v2519_v43 }
 0x1e2   :  { %4002 = vst [vmem:[#allocation15_spill] sm:$0xff] %v2526_v23 }
 0x1e3   :  { %v912_v6 = vadd.f32 %v911_v15, %v910_v27  ;;  %v799_v27 = vmul.f32 %v2526_v23, %v2526_v23  ;;  %v917_v15 = vsel %vm534_vm1, %v797_v17, 0.0  ;;  %v919_v40 = vsel %vm534_vm1, %v798_v24, 0.0 }
 0x1e4   :  { %v923_v24 = vsel %vm534_vm1, %v800_v38, 0.0 }
 0x1e5   :  { %v914_v13 = vadd.f32 %v913_v62, %v912_v6  ;;  %v2544_v6 = vsub.f32 %v4005_v18, %v2117_v26  ;;  %v921_v4 = vsel %vm534_vm1, %v799_v27, 0.0 }
 0x1e7   :  { %v916_v16 = vadd.f32 %v915_v44, %v914_v13  ;;  %4006 = vst [vmem:[#allocation17_spill] sm:$0xff] %v2544_v6  ;;  %v4007_v13 = vld [vmem:[#allocation18_spill] sm:$0xff]  ;;  %v801_v17 = vmul.f32 %v2544_v6, %v2544_v6 }
 0x1e8   :  { %v2551_v44 = vsub.f32 %v4007_v13, %v2117_v26 }
 0x1e9   :  { %v918_v20 = vadd.f32 %v917_v15, %v916_v16  ;;  %v739_v15 = vsub.f32 %v2110_v56, %v2117_v26 }
 0x1ea   :  { %4008 = vst [vmem:[#allocation18_spill] sm:$0xff] %v2551_v44  ;;  %v802_v18 = vmul.f32 %v2551_v44, %v2551_v44 }
 0x1eb   :  { %v920_v62 = vadd.f32 %v919_v40, %v918_v20  ;;  %v925_v40 = vsel %vm534_vm1, %v801_v17, 0.0  ;;  %v803_v20 = vmul.f32 %v739_v15, %v739_v15 }
 0x1ed   :  { %v922_v43 = vadd.f32 %v921_v4, %v920_v62  ;;  %v927_v62 = vsel %vm534_vm1, %v802_v18, 0.0  ;;  %v929_v13 = vsel %vm534_vm1, %v803_v20, 0.0 }
 0x1ef   :  { %v924_v16 = vadd.f32 %v923_v24, %v922_v43 }
 0x1f1   :  { %v926_v27 = vadd.f32 %v925_v40, %v924_v16 }
 0x1f3   :  { %v928_v4 = vadd.f32 %v927_v62, %v926_v27 }
 0x1f5   :  { %v930_v58 = vadd.f32 %v929_v13, %v928_v4  ;;  %v4011_v4 = vld [vmem:[#allocation7_spill] sm:$0xff]  ;;  %v4012_v13 = vld [vmem:[#allocation8_spill] sm:$0xff] }
 0x1f7   :  { %v931_v6 = vrot.slane %v930_v58, 4 }
 0x1f9   :  { %v932_v23 = vadd.f32 %v931_v6, %v930_v58 }
 0x1fb   :  { %v933_v38 = vrot.slane %v932_v23, 2 }
 0x1fd   :  { %v934_v43 = vadd.f32 %v933_v38, %v932_v23  ;;  %v2570_v23 = vld [vmem:[%s3897_s2] ss:$0 sm:$0xff] }
 0x1fe   :  { %v4013_v38 = vld [vmem:[#allocation10_spill] sm:$0xff] }
 0x1ff   :  { %v935_v24 = vrot.slane %v934_v43, 1 }
 0x201   :  { %v936_v30 = vadd.f32 %v935_v24, %v934_v43  ;;  %v4014_v24 = vld [vmem:[#allocation2_spill] sm:$0xff] }
 0x203   :  { %v937_v56 = vmul.f32 %v936_v30, %v2114_v12  ;;  %v2576_v30 = vld [vmem:[%s3898_s3] ss:$0 sm:$0xff] }
 0x204   :  { %4009 = vst [vmem:[#allocation23_spill] sm:$0xff] %v2576_v30 }
 0x205   :  { %v938_v26 = vadd.f32 1e-05, %v937_v56 }
 0x207   :  { %1693 = vrsqrt.f32 %v938_v26  ;;  %vm945_vm4 = vweird.f32 %v938_v26 }
 0x20d   :  { %v1694_v44 = vpop.eup %1693 }
 0x20e   :  { %v940_v17 = vmul.f32 %v1694_v44, %v938_v26  ;;  %vm946_vm3 = vweird.f32 %v1694_v44  ;;  %v4015_v26 = vld [vmem:[#allocation3_spill] sm:$0xff] }
 0x20f   :  { %vm947_vm5 = vmor %vm945_vm4, %vm946_vm3 }
 0x210   :  { %v941_v16 = vmul.f32 %v1694_v44, %v940_v17 }
 0x212   :  { %v942_v40 = vmul.f32 0.5, %v941_v16 }
 0x214   :  { %v943_v53 = vsub.f32 1.5, %v942_v40  ;;  %v4016_v40 = vld [vmem:[#allocation5_spill] sm:$0xff] }
 0x216   :  { %v944_v18 = vmul.f32 %v1694_v44, %v943_v53 }
 0x218   :  { %v2564_v27 = vsel %vm947_vm5, %v1694_v44, %v944_v18 }
 0x219   :  { %v1012_v58 = vmul.f32 %v2564_v27, %v739_v15  ;;  %v2583_v6 = vmul.f32 %v2564_v27, %v2121_v19  ;;  %v2587_v44 = vmul.f32 %v2564_v27, %v2125_v22  ;;  %v2591_v15 = vmul.f32 %v2564_v27, %v2129_v29 }
 0x21a   :  { %v2595_v20 = vmul.f32 %v2564_v27, %v2133_v3  ;;  %v2599_v62 = vmul.f32 %v2564_v27, %v2141_v31  ;;  %v2603_v19 = vmul.f32 %v2564_v27, %v2147_v37  ;;  %v2607_v22 = vmul.f32 %v2564_v27, %v2155_v33 }
 0x21b   :  { %v1079_v12 = vmul.f32 %v2570_v23, %v1012_v58  ;;  %v2611_v29 = vmul.f32 %v2564_v27, %v2162_v45  ;;  %v2615_v3 = vmul.f32 %v2564_v27, %v2169_v48  ;;  %v2619_v31 = vmul.f32 %v2564_v27, %v2176_v51  ;;  %v4017_v58 = vld [vmem:[#allocation6_spill] sm:$0xff] }
 0x21c   :  { %v2623_v37 = vmul.f32 %v2564_v27, %v2183_v54  ;;  %v2627_v33 = vmul.f32 %v2564_v27, %v2190_v57  ;;  %v2631_v45 = vmul.f32 %v2564_v27, %v2197_v59  ;;  %v2635_v48 = vmul.f32 %v2564_v27, %v2204_v63 }
 0x21d   :  { %v2579_v53 = vadd.f32 %v2576_v30, %v1079_v12  ;;  %v2639_v51 = vmul.f32 %v2564_v27, %v2211_v9  ;;  %v2643_v54 = vmul.f32 %v2564_v27, %v2218_v21  ;;  %v2647_v57 = vmul.f32 %v2564_v27, %v2225_v34  ;;  %v4018_v12 = vld [vmem:[#allocation12_spill] sm:$0xff]  ;;  %v4030_v30 = vld [vmem:[#allocation11_spill] sm:$0xff] }
 0x21e   :  { %v2651_v59 = vmul.f32 %v2564_v27, %v2232_v10  ;;  %v2655_v63 = vmul.f32 %v2564_v27, %v2239_v32  ;;  %v2659_v9 = vmul.f32 %v2564_v27, %v2246_v36  ;;  %v2663_v21 = vmul.f32 %v2564_v27, %v2253_v39 }
 0x21f   :  { %4010 = vst [vmem:[#allocation24_spill] sm:$0xff] %v2579_v53  ;;  %v2667_v34 = vmul.f32 %v2564_v27, %v2260_v41  ;;  %v2671_v10 = vmul.f32 %v2564_v27, %v2267_v46  ;;  %v2675_v32 = vmul.f32 %v2564_v27, %v2274_v49  ;;  %v2679_v36 = vmul.f32 %v2564_v27, %v2281_v52  ;;  %v4028_v53 = vld [vmem:[#allocation9_spill] sm:$0xff] }
 0x220   :  { %v2683_v39 = vmul.f32 %v2564_v27, %v2288_v55  ;;  %v2687_v41 = vmul.f32 %v2564_v27, %v2295_v60  ;;  %v2691_v46 = vmul.f32 %v2564_v27, %v2302_v0  ;;  %v2695_v49 = vmul.f32 %v2564_v27, %v2309_v14 }
 0x221   :  { %v2699_v52 = vmul.f32 %v2564_v27, %v2316_v28  ;;  %v2703_v55 = vmul.f32 %v2564_v27, %v2323_v11  ;;  %v2707_v60 = vmul.f32 %v2564_v27, %v4011_v4  ;;  %v2711_v0 = vmul.f32 %v2564_v27, %v4012_v13  ;;  %v4019_v4 = vld [vmem:[#allocation4_spill] sm:$0xff]  ;;  %v4020_v13 = vld [vmem:[#allocation19_spill] sm:$0xff] }
 0x222   :  { %v2715_v14 = vmul.f32 %v2564_v27, %v2344_v35  ;;  %v2719_v28 = vmul.f32 %v2564_v27, %v2351_v42  ;;  %v2723_v11 = vmul.f32 %v2564_v27, %v2358_v47  ;;  %v2727_v43 = vmul.f32 %v2564_v27, %v4013_v38 }
 0x223   :  { %v2731_v56 = vmul.f32 %v2564_v27, %v4014_v24  ;;  %v2735_v35 = vmul.f32 %v2564_v27, %v2379_v7  ;;  %v2739_v42 = vmul.f32 %v2564_v27, %v2386_v61  ;;  %v2743_v47 = vmul.f32 %v2564_v27, %v2393_v2  ;;  %v4022_v24 = vld [vmem:[#allocation20_spill] sm:$0xff] }
 0x224   :  { %v2747_v17 = vmul.f32 %v2564_v27, %v4015_v26  ;;  %v2751_v16 = vmul.f32 %v2564_v27, %v2407_v5  ;;  %v2755_v7 = vmul.f32 %v2564_v27, %v2414_v8  ;;  %v2759_v61 = vmul.f32 %v2564_v27, %v2421_v1  ;;  %v4024_v26 = vld [vmem:[#allocation21_spill] sm:$0xff] }
 0x225   :  { %v2763_v2 = vmul.f32 %v2564_v27, %v2428_v25  ;;  %v2767_v18 = vmul.f32 %v2564_v27, %v4016_v40  ;;  %v2771_v5 = vmul.f32 %v2564_v27, %v2442_v50  ;;  %v2775_v8 = vmul.f32 %v2564_v27, %v4017_v58  ;;  %v4026_v58 = vld [vmem:[#allocation22_spill] sm:$0xff] }
 0x226   :  { %v2779_v1 = vmul.f32 %v2564_v27, %v4018_v12  ;;  %v2783_v25 = vmul.f32 %v2564_v27, %v4019_v4  ;;  %v2787_v38 = vmul.f32 %v2564_v27, %v4020_v13  ;;  %v2791_v50 = vmul.f32 %v2564_v27, %v4022_v24 }
 0x227   :  { %v2795_v40 = vmul.f32 %v2564_v27, %v4024_v26  ;;  %v2799_v12 = vmul.f32 %v2564_v27, %v4026_v58  ;;  %v2803_v4 = vmul.f32 %v2564_v27, %v4028_v53  ;;  %v2807_v13 = vmul.f32 %v2564_v27, %v4030_v30 }
 0x228   :  { %4021 = vst [vmem:[#allocation7_spill] sm:$0xff] %v2787_v38  ;;  %v4032_v38 = vld [vmem:[#allocation13_spill] sm:$0xff] }
 0x229   :  { %4023 = vst [vmem:[#allocation8_spill] sm:$0xff] %v2791_v50  ;;  %v2811_v24 = vmul.f32 %v2564_v27, %v4032_v38  ;;  %v4033_v50 = vld [vmem:[#allocation14_spill] sm:$0xff] }
 0x22a   :  { %4025 = vst [vmem:[#allocation10_spill] sm:$0xff] %v2795_v40  ;;  %v2815_v26 = vmul.f32 %v2564_v27, %v4033_v50  ;;  %v4034_v40 = vld [vmem:[#allocation15_spill] sm:$0xff]  ;;  %v2835_v50 = vmul.f32 %v2570_v23, %v2583_v6  ;;  %v2855_v6 = vmul.f32 %v2570_v23, %v2603_v19  ;;  %v2875_v19 = vmul.f32 %v2570_v23, %v2623_v37 }
 0x22b   :  { %4027 = vst [vmem:[#allocation2_spill] sm:$0xff] %v2799_v12  ;;  %v2819_v58 = vmul.f32 %v2564_v27, %v4034_v40  ;;  %v4035_v12 = vld [vmem:[#allocation16_spill] sm:$0xff]  ;;  %v2839_v40 = vmul.f32 %v2570_v23, %v2587_v44  ;;  %v2859_v44 = vmul.f32 %v2570_v23, %v2607_v22  ;;  %v2879_v22 = vmul.f32 %v2570_v23, %v2627_v33 }
 0x22c   :  { %4029 = vst [vmem:[#allocation3_spill] sm:$0xff] %v2803_v4  ;;  %v2823_v53 = vmul.f32 %v2564_v27, %v4035_v12  ;;  %v4036_v4 = vld [vmem:[#allocation17_spill] sm:$0xff]  ;;  %v2843_v12 = vmul.f32 %v2570_v23, %v2591_v15  ;;  %v2863_v15 = vmul.f32 %v2570_v23, %v2611_v29  ;;  %v2883_v29 = vmul.f32 %v2570_v23, %v2631_v45 }
 0x22d   :  { %4031 = vst [vmem:[#allocation5_spill] sm:$0xff] %v2807_v13  ;;  %v2827_v30 = vmul.f32 %v2564_v27, %v4036_v4  ;;  %v4037_v13 = vld [vmem:[#allocation18_spill] sm:$0xff]  ;;  %v2847_v4 = vmul.f32 %v2570_v23, %v2595_v20  ;;  %v2867_v20 = vmul.f32 %v2570_v23, %v2615_v3  ;;  %v2887_v3 = vmul.f32 %v2570_v23, %v2635_v48 }
 0x22e   :  { %v2831_v38 = vmul.f32 %v2564_v27, %v4037_v13  ;;  %v2851_v27 = vmul.f32 %v2570_v23, %v2599_v62  ;;  %v2871_v62 = vmul.f32 %v2570_v23, %v2619_v31  ;;  %v2891_v31 = vmul.f32 %v2570_v23, %v2639_v51 }
 0x22f   :  { %v2895_v37 = vmul.f32 %v2570_v23, %v2643_v54  ;;  %v2899_v33 = vmul.f32 %v2570_v23, %v2647_v57  ;;  %v2903_v45 = vmul.f32 %v2570_v23, %v2651_v59  ;;  %v2907_v48 = vmul.f32 %v2570_v23, %v2655_v63  ;;  %v4043_v13 = vld [vmem:[#allocation7_spill] sm:$0xff] }
 0x230   :  { %v2911_v51 = vmul.f32 %v2570_v23, %v2659_v9  ;;  %v2915_v54 = vmul.f32 %v2570_v23, %v2663_v21  ;;  %v2919_v57 = vmul.f32 %v2570_v23, %v2667_v34  ;;  %v2923_v59 = vmul.f32 %v2570_v23, %v2671_v10 }
 0x231   :  { %v2927_v63 = vmul.f32 %v2570_v23, %v2675_v32  ;;  %v2931_v9 = vmul.f32 %v2570_v23, %v2679_v36  ;;  %v2935_v21 = vmul.f32 %v2570_v23, %v2683_v39  ;;  %v2939_v34 = vmul.f32 %v2570_v23, %v2687_v41 }
 0x232   :  { %v2943_v10 = vmul.f32 %v2570_v23, %v2691_v46  ;;  %v2947_v32 = vmul.f32 %v2570_v23, %v2695_v49  ;;  %v2951_v36 = vmul.f32 %v2570_v23, %v2699_v52  ;;  %v2955_v39 = vmul.f32 %v2570_v23, %v2703_v55 }
 0x233   :  { %v2959_v41 = vmul.f32 %v2570_v23, %v2707_v60  ;;  %v2963_v46 = vmul.f32 %v2570_v23, %v2711_v0  ;;  %v2967_v49 = vmul.f32 %v2570_v23, %v2715_v14  ;;  %v2971_v52 = vmul.f32 %v2570_v23, %v2719_v28 }
 0x234   :  { %v2975_v55 = vmul.f32 %v2570_v23, %v2723_v11  ;;  %v2979_v60 = vmul.f32 %v2570_v23, %v2727_v43  ;;  %v2983_v0 = vmul.f32 %v2570_v23, %v2731_v56  ;;  %v2987_v14 = vmul.f32 %v2570_v23, %v2735_v35 }
 0x235   :  { %v2991_v28 = vmul.f32 %v2570_v23, %v2739_v42  ;;  %v2995_v11 = vmul.f32 %v2570_v23, %v2743_v47  ;;  %v2999_v43 = vmul.f32 %v2570_v23, %v2747_v17  ;;  %v3003_v56 = vmul.f32 %v2570_v23, %v2751_v16 }
 0x236   :  { %v3007_v35 = vmul.f32 %v2570_v23, %v2755_v7  ;;  %v3011_v42 = vmul.f32 %v2570_v23, %v2759_v61  ;;  %v3015_v47 = vmul.f32 %v2570_v23, %v2763_v2  ;;  %v3019_v17 = vmul.f32 %v2570_v23, %v2767_v18 }
 0x237   :  { %v3023_v16 = vmul.f32 %v2570_v23, %v2771_v5  ;;  %v3027_v7 = vmul.f32 %v2570_v23, %v2775_v8  ;;  %v3031_v61 = vmul.f32 %v2570_v23, %v2779_v1  ;;  %v3035_v2 = vmul.f32 %v2570_v23, %v2783_v25 }
 0x238   :  { %4038 = vst [vmem:[#allocation6_spill] sm:$0xff] %v3019_v17  ;;  %v3039_v18 = vmul.f32 %v2570_v23, %v4043_v13  ;;  %v4044_v17 = vld [vmem:[#allocation8_spill] sm:$0xff] }
 0x239   :  { %4039 = vst [vmem:[#allocation12_spill] sm:$0xff] %v3023_v16  ;;  %v3043_v5 = vmul.f32 %v2570_v23, %v4044_v17  ;;  %v4045_v16 = vld [vmem:[#allocation10_spill] sm:$0xff]  ;;  %v3063_v17 = vmul.f32 %v2570_v23, %v2811_v24  ;;  %v3083_v24 = vmul.f32 %v2570_v23, %v2831_v38 }
 0x23a   :  { %4040 = vst [vmem:[#allocation4_spill] sm:$0xff] %v3027_v7  ;;  %v3047_v8 = vmul.f32 %v2570_v23, %v4045_v16  ;;  %v4046_v7 = vld [vmem:[#allocation2_spill] sm:$0xff]  ;;  %v3067_v16 = vmul.f32 %v2570_v23, %v2815_v26 }
 0x23b   :  { %4041 = vst [vmem:[#allocation19_spill] sm:$0xff] %v3031_v61  ;;  %v3051_v1 = vmul.f32 %v2570_v23, %v4046_v7  ;;  %v4047_v61 = vld [vmem:[#allocation3_spill] sm:$0xff]  ;;  %v3071_v7 = vmul.f32 %v2570_v23, %v2819_v58 }
 0x23c   :  { %4042 = vst [vmem:[#allocation20_spill] sm:$0xff] %v3035_v2  ;;  %v3055_v25 = vmul.f32 %v2570_v23, %v4047_v61  ;;  %v4048_v2 = vld [vmem:[#allocation5_spill] sm:$0xff]  ;;  %v3075_v61 = vmul.f32 %v2570_v23, %v2823_v53 }
 0x23d   :  { %v3059_v13 = vmul.f32 %v2570_v23, %v4048_v2  ;;  %4049 = vst [vmem:[#allocation21_spill] sm:$0xff] %v3063_v17  ;;  %v3079_v2 = vmul.f32 %v2570_v23, %v2827_v30  ;;  %v4050_v17 = vld [vmem:[#allocation23_spill] sm:$0xff] }
 0x23e   :  { %v3087_v26 = vadd.f32 %v4050_v17, %v2835_v50  ;;  %v3091_v58 = vadd.f32 %v4050_v17, %v2839_v40  ;;  %v3095_v53 = vadd.f32 %v4050_v17, %v2843_v12  ;;  %v3099_v30 = vadd.f32 %v4050_v17, %v2847_v4 }
 0x23f   :  { %v3103_v23 = vadd.f32 %v4050_v17, %v2851_v27  ;;  %v3107_v38 = vadd.f32 %v4050_v17, %v2855_v6  ;;  %v3111_v50 = vadd.f32 %v4050_v17, %v2859_v44  ;;  %v3115_v40 = vadd.f32 %v4050_v17, %v2863_v15 }
 0x240   :  { %v3119_v12 = vadd.f32 %v4050_v17, %v2867_v20  ;;  %v3123_v4 = vadd.f32 %v4050_v17, %v2871_v62  ;;  %v3127_v27 = vadd.f32 %v4050_v17, %v2875_v19  ;;  %v3131_v6 = vadd.f32 %v4050_v17, %v2879_v22 }
 0x241   :  { %v3135_v44 = vadd.f32 %v4050_v17, %v2883_v29  ;;  %v3139_v15 = vadd.f32 %v4050_v17, %v2887_v3  ;;  %v3143_v20 = vadd.f32 %v4050_v17, %v2891_v31  ;;  %v3147_v62 = vadd.f32 %v4050_v17, %v2895_v37 }
 0x242   :  { %v3151_v19 = vadd.f32 %v4050_v17, %v2899_v33  ;;  %v3155_v22 = vadd.f32 %v4050_v17, %v2903_v45  ;;  %v3159_v29 = vadd.f32 %v4050_v17, %v2907_v48  ;;  %v3163_v3 = vadd.f32 %v4050_v17, %v2911_v51 }
 0x243   :  { %v3167_v31 = vadd.f32 %v4050_v17, %v2915_v54  ;;  %v3171_v37 = vadd.f32 %v4050_v17, %v2919_v57  ;;  %v3175_v33 = vadd.f32 %v4050_v17, %v2923_v59  ;;  %v3179_v45 = vadd.f32 %v4050_v17, %v2927_v63 }
 0x244   :  { %v3183_v48 = vadd.f32 %v4050_v17, %v2931_v9  ;;  %v3187_v51 = vadd.f32 %v4050_v17, %v2935_v21  ;;  %v3191_v54 = vadd.f32 %v4050_v17, %v2939_v34  ;;  %v3195_v57 = vadd.f32 %v4050_v17, %v2943_v10 }
 0x245   :  { %v3199_v59 = vadd.f32 %v4050_v17, %v2947_v32  ;;  %v3203_v63 = vadd.f32 %v4050_v17, %v2951_v36  ;;  %v3207_v9 = vadd.f32 %v4050_v17, %v2955_v39  ;;  %v3211_v21 = vadd.f32 %v4050_v17, %v2959_v41 }
 0x246   :  { %v3215_v34 = vadd.f32 %v4050_v17, %v2963_v46  ;;  %v3219_v10 = vadd.f32 %v4050_v17, %v2967_v49  ;;  %v3223_v32 = vadd.f32 %v4050_v17, %v2971_v52  ;;  %v3227_v36 = vadd.f32 %v4050_v17, %v2975_v55 }
 0x247   :  { %v3231_v39 = vadd.f32 %v4050_v17, %v2979_v60  ;;  %v3235_v41 = vadd.f32 %v4050_v17, %v2983_v0  ;;  %v3239_v46 = vadd.f32 %v4050_v17, %v2987_v14  ;;  %v3243_v49 = vadd.f32 %v4050_v17, %v2991_v28 }
 0x248   :  { %v3247_v52 = vadd.f32 %v4050_v17, %v2995_v11  ;;  %v3251_v55 = vadd.f32 %v4050_v17, %v2999_v43  ;;  %v3255_v60 = vadd.f32 %v4050_v17, %v3003_v56  ;;  %v3259_v0 = vadd.f32 %v4050_v17, %v3007_v35  ;;  %v4055_v11 = vld [vmem:[#allocation6_spill] sm:$0xff] }
 0x249   :  { %v3263_v14 = vadd.f32 %v4050_v17, %v3011_v42  ;;  %v3267_v28 = vadd.f32 %v4050_v17, %v3015_v47  ;;  %v3271_v43 = vadd.f32 %v4050_v17, %v4055_v11  ;;  %v3291_v11 = vadd.f32 %v4050_v17, %v3039_v18 }
 0x24a   :  { %4051 = vst [vmem:[#allocation22_spill] sm:$0xff] %v3251_v55  ;;  %v4056_v55 = vld [vmem:[#allocation12_spill] sm:$0xff]  ;;  %v3312_v18 = vadd.f32 %v4050_v17, %v3059_v13  ;;  %vm1147_vm6 = vcmp.gt.f32.partialorder %v3087_v26, 0.0  ;;  %vm1148_vm7 = vcmp.gt.f32.partialorder %v3091_v58, 0.0  ;;  %v3328_v13 = vadd.f32 %v4050_v17, %v3071_v7 }
 0x24b   :  { %4052 = vst [vmem:[#allocation9_spill] sm:$0xff] %v3255_v60  ;;  %v3275_v56 = vadd.f32 %v4050_v17, %v4056_v55  ;;  %v4057_v60 = vld [vmem:[#allocation4_spill] sm:$0xff]  ;;  %v3295_v55 = vadd.f32 %v4050_v17, %v3043_v5  ;;  %v1212_v5 = vmul.f32 0.2, %v3091_v58  ;;  %vm1149_vm8 = vcmp.gt.f32.partialorder %v3095_v53, 0.0 }
 0x24c   :  { %4053 = vst [vmem:[#allocation11_spill] sm:$0xff] %v3259_v0  ;;  %v3279_v35 = vadd.f32 %v4050_v17, %v4057_v60  ;;  %v4058_v0 = vld [vmem:[#allocation19_spill] sm:$0xff]  ;;  %v3299_v60 = vadd.f32 %v4050_v17, %v3047_v8  ;;  %v4063_v8 = vld [vmem:[#allocation21_spill] sm:$0xff]  ;;  %vm1150_vm9 = vcmp.gt.f32.partialorder %v3099_v30, 0.0  ;;  %v3345_v7 = vadd.f32 %v4050_v17, %v3083_v24 }
 0x24d   :  { %4054 = vst [vmem:[#allocation13_spill] sm:$0xff] %v3263_v14  ;;  %v3283_v42 = vadd.f32 %v4050_v17, %v4058_v0  ;;  %v4060_v14 = vld [vmem:[#allocation20_spill] sm:$0xff]  ;;  %v3303_v0 = vadd.f32 %v4050_v17, %v3051_v1  ;;  %v3322_v1 = vadd.f32 %v4050_v17, %v3067_v16  ;;  %v3338_v16 = vadd.f32 %v4050_v17, %v3079_v2 }
 0x24e   :  { %v3287_v47 = vadd.f32 %v4050_v17, %v4060_v14  ;;  %4061 = vst [vmem:[#allocation15_spill] sm:$0xff] %v3299_v60  ;;  %v3308_v14 = vadd.f32 %v4050_v17, %v3055_v25  ;;  %v3318_v60 = vadd.f32 %v4050_v17, %v4063_v8  ;;  %v1213_v25 = vmul.f32 0.2, %v3095_v53 }
 0x24f   :  { %4059 = vst [vmem:[#allocation14_spill] sm:$0xff] %v3283_v42  ;;  %v1211_v42 = vmul.f32 0.2, %v3087_v26  ;;  %v1214_v8 = vmul.f32 0.2, %v3099_v30  ;;  %vm1151_vm10 = vcmp.gt.f32.partialorder %v3103_v23, 0.0 }
 0x250   :  { %4062 = vst [vmem:[#allocation16_spill] sm:$0xff] %v3312_v18  ;;  %v3332_v18 = vadd.f32 %v4050_v17, %v3075_v61  ;;  %v1216_v61 = vmul.f32 0.2, %v3107_v38  ;;  %vm1152_vm11 = vcmp.gt.f32.partialorder %v3107_v38, 0.0  ;;  %vm1153_vm12 = vcmp.gt.f32.partialorder %v3111_v50, 0.0 }
 0x251   :  { %4064 = vst [vmem:[#allocation17_spill] sm:$0xff] %v3318_v60  ;;  %v1275_v60 = vsel %vm1147_vm6, %v3087_v26, %v1211_v42  ;;  %v1217_v2 = vmul.f32 0.2, %v3111_v50  ;;  %vm1154_vm13 = vcmp.gt.f32.partialorder %v3115_v40, 0.0  ;;  %v1218_v26 = vmul.f32 0.2, %v3115_v40 }
 0x252   :  { %4065 = vst [vmem:[#allocation18_spill] sm:$0xff] %v3322_v1  ;;  %v1215_v1 = vmul.f32 0.2, %v3103_v23  ;;  %v1278_v17 = vsel %vm1150_vm9, %v3099_v30, %v1214_v8  ;;  %v1339_v24 = vpack.c.bf16 %v1275_v60, %v1275_v60  ;;  %vm1155_vm14 = vcmp.gt.f32.partialorder %v3119_v12, 0.0 }
 0x253   :  { %4066 = vst [vmem:[#allocation7_spill] sm:$0xff] %v3328_v13  ;;  %v1219_v42 = vmul.f32 0.2, %v3119_v12  ;;  %vm1156_vm15 = vcmp.gt.f32.partialorder %v3123_v4, 0.0  ;;  %v1221_v13 = vmul.f32 0.2, %v3127_v27  ;;  %v1281_v30 = vsel %vm1153_vm12, %v3111_v50, %v1217_v2 }
 0x254   :  { %4067 = vst [vmem:[#allocation8_spill] sm:$0xff] %v3332_v18  ;;  %v1276_v18 = vsel %vm1148_vm7, %v3091_v58, %v1212_v5  ;;  %v1279_v58 = vsel %vm1151_vm10, %v3103_v23, %v1215_v1  ;;  %v1342_v60 = vpack.c.bf16 %v1278_v17, %v1278_v17  ;;  %vm1157_vm1 = vcmp.gt.f32.partialorder %v3127_v27, 0.0 }
 0x255   :  { %4068 = vst [vmem:[#allocation10_spill] sm:$0xff] %v3338_v16  ;;  %v1277_v16 = vsel %vm1149_vm8, %v3095_v53, %v1213_v25  ;;  %v1340_v5 = vpack.c.bf16 %v1276_v18, %v1276_v18  ;;  %v1280_v53 = vsel %vm1152_vm11, %v3107_v38, %v1216_v61  ;;  %v1222_v23 = vmul.f32 0.2, %v3131_v6 }
 0x256   :  { %4069 = vst [vmem:[#allocation2_spill] sm:$0xff] %v3345_v7  ;;  %v1220_v7 = vmul.f32 0.2, %v3123_v4  ;;  %v1341_v25 = vpack.c.bf16 %v1277_v16, %v1277_v16  ;;  %v1282_v18 = vsel %vm1154_vm13, %v3115_v40, %v1218_v26  ;;  %v1343_v1 = vpack.c.bf16 %v1279_v58, %v1279_v58 }
 0x257   :  { %1404 = vst.msk [vmem:[%s3899_s4] sm:$0xf] %vm1403_vm0, %v1339_v24  ;;  %vm1158_vm2 = vcmp.gt.f32.partialorder %v3131_v6, 0.0  ;;  %v1223_v38 = vmul.f32 0.2, %v3135_v44  ;;  %v1283_v50 = vsel %vm1155_vm14, %v3119_v12, %v1219_v42  ;;  %v1344_v8 = vpack.c.bf16 %v1280_v53, %v1280_v53 }
 0x258   :  { %1405 = vst.msk [vmem:[%s3899_s4 + $0x4] sm:$0xf] %vm1403_vm0, %v1340_v5  ;;  %vm1159_vm3 = vcmp.gt.f32.partialorder %v3135_v44, 0.0  ;;  %v1224_v40 = vmul.f32 0.2, %v3139_v15  ;;  %v1284_v16 = vsel %vm1156_vm15, %v3123_v4, %v1220_v7  ;;  %v1345_v61 = vpack.c.bf16 %v1281_v30, %v1281_v30 }
 0x259   :  { %1406 = vst.msk [vmem:[%s3899_s4 + $0x8] sm:$0xf] %vm1403_vm0, %v1341_v25  ;;  %vm1160_vm4 = vcmp.gt.f32.partialorder %v3139_v15, 0.0  ;;  %v1225_v12 = vmul.f32 0.2, %v3143_v20  ;;  %v1285_v2 = vsel %vm1157_vm1, %v3127_v27, %v1221_v13  ;;  %v1346_v26 = vpack.c.bf16 %v1282_v18, %v1282_v18 }
 0x25a   :  { %1407 = vst.msk [vmem:[%s3899_s4 + $0xc] sm:$0xf] %vm1403_vm0, %v1342_v60  ;;  %vm1161_vm5 = vcmp.gt.f32.partialorder %v3143_v20, 0.0  ;;  %v1226_v4 = vmul.f32 0.2, %v3147_v62  ;;  %v1286_v7 = vsel %vm1158_vm2, %v3131_v6, %v1222_v23  ;;  %v1347_v17 = vpack.c.bf16 %v1283_v50, %v1283_v50 }
 0x25b   :  { %1408 = vst.msk [vmem:[%s3899_s4 + $0x10] sm:$0xf] %vm1403_vm0, %v1343_v1  ;;  %vm1162_vm6 = vcmp.gt.f32.partialorder %v3147_v62, 0.0  ;;  %v1227_v27 = vmul.f32 0.2, %v3151_v19  ;;  %v1287_v13 = vsel %vm1159_vm3, %v3135_v44, %v1223_v38  ;;  %v1348_v24 = vpack.c.bf16 %v1284_v16, %v1284_v16 }
 0x25c   :  { %1409 = vst.msk [vmem:[%s3899_s4 + $0x14] sm:$0xf] %vm1403_vm0, %v1344_v8  ;;  %vm1163_vm7 = vcmp.gt.f32.partialorder %v3151_v19, 0.0  ;;  %v1228_v6 = vmul.f32 0.2, %v3155_v22  ;;  %v1288_v42 = vsel %vm1160_vm4, %v3139_v15, %v1224_v40  ;;  %v1349_v58 = vpack.c.bf16 %v1285_v2, %v1285_v2 }
 0x25d   :  { %1410 = vst.msk [vmem:[%s3899_s4 + $0x18] sm:$0xf] %vm1403_vm0, %v1345_v61  ;;  %vm1164_vm8 = vcmp.gt.f32.partialorder %v3155_v22, 0.0  ;;  %v1229_v44 = vmul.f32 0.2, %v3159_v29  ;;  %v1289_v5 = vsel %vm1161_vm5, %v3143_v20, %v1225_v12  ;;  %v1350_v53 = vpack.c.bf16 %v1286_v7, %v1286_v7 }
 0x25e   :  { %1411 = vst.msk [vmem:[%s3899_s4 + $0x1c] sm:$0xf] %vm1403_vm0, %v1346_v26  ;;  %vm1165_vm9 = vcmp.gt.f32.partialorder %v3159_v29, 0.0  ;;  %v1230_v15 = vmul.f32 0.2, %v3163_v3  ;;  %v1290_v25 = vsel %vm1162_vm6, %v3147_v62, %v1226_v4  ;;  %v1351_v30 = vpack.c.bf16 %v1287_v13, %v1287_v13 }
 0x25f   :  { %1412 = vst.msk [vmem:[%s3899_s4 + $0x20] sm:$0xf] %vm1403_vm0, %v1347_v17  ;;  %vm1166_vm10 = vcmp.gt.f32.partialorder %v3163_v3, 0.0  ;;  %v1231_v20 = vmul.f32 0.2, %v3167_v31  ;;  %v1291_v60 = vsel %vm1163_vm7, %v3151_v19, %v1227_v27  ;;  %v1352_v23 = vpack.c.bf16 %v1288_v42, %v1288_v42 }
 0x260   :  { %1413 = vst.msk [vmem:[%s3899_s4 + $0x24] sm:$0xf] %vm1403_vm0, %v1348_v24  ;;  %vm1167_vm11 = vcmp.gt.f32.partialorder %v3167_v31, 0.0  ;;  %v1232_v62 = vmul.f32 0.2, %v3171_v37  ;;  %v1292_v18 = vsel %vm1164_vm8, %v3155_v22, %v1228_v6  ;;  %v1353_v1 = vpack.c.bf16 %v1289_v5, %v1289_v5 }
 0x261   :  { %1414 = vst.msk [vmem:[%s3899_s4 + $0x28] sm:$0xf] %vm1403_vm0, %v1349_v58  ;;  %vm1168_vm12 = vcmp.gt.f32.partialorder %v3171_v37, 0.0  ;;  %v1233_v19 = vmul.f32 0.2, %v3175_v33  ;;  %v1293_v38 = vsel %vm1165_vm9, %v3159_v29, %v1229_v44  ;;  %v1354_v50 = vpack.c.bf16 %v1290_v25, %v1290_v25 }
 0x262   :  { %1415 = vst.msk [vmem:[%s3899_s4 + $0x2c] sm:$0xf] %vm1403_vm0, %v1350_v53  ;;  %vm1169_vm13 = vcmp.gt.f32.partialorder %v3175_v33, 0.0  ;;  %v1234_v22 = vmul.f32 0.2, %v3179_v45  ;;  %v1294_v8 = vsel %vm1166_vm10, %v3163_v3, %v1230_v15  ;;  %v1355_v40 = vpack.c.bf16 %v1291_v60, %v1291_v60 }
 0x263   :  { %1416 = vst.msk [vmem:[%s3899_s4 + $0x30] sm:$0xf] %vm1403_vm0, %v1351_v30  ;;  %vm1170_vm14 = vcmp.gt.f32.partialorder %v3179_v45, 0.0  ;;  %v1235_v29 = vmul.f32 0.2, %v3183_v48  ;;  %v1295_v16 = vsel %vm1167_vm11, %v3167_v31, %v1231_v20  ;;  %v1356_v61 = vpack.c.bf16 %v1292_v18, %v1292_v18 }
 0x264   :  { %1417 = vst.msk [vmem:[%s3899_s4 + $0x34] sm:$0xf] %vm1403_vm0, %v1352_v23  ;;  %vm1171_vm15 = vcmp.gt.f32.partialorder %v3183_v48, 0.0  ;;  %v1236_v3 = vmul.f32 0.2, %v3187_v51  ;;  %v1296_v12 = vsel %vm1168_vm12, %v3171_v37, %v1232_v62  ;;  %v1357_v2 = vpack.c.bf16 %v1293_v38, %v1293_v38 }
 0x265   :  { %1418 = vst.msk [vmem:[%s3899_s4 + $0x38] sm:$0xf] %vm1403_vm0, %v1353_v1  ;;  %vm1172_vm1 = vcmp.gt.f32.partialorder %v3187_v51, 0.0  ;;  %v1237_v31 = vmul.f32 0.2, %v3191_v54  ;;  %v1297_v26 = vsel %vm1169_vm13, %v3175_v33, %v1233_v19  ;;  %v1358_v4 = vpack.c.bf16 %v1294_v8, %v1294_v8 }
 0x266   :  { %1419 = vst.msk [vmem:[%s3899_s4 + $0x3c] sm:$0xf] %vm1403_vm0, %v1354_v50  ;;  %vm1173_vm2 = vcmp.gt.f32.partialorder %v3191_v54, 0.0  ;;  %v1238_v37 = vmul.f32 0.2, %v3195_v57  ;;  %v1298_v7 = vsel %vm1170_vm14, %v3179_v45, %v1234_v22  ;;  %v1359_v17 = vpack.c.bf16 %v1295_v16, %v1295_v16 }
 0x267   :  { %1420 = vst.msk [vmem:[%s3899_s4 + $0x40] sm:$0xf] %vm1403_vm0, %v1355_v40  ;;  %vm1174_vm3 = vcmp.gt.f32.partialorder %v3195_v57, 0.0  ;;  %v1239_v33 = vmul.f32 0.2, %v3199_v59  ;;  %v1299_v27 = vsel %vm1171_vm15, %v3183_v48, %v1235_v29  ;;  %v1360_v13 = vpack.c.bf16 %v1296_v12, %v1296_v12 }
 0x268   :  { %1421 = vst.msk [vmem:[%s3899_s4 + $0x44] sm:$0xf] %vm1403_vm0, %v1356_v61  ;;  %vm1175_vm4 = vcmp.gt.f32.partialorder %v3199_v59, 0.0  ;;  %v1240_v45 = vmul.f32 0.2, %v3203_v63  ;;  %v1300_v24 = vsel %vm1172_vm1, %v3187_v51, %v1236_v3  ;;  %v1361_v6 = vpack.c.bf16 %v1297_v26, %v1297_v26 }
 0x269   :  { %1422 = vst.msk [vmem:[%s3899_s4 + $0x48] sm:$0xf] %vm1403_vm0, %v1357_v2  ;;  %vm1176_vm5 = vcmp.gt.f32.partialorder %v3203_v63, 0.0  ;;  %v1241_v48 = vmul.f32 0.2, %v3207_v9  ;;  %v1301_v42 = vsel %vm1173_vm2, %v3191_v54, %v1237_v31  ;;  %v1362_v58 = vpack.c.bf16 %v1298_v7, %v1298_v7 }
 0x26a   :  { %1423 = vst.msk [vmem:[%s3899_s4 + $0x4c] sm:$0xf] %vm1403_vm0, %v1358_v4  ;;  %vm1177_vm6 = vcmp.gt.f32.partialorder %v3207_v9, 0.0  ;;  %v1242_v51 = vmul.f32 0.2, %v3211_v21  ;;  %v1302_v44 = vsel %vm1174_vm3, %v3195_v57, %v1238_v37  ;;  %v1363_v5 = vpack.c.bf16 %v1299_v27, %v1299_v27 }
 0x26b   :  { %1424 = vst.msk [vmem:[%s3899_s4 + $0x50] sm:$0xf] %vm1403_vm0, %v1359_v17  ;;  %vm1178_vm7 = vcmp.gt.f32.partialorder %v3211_v21, 0.0  ;;  %v1243_v54 = vmul.f32 0.2, %v3215_v34  ;;  %v1303_v53 = vsel %vm1175_vm4, %v3199_v59, %v1239_v33  ;;  %v1364_v15 = vpack.c.bf16 %v1300_v24, %v1300_v24 }
 0x26c   :  { %1425 = vst.msk [vmem:[%s3899_s4 + $0x54] sm:$0xf] %vm1403_vm0, %v1360_v13  ;;  %vm1179_vm8 = vcmp.gt.f32.partialorder %v3215_v34, 0.0  ;;  %v1244_v57 = vmul.f32 0.2, %v3219_v10  ;;  %v1304_v25 = vsel %vm1176_vm5, %v3203_v63, %v1240_v45  ;;  %v1365_v30 = vpack.c.bf16 %v1301_v42, %v1301_v42 }
 0x26d   :  { %1426 = vst.msk [vmem:[%s3899_s4 + $0x58] sm:$0xf] %vm1403_vm0, %v1361_v6  ;;  %vm1180_vm9 = vcmp.gt.f32.partialorder %v3219_v10, 0.0  ;;  %v1245_v59 = vmul.f32 0.2, %v3223_v32  ;;  %v1305_v20 = vsel %vm1177_vm6, %v3207_v9, %v1241_v48  ;;  %v1366_v60 = vpack.c.bf16 %v1302_v44, %v1302_v44 }
 0x26e   :  { %1427 = vst.msk [vmem:[%s3899_s4 + $0x5c] sm:$0xf] %vm1403_vm0, %v1362_v58  ;;  %vm1181_vm10 = vcmp.gt.f32.partialorder %v3223_v32, 0.0  ;;  %v1246_v63 = vmul.f32 0.2, %v3227_v36  ;;  %v1306_v23 = vsel %vm1178_vm7, %v3211_v21, %v1242_v51  ;;  %v1367_v62 = vpack.c.bf16 %v1303_v53, %v1303_v53 }
 0x26f   :  { %1428 = vst.msk [vmem:[%s3899_s4 + $0x60] sm:$0xf] %vm1403_vm0, %v1363_v5  ;;  %vm1182_vm11 = vcmp.gt.f32.partialorder %v3227_v36, 0.0  ;;  %v1247_v9 = vmul.f32 0.2, %v3231_v39  ;;  %v1307_v18 = vsel %vm1179_vm8, %v3215_v34, %v1243_v54  ;;  %v1368_v1 = vpack.c.bf16 %v1304_v25, %v1304_v25  ;;  %v4074_v54 = vld [vmem:[#allocation14_spill] sm:$0xff] }
 0x270   :  { %1429 = vst.msk [vmem:[%s3899_s4 + $0x64] sm:$0xf] %vm1403_vm0, %v1364_v15  ;;  %vm1183_vm12 = vcmp.gt.f32.partialorder %v3231_v39, 0.0  ;;  %v1248_v21 = vmul.f32 0.2, %v3235_v41  ;;  %v1308_v19 = vsel %vm1180_vm9, %v3219_v10, %v1244_v57  ;;  %v1369_v38 = vpack.c.bf16 %v1305_v20, %v1305_v20 }
 0x271   :  { %1430 = vst.msk [vmem:[%s3899_s4 + $0x68] sm:$0xf] %vm1403_vm0, %v1365_v30  ;;  %vm1184_vm13 = vcmp.gt.f32.partialorder %v3235_v41, 0.0  ;;  %v1249_v34 = vmul.f32 0.2, %v3239_v46  ;;  %v1309_v50 = vsel %vm1181_vm10, %v3223_v32, %v1245_v59  ;;  %v1370_v22 = vpack.c.bf16 %v1306_v23, %v1306_v23 }
 0x272   :  { %1431 = vst.msk [vmem:[%s3899_s4 + $0x6c] sm:$0xf] %vm1403_vm0, %v1366_v60  ;;  %vm1185_vm14 = vcmp.gt.f32.partialorder %v3239_v46, 0.0  ;;  %v1250_v10 = vmul.f32 0.2, %v3243_v49  ;;  %v1310_v8 = vsel %vm1182_vm11, %v3227_v36, %v1246_v63  ;;  %v1371_v40 = vpack.c.bf16 %v1307_v18, %v1307_v18  ;;  %v4070_v36 = vld [vmem:[#allocation22_spill] sm:$0xff] }
 0x273   :  { %1432 = vst.msk [vmem:[%s3899_s4 + $0x70] sm:$0xf] %vm1403_vm0, %v1367_v62  ;;  %vm1186_vm15 = vcmp.gt.f32.partialorder %v3243_v49, 0.0  ;;  %v1251_v32 = vmul.f32 0.2, %v3247_v52  ;;  %v1311_v29 = vsel %vm1183_vm12, %v3231_v39, %v1247_v9  ;;  %v1372_v16 = vpack.c.bf16 %v1308_v19, %v1308_v19  ;;  %v4071_v39 = vld [vmem:[#allocation9_spill] sm:$0xff] }
 0x274   :  { %1433 = vst.msk [vmem:[%s3899_s4 + $0x74] sm:$0xf] %vm1403_vm0, %v1368_v1  ;;  %vm1187_vm1 = vcmp.gt.f32.partialorder %v3247_v52, 0.0  ;;  %v1252_v61 = vmul.f32 0.2, %v4070_v36  ;;  %v1312_v3 = vsel %vm1184_vm13, %v3235_v41, %v1248_v21  ;;  %v1373_v12 = vpack.c.bf16 %v1309_v50, %v1309_v50  ;;  %v4072_v41 = vld [vmem:[#allocation11_spill] sm:$0xff] }
 0x275   :  { %1434 = vst.msk [vmem:[%s3899_s4 + $0x78] sm:$0xf] %vm1403_vm0, %v1369_v38  ;;  %vm1188_vm2 = vcmp.gt.f32.partialorder %v4070_v36, 0.0  ;;  %v1253_v2 = vmul.f32 0.2, %v4071_v39  ;;  %v1313_v31 = vsel %vm1185_vm14, %v3239_v46, %v1249_v34  ;;  %v1374_v26 = vpack.c.bf16 %v1310_v8, %v1310_v8  ;;  %v4073_v46 = vld [vmem:[#allocation13_spill] sm:$0xff] }
 0x276   :  { %1435 = vst.msk [vmem:[%s3899_s4 + $0x7c] sm:$0xf] %vm1403_vm0, %v1370_v22  ;;  %vm1189_vm3 = vcmp.gt.f32.partialorder %v4071_v39, 0.0  ;;  %v1254_v4 = vmul.f32 0.2, %v4072_v41  ;;  %v1314_v37 = vsel %vm1186_vm15, %v3243_v49, %v1250_v10  ;;  %v1375_v7 = vpack.c.bf16 %v1311_v29, %v1311_v29 }
 0x277   :  { %1436 = vst.msk [vmem:[%s3899_s4 + $0x80] sm:$0xf] %vm1403_vm0, %v1371_v40  ;;  %vm1190_vm4 = vcmp.gt.f32.partialorder %v4072_v41, 0.0  ;;  %v1255_v17 = vmul.f32 0.2, %v4073_v46  ;;  %v1315_v33 = vsel %vm1187_vm1, %v3247_v52, %v1251_v32  ;;  %v1376_v27 = vpack.c.bf16 %v1312_v3, %v1312_v3 }
 0x278   :  { %1437 = vst.msk [vmem:[%s3899_s4 + $0x84] sm:$0xf] %vm1403_vm0, %v1372_v16  ;;  %vm1191_vm5 = vcmp.gt.f32.partialorder %v4073_v46, 0.0  ;;  %v1256_v49 = vmul.f32 0.2, %v3267_v28  ;;  %v1316_v13 = vsel %vm1188_vm2, %v4070_v36, %v1252_v61  ;;  %v1377_v45 = vpack.c.bf16 %v1313_v31, %v1313_v31  ;;  %v4079_v61 = vld [vmem:[#allocation7_spill] sm:$0xff] }
 0x279   :  { %1438 = vst.msk [vmem:[%s3899_s4 + $0x88] sm:$0xf] %vm1403_vm0, %v1373_v12  ;;  %vm1192_vm6 = vcmp.gt.f32.partialorder %v3267_v28, 0.0  ;;  %v1257_v52 = vmul.f32 0.2, %v3271_v43  ;;  %v1317_v24 = vsel %vm1189_vm3, %v4071_v39, %v1253_v2  ;;  %v1378_v6 = vpack.c.bf16 %v1314_v37, %v1314_v37 }
 0x27a   :  { %1439 = vst.msk [vmem:[%s3899_s4 + $0x8c] sm:$0xf] %vm1403_vm0, %v1374_v26  ;;  %vm1193_vm7 = vcmp.gt.f32.partialorder %v3271_v43, 0.0  ;;  %v1258_v48 = vmul.f32 0.2, %v3275_v56  ;;  %v1318_v42 = vsel %vm1190_vm4, %v4072_v41, %v1254_v4  ;;  %v1379_v58 = vpack.c.bf16 %v1315_v33, %v1315_v33 }
 0x27b   :  { %1440 = vst.msk [vmem:[%s3899_s4 + $0x90] sm:$0xf] %vm1403_vm0, %v1375_v7  ;;  %vm1194_vm8 = vcmp.gt.f32.partialorder %v3275_v56, 0.0  ;;  %v1259_v51 = vmul.f32 0.2, %v3279_v35  ;;  %v1319_v44 = vsel %vm1191_vm5, %v4073_v46, %v1255_v17  ;;  %v1380_v5 = vpack.c.bf16 %v1316_v13, %v1316_v13  ;;  %v4082_v7 = vld [vmem:[#allocation2_spill] sm:$0xff] }
 0x27c   :  { %1441 = vst.msk [vmem:[%s3899_s4 + $0x94] sm:$0xf] %vm1403_vm0, %v1376_v27  ;;  %vm1195_vm9 = vcmp.gt.f32.partialorder %v3279_v35, 0.0  ;;  %v1260_v53 = vmul.f32 0.2, %v4074_v54  ;;  %v1320_v15 = vsel %vm1192_vm6, %v3267_v28, %v1256_v49  ;;  %v1381_v57 = vpack.c.bf16 %v1317_v24, %v1317_v24  ;;  %v4083_v27 = vld [vmem:[#allocation24_spill] sm:$0xff] }
 0x27d   :  { %1442 = vst.msk [vmem:[%s3899_s4 + $0x98] sm:$0xf] %vm1403_vm0, %v1377_v45  ;;  %vm1196_vm10 = vcmp.gt.f32.partialorder %v4074_v54, 0.0  ;;  %v1261_v25 = vmul.f32 0.2, %v3287_v47  ;;  %v1321_v30 = vsel %vm1193_vm7, %v3271_v43, %v1257_v52  ;;  %v1382_v59 = vpack.c.bf16 %v1318_v42, %v1318_v42 }
 0x27e   :  { %1443 = vst.msk [vmem:[%s3899_s4 + $0x9c] sm:$0xf] %vm1403_vm0, %v1378_v6  ;;  %vm1197_vm11 = vcmp.gt.f32.partialorder %v3287_v47, 0.0  ;;  %v1262_v28 = vmul.f32 0.2, %v3291_v11  ;;  %v1322_v20 = vsel %vm1194_vm8, %v3275_v56, %v1258_v48  ;;  %v1383_v60 = vpack.c.bf16 %v1319_v44, %v1319_v44  ;;  %v4075_v56 = vld [vmem:[#allocation15_spill] sm:$0xff] }
 0x27f   :  { %1444 = vst.msk [vmem:[%s3899_s4 + $0xa0] sm:$0xf] %vm1403_vm0, %v1379_v58  ;;  %vm1198_vm12 = vcmp.gt.f32.partialorder %v3291_v11, 0.0  ;;  %v1263_v43 = vmul.f32 0.2, %v3295_v55  ;;  %v1323_v63 = vsel %vm1195_vm9, %v3279_v35, %v1259_v51  ;;  %v1384_v23 = vpack.c.bf16 %v1320_v15, %v1320_v15 }
 0x280   :  { %1445 = vst.msk [vmem:[%s3899_s4 + $0xa4] sm:$0xf] %vm1403_vm0, %v1380_v5  ;;  %vm1199_vm13 = vcmp.gt.f32.partialorder %v3295_v55, 0.0  ;;  %v1264_v62 = vmul.f32 0.2, %v4075_v56  ;;  %v1324_v9 = vsel %vm1196_vm10, %v4074_v54, %v1260_v53  ;;  %v1385_v18 = vpack.c.bf16 %v1321_v30, %v1321_v30 }
 0x281   :  { %1446 = vst.msk [vmem:[%s3899_s4 + $0xa8] sm:$0xf] %vm1403_vm0, %v1381_v57  ;;  %vm1200_vm14 = vcmp.gt.f32.partialorder %v4075_v56, 0.0  ;;  %v1265_v35 = vmul.f32 0.2, %v3303_v0  ;;  %v1325_v1 = vsel %vm1197_vm11, %v3287_v47, %v1261_v25  ;;  %v1386_v21 = vpack.c.bf16 %v1322_v20, %v1322_v20  ;;  %v4076_v47 = vld [vmem:[#allocation16_spill] sm:$0xff] }
 0x282   :  { %1447 = vst.msk [vmem:[%s3899_s4 + $0xac] sm:$0xf] %vm1403_vm0, %v1382_v59  ;;  %vm1201_vm15 = vcmp.gt.f32.partialorder %v3303_v0, 0.0  ;;  %v1266_v19 = vmul.f32 0.2, %v3308_v14  ;;  %v1326_v38 = vsel %vm1198_vm12, %v3291_v11, %v1262_v28  ;;  %v1387_v34 = vpack.c.bf16 %v1323_v63, %v1323_v63  ;;  %v4077_v11 = vld [vmem:[#allocation17_spill] sm:$0xff] }
 0x283   :  { %1448 = vst.msk [vmem:[%s3899_s4 + $0xb0] sm:$0xf] %vm1403_vm0, %v1383_v60  ;;  %vm1202_vm1 = vcmp.gt.f32.partialorder %v3308_v14, 0.0  ;;  %v1267_v50 = vmul.f32 0.2, %v4076_v47  ;;  %v1327_v22 = vsel %vm1199_vm13, %v3295_v55, %v1263_v43  ;;  %v1388_v10 = vpack.c.bf16 %v1324_v9, %v1324_v9  ;;  %v4078_v55 = vld [vmem:[#allocation18_spill] sm:$0xff] }
 0x284   :  { %1449 = vst.msk [vmem:[%s3899_s4 + $0xb4] sm:$0xf] %vm1403_vm0, %v1384_v23  ;;  %vm1203_vm2 = vcmp.gt.f32.partialorder %v4076_v47, 0.0  ;;  %v1268_v8 = vmul.f32 0.2, %v4077_v11  ;;  %v1328_v40 = vsel %vm1200_vm14, %v4075_v56, %v1264_v62  ;;  %v1389_v32 = vpack.c.bf16 %v1325_v1, %v1325_v1 }
 0x285   :  { %1450 = vst.msk [vmem:[%s3899_s4 + $0xb8] sm:$0xf] %vm1403_vm0, %v1385_v18  ;;  %vm1204_vm3 = vcmp.gt.f32.partialorder %v4077_v11, 0.0  ;;  %v1269_v29 = vmul.f32 0.2, %v4078_v55  ;;  %v1329_v16 = vsel %vm1201_vm15, %v3303_v0, %v1265_v35  ;;  %v1390_v36 = vpack.c.bf16 %v1326_v38, %v1326_v38  ;;  %v4080_v0 = vld [vmem:[#allocation8_spill] sm:$0xff] }
 0x286   :  { %1451 = vst.msk [vmem:[%s3899_s4 + $0xbc] sm:$0xf] %vm1403_vm0, %v1386_v21  ;;  %vm1205_vm4 = vcmp.gt.f32.partialorder %v4078_v55, 0.0  ;;  %v1270_v3 = vmul.f32 0.2, %v4079_v61  ;;  %v1330_v12 = vsel %vm1202_vm1, %v3308_v14, %v1266_v19  ;;  %v1391_v39 = vpack.c.bf16 %v1327_v22, %v1327_v22  ;;  %v4081_v14 = vld [vmem:[#allocation10_spill] sm:$0xff] }
 0x287   :  { %1452 = vst.msk [vmem:[%s3899_s4 + $0xc0] sm:$0xf] %vm1403_vm0, %v1387_v34  ;;  %vm1206_vm5 = vcmp.gt.f32.partialorder %v4079_v61, 0.0  ;;  %v1271_v2 = vmul.f32 0.2, %v4080_v0  ;;  %v1331_v31 = vsel %vm1203_vm2, %v4076_v47, %v1267_v50  ;;  %v1392_v26 = vpack.c.bf16 %v1328_v40, %v1328_v40 }
 0x288   :  { %1453 = vst.msk [vmem:[%s3899_s4 + $0xc4] sm:$0xf] %vm1403_vm0, %v1388_v10  ;;  %vm1207_vm6 = vcmp.gt.f32.partialorder %v4080_v0, 0.0  ;;  %v1272_v41 = vmul.f32 0.2, %v4081_v14  ;;  %v1332_v4 = vsel %vm1204_vm3, %v4077_v11, %v1268_v8  ;;  %v1393_v37 = vpack.c.bf16 %v1329_v16, %v1329_v16 }
 0x289   :  { %1454 = vst.msk [vmem:[%s3899_s4 + $0xc8] sm:$0xf] %vm1403_vm0, %v1389_v32  ;;  %vm1208_vm7 = vcmp.gt.f32.partialorder %v4081_v14, 0.0  ;;  %v1273_v46 = vmul.f32 0.2, %v4082_v7  ;;  %v1333_v17 = vsel %vm1205_vm4, %v4078_v55, %v1269_v29  ;;  %v1394_v33 = vpack.c.bf16 %v1330_v12, %v1330_v12 }
 0x28a   :  { %1455 = vst.msk [vmem:[%s3899_s4 + $0xcc] sm:$0xf] %vm1403_vm0, %v1390_v36  ;;  %vm1209_vm8 = vcmp.gt.f32.partialorder %v4082_v7, 0.0  ;;  %v1274_v49 = vmul.f32 0.2, %v4083_v27  ;;  %v1334_v13 = vsel %vm1206_vm5, %v4079_v61, %v1270_v3  ;;  %v1395_v45 = vpack.c.bf16 %v1331_v31, %v1331_v31 }
 0x28b   :  { %1456 = vst.msk [vmem:[%s3899_s4 + $0xd0] sm:$0xf] %vm1403_vm0, %v1391_v39  ;;  %vm1210_vm9 = vcmp.gt.f32.partialorder %v4083_v27, 0.0  ;;  %v1335_v52 = vsel %vm1207_vm6, %v4080_v0, %v1271_v2  ;;  %v1396_v24 = vpack.c.bf16 %v1332_v4, %v1332_v4  ;;  %v1336_v6 = vsel %vm1208_vm7, %v4081_v14, %v1272_v41 }
 0x28c   :  { %1457 = vst.msk [vmem:[%s3899_s4 + $0xd4] sm:$0xf] %vm1403_vm0, %v1392_v26  ;;  %v1397_v48 = vpack.c.bf16 %v1333_v17, %v1333_v17  ;;  %v1337_v42 = vsel %vm1209_vm8, %v4082_v7, %v1273_v46  ;;  %v1398_v58 = vpack.c.bf16 %v1334_v13, %v1334_v13  ;;  %v1338_v51 = vsel %vm1210_vm9, %v4083_v27, %v1274_v49 }
 0x28d   :  { %1458 = vst.msk [vmem:[%s3899_s4 + $0xd8] sm:$0xf] %vm1403_vm0, %v1393_v37  ;;  %v1399_v44 = vpack.c.bf16 %v1335_v52, %v1335_v52  ;;  %v1400_v5 = vpack.c.bf16 %v1336_v6, %v1336_v6  ;;  %v1401_v54 = vpack.c.bf16 %v1337_v42, %v1337_v42  ;;  %v1402_v53 = vpack.c.bf16 %v1338_v51, %v1338_v51 }
 0x28e   :  { %1459 = vst.msk [vmem:[%s3899_s4 + $0xdc] sm:$0xf] %vm1403_vm0, %v1394_v33 }
 0x28f   :  { %1460 = vst.msk [vmem:[%s3899_s4 + $0xe0] sm:$0xf] %vm1403_vm0, %v1395_v45 }
 0x290   :  { %1461 = vst.msk [vmem:[%s3899_s4 + $0xe4] sm:$0xf] %vm1403_vm0, %v1396_v24 }
 0x291   :  { %1462 = vst.msk [vmem:[%s3899_s4 + $0xe8] sm:$0xf] %vm1403_vm0, %v1397_v48 }
 0x292   :  { %1463 = vst.msk [vmem:[%s3899_s4 + $0xec] sm:$0xf] %vm1403_vm0, %v1398_v58 }
 0x293   :  { %1464 = vst.msk [vmem:[%s3899_s4 + $0xf0] sm:$0xf] %vm1403_vm0, %v1399_v44 }
 0x294   :  { %1465 = vst.msk [vmem:[%s3899_s4 + $0xf4] sm:$0xf] %vm1403_vm0, %v1400_v5 }
 0x295   :  { %1466 = vst.msk [vmem:[%s3899_s4 + $0xf8] sm:$0xf] %vm1403_vm0, %v1401_v54 }
 0x296   :  { %1467 = vst.msk [vmem:[%s3899_s4 + $0xfc] sm:$0xf] %vm1403_vm0, %v1402_v53 }

// kernel: discriminator_forward.4
= control target key start
LH: loop header
LB: loop body
LE: loop exit
PB: predicated region body
PF: predicated region fallthrough
CT: control target
= control target key end

     0   :  { %s3057_s1 = inlined_call_operand.vmem [shape: bf16[1024,128], index: 1, kind: input, shape index: {}]   ;;  %s3058_s0 = inlined_call_operand.vmem [shape: bf16[128,1024], index: 0, kind: input, shape index: {}]   ;;  %s3059_s2 = inlined_call_operand.vmem [shape: f32[1,128], index: 2, kind: input, shape index: {}]   ;;  %s3060_s3 = inlined_call_operand.vmem [shape: f32[1,128], index: 3, kind: input, shape index: {}]   ;;  %s3061_s4 = inlined_call_operand.vmem [shape: bf16[128,128], index: 4, kind: output, shape index: {}]  }
   0x1   :  { %v2122_v0 = vld [vmem:[%s3057_s1 + $0x38] sm:$0xff]  ;;  %v2121_v4 = vld [vmem:[%s3057_s1 + $0x30] sm:$0xff]  ;;  %v2120_v8 = vld [vmem:[%s3057_s1 + $0x28] sm:$0xff] }
   0x2   :  { %v2130_v1 = vld [vmem:[%s3057_s1 + $0x78] sm:$0xff]  ;;  %913 = vmatpush.bf16.msra.mxu0 %v2122_v0  ;;  %v2129_v5 = vld [vmem:[%s3057_s1 + $0x70] sm:$0xff]  ;;  %v2128_v9 = vld [vmem:[%s3057_s1 + $0x68] sm:$0xff] }
   0x3   :  { %v2138_v2 = vld [vmem:[%s3057_s1 + $0xb8] sm:$0xff]  ;;  %962 = vmatpush.bf16.msra.mxu1 %v2130_v1  ;;  %v2137_v6 = vld [vmem:[%s3057_s1 + $0xb0] sm:$0xff]  ;;  %v2136_v10 = vld [vmem:[%s3057_s1 + $0xa8] sm:$0xff] }
   0x4   :  { %v2146_v3 = vld [vmem:[%s3057_s1 + $0xf8] sm:$0xff]  ;;  %1011 = vmatpush.bf16.msra.mxu2 %v2138_v2  ;;  %v2145_v7 = vld [vmem:[%s3057_s1 + $0xf0] sm:$0xff]  ;;  %v2144_v11 = vld [vmem:[%s3057_s1 + $0xe8] sm:$0xff] }
   0x5   :  { %1060 = vmatpush.bf16.msra.mxu3 %v2146_v3  ;;  %v2119_v12 = vld [vmem:[%s3057_s1 + $0x20] sm:$0xff]  ;;  %v2118_v16 = vld [vmem:[%s3057_s1 + $0x18] sm:$0xff]  ;;  %v2117_v20 = vld [vmem:[%s3057_s1 + $0x10] sm:$0xff] }
   0x6   :  { %914 = vmatpush.bf16.msra.mxu0 %v2121_v4  ;;  %v2127_v13 = vld [vmem:[%s3057_s1 + $0x60] sm:$0xff]  ;;  %v2126_v17 = vld [vmem:[%s3057_s1 + $0x58] sm:$0xff]  ;;  %v2125_v21 = vld [vmem:[%s3057_s1 + $0x50] sm:$0xff] }
   0x7   :  { %963 = vmatpush.bf16.msra.mxu1 %v2129_v5  ;;  %v2135_v14 = vld [vmem:[%s3057_s1 + $0xa0] sm:$0xff]  ;;  %v2134_v18 = vld [vmem:[%s3057_s1 + $0x98] sm:$0xff]  ;;  %v2133_v22 = vld [vmem:[%s3057_s1 + $0x90] sm:$0xff] }
   0x8   :  { %1012 = vmatpush.bf16.msra.mxu2 %v2137_v6  ;;  %v2143_v15 = vld [vmem:[%s3057_s1 + $0xe0] sm:$0xff]  ;;  %v2142_v19 = vld [vmem:[%s3057_s1 + $0xd8] sm:$0xff]  ;;  %v2141_v23 = vld [vmem:[%s3057_s1 + $0xd0] sm:$0xff] }
   0x9   :  { %1061 = vmatpush.bf16.msra.mxu3 %v2145_v7  ;;  %v2116_v24 = vld [vmem:[%s3057_s1 + $0x8] sm:$0xff]  ;;  %v2115_v28 = vld [vmem:[%s3057_s1] sm:$0xff]  ;;  %v2170_v40 = vld [vmem:[%s3057_s1 + $0x1b8] sm:$0xff] }
   0xa   :  { %915 = vmatpush.bf16.msra.mxu0 %v2120_v8  ;;  %v2124_v25 = vld [vmem:[%s3057_s1 + $0x48] sm:$0xff]  ;;  %v2123_v29 = vld [vmem:[%s3057_s1 + $0x40] sm:$0xff]  ;;  %v2154_v41 = vld [vmem:[%s3057_s1 + $0x138] sm:$0xff] }
   0xb   :  { %964 = vmatpush.bf16.msra.mxu1 %v2128_v9  ;;  %v2132_v26 = vld [vmem:[%s3057_s1 + $0x88] sm:$0xff]  ;;  %v2131_v30 = vld [vmem:[%s3057_s1 + $0x80] sm:$0xff]  ;;  %v2178_v46 = vld [vmem:[%s3057_s1 + $0x1f8] sm:$0xff] }
   0xc   :  { %1013 = vmatpush.bf16.msra.mxu2 %v2136_v10  ;;  %v2140_v27 = vld [vmem:[%s3057_s1 + $0xc8] sm:$0xff]  ;;  %v2139_v31 = vld [vmem:[%s3057_s1 + $0xc0] sm:$0xff]  ;;  %v2162_v47 = vld [vmem:[%s3057_s1 + $0x178] sm:$0xff] }
   0xd   :  { %1062 = vmatpush.bf16.msra.mxu3 %v2144_v11  ;;  %v1541_v32 = vld [vmem:[%s3058_s0] sm:$0xf]  ;;  %v2051_v34 = vld [vmem:[%s3058_s0 + $0x4] sm:$0xf]  ;;  %v1549_v36 = vld [vmem:[%s3058_s0 + $0x8] sm:$0xf] }
   0xe   :  { %916 = vmatpush.bf16.msra.mxu0 %v2119_v12  ;;  %v2055_v33 = vld [vmem:[%s3058_s0 + $0x1c] sm:$0xf0]  ;;  %v1543_v35 = vld [vmem:[%s3058_s0 + $0x20] sm:$0xf0]  ;;  %v2056_v37 = vld [vmem:[%s3058_s0 + $0x24] sm:$0xf0] }
   0xf   :  { %965 = vmatpush.bf16.msra.mxu1 %v2127_v13  ;;  %v2052_v38 = vld [vmem:[%s3058_s0 + $0xc] sm:$0xf]  ;;  %v1542_v42 = vor.u32 %v2055_v33, %v1541_v32  ;;  %v1546_v43 = vor.u32 %v2051_v34, %v1543_v35  ;;  %v1550_v44 = vor.u32 %v2056_v37, %v1549_v36  ;;  %v2169_v48 = vld [vmem:[%s3057_s1 + $0x1b0] sm:$0xff]  ;;  %v1573_v56 = vld [vmem:[%s3058_s0 + $0x40] sm:$0xf] }
  0x10   :  { %1014 = vmatpush.bf16.msra.mxu2 %v2135_v14  ;;  %v1551_v39 = vld [vmem:[%s3058_s0 + $0x28] sm:$0xf0]  ;;  %v2153_v49 = vld [vmem:[%s3057_s1 + $0x130] sm:$0xff]  ;;  %v2063_v57 = vld [vmem:[%s3058_s0 + $0x5c] sm:$0xf0] }
  0x11   :  { %1063 = vmatpush.bf16.msra.mxu3 %v2143_v15  ;;  %v1554_v45 = vor.u32 %v2052_v38, %v1551_v39  ;;  %v2177_v50 = vld [vmem:[%s3057_s1 + $0x1f0] sm:$0xff]  ;;  %v2168_v52 = vld [vmem:[%s3057_s1 + $0x1a8] sm:$0xff]  ;;  %v2059_v58 = vld [vmem:[%s3058_s0 + $0x44] sm:$0xf]  ;;  %v1574_v0 = vor.u32 %v2063_v57, %v1573_v56 }
  0x12   :  { %917 = vmatpush.bf16.msra.mxu0 %v2118_v16  ;;  %v2161_v51 = vld [vmem:[%s3057_s1 + $0x170] sm:$0xff]  ;;  %v2152_v53 = vld [vmem:[%s3057_s1 + $0x128] sm:$0xff]  ;;  %v1575_v59 = vld [vmem:[%s3058_s0 + $0x60] sm:$0xf0] }
  0x13   :  { %966 = vmatpush.bf16.msra.mxu1 %v2126_v17  ;;  %v2176_v54 = vld [vmem:[%s3057_s1 + $0x1e8] sm:$0xff]  ;;  %v1578_v1 = vor.u32 %v2059_v58, %v1575_v59  ;;  %v2167_v4 = vld [vmem:[%s3057_s1 + $0x1a0] sm:$0xff]  ;;  %v2165_v36 = vld [vmem:[%s3057_s1 + $0x190] sm:$0xff] }
  0x14   :  { %1015 = vmatpush.bf16.msra.mxu2 %v2134_v18  ;;  %v2160_v55 = vld [vmem:[%s3057_s1 + $0x168] sm:$0xff]  ;;  %v2151_v5 = vld [vmem:[%s3057_s1 + $0x120] sm:$0xff]  ;;  %v2149_v37 = vld [vmem:[%s3057_s1 + $0x110] sm:$0xff] }
  0x15   :  { %1064 = vmatpush.bf16.msra.mxu3 %v2142_v19  ;;  %v1581_v60 = vld [vmem:[%s3058_s0 + $0x48] sm:$0xf]  ;;  %v2060_v62 = vld [vmem:[%s3058_s0 + $0x4c] sm:$0xf]  ;;  %v2175_v6 = vld [vmem:[%s3057_s1 + $0x1e0] sm:$0xff] }
  0x16   :  { %918 = vmatpush.bf16.msra.mxu0 %v2117_v20  ;;  %v2064_v61 = vld [vmem:[%s3058_s0 + $0x64] sm:$0xf0]  ;;  %v1583_v63 = vld [vmem:[%s3058_s0 + $0x68] sm:$0xf0]  ;;  %v2159_v7 = vld [vmem:[%s3057_s1 + $0x160] sm:$0xff] }
  0x17   :  { %967 = vmatpush.bf16.msra.mxu1 %v2125_v21  ;;  %v1582_v2 = vor.u32 %v2064_v61, %v1581_v60  ;;  %v1586_v3 = vor.u32 %v2060_v62, %v1583_v63  ;;  %v1605_v8 = vld [vmem:[%s3058_s0 + $0x80] sm:$0xf]  ;;  %v2067_v10 = vld [vmem:[%s3058_s0 + $0x84] sm:$0xf]  ;;  %v1613_v12 = vld [vmem:[%s3058_s0 + $0x88] sm:$0xf] }
  0x18   :  { %1016 = vmatpush.bf16.msra.mxu2 %v2133_v22  ;;  %v2071_v9 = vld [vmem:[%s3058_s0 + $0x9c] sm:$0xf0]  ;;  %v1607_v11 = vld [vmem:[%s3058_s0 + $0xa0] sm:$0xf0]  ;;  %v2072_v13 = vld [vmem:[%s3058_s0 + $0xa4] sm:$0xf0] }
  0x19   :  { %1065 = vmatpush.bf16.msra.mxu3 %v2141_v23  ;;  %v2068_v14 = vld [vmem:[%s3058_s0 + $0x8c] sm:$0xf]  ;;  %v1606_v16 = vor.u32 %v2071_v9, %v1605_v8  ;;  %v1610_v17 = vor.u32 %v2067_v10, %v1607_v11  ;;  %v1614_v18 = vor.u32 %v2072_v13, %v1613_v12  ;;  %v2166_v20 = vld [vmem:[%s3057_s1 + $0x198] sm:$0xff]  ;;  %v2173_v38 = vld [vmem:[%s3057_s1 + $0x1d0] sm:$0xff] }
  0x1a   :  { %919 = vmatpush.bf16.msra.mxu0 %v2116_v24  ;;  %v1615_v15 = vld [vmem:[%s3058_s0 + $0xa8] sm:$0xf0]  ;;  %v2150_v21 = vld [vmem:[%s3057_s1 + $0x118] sm:$0xff]  ;;  %v1637_v24 = vld [vmem:[%s3058_s0 + $0xc0] sm:$0xf] }
  0x1b   :  { %968 = vmatpush.bf16.msra.mxu1 %v2124_v25  ;;  %v1618_v19 = vor.u32 %v2068_v14, %v1615_v15  ;;  %v2174_v22 = vld [vmem:[%s3057_s1 + $0x1d8] sm:$0xff]  ;;  %v2079_v25 = vld [vmem:[%s3058_s0 + $0xdc] sm:$0xf0]  ;;  %v2157_v39 = vld [vmem:[%s3057_s1 + $0x150] sm:$0xff] }
  0x1c   :  { %1017 = vmatpush.bf16.msra.mxu2 %v2132_v26  ;;  %v2158_v23 = vld [vmem:[%s3057_s1 + $0x158] sm:$0xff]  ;;  %v2075_v26 = vld [vmem:[%s3058_s0 + $0xc4] sm:$0xf]  ;;  %v1638_v32 = vor.u32 %v2079_v25, %v1637_v24  ;;  %v1701_v56 = vld [vmem:[%s3058_s0 + $0x140] sm:$0xf] }
  0x1d   :  { %1066 = vmatpush.bf16.msra.mxu3 %v2140_v27  ;;  %v1639_v27 = vld [vmem:[%s3058_s0 + $0xe0] sm:$0xf0]  ;;  %v2095_v57 = vld [vmem:[%s3058_s0 + $0x15c] sm:$0xf0]  ;;  %v1709_v60 = vld [vmem:[%s3058_s0 + $0x148] sm:$0xf] }
  0x1e   :  { %920 = vmatpush.bf16.msra.mxu0 %v2115_v28  ;;  %v1645_v28 = vld [vmem:[%s3058_s0 + $0xc8] sm:$0xf]  ;;  %v1642_v33 = vor.u32 %v2075_v26, %v1639_v27  ;;  %v2091_v58 = vld [vmem:[%s3058_s0 + $0x144] sm:$0xf]  ;;  %v2092_v62 = vld [vmem:[%s3058_s0 + $0x14c] sm:$0xf] }
  0x1f   :  { %969 = vmatpush.bf16.msra.mxu1 %v2123_v29  ;;  %v2080_v29 = vld [vmem:[%s3058_s0 + $0xe4] sm:$0xf0]  ;;  %v1703_v59 = vld [vmem:[%s3058_s0 + $0x160] sm:$0xf0]  ;;  %v1711_v63 = vld [vmem:[%s3058_s0 + $0x168] sm:$0xf0] }
  0x20   :  { %1018 = vmatpush.bf16.msra.mxu2 %v2131_v30  ;;  %v2076_v30 = vld [vmem:[%s3058_s0 + $0xcc] sm:$0xf]  ;;  %v1646_v34 = vor.u32 %v2080_v29, %v1645_v28  ;;  %v2096_v61 = vld [vmem:[%s3058_s0 + $0x164] sm:$0xf0]  ;;  %v1733_v8 = vld [vmem:[%s3058_s0 + $0x180] sm:$0xf] }
  0x21   :  { %1067 = vmatpush.bf16.msra.mxu3 %v2139_v31  ;;  %921 = vmatmul.bf16.vlgmr.msra.gmra.mxu0 %v1542_v42  ;;  %v1647_v31 = vld [vmem:[%s3058_s0 + $0xe8] sm:$0xf0]  ;;  %v2083_v42 = vld [vmem:[%s3058_s0 + $0x104] sm:$0xf]  ;;  %v2103_v9 = vld [vmem:[%s3058_s0 + $0x19c] sm:$0xf0] }
  0x22   :  { %1109 = vmatpush.bf16.msrb.mxu0 %v2154_v41  ;;  %970 = vmatmul.bf16.vlgmr.msra.gmra.mxu1 %v1546_v43  ;;  %v1650_v35 = vor.u32 %v2076_v30, %v1647_v31  ;;  %v2087_v41 = vld [vmem:[%s3058_s0 + $0x11c] sm:$0xf0]  ;;  %v1671_v43 = vld [vmem:[%s3058_s0 + $0x120] sm:$0xf0]  ;;  %v1741_v12 = vld [vmem:[%s3058_s0 + $0x188] sm:$0xf] }
  0x23   :  { %1019 = vmatmul.bf16.vlgmr.msra.gmra.mxu2 %v1550_v44  ;;  %1158 = vmatpush.bf16.msrb.mxu1 %v2162_v47  ;;  %v1677_v44 = vld [vmem:[%s3058_s0 + $0x108] sm:$0xf]  ;;  %v1679_v47 = vld [vmem:[%s3058_s0 + $0x128] sm:$0xf0]  ;;  %v2099_v10 = vld [vmem:[%s3058_s0 + $0x184] sm:$0xf] }
  0x24   :  { %1207 = vmatpush.bf16.msrb.mxu2 %v2170_v40  ;;  %1068 = vmatmul.bf16.vlgmr.msra.gmra.mxu3 %v1554_v45  ;;  %v1669_v40 = vld [vmem:[%s3058_s0 + $0x100] sm:$0xf]  ;;  %v2088_v45 = vld [vmem:[%s3058_s0 + $0x124] sm:$0xf0]  ;;  %v1735_v11 = vld [vmem:[%s3058_s0 + $0x1a0] sm:$0xf0] }
  0x25   :  { %1256 = vmatpush.bf16.msrb.mxu3 %v2178_v46  ;;  %v2084_v46 = vld [vmem:[%s3058_s0 + $0x10c] sm:$0xf]  ;;  %v2104_v13 = vld [vmem:[%s3058_s0 + $0x1a4] sm:$0xf0] }
  0x26   :  { %1110 = vmatpush.bf16.msrb.mxu0 %v2153_v49  ;;  %v1674_v49 = vor.u32 %v2083_v42, %v1671_v43  ;;  %v2100_v14 = vld [vmem:[%s3058_s0 + $0x18c] sm:$0xf]  ;;  %v1773_v24 = vld [vmem:[%s3058_s0 + $0x1c8] sm:$0xf] }
  0x27   :  { %1159 = vmatpush.bf16.msrb.mxu1 %v2161_v51  ;;  %v1682_v51 = vor.u32 %v2084_v46, %v1679_v47  ;;  %v1743_v15 = vld [vmem:[%s3058_s0 + $0x1a8] sm:$0xf0]  ;;  %v2112_v25 = vld [vmem:[%s3058_s0 + $0x1e4] sm:$0xf0] }
  0x28   :  { %1208 = vmatpush.bf16.msrb.mxu2 %v2169_v48  ;;  %v1670_v48 = vor.u32 %v2087_v41, %v1669_v40  ;;  %v2108_v26 = vld [vmem:[%s3058_s0 + $0x1cc] sm:$0xf]  ;;  %v1774_v30 = vor.u32 %v2112_v25, %v1773_v24 }
  0x29   :  { %1257 = vmatpush.bf16.msrb.mxu3 %v2177_v50  ;;  %v1678_v50 = vor.u32 %v2088_v45, %v1677_v44  ;;  %v1775_v27 = vld [vmem:[%s3058_s0 + $0x1e8] sm:$0xf0] }
  0x2a   :  { %1111 = vmatpush.bf16.msrb.mxu0 %v2152_v53  ;;  %v2148_v53 = vld [vmem:[%s3057_s1 + $0x108] sm:$0xff]  ;;  %v1778_v31 = vor.u32 %v2108_v26, %v1775_v27 }
  0x2b   :  { %1160 = vmatpush.bf16.msrb.mxu1 %v2160_v55  ;;  %v2156_v55 = vld [vmem:[%s3057_s1 + $0x148] sm:$0xff] }
  0x2c   :  { %1209 = vmatpush.bf16.msrb.mxu2 %v2168_v52  ;;  %v2164_v52 = vld [vmem:[%s3057_s1 + $0x188] sm:$0xff] }
  0x2d   :  { %1258 = vmatpush.bf16.msrb.mxu3 %v2176_v54  ;;  %v2172_v54 = vld [vmem:[%s3057_s1 + $0x1c8] sm:$0xff] }
  0x2e   :  { %1112 = vmatpush.bf16.msrb.mxu0 %v2151_v5  ;;  %v2147_v5 = vld [vmem:[%s3057_s1 + $0x100] sm:$0xff] }
  0x2f   :  { %1161 = vmatpush.bf16.msrb.mxu1 %v2159_v7  ;;  %v2155_v7 = vld [vmem:[%s3057_s1 + $0x140] sm:$0xff] }
  0x30   :  { %1210 = vmatpush.bf16.msrb.mxu2 %v2167_v4  ;;  %v2163_v4 = vld [vmem:[%s3057_s1 + $0x180] sm:$0xff] }
  0x31   :  { %926 = vmatmul.bf16.gmra.mxu0 %v1574_v0  ;;  %1259 = vmatpush.bf16.msrb.mxu3 %v2175_v6  ;;  %v1702_v0 = vor.u32 %v2095_v57, %v1701_v56  ;;  %v2171_v6 = vld [vmem:[%s3057_s1 + $0x1c0] sm:$0xff]  ;;  %v2061_v56 = vld [vmem:[%s3058_s0 + $0x54] sm:$0xf] }
  0x32   :  { %975 = vmatmul.bf16.gmra.mxu1 %v1578_v1  ;;  %1113 = vmatpush.bf16.msrb.mxu0 %v2150_v21  ;;  %v1706_v1 = vor.u32 %v2091_v58, %v1703_v59  ;;  %v2111_v21 = vld [vmem:[%s3058_s0 + $0x1dc] sm:$0xf0]  ;;  %v1591_v57 = vld [vmem:[%s3058_s0 + $0x70] sm:$0xf0]  ;;  %v1597_v58 = vld [vmem:[%s3058_s0 + $0x58] sm:$0xf] }
  0x33   :  { %1024 = vmatmul.bf16.gmra.mxu2 %v1582_v2  ;;  %1162 = vmatpush.bf16.msrb.mxu1 %v2158_v23  ;;  %v1710_v2 = vor.u32 %v2096_v61, %v1709_v60  ;;  %v1767_v23 = vld [vmem:[%s3058_s0 + $0x1e0] sm:$0xf0]  ;;  %v2066_v59 = vld [vmem:[%s3058_s0 + $0x74] sm:$0xf0]  ;;  %v2062_v60 = vld [vmem:[%s3058_s0 + $0x5c] sm:$0xf] }
  0x34   :  { %1073 = vmatmul.bf16.gmra.mxu3 %v1586_v3  ;;  %1211 = vmatpush.bf16.msrb.mxu2 %v2166_v20  ;;  %v1714_v3 = vor.u32 %v2092_v62, %v1711_v63  ;;  %v1765_v20 = vld [vmem:[%s3058_s0 + $0x1c0] sm:$0xf]  ;;  %v1599_v61 = vld [vmem:[%s3058_s0 + $0x78] sm:$0xf0] }
  0x35   :  { %1260 = vmatpush.bf16.msrb.mxu3 %v2174_v22  ;;  %v2107_v22 = vld [vmem:[%s3058_s0 + $0x1c4] sm:$0xf]  ;;  %v1766_v28 = vor.u32 %v2111_v21, %v1765_v20  ;;  %v1629_v20 = vld [vmem:[%s3058_s0 + $0x98] sm:$0xf] }
  0x36   :  { %1114 = vmatpush.bf16.msrb.mxu0 %v2149_v37  ;;  %v1770_v29 = vor.u32 %v2107_v22, %v1767_v23  ;;  %v2058_v37 = vld [vmem:[%s3058_s0 + $0x34] sm:$0xf0]  ;;  %v2070_v22 = vld [vmem:[%s3058_s0 + $0x9c] sm:$0xf] }
  0x37   :  { %1163 = vmatpush.bf16.msrb.mxu1 %v2157_v39  ;;  %v1567_v39 = vld [vmem:[%s3058_s0 + $0x38] sm:$0xf0]  ;;  %v2074_v21 = vld [vmem:[%s3058_s0 + $0xb4] sm:$0xf0] }
  0x38   :  { %1212 = vmatpush.bf16.msrb.mxu2 %v2165_v36  ;;  %v1565_v36 = vld [vmem:[%s3058_s0 + $0x18] sm:$0xf]  ;;  %v1631_v23 = vld [vmem:[%s3058_s0 + $0xb8] sm:$0xf0] }
  0x39   :  { %1261 = vmatpush.bf16.msrb.mxu3 %v2173_v38  ;;  %v2054_v38 = vld [vmem:[%s3058_s0 + $0x1c] sm:$0xf]  ;;  %v1566_v44 = vor.u32 %v2058_v37, %v1565_v36 }
  0x3a   :  { %1115 = vmatpush.bf16.msrb.mxu0 %v2148_v53  ;;  %v1570_v45 = vor.u32 %v2054_v38, %v1567_v39 }
  0x3b   :  { %1164 = vmatpush.bf16.msrb.mxu1 %v2156_v55  ;;  %v2065_v55 = vld [vmem:[%s3058_s0 + $0x6c] sm:$0xf0] }
  0x3c   :  { %1213 = vmatpush.bf16.msrb.mxu2 %v2164_v52 }
  0x3d   :  { %1262 = vmatpush.bf16.msrb.mxu3 %v2172_v54  ;;  %v1589_v54 = vld [vmem:[%s3058_s0 + $0x50] sm:$0xf] }
  0x3e   :  { %1116 = vmatpush.bf16.msrb.mxu0 %v2147_v5  ;;  %v1598_v5 = vor.u32 %v2066_v59, %v1597_v58 }
  0x3f   :  { %1165 = vmatpush.bf16.msrb.mxu1 %v2155_v7 }
  0x40   :  { %1214 = vmatpush.bf16.msrb.mxu2 %v2163_v4 }
  0x41   :  { %931 = vmatmul.bf16.gmra.mxu0 %v1606_v16  ;;  %1263 = vmatpush.bf16.msrb.mxu3 %v2171_v6  ;;  %v1734_v16 = vor.u32 %v2103_v9, %v1733_v8  ;;  %v1602_v6 = vor.u32 %v2062_v60, %v1599_v61 }
  0x42   :  { %980 = vmatmul.bf16.gmra.mxu1 %v1610_v17  ;;  %v1738_v17 = vor.u32 %v2099_v10, %v1735_v11 }
  0x43   :  { %1029 = vmatmul.bf16.gmra.mxu2 %v1614_v18  ;;  %v1742_v18 = vor.u32 %v2104_v13, %v1741_v12 }
  0x44   :  { %1078 = vmatmul.bf16.gmra.mxu3 %v1618_v19  ;;  %v1746_v19 = vor.u32 %v2100_v14, %v1743_v15 }
  0x51   :  { %936 = vmatmul.bf16.gmra.mxu0 %v1638_v32  ;;  %v1557_v32 = vld [vmem:[%s3058_s0 + $0x10] sm:$0xf] }
  0x52   :  { %985 = vmatmul.bf16.gmra.mxu1 %v1642_v33  ;;  %v2057_v33 = vld [vmem:[%s3058_s0 + $0x2c] sm:$0xf0] }
  0x53   :  { %1034 = vmatmul.bf16.gmra.mxu2 %v1646_v34  ;;  %v2053_v34 = vld [vmem:[%s3058_s0 + $0x14] sm:$0xf]  ;;  %v1558_v40 = vor.u32 %v2057_v33, %v1557_v32  ;;  %v1634_v32 = vor.u32 %v2070_v22, %v1631_v23 }
  0x54   :  { %1083 = vmatmul.bf16.gmra.mxu3 %v1650_v35  ;;  %v1559_v35 = vld [vmem:[%s3058_s0 + $0x30] sm:$0xf0] }
  0x55   :  { %v1562_v41 = vor.u32 %v2053_v34, %v1559_v35 }
  0x61   :  { %941 = vmatmul.bf16.gmra.mxu0 %v1670_v48 }
  0x62   :  { %990 = vmatmul.bf16.gmra.mxu1 %v1674_v49 }
  0x63   :  { %1039 = vmatmul.bf16.gmra.mxu2 %v1678_v50 }
  0x64   :  { %1088 = vmatmul.bf16.gmra.mxu3 %v1682_v51 }
  0x71   :  { %946 = vmatmul.bf16.gmra.mxu0 %v1702_v0  ;;  %v1590_v0 = vor.u32 %v2065_v55, %v1589_v54 }
  0x72   :  { %995 = vmatmul.bf16.gmra.mxu1 %v1706_v1  ;;  %v1594_v1 = vor.u32 %v2061_v56, %v1591_v57 }
  0x73   :  { %1044 = vmatmul.bf16.gmra.mxu2 %v1710_v2 }
  0x74   :  { %1093 = vmatmul.bf16.gmra.mxu3 %v1714_v3 }
  0x81   :  { %951 = vmatmul.bf16.gmra.mxu0 %v1734_v16  ;;  %v1621_v16 = vld [vmem:[%s3058_s0 + $0x90] sm:$0xf] }
  0x82   :  { %1000 = vmatmul.bf16.gmra.mxu1 %v1738_v17  ;;  %v2073_v17 = vld [vmem:[%s3058_s0 + $0xac] sm:$0xf0] }
  0x83   :  { %1049 = vmatmul.bf16.gmra.mxu2 %v1742_v18  ;;  %v2069_v18 = vld [vmem:[%s3058_s0 + $0x94] sm:$0xf]  ;;  %v1622_v26 = vor.u32 %v2073_v17, %v1621_v16 }
  0x84   :  { %1098 = vmatmul.bf16.gmra.mxu3 %v1746_v19  ;;  %v1623_v19 = vld [vmem:[%s3058_s0 + $0xb0] sm:$0xf0] }
  0x85   :  { %v1626_v27 = vor.u32 %v2069_v18, %v1623_v19 }
  0x91   :  { %956 = vmatmul.bf16.gmra.mxu0 %v1766_v28 }
  0x92   :  { %1005 = vmatmul.bf16.gmra.mxu1 %v1770_v29 }
  0x93   :  { %1054 = vmatmul.bf16.gmra.mxu2 %v1774_v30 }
  0x94   :  { %1103 = vmatmul.bf16.gmra.mxu3 %v1778_v31  ;;  %v1630_v31 = vor.u32 %v2074_v21, %v1629_v20 }
  0x9e   :  { %v922_v42 = vpop.f32.mrf.mxu0 }
  0x9f   :  { %v971_v43 = vpop.f32.mrf.mxu1 }
  0xa0   :  { %v972_v46 = vadd.f32 %v971_v43, %v922_v42  ;;  %v1653_v42 = vld [vmem:[%s3058_s0 + $0xd0] sm:$0xf] }
  0xa1   :  { %1117 = vmatmul.bf16.vlgmr.msrb.gmra.mxu0 %v1558_v40  ;;  %v2081_v43 = vld [vmem:[%s3058_s0 + $0xec] sm:$0xf0] }
  0xa2   :  { %1166 = vmatmul.bf16.vlgmr.msrb.gmra.mxu1 %v1562_v41 }
  0xa3   :  { %1215 = vmatmul.bf16.vlgmr.msrb.gmra.mxu2 %v1566_v44  ;;  %v2077_v44 = vld [vmem:[%s3058_s0 + $0xd4] sm:$0xf] }
  0xa4   :  { %1264 = vmatmul.bf16.vlgmr.msrb.gmra.mxu3 %v1570_v45  ;;  %v1655_v45 = vld [vmem:[%s3058_s0 + $0xf0] sm:$0xf0] }
  0xa5   :  { %v1658_v54 = vor.u32 %v2077_v44, %v1655_v45 }
  0xa6   :  { %v1020_v47 = vpop.f32.mrf.mxu2  ;;  %v924_v50 = vpop.f32.mrf.mxu0 }
  0xa7   :  { %v1069_v48 = vpop.f32.mrf.mxu3  ;;  %v1021_v49 = vadd.f32 %v1020_v47, %v972_v46  ;;  %v973_v51 = vpop.f32.mrf.mxu1  ;;  %v1661_v46 = vld [vmem:[%s3058_s0 + $0xd8] sm:$0xf] }
  0xa8   :  { %v974_v52 = vadd.f32 %v973_v51, %v924_v50  ;;  %v2082_v47 = vld [vmem:[%s3058_s0 + $0xf4] sm:$0xf0] }
  0xa9   :  { %v2667_v53 = vadd.f32 %v1069_v48, %v1021_v49  ;;  %v2078_v48 = vld [vmem:[%s3058_s0 + $0xdc] sm:$0xf]  ;;  %v1662_v58 = vor.u32 %v2082_v47, %v1661_v46 }
  0xaa   :  { %v1663_v49 = vld [vmem:[%s3058_s0 + $0xf8] sm:$0xf0] }
  0xab   :  { %v1666_v59 = vor.u32 %v2078_v48, %v1663_v49 }
  0xae   :  { %v1022_v62 = vpop.f32.mrf.mxu2  ;;  %v927_v3 = vpop.f32.mrf.mxu0 }
  0xaf   :  { %v1071_v63 = vpop.f32.mrf.mxu3  ;;  %v1023_v2 = vadd.f32 %v1022_v62, %v974_v52  ;;  %v976_v4 = vpop.f32.mrf.mxu1  ;;  %v1654_v52 = vor.u32 %v2081_v43, %v1653_v42  ;;  %v1727_v42 = vld [vmem:[%s3058_s0 + $0x178] sm:$0xf0] }
  0xb0   :  { %v977_v7 = vadd.f32 %v976_v4, %v927_v3 }
  0xb1   :  { %v2693_v8 = vadd.f32 %v1071_v63, %v1023_v2  ;;  %1122 = vmatmul.bf16.gmra.mxu0 %v1590_v0 }
  0xb2   :  { %1171 = vmatmul.bf16.gmra.mxu1 %v1594_v1 }
  0xb3   :  { %1220 = vmatmul.bf16.gmra.mxu2 %v1598_v5  ;;  %v1685_v5 = vld [vmem:[%s3058_s0 + $0x110] sm:$0xf] }
  0xb4   :  { %1269 = vmatmul.bf16.gmra.mxu3 %v1602_v6  ;;  %v2089_v6 = vld [vmem:[%s3058_s0 + $0x12c] sm:$0xf0] }
  0xb5   :  { %v1686_v17 = vor.u32 %v2089_v6, %v1685_v5  ;;  %v2106_v5 = vld [vmem:[%s3058_s0 + $0x1b4] sm:$0xf0]  ;;  %v2102_v6 = vld [vmem:[%s3058_s0 + $0x19c] sm:$0xf] }
  0xb6   :  { %v1025_v9 = vpop.f32.mrf.mxu2  ;;  %v929_v12 = vpop.f32.mrf.mxu0 }
  0xb7   :  { %v1074_v10 = vpop.f32.mrf.mxu3  ;;  %v1026_v11 = vadd.f32 %v1025_v9, %v977_v7  ;;  %v978_v13 = vpop.f32.mrf.mxu1  ;;  %v2085_v7 = vld [vmem:[%s3058_s0 + $0x114] sm:$0xf] }
  0xb8   :  { %v979_v14 = vadd.f32 %v978_v13, %v929_v12  ;;  %v1687_v9 = vld [vmem:[%s3058_s0 + $0x130] sm:$0xf0]  ;;  %v2086_v12 = vld [vmem:[%s3058_s0 + $0x11c] sm:$0xf] }
  0xb9   :  { %v2695_v15 = vadd.f32 %v1074_v10, %v1026_v11  ;;  %v1693_v10 = vld [vmem:[%s3058_s0 + $0x118] sm:$0xf]  ;;  %v1695_v13 = vld [vmem:[%s3058_s0 + $0x138] sm:$0xf0]  ;;  %v1690_v18 = vor.u32 %v2085_v7, %v1687_v9 }
  0xba   :  { %v2090_v11 = vld [vmem:[%s3058_s0 + $0x134] sm:$0xf0]  ;;  %v1698_v23 = vor.u32 %v2086_v12, %v1695_v13  ;;  %v1759_v7 = vld [vmem:[%s3058_s0 + $0x1b8] sm:$0xf0] }
  0xbb   :  { %v1694_v22 = vor.u32 %v2090_v11, %v1693_v10 }
  0xbe   :  { %v1027_v24 = vpop.f32.mrf.mxu2  ;;  %v932_v29 = vpop.f32.mrf.mxu0 }
  0xbf   :  { %v1076_v25 = vpop.f32.mrf.mxu3  ;;  %v1028_v28 = vadd.f32 %v1027_v24, %v979_v14  ;;  %v981_v30 = vpop.f32.mrf.mxu1 }
  0xc0   :  { %v982_v33 = vadd.f32 %v981_v30, %v932_v29 }
  0xc1   :  { %v2721_v34 = vadd.f32 %v1076_v25, %v1028_v28  ;;  %1127 = vmatmul.bf16.gmra.mxu0 %v1622_v26 }
  0xc2   :  { %1176 = vmatmul.bf16.gmra.mxu1 %v1626_v27 }
  0xc3   :  { %1225 = vmatmul.bf16.gmra.mxu2 %v1630_v31 }
  0xc4   :  { %1274 = vmatmul.bf16.gmra.mxu3 %v1634_v32 }
  0xc6   :  { %v1030_v35 = vpop.f32.mrf.mxu2  ;;  %v934_v38 = vpop.f32.mrf.mxu0 }
  0xc7   :  { %v1079_v36 = vpop.f32.mrf.mxu3  ;;  %v1031_v37 = vadd.f32 %v1030_v35, %v982_v33  ;;  %v983_v39 = vpop.f32.mrf.mxu1  ;;  %v1717_v33 = vld [vmem:[%s3058_s0 + $0x150] sm:$0xf] }
  0xc8   :  { %v984_v40 = vadd.f32 %v983_v39, %v934_v38  ;;  %v2097_v35 = vld [vmem:[%s3058_s0 + $0x16c] sm:$0xf0]  ;;  %v1725_v38 = vld [vmem:[%s3058_s0 + $0x158] sm:$0xf] }
  0xc9   :  { %v2723_v41 = vadd.f32 %v1079_v36, %v1031_v37  ;;  %v2093_v36 = vld [vmem:[%s3058_s0 + $0x154] sm:$0xf]  ;;  %v2098_v39 = vld [vmem:[%s3058_s0 + $0x174] sm:$0xf0]  ;;  %v1718_v45 = vor.u32 %v2097_v35, %v1717_v33 }
  0xca   :  { %v1719_v37 = vld [vmem:[%s3058_s0 + $0x170] sm:$0xf0]  ;;  %v1789_v35 = vld [vmem:[%s3058_s0 + $0x1d8] sm:$0xf] }
  0xcb   :  { %v1722_v46 = vor.u32 %v2093_v36, %v1719_v37  ;;  %v1783_v33 = vld [vmem:[%s3058_s0 + $0x1f0] sm:$0xf0]  ;;  %v2114_v36 = vld [vmem:[%s3058_s0 + $0x1f4] sm:$0xf0]  ;;  %v2110_v37 = vld [vmem:[%s3058_s0 + $0x1dc] sm:$0xf] }
  0xce   :  { %v1032_v50 = vpop.f32.mrf.mxu2  ;;  %v937_v56 = vpop.f32.mrf.mxu0 }
  0xcf   :  { %v1081_v51 = vpop.f32.mrf.mxu3  ;;  %v1033_v55 = vadd.f32 %v1032_v50, %v984_v40  ;;  %v986_v57 = vpop.f32.mrf.mxu1  ;;  %v2094_v40 = vld [vmem:[%s3058_s0 + $0x15c] sm:$0xf]  ;;  %v1726_v50 = vor.u32 %v2098_v39, %v1725_v38 }
  0xd0   :  { %v987_v60 = vadd.f32 %v986_v57, %v937_v56  ;;  %v1791_v38 = vld [vmem:[%s3058_s0 + $0x1f8] sm:$0xf0] }
  0xd1   :  { %v2749_v61 = vadd.f32 %v1081_v51, %v1033_v55  ;;  %1132 = vmatmul.bf16.gmra.mxu0 %v1654_v52  ;;  %v1730_v51 = vor.u32 %v2094_v40, %v1727_v42 }
  0xd2   :  { %1181 = vmatmul.bf16.gmra.mxu1 %v1658_v54 }
  0xd3   :  { %1230 = vmatmul.bf16.gmra.mxu2 %v1662_v58 }
  0xd4   :  { %1279 = vmatmul.bf16.gmra.mxu3 %v1666_v59 }
  0xd6   :  { %v1035_v62 = vpop.f32.mrf.mxu2  ;;  %v939_v1 = vpop.f32.mrf.mxu0 }
  0xd7   :  { %v1084_v63 = vpop.f32.mrf.mxu3  ;;  %v1036_v0 = vadd.f32 %v1035_v62, %v987_v60  ;;  %v988_v2 = vpop.f32.mrf.mxu1 }
  0xd8   :  { %v989_v3 = vadd.f32 %v988_v2, %v939_v1  ;;  %v2101_v1 = vld [vmem:[%s3058_s0 + $0x194] sm:$0xf] }
  0xd9   :  { %v2751_v4 = vadd.f32 %v1084_v63, %v1036_v0  ;;  %v1749_v63 = vld [vmem:[%s3058_s0 + $0x190] sm:$0xf]  ;;  %v1751_v2 = vld [vmem:[%s3058_s0 + $0x1b0] sm:$0xf0] }
  0xda   :  { %v2105_v0 = vld [vmem:[%s3058_s0 + $0x1ac] sm:$0xf0]  ;;  %v1754_v12 = vor.u32 %v2101_v1, %v1751_v2 }
  0xdb   :  { %v1750_v11 = vor.u32 %v2105_v0, %v1749_v63 }
  0xde   :  { %v1037_v14 = vpop.f32.mrf.mxu2  ;;  %v942_v20 = vpop.f32.mrf.mxu0 }
  0xdf   :  { %v1086_v16 = vpop.f32.mrf.mxu3  ;;  %v1038_v19 = vadd.f32 %v1037_v14, %v989_v3  ;;  %v991_v21 = vpop.f32.mrf.mxu1  ;;  %v1757_v3 = vld [vmem:[%s3058_s0 + $0x198] sm:$0xf] }
  0xe0   :  { %v992_v24 = vadd.f32 %v991_v21, %v942_v20 }
  0xe1   :  { %v2777_v25 = vadd.f32 %v1086_v16, %v1038_v19  ;;  %1137 = vmatmul.bf16.gmra.mxu0 %v1686_v17  ;;  %v1758_v17 = vor.u32 %v2106_v5, %v1757_v3 }
  0xe2   :  { %1186 = vmatmul.bf16.gmra.mxu1 %v1690_v18  ;;  %v1762_v18 = vor.u32 %v2102_v6, %v1759_v7 }
  0xe3   :  { %1235 = vmatmul.bf16.gmra.mxu2 %v1694_v22 }
  0xe4   :  { %1284 = vmatmul.bf16.gmra.mxu3 %v1698_v23 }
  0xe6   :  { %v1040_v26 = vpop.f32.mrf.mxu2  ;;  %v944_v29 = vpop.f32.mrf.mxu0 }
  0xe7   :  { %v1089_v27 = vpop.f32.mrf.mxu3  ;;  %v1041_v28 = vadd.f32 %v1040_v26, %v992_v24  ;;  %v993_v30 = vpop.f32.mrf.mxu1 }
  0xe8   :  { %v994_v31 = vadd.f32 %v993_v30, %v944_v29  ;;  %v1781_v29 = vld [vmem:[%s3058_s0 + $0x1d0] sm:$0xf] }
  0xe9   :  { %v2779_v32 = vadd.f32 %v1089_v27, %v1041_v28  ;;  %v2113_v30 = vld [vmem:[%s3058_s0 + $0x1ec] sm:$0xf0] }
  0xea   :  { %v1782_v42 = vor.u32 %v2113_v30, %v1781_v29 }
  0xee   :  { %v1042_v43 = vpop.f32.mrf.mxu2  ;;  %v947_v48 = vpop.f32.mrf.mxu0 }
  0xef   :  { %v1091_v44 = vpop.f32.mrf.mxu3  ;;  %v1043_v47 = vadd.f32 %v1042_v43, %v994_v31  ;;  %v996_v49 = vpop.f32.mrf.mxu1  ;;  %v2109_v31 = vld [vmem:[%s3058_s0 + $0x1d4] sm:$0xf] }
  0xf0   :  { %v997_v52 = vadd.f32 %v996_v49, %v947_v48  ;;  %v1786_v43 = vor.u32 %v2109_v31, %v1783_v33  ;;  %v1794_v48 = vor.u32 %v2110_v37, %v1791_v38 }
  0xf1   :  { %v2805_v54 = vadd.f32 %v1091_v44, %v1043_v47  ;;  %1142 = vmatmul.bf16.gmra.mxu0 %v1718_v45  ;;  %v1790_v47 = vor.u32 %v2114_v36, %v1789_v35 }
  0xf2   :  { %1191 = vmatmul.bf16.gmra.mxu1 %v1722_v46 }
  0xf3   :  { %1240 = vmatmul.bf16.gmra.mxu2 %v1726_v50 }
  0xf4   :  { %1289 = vmatmul.bf16.gmra.mxu3 %v1730_v51 }
  0xf6   :  { %v1045_v55 = vpop.f32.mrf.mxu2  ;;  %v949_v58 = vpop.f32.mrf.mxu0 }
  0xf7   :  { %v1094_v56 = vpop.f32.mrf.mxu3  ;;  %v1046_v57 = vadd.f32 %v1045_v55, %v997_v52  ;;  %v998_v59 = vpop.f32.mrf.mxu1 }
  0xf8   :  { %v999_v60 = vadd.f32 %v998_v59, %v949_v58 }
  0xf9   :  { %v2807_v62 = vadd.f32 %v1094_v56, %v1046_v57 }
  0xfe   :  { %v1047_v9 = vpop.f32.mrf.mxu2  ;;  %v952_v14 = vpop.f32.mrf.mxu0 }
  0xff   :  { %v1096_v10 = vpop.f32.mrf.mxu3  ;;  %v1048_v13 = vadd.f32 %v1047_v9, %v999_v60  ;;  %v1001_v16 = vpop.f32.mrf.mxu1 }
 0x100   :  { %v1002_v19 = vadd.f32 %v1001_v16, %v952_v14 }
 0x101   :  { %v2833_v20 = vadd.f32 %v1096_v10, %v1048_v13  ;;  %1147 = vmatmul.bf16.gmra.mxu0 %v1750_v11 }
 0x102   :  { %1196 = vmatmul.bf16.gmra.mxu1 %v1754_v12 }
 0x103   :  { %1245 = vmatmul.bf16.gmra.mxu2 %v1758_v17 }
 0x104   :  { %1294 = vmatmul.bf16.gmra.mxu3 %v1762_v18 }
 0x106   :  { %v1050_v21 = vpop.f32.mrf.mxu2  ;;  %v954_v24 = vpop.f32.mrf.mxu0 }
 0x107   :  { %v1099_v22 = vpop.f32.mrf.mxu3  ;;  %v1051_v23 = vadd.f32 %v1050_v21, %v1002_v19  ;;  %v1003_v26 = vpop.f32.mrf.mxu1 }
 0x108   :  { %v1004_v27 = vadd.f32 %v1003_v26, %v954_v24 }
 0x109   :  { %v2835_v28 = vadd.f32 %v1099_v22, %v1051_v23 }
 0x10e   :  { %v1052_v39 = vpop.f32.mrf.mxu2  ;;  %v957_v45 = vpop.f32.mrf.mxu0 }
 0x10f   :  { %v1101_v40 = vpop.f32.mrf.mxu3  ;;  %v1053_v44 = vadd.f32 %v1052_v39, %v1004_v27  ;;  %v1006_v46 = vpop.f32.mrf.mxu1 }
 0x110   :  { %v1007_v49 = vadd.f32 %v1006_v46, %v957_v45 }
 0x111   :  { %v2861_v50 = vadd.f32 %v1101_v40, %v1053_v44  ;;  %1152 = vmatmul.bf16.gmra.mxu0 %v1782_v42 }
 0x112   :  { %1201 = vmatmul.bf16.gmra.mxu1 %v1786_v43 }
 0x113   :  { %1250 = vmatmul.bf16.gmra.mxu2 %v1790_v47 }
 0x114   :  { %1299 = vmatmul.bf16.gmra.mxu3 %v1794_v48 }
 0x116   :  { %v1055_v51 = vpop.f32.mrf.mxu2  ;;  %v959_v56 = vpop.f32.mrf.mxu0 }
 0x117   :  { %v1104_v52 = vpop.f32.mrf.mxu3  ;;  %v1056_v55 = vadd.f32 %v1055_v51, %v1007_v49  ;;  %v1008_v57 = vpop.f32.mrf.mxu1 }
 0x118   :  { %v1009_v58 = vadd.f32 %v1008_v57, %v959_v56 }
 0x119   :  { %v2863_v59 = vadd.f32 %v1104_v52, %v1056_v55 }
 0x11e   :  { %v1057_v60 = vpop.f32.mrf.mxu2  ;;  %v1118_v1 = vpop.f32.mrf.mxu0 }
 0x11f   :  { %v1106_v63 = vpop.f32.mrf.mxu3  ;;  %v1058_v0 = vadd.f32 %v1057_v60, %v1009_v58  ;;  %v1167_v2 = vpop.f32.mrf.mxu1  ;;  %v1119_v3 = vadd.f32 %v1118_v1, %v2667_v53 }
 0x121   :  { %v2866_v5 = vadd.f32 %v1106_v63, %v1058_v0  ;;  %v1168_v6 = vadd.f32 %v1167_v2, %v1119_v3 }
 0x126   :  { %v1216_v7 = vpop.f32.mrf.mxu2  ;;  %v1120_v11 = vpop.f32.mrf.mxu0 }
 0x127   :  { %v1265_v9 = vpop.f32.mrf.mxu3  ;;  %v1217_v10 = vadd.f32 %v1216_v7, %v1168_v6  ;;  %v1169_v12 = vpop.f32.mrf.mxu1  ;;  %v1121_v13 = vadd.f32 %v1120_v11, %v2693_v8 }
 0x129   :  { %v2869_v14 = vadd.f32 %v1265_v9, %v1217_v10  ;;  %v1170_v16 = vadd.f32 %v1169_v12, %v1121_v13 }
 0x12e   :  { %v1218_v17 = vpop.f32.mrf.mxu2  ;;  %v1123_v21 = vpop.f32.mrf.mxu0 }
 0x12f   :  { %v1267_v18 = vpop.f32.mrf.mxu3  ;;  %v1219_v19 = vadd.f32 %v1218_v17, %v1170_v16  ;;  %v1172_v22 = vpop.f32.mrf.mxu1  ;;  %v1124_v53 = vadd.f32 %v1123_v21, %v2695_v15 }
 0x131   :  { %v2872_v23 = vadd.f32 %v1267_v18, %v1219_v19  ;;  %v1173_v24 = vadd.f32 %v1172_v22, %v1124_v53 }
 0x133   :  { %v1307_v26 = vadd.f32 %v2872_v23, %v2869_v14 }
 0x136   :  { %v1221_v27 = vpop.f32.mrf.mxu2  ;;  %v1125_v8 = vpop.f32.mrf.mxu0 }
 0x137   :  { %v1270_v29 = vpop.f32.mrf.mxu3  ;;  %v1222_v30 = vadd.f32 %v1221_v27, %v1173_v24  ;;  %v1174_v31 = vpop.f32.mrf.mxu1  ;;  %v1126_v33 = vadd.f32 %v1125_v8, %v2721_v34 }
 0x139   :  { %v2877_v35 = vadd.f32 %v1270_v29, %v1222_v30  ;;  %v1175_v36 = vadd.f32 %v1174_v31, %v1126_v33 }
 0x13b   :  { %v1308_v37 = vadd.f32 %v1307_v26, %v2877_v35 }
 0x13e   :  { %v1223_v38 = vpop.f32.mrf.mxu2  ;;  %v1128_v40 = vpop.f32.mrf.mxu0 }
 0x13f   :  { %v1272_v15 = vpop.f32.mrf.mxu3  ;;  %v1224_v39 = vadd.f32 %v1223_v38, %v1175_v36  ;;  %v1177_v42 = vpop.f32.mrf.mxu1  ;;  %v1129_v43 = vadd.f32 %v1128_v40, %v2723_v41 }
 0x141   :  { %v2881_v44 = vadd.f32 %v1272_v15, %v1224_v39  ;;  %v1178_v45 = vadd.f32 %v1177_v42, %v1129_v43 }
 0x143   :  { %v1309_v46 = vadd.f32 %v1308_v37, %v2881_v44 }
 0x146   :  { %v1226_v47 = vpop.f32.mrf.mxu2  ;;  %v1130_v49 = vpop.f32.mrf.mxu0 }
 0x147   :  { %v1275_v48 = vpop.f32.mrf.mxu3  ;;  %v1227_v34 = vadd.f32 %v1226_v47, %v1178_v45  ;;  %v1179_v51 = vpop.f32.mrf.mxu1  ;;  %v1131_v55 = vadd.f32 %v1130_v49, %v2749_v61 }
 0x149   :  { %v2884_v52 = vadd.f32 %v1275_v48, %v1227_v34  ;;  %v1180_v57 = vadd.f32 %v1179_v51, %v1131_v55 }
 0x14b   :  { %v1310_v56 = vadd.f32 %v1309_v46, %v2884_v52 }
 0x14e   :  { %v1228_v58 = vpop.f32.mrf.mxu2  ;;  %v1133_v63 = vpop.f32.mrf.mxu0 }
 0x14f   :  { %v1277_v60 = vpop.f32.mrf.mxu3  ;;  %v1229_v41 = vadd.f32 %v1228_v58, %v1180_v57  ;;  %v1182_v0 = vpop.f32.mrf.mxu1  ;;  %v1134_v2 = vadd.f32 %v1133_v63, %v2751_v4 }
 0x151   :  { %v2888_v1 = vadd.f32 %v1277_v60, %v1229_v41  ;;  %v1183_v6 = vadd.f32 %v1182_v0, %v1134_v2 }
 0x153   :  { %v1311_v3 = vadd.f32 %v1310_v56, %v2888_v1 }
 0x156   :  { %v1231_v7 = vpop.f32.mrf.mxu2  ;;  %v1135_v11 = vpop.f32.mrf.mxu0 }
 0x157   :  { %v1280_v9 = vpop.f32.mrf.mxu3  ;;  %v1232_v10 = vadd.f32 %v1231_v7, %v1183_v6  ;;  %v1184_v61 = vpop.f32.mrf.mxu1  ;;  %v1136_v13 = vadd.f32 %v1135_v11, %v2777_v25 }
 0x159   :  { %v2892_v12 = vadd.f32 %v1280_v9, %v1232_v10  ;;  %v1185_v17 = vadd.f32 %v1184_v61, %v1136_v13 }
 0x15b   :  { %v1312_v16 = vadd.f32 %v1311_v3, %v2892_v12 }
 0x15e   :  { %v1233_v18 = vpop.f32.mrf.mxu2  ;;  %v1138_v22 = vpop.f32.mrf.mxu0 }
 0x15f   :  { %v1282_v19 = vpop.f32.mrf.mxu3  ;;  %v1234_v21 = vadd.f32 %v1233_v18, %v1185_v17  ;;  %v1187_v4 = vpop.f32.mrf.mxu1  ;;  %v1139_v24 = vadd.f32 %v1138_v22, %v2779_v32 }
 0x161   :  { %v2896_v53 = vadd.f32 %v1282_v19, %v1234_v21  ;;  %v1188_v27 = vadd.f32 %v1187_v4, %v1139_v24 }
 0x163   :  { %v1313_v26 = vadd.f32 %v1312_v16, %v2896_v53 }
 0x166   :  { %v1236_v29 = vpop.f32.mrf.mxu2  ;;  %v1140_v31 = vpop.f32.mrf.mxu0 }
 0x167   :  { %v1285_v30 = vpop.f32.mrf.mxu3  ;;  %v1237_v8 = vadd.f32 %v1236_v29, %v1188_v27  ;;  %v1189_v25 = vpop.f32.mrf.mxu1  ;;  %v1141_v36 = vadd.f32 %v1140_v31, %v2805_v54 }
 0x169   :  { %v2900_v33 = vadd.f32 %v1285_v30, %v1237_v8  ;;  %v1190_v38 = vadd.f32 %v1189_v25, %v1141_v36  ;;  %v2233_v30 = vmov 128.0  }
 0x16a   :  { %2229 = vrcp.f32 %v2233_v30 }
 0x16b   :  { %v1314_v37 = vadd.f32 %v1313_v26, %v2900_v33 }
 0x16e   :  { %v1238_v15 = vpop.f32.mrf.mxu2  ;;  %v1143_v42 = vpop.f32.mrf.mxu0 }
 0x16f   :  { %v1287_v39 = vpop.f32.mrf.mxu3  ;;  %v1239_v40 = vadd.f32 %v1238_v15, %v1190_v38  ;;  %v1192_v32 = vpop.f32.mrf.mxu1  ;;  %v1144_v45 = vadd.f32 %v1143_v42, %v2807_v62 }
 0x170   :  { %v2230_v38 = vpop.eup %2229 }
 0x171   :  { %v2904_v43 = vadd.f32 %v1287_v39, %v1239_v40  ;;  %v1193_v47 = vadd.f32 %v1192_v32, %v1144_v45  ;;  %v1329_v32 = vmul.f32 128.0, %v2230_v38  ;;  %vm1333_vm0 = vweird.f32 %v2230_v38 }
 0x173   :  { %v1315_v46 = vadd.f32 %v1314_v37, %v2904_v43 }
 0x176   :  { %v1241_v48 = vpop.f32.mrf.mxu2  ;;  %v1145_v51 = vpop.f32.mrf.mxu0 }
 0x177   :  { %v1290_v34 = vpop.f32.mrf.mxu3  ;;  %v1242_v49 = vadd.f32 %v1241_v48, %v1193_v47  ;;  %v1194_v54 = vpop.f32.mrf.mxu1  ;;  %v1146_v56 = vadd.f32 %v1145_v51, %v2833_v20  ;;  %v1330_v47 = vsub.f32 1.0, %v1329_v32 }
 0x179   :  { %v2908_v55 = vadd.f32 %v1290_v34, %v1242_v49  ;;  %v1195_v58 = vadd.f32 %v1194_v54, %v1146_v56  ;;  %v1331_v49 = vmul.f32 %v2230_v38, %v1330_v47 }
 0x17b   :  { %v1316_v57 = vadd.f32 %v1315_v46, %v2908_v55  ;;  %v1332_v56 = vadd.f32 %v2230_v38, %v1331_v49 }
 0x17e   :  { %v1243_v60 = vpop.f32.mrf.mxu2  ;;  %v1148_v0 = vpop.f32.mrf.mxu0 }
 0x17f   :  { %v1292_v41 = vpop.f32.mrf.mxu3  ;;  %v1244_v63 = vadd.f32 %v1243_v60, %v1195_v58  ;;  %v1197_v62 = vpop.f32.mrf.mxu1  ;;  %v1149_v3 = vadd.f32 %v1148_v0, %v2835_v28 }
 0x181   :  { %v2912_v2 = vadd.f32 %v1292_v41, %v1244_v63  ;;  %v1198_v7 = vadd.f32 %v1197_v62, %v1149_v3 }
 0x183   :  { %v1317_v6 = vadd.f32 %v1316_v57, %v2912_v2 }
 0x186   :  { %v1246_v9 = vpop.f32.mrf.mxu2  ;;  %v1150_v61 = vpop.f32.mrf.mxu0 }
 0x187   :  { %v1295_v10 = vpop.f32.mrf.mxu3  ;;  %v1247_v11 = vadd.f32 %v1246_v9, %v1198_v7  ;;  %v1199_v20 = vpop.f32.mrf.mxu1  ;;  %v1151_v16 = vadd.f32 %v1150_v61, %v2861_v50 }
 0x189   :  { %v1296_v13 = vadd.f32 %v1295_v10, %v1247_v11  ;;  %v1200_v18 = vadd.f32 %v1199_v20, %v1151_v16 }
 0x18b   :  { %v1318_v17 = vadd.f32 %v1317_v6, %v1296_v13 }
 0x18e   :  { %v1248_v19 = vpop.f32.mrf.mxu2  ;;  %v1153_v4 = vpop.f32.mrf.mxu0 }
 0x18f   :  { %v1297_v21 = vpop.f32.mrf.mxu3  ;;  %v1249_v22 = vadd.f32 %v1248_v19, %v1200_v18  ;;  %v1154_v28 = vadd.f32 %v1153_v4, %v2863_v59  ;;  %v1202_v26 = vpop.f32.mrf.mxu1 }
 0x191   :  { %v1298_v24 = vadd.f32 %v1297_v21, %v1249_v22  ;;  %v1203_v29 = vadd.f32 %v1202_v26, %v1154_v28 }
 0x193   :  { %v1319_v27 = vadd.f32 %v1318_v17, %v1298_v24 }
 0x196   :  { %v1251_v8 = vpop.f32.mrf.mxu2  ;;  %v1155_v36 = vpop.f32.mrf.mxu0 }
 0x197   :  { %v1300_v31 = vpop.f32.mrf.mxu3  ;;  %v1252_v25 = vadd.f32 %v1251_v8, %v1203_v29  ;;  %v1156_v50 = vadd.f32 %v1155_v36, %v2866_v5  ;;  %v1204_v39 = vpop.f32.mrf.mxu1  ;;  %v1334_v5 = vsel %vm1333_vm0, %v2230_v38, %v1332_v56 }
 0x199   :  { %v1301_v37 = vadd.f32 %v1300_v31, %v1252_v25  ;;  %v1205_v40 = vadd.f32 %v1204_v39, %v1156_v50 }
 0x19b   :  { %v1320_v15 = vadd.f32 %v1319_v27, %v1301_v37 }
 0x19e   :  { %v1253_v42 = vpop.f32.mrf.mxu2 }
 0x19f   :  { %v1254_v45 = vadd.f32 %v1253_v42, %v1205_v40  ;;  %v1302_v59 = vpop.f32.mrf.mxu3 }
 0x1a1   :  { %v1303_v46 = vadd.f32 %v1302_v59, %v1254_v45 }
 0x1a3   :  { %v1321_v48 = vadd.f32 %v1320_v15, %v1303_v46 }
 0x1a5   :  { %v1322_v34 = vrot.slane %v1321_v48, 4 }
 0x1a7   :  { %v1323_v51 = vadd.f32 %v1322_v34, %v1321_v48 }
 0x1a9   :  { %v1324_v54 = vrot.slane %v1323_v51, 2 }
 0x1ab   :  { %v1325_v57 = vadd.f32 %v1324_v54, %v1323_v51 }
 0x1ad   :  { %v1326_v58 = vrot.slane %v1325_v57, 1 }
 0x1af   :  { %v1327_v60 = vadd.f32 %v1326_v58, %v1325_v57 }
 0x1b1   :  { %v1335_v41 = vmul.f32 %v1334_v5, %v1327_v60 }
 0x1b3   :  { %v2920_v63 = vsub.f32 %v2869_v14, %v1335_v41  ;;  %v2923_v0 = vsub.f32 %v2872_v23, %v1335_v41  ;;  %v2926_v62 = vsub.f32 %v2877_v35, %v1335_v41  ;;  %v2929_v3 = vsub.f32 %v2881_v44, %v1335_v41 }
 0x1b4   :  { %v2932_v6 = vsub.f32 %v2884_v52, %v1335_v41  ;;  %v2935_v7 = vsub.f32 %v2888_v1, %v1335_v41  ;;  %v2938_v9 = vsub.f32 %v2892_v12, %v1335_v41  ;;  %v2941_v14 = vsub.f32 %v2896_v53, %v1335_v41 }
 0x1b5   :  { %v2944_v23 = vsub.f32 %v2900_v33, %v1335_v41  ;;  %v2947_v35 = vsub.f32 %v2904_v43, %v1335_v41  ;;  %v2950_v44 = vsub.f32 %v2908_v55, %v1335_v41  ;;  %v2953_v52 = vsub.f32 %v2912_v2, %v1335_v41 }
 0x1b6   :  { %v2955_v1 = vsub.f32 %v1296_v13, %v1335_v41  ;;  %v2957_v10 = vsub.f32 %v1298_v24, %v1335_v41  ;;  %v2959_v12 = vsub.f32 %v1301_v37, %v1335_v41  ;;  %v2961_v53 = vsub.f32 %v1303_v46, %v1335_v41 }
 0x1b7   :  { %v1352_v33 = vmul.f32 %v2920_v63, %v2920_v63  ;;  %v1353_v43 = vmul.f32 %v2923_v0, %v2923_v0  ;;  %v1354_v55 = vmul.f32 %v2926_v62, %v2926_v62  ;;  %v1355_v2 = vmul.f32 %v2929_v3, %v2929_v3 }
 0x1b8   :  { %v1356_v20 = vmul.f32 %v2932_v6, %v2932_v6  ;;  %v1357_v16 = vmul.f32 %v2935_v7, %v2935_v7  ;;  %v1358_v18 = vmul.f32 %v2938_v9, %v2938_v9  ;;  %v1359_v21 = vmul.f32 %v2941_v14, %v2941_v14 }
 0x1b9   :  { %v1368_v11 = vadd.f32 %v1353_v43, %v1352_v33  ;;  %v1360_v4 = vmul.f32 %v2944_v23, %v2944_v23  ;;  %v1361_v28 = vmul.f32 %v2947_v35, %v2947_v35  ;;  %v1362_v27 = vmul.f32 %v2950_v44, %v2950_v44 }
 0x1ba   :  { %v1363_v30 = vmul.f32 %v2953_v52, %v2953_v52  ;;  %v1364_v31 = vmul.f32 %v2955_v1, %v2955_v1  ;;  %v1365_v36 = vmul.f32 %v2957_v10, %v2957_v10  ;;  %v1366_v50 = vmul.f32 %v2959_v12, %v2959_v12 }
 0x1bb   :  { %v1369_v61 = vadd.f32 %v1368_v11, %v1354_v55  ;;  %v1367_v15 = vmul.f32 %v2961_v53, %v2961_v53  ;;  %v2227_v55 = vld [vmem:[%s3059_s2] ss:$0 sm:$0xff] }
 0x1bd   :  { %v1370_v13 = vadd.f32 %v1369_v61, %v1355_v2 }
 0x1bf   :  { %v1371_v17 = vadd.f32 %v1370_v13, %v1356_v20 }
 0x1c1   :  { %v1372_v19 = vadd.f32 %v1371_v17, %v1357_v16 }
 0x1c3   :  { %v1373_v22 = vadd.f32 %v1372_v19, %v1358_v18 }
 0x1c5   :  { %v1374_v24 = vadd.f32 %v1373_v22, %v1359_v21 }
 0x1c7   :  { %v1375_v26 = vadd.f32 %v1374_v24, %v1360_v4 }
 0x1c9   :  { %v1376_v29 = vadd.f32 %v1375_v26, %v1361_v28 }
 0x1cb   :  { %v1377_v8 = vadd.f32 %v1376_v29, %v1362_v27 }
 0x1cd   :  { %v1378_v25 = vadd.f32 %v1377_v8, %v1363_v30 }
 0x1cf   :  { %v1379_v37 = vadd.f32 %v1378_v25, %v1364_v31 }
 0x1d1   :  { %v1380_v38 = vadd.f32 %v1379_v37, %v1365_v36 }
 0x1d3   :  { %v1381_v39 = vadd.f32 %v1380_v38, %v1366_v50 }
 0x1d5   :  { %v1382_v40 = vadd.f32 %v1381_v39, %v1367_v15 }
 0x1d7   :  { %v1383_v42 = vrot.slane %v1382_v40, 4 }
 0x1d9   :  { %v1384_v32 = vadd.f32 %v1383_v42, %v1382_v40 }
 0x1db   :  { %v1385_v45 = vrot.slane %v1384_v32, 2 }
 0x1dd   :  { %v1386_v59 = vadd.f32 %v1385_v45, %v1384_v32 }
 0x1df   :  { %v1387_v46 = vrot.slane %v1386_v59, 1 }
 0x1e1   :  { %v1388_v47 = vadd.f32 %v1387_v46, %v1386_v59 }
 0x1e3   :  { %v1389_v48 = vmul.f32 %v1388_v47, %v1334_v5 }
 0x1e5   :  { %v1390_v34 = vadd.f32 1e-05, %v1389_v48 }
 0x1e7   :  { %2231 = vrsqrt.f32 %v1390_v34  ;;  %vm1397_vm2 = vweird.f32 %v1390_v34 }
 0x1ed   :  { %v2232_v49 = vpop.eup %2231 }
 0x1ee   :  { %v1392_v51 = vmul.f32 %v2232_v49, %v1390_v34  ;;  %vm1398_vm1 = vweird.f32 %v2232_v49 }
 0x1ef   :  { %vm1399_vm3 = vmor %vm1397_vm2, %vm1398_vm1 }
 0x1f0   :  { %v1393_v54 = vmul.f32 %v2232_v49, %v1392_v51 }
 0x1f2   :  { %v1394_v56 = vmul.f32 0.5, %v1393_v54 }
 0x1f4   :  { %v1395_v57 = vsub.f32 1.5, %v1394_v56 }
 0x1f6   :  { %v1396_v58 = vmul.f32 %v2232_v49, %v1395_v57 }
 0x1f8   :  { %v1400_v60 = vsel %vm1399_vm3, %v2232_v49, %v1396_v58 }
 0x1f9   :  { %v1401_v41 = vmul.f32 %v1400_v60, %v2920_v63  ;;  %v1402_v33 = vmul.f32 %v1400_v60, %v2923_v0  ;;  %v1403_v43 = vmul.f32 %v1400_v60, %v2926_v62  ;;  %v1404_v5 = vmul.f32 %v1400_v60, %v2929_v3 }
 0x1fa   :  { %v1405_v11 = vmul.f32 %v1400_v60, %v2932_v6  ;;  %v1406_v2 = vmul.f32 %v1400_v60, %v2935_v7  ;;  %v1407_v61 = vmul.f32 %v1400_v60, %v2938_v9  ;;  %v1408_v20 = vmul.f32 %v1400_v60, %v2941_v14 }
 0x1fb   :  { %v1409_v63 = vmul.f32 %v1400_v60, %v2944_v23  ;;  %v1410_v0 = vmul.f32 %v1400_v60, %v2947_v35  ;;  %v1411_v62 = vmul.f32 %v1400_v60, %v2950_v44  ;;  %v1412_v3 = vmul.f32 %v1400_v60, %v2953_v52  ;;  %v2228_v23 = vld [vmem:[%s3060_s3] ss:$0 sm:$0xff] }
 0x1fc   :  { %v1413_v13 = vmul.f32 %v1400_v60, %v2955_v1  ;;  %v1414_v16 = vmul.f32 %v1400_v60, %v2957_v10  ;;  %v1415_v6 = vmul.f32 %v1400_v60, %v2959_v12  ;;  %v1416_v7 = vmul.f32 %v1400_v60, %v2961_v53 }
 0x1fd   :  { %v1420_v17 = vmul.f32 %v2227_v55, %v1401_v41  ;;  %v1421_v9 = vmul.f32 %v2227_v55, %v1402_v33  ;;  %v1422_v18 = vmul.f32 %v2227_v55, %v1403_v43  ;;  %v1423_v14 = vmul.f32 %v2227_v55, %v1404_v5 }
 0x1fe   :  { %v1424_v35 = vmul.f32 %v2227_v55, %v1405_v11  ;;  %v1425_v44 = vmul.f32 %v2227_v55, %v1406_v2  ;;  %v1426_v19 = vmul.f32 %v2227_v55, %v1407_v61  ;;  %v1427_v52 = vmul.f32 %v2227_v55, %v1408_v20 }
 0x1ff   :  { %v1428_v21 = vmul.f32 %v2227_v55, %v1409_v63  ;;  %v1429_v1 = vmul.f32 %v2227_v55, %v1410_v0  ;;  %v1430_v22 = vmul.f32 %v2227_v55, %v1411_v62  ;;  %v1431_v10 = vmul.f32 %v2227_v55, %v1412_v3 }
 0x200   :  { %v1432_v4 = vmul.f32 %v2227_v55, %v1413_v13  ;;  %v1433_v12 = vmul.f32 %v2227_v55, %v1414_v16  ;;  %v1434_v24 = vmul.f32 %v2227_v55, %v1415_v6  ;;  %v1435_v53 = vmul.f32 %v2227_v55, %v1416_v7 }
 0x201   :  { %v1439_v28 = vadd.f32 %v2228_v23, %v1420_v17  ;;  %v1440_v26 = vadd.f32 %v2228_v23, %v1421_v9  ;;  %v1441_v27 = vadd.f32 %v2228_v23, %v1422_v18  ;;  %v1442_v29 = vadd.f32 %v2228_v23, %v1423_v14 }
 0x202   :  { %v1443_v30 = vadd.f32 %v2228_v23, %v1424_v35  ;;  %v1444_v8 = vadd.f32 %v2228_v23, %v1425_v44  ;;  %v1445_v31 = vadd.f32 %v2228_v23, %v1426_v19  ;;  %v1446_v25 = vadd.f32 %v2228_v23, %v1427_v52 }
 0x203   :  { %v1447_v36 = vadd.f32 %v2228_v23, %v1428_v21  ;;  %v1448_v37 = vadd.f32 %v2228_v23, %v1429_v1  ;;  %v1449_v50 = vadd.f32 %v2228_v23, %v1430_v22  ;;  %v1450_v38 = vadd.f32 %v2228_v23, %v1431_v10 }
 0x204   :  { %v1451_v15 = vadd.f32 %v2228_v23, %v1432_v4  ;;  %v1452_v39 = vadd.f32 %v2228_v23, %v1433_v12  ;;  %v1453_v40 = vadd.f32 %v2228_v23, %v1434_v24  ;;  %v1454_v42 = vadd.f32 %v2228_v23, %v1435_v53 }
 0x205   :  { %vm1455_vm4 = vcmp.gt.f32.partialorder %v1439_v28, 0.0  ;;  %vm1456_vm5 = vcmp.gt.f32.partialorder %v1440_v26, 0.0  ;;  %vm1457_vm6 = vcmp.gt.f32.partialorder %v1441_v27, 0.0  ;;  %vm1458_vm7 = vcmp.gt.f32.partialorder %v1442_v29, 0.0 }
 0x206   :  { %vm1459_vm8 = vcmp.gt.f32.partialorder %v1443_v30, 0.0  ;;  %vm1460_vm9 = vcmp.gt.f32.partialorder %v1444_v8, 0.0  ;;  %vm1461_vm10 = vcmp.gt.f32.partialorder %v1445_v31, 0.0  ;;  %vm1462_vm11 = vcmp.gt.f32.partialorder %v1446_v25, 0.0 }
 0x207   :  { %vm1463_vm12 = vcmp.gt.f32.partialorder %v1447_v36, 0.0  ;;  %vm1464_vm13 = vcmp.gt.f32.partialorder %v1448_v37, 0.0  ;;  %vm1465_vm14 = vcmp.gt.f32.partialorder %v1449_v50, 0.0  ;;  %vm1466_vm15 = vcmp.gt.f32.partialorder %v1450_v38, 0.0 }
 0x208   :  { %vm1467_vm0 = vcmp.gt.f32.partialorder %v1451_v15, 0.0  ;;  %vm1468_vm1 = vcmp.gt.f32.partialorder %v1452_v39, 0.0  ;;  %vm1469_vm2 = vcmp.gt.f32.partialorder %v1453_v40, 0.0  ;;  %vm1470_vm3 = vcmp.gt.f32.partialorder %v1454_v42, 0.0 }
 0x209   :  { %v1471_v32 = vmul.f32 0.2, %v1439_v28  ;;  %v1472_v45 = vmul.f32 0.2, %v1440_v26  ;;  %v1473_v59 = vmul.f32 0.2, %v1441_v27 }
 0x20a   :  { %v1474_v46 = vmul.f32 0.2, %v1442_v29  ;;  %v1475_v47 = vmul.f32 0.2, %v1443_v30  ;;  %v1476_v48 = vmul.f32 0.2, %v1444_v8 }
 0x20b   :  { %v1477_v34 = vmul.f32 0.2, %v1445_v31  ;;  %v1478_v49 = vmul.f32 0.2, %v1446_v25  ;;  %v1479_v51 = vmul.f32 0.2, %v1447_v36  ;;  %v1487_v54 = vsel %vm1455_vm4, %v1439_v28, %v1471_v32 }
 0x20c   :  { %v1480_v56 = vmul.f32 0.2, %v1448_v37  ;;  %v1481_v57 = vmul.f32 0.2, %v1449_v50  ;;  %v1482_v58 = vmul.f32 0.2, %v1450_v38  ;;  %v1488_v60 = vsel %vm1456_vm5, %v1440_v26, %v1472_v45 }
 0x20d   :  { %v1483_v41 = vmul.f32 0.2, %v1451_v15  ;;  %v1484_v33 = vmul.f32 0.2, %v1452_v39  ;;  %v1485_v43 = vmul.f32 0.2, %v1453_v40  ;;  %v1489_v5 = vsel %vm1457_vm6, %v1441_v27, %v1473_v59 }
 0x20e   :  { %v1486_v55 = vmul.f32 0.2, %v1454_v42  ;;  %v1490_v11 = vsel %vm1458_vm7, %v1442_v29, %v1474_v46  ;;  %v1491_v2 = vsel %vm1459_vm8, %v1443_v30, %v1475_v47  ;;  %v1492_v61 = vsel %vm1460_vm9, %v1444_v8, %v1476_v48 }
 0x20f   :  { %v1493_v20 = vsel %vm1461_vm10, %v1445_v31, %v1477_v34  ;;  %v1494_v63 = vsel %vm1462_vm11, %v1446_v25, %v1478_v49  ;;  %v1495_v0 = vsel %vm1463_vm12, %v1447_v36, %v1479_v51  ;;  %v1496_v62 = vsel %vm1464_vm13, %v1448_v37, %v1480_v56 }
 0x210   :  { %v1497_v3 = vsel %vm1465_vm14, %v1449_v50, %v1481_v57  ;;  %v1498_v13 = vsel %vm1466_vm15, %v1450_v38, %v1482_v58  ;;  %v1499_v16 = vsel %vm1467_vm0, %v1451_v15, %v1483_v41  ;;  %v1500_v6 = vsel %vm1468_vm1, %v1452_v39, %v1484_v33 }
 0x211   :  { %v1501_v7 = vsel %vm1469_vm2, %v1453_v40, %v1485_v43  ;;  %v1502_v17 = vsel %vm1470_vm3, %v1454_v42, %v1486_v55  ;;  %v2182_v9 = vpack.c.bf16 %v1488_v60, %v1487_v54  ;;  %v2187_v18 = vpack.c.bf16 %v1490_v11, %v1489_v5 }
 0x212   :  { %v2192_v14 = vpack.c.bf16 %v1492_v61, %v1491_v2  ;;  %v2197_v23 = vpack.c.bf16 %v1494_v63, %v1493_v20  ;;  %v2202_v35 = vpack.c.bf16 %v1496_v62, %v1495_v0  ;;  %v2207_v44 = vpack.c.bf16 %v1498_v13, %v1497_v3 }
 0x213   :  { %2183 = vst [vmem:[%s3061_s4] sm:$0xff] %v2182_v9   ;;  %v2212_v19 = vpack.c.bf16 %v1500_v6, %v1499_v16  ;;  %v2217_v52 = vpack.c.bf16 %v1502_v17, %v1501_v7 }
 0x214   :  { %2219 = vst [vmem:[%s3061_s4 + $0x8] sm:$0xff] %v2187_v18  }
 0x215   :  { %2220 = vst [vmem:[%s3061_s4 + $0x10] sm:$0xff] %v2192_v14  }
 0x216   :  { %2221 = vst [vmem:[%s3061_s4 + $0x18] sm:$0xff] %v2197_v23  }
 0x217   :  { %2222 = vst [vmem:[%s3061_s4 + $0x20] sm:$0xff] %v2202_v35  }
 0x218   :  { %2223 = vst [vmem:[%s3061_s4 + $0x28] sm:$0xff] %v2207_v44  }
 0x219   :  { %2224 = vst [vmem:[%s3061_s4 + $0x30] sm:$0xff] %v2212_v19  }
 0x21a   :  { %2225 = vst [vmem:[%s3061_s4 + $0x38] sm:$0xff] %v2217_v52  }

// kernel: discriminator_forward.5
= control target key start
LH: loop header
LB: loop body
LE: loop exit
PB: predicated region body
PF: predicated region fallthrough
CT: control target
= control target key end

     0   :  { %vm3746_vm15 = vcmask 9216   ;;  %s9488_s1 = inlined_call_operand.vmem [shape: bf16[2048,256], index: 1, kind: input, shape index: {}]   ;;  %s9489_s0 = inlined_call_operand.vmem [shape: bf16[32,2048], index: 0, kind: input, shape index: {}]   ;;  %s9490_s4 = inlined_call_operand.vmem [shape: f32[16,256,2], index: 4, kind: input, shape index: {}]   ;;  %s9491_s2 = inlined_call_operand.vmem [shape: f32[1,256], index: 2, kind: input, shape index: {}]   ;;  %s9492_s3 = inlined_call_operand.vmem [shape: f32[1,256], index: 3, kind: input, shape index: {}]   ;;  %s9493_s5 = inlined_call_operand.vmem [shape: f32[1,2], index: 5, kind: input, shape index: {}]   ;;  %s9494_s6 = inlined_call_operand.vmem [shape: f32[2,2], index: 6, kind: output, shape index: {}]  }
   0x1   :  { %v3938_v0 = vld [vmem:[%s9488_s1 + $0x70] sm:$0xf]  ;;  %v5431_v1 = vld [vmem:[%s9488_s1 + $0x74] sm:$0xf0]  ;;  %v3930_v11 = vld [vmem:[%s9488_s1 + $0x60] sm:$0xf] }
   0x2   :  { %v4002_v2 = vld [vmem:[%s9488_s1 + $0xf0] sm:$0xf]  ;;  %v3939_v3 = vor.u32 %v5431_v1, %v3938_v0  ;;  %v5447_v4 = vld [vmem:[%s9488_s1 + $0xf4] sm:$0xf0]  ;;  %v5429_v13 = vld [vmem:[%s9488_s1 + $0x64] sm:$0xf0] }
   0x3   :  { %v4066_v5 = vld [vmem:[%s9488_s1 + $0x170] sm:$0xf]  ;;  %v5463_v6 = vld [vmem:[%s9488_s1 + $0x174] sm:$0xf0]  ;;  %v4003_v7 = vor.u32 %v5447_v4, %v4002_v2  ;;  %v3994_v14 = vld [vmem:[%s9488_s1 + $0xe0] sm:$0xf]  ;;  %v3931_v16 = vor.u32 %v5429_v13, %v3930_v11 }
   0x4   :  { %v4067_v8 = vor.u32 %v5463_v6, %v4066_v5  ;;  %v4130_v9 = vld [vmem:[%s9488_s1 + $0x1f0] sm:$0xf]  ;;  %v5479_v10 = vld [vmem:[%s9488_s1 + $0x1f4] sm:$0xf0]  ;;  %1751 = vmatpush.bf16.msra.mxu0 %v3939_v3  ;;  %v5445_v15 = vld [vmem:[%s9488_s1 + $0xe4] sm:$0xf0] }
   0x5   :  { %v4131_v12 = vor.u32 %v5479_v10, %v4130_v9  ;;  %1770 = vmatpush.bf16.msra.mxu1 %v4003_v7  ;;  %v3995_v17 = vor.u32 %v5445_v15, %v3994_v14  ;;  %v4058_v18 = vld [vmem:[%s9488_s1 + $0x160] sm:$0xf]  ;;  %v5461_v19 = vld [vmem:[%s9488_s1 + $0x164] sm:$0xf0]  ;;  %v3922_v23 = vld [vmem:[%s9488_s1 + $0x50] sm:$0xf] }
   0x6   :  { %1789 = vmatpush.bf16.msra.mxu2 %v4067_v8  ;;  %v4122_v20 = vld [vmem:[%s9488_s1 + $0x1e0] sm:$0xf]  ;;  %v4059_v21 = vor.u32 %v5461_v19, %v4058_v18  ;;  %v5477_v22 = vld [vmem:[%s9488_s1 + $0x1e4] sm:$0xf0]  ;;  %v5427_v24 = vld [vmem:[%s9488_s1 + $0x54] sm:$0xf0] }
   0x7   :  { %1808 = vmatpush.bf16.msra.mxu3 %v4131_v12  ;;  %v4123_v25 = vor.u32 %v5477_v22, %v4122_v20  ;;  %v3986_v26 = vld [vmem:[%s9488_s1 + $0xd0] sm:$0xf]  ;;  %v5443_v27 = vld [vmem:[%s9488_s1 + $0xd4] sm:$0xf0]  ;;  %v3923_v29 = vor.u32 %v5427_v24, %v3922_v23  ;;  %v3914_v35 = vld [vmem:[%s9488_s1 + $0x40] sm:$0xf] }
   0x8   :  { %v4050_v28 = vld [vmem:[%s9488_s1 + $0x150] sm:$0xf]  ;;  %1752 = vmatpush.bf16.msra.mxu0 %v3931_v16  ;;  %v5459_v30 = vld [vmem:[%s9488_s1 + $0x154] sm:$0xf0]  ;;  %v3987_v33 = vor.u32 %v5443_v27, %v3986_v26  ;;  %v5425_v36 = vld [vmem:[%s9488_s1 + $0x44] sm:$0xf0] }
   0x9   :  { %v4114_v31 = vld [vmem:[%s9488_s1 + $0x1d0] sm:$0xf]  ;;  %v5475_v32 = vld [vmem:[%s9488_s1 + $0x1d4] sm:$0xf0]  ;;  %1771 = vmatpush.bf16.msra.mxu1 %v3995_v17  ;;  %v4051_v34 = vor.u32 %v5459_v30, %v4050_v28  ;;  %v3978_v37 = vld [vmem:[%s9488_s1 + $0xc0] sm:$0xf]  ;;  %v3915_v44 = vor.u32 %v5425_v36, %v3914_v35 }
   0xa   :  { %1790 = vmatpush.bf16.msra.mxu2 %v4059_v21  ;;  %v4115_v38 = vor.u32 %v5475_v32, %v4114_v31  ;;  %v5441_v39 = vld [vmem:[%s9488_s1 + $0xc4] sm:$0xf0]  ;;  %v4042_v40 = vld [vmem:[%s9488_s1 + $0x140] sm:$0xf]  ;;  %v3906_v47 = vld [vmem:[%s9488_s1 + $0x30] sm:$0xf] }
   0xb   :  { %1809 = vmatpush.bf16.msra.mxu3 %v4123_v25  ;;  %v5457_v41 = vld [vmem:[%s9488_s1 + $0x144] sm:$0xf0]  ;;  %v4106_v42 = vld [vmem:[%s9488_s1 + $0x1c0] sm:$0xf]  ;;  %v3979_v45 = vor.u32 %v5441_v39, %v3978_v37  ;;  %v5423_v48 = vld [vmem:[%s9488_s1 + $0x34] sm:$0xf0] }
   0xc   :  { %v5473_v43 = vld [vmem:[%s9488_s1 + $0x1c4] sm:$0xf0]  ;;  %1753 = vmatpush.bf16.msra.mxu0 %v3923_v29  ;;  %v4043_v46 = vor.u32 %v5457_v41, %v4042_v40  ;;  %v3970_v49 = vld [vmem:[%s9488_s1 + $0xb0] sm:$0xf]  ;;  %v5439_v51 = vld [vmem:[%s9488_s1 + $0xb4] sm:$0xf0]  ;;  %v3907_v56 = vor.u32 %v5423_v48, %v3906_v47 }
   0xd   :  { %1772 = vmatpush.bf16.msra.mxu1 %v3987_v33  ;;  %v4107_v50 = vor.u32 %v5473_v43, %v4106_v42  ;;  %v4034_v52 = vld [vmem:[%s9488_s1 + $0x130] sm:$0xf]  ;;  %v5455_v53 = vld [vmem:[%s9488_s1 + $0x134] sm:$0xf0]  ;;  %v3971_v57 = vor.u32 %v5439_v51, %v3970_v49  ;;  %v3898_v59 = vld [vmem:[%s9488_s1 + $0x20] sm:$0xf] }
   0xe   :  { %1791 = vmatpush.bf16.msra.mxu2 %v4051_v34  ;;  %v4098_v54 = vld [vmem:[%s9488_s1 + $0x1b0] sm:$0xf]  ;;  %v5471_v55 = vld [vmem:[%s9488_s1 + $0x1b4] sm:$0xf0]  ;;  %v4035_v58 = vor.u32 %v5455_v53, %v4034_v52  ;;  %v5421_v60 = vld [vmem:[%s9488_s1 + $0x24] sm:$0xf0] }
   0xf   :  { %1810 = vmatpush.bf16.msra.mxu3 %v4115_v38  ;;  %v3962_v61 = vld [vmem:[%s9488_s1 + $0xa0] sm:$0xf]  ;;  %v4099_v62 = vor.u32 %v5471_v55, %v4098_v54  ;;  %v5437_v63 = vld [vmem:[%s9488_s1 + $0xa4] sm:$0xf0]  ;;  %v3899_v4 = vor.u32 %v5421_v60, %v3898_v59  ;;  %v3890_v7 = vld [vmem:[%s9488_s1 + $0x10] sm:$0xf] }
  0x10   :  { %1754 = vmatpush.bf16.msra.mxu0 %v3915_v44  ;;  %v4026_v0 = vld [vmem:[%s9488_s1 + $0x120] sm:$0xf]  ;;  %v5453_v1 = vld [vmem:[%s9488_s1 + $0x124] sm:$0xf0]  ;;  %v3963_v5 = vor.u32 %v5437_v63, %v3962_v61  ;;  %v5419_v8 = vld [vmem:[%s9488_s1 + $0x14] sm:$0xf0] }
  0x11   :  { %1773 = vmatpush.bf16.msra.mxu1 %v3979_v45  ;;  %v4090_v2 = vld [vmem:[%s9488_s1 + $0x1a0] sm:$0xf]  ;;  %v5469_v3 = vld [vmem:[%s9488_s1 + $0x1a4] sm:$0xf0]  ;;  %v4027_v6 = vor.u32 %v5453_v1, %v4026_v0  ;;  %v3954_v9 = vld [vmem:[%s9488_s1 + $0x90] sm:$0xf]  ;;  %v3891_v17 = vor.u32 %v5419_v8, %v3890_v7 }
  0x12   :  { %1792 = vmatpush.bf16.msra.mxu2 %v4043_v46  ;;  %v4091_v10 = vor.u32 %v5469_v3, %v4090_v2  ;;  %v5435_v11 = vld [vmem:[%s9488_s1 + $0x94] sm:$0xf0]  ;;  %v4018_v12 = vld [vmem:[%s9488_s1 + $0x110] sm:$0xf]  ;;  %v3882_v16 = vld [vmem:[%s9488_s1] sm:$0xf] }
  0x13   :  { %1811 = vmatpush.bf16.msra.mxu3 %v4107_v50  ;;  %v5451_v13 = vld [vmem:[%s9488_s1 + $0x114] sm:$0xf0]  ;;  %v4082_v14 = vld [vmem:[%s9488_s1 + $0x190] sm:$0xf]  ;;  %v5417_v18 = vld [vmem:[%s9488_s1 + $0x4] sm:$0xf0]  ;;  %v3955_v21 = vor.u32 %v5435_v11, %v3954_v9 }
  0x14   :  { %1755 = vmatpush.bf16.msra.mxu0 %v3907_v56  ;;  %v5467_v15 = vld [vmem:[%s9488_s1 + $0x194] sm:$0xf0]  ;;  %v3946_v19 = vld [vmem:[%s9488_s1 + $0x80] sm:$0xf]  ;;  %v5433_v20 = vld [vmem:[%s9488_s1 + $0x84] sm:$0xf0]  ;;  %v4019_v22 = vor.u32 %v5451_v13, %v4018_v12  ;;  %v3883_v34 = vor.u32 %v5417_v18, %v3882_v16 }
  0x15   :  { %1774 = vmatpush.bf16.msra.mxu1 %v3971_v57  ;;  %v4010_v23 = vld [vmem:[%s9488_s1 + $0x100] sm:$0xf]  ;;  %v5449_v24 = vld [vmem:[%s9488_s1 + $0x104] sm:$0xf0]  ;;  %v4083_v26 = vor.u32 %v5467_v15, %v4082_v14  ;;  %v5384_v30 = vld [vmem:[%s9489_s0 + $0x4] sm:$0xf]  ;;  %v3947_v38 = vor.u32 %v5433_v20, %v3946_v19 }
  0x16   :  { %1793 = vmatpush.bf16.msra.mxu2 %v4035_v58  ;;  %v4074_v25 = vld [vmem:[%s9488_s1 + $0x180] sm:$0xf]  ;;  %v5465_v27 = vld [vmem:[%s9488_s1 + $0x184] sm:$0xf0]  ;;  %v3756_v31 = vld [vmem:[%s9489_s0 + $0x40] sm:$0xf0]  ;;  %v4011_v39 = vor.u32 %v5449_v24, %v4010_v23 }
  0x17   :  { %1812 = vmatpush.bf16.msra.mxu3 %v4099_v62  ;;  %v3754_v28 = vld [vmem:[%s9489_s0] sm:$0xf]  ;;  %v4194_v32 = vld [vmem:[%s9488_s1 + $0x270] sm:$0xf]  ;;  %v5495_v33 = vld [vmem:[%s9488_s1 + $0x274] sm:$0xf0]  ;;  %v4075_v43 = vor.u32 %v5465_v27, %v4074_v25  ;;  %v5966_v53 = vor.u32 %v5384_v30, %v3756_v31 }
  0x18   :  { %1756 = vmatpush.bf16.msra.mxu0 %v3899_v4  ;;  %v5392_v29 = vld [vmem:[%s9489_s0 + $0x3c] sm:$0xf0]  ;;  %v3762_v35 = vld [vmem:[%s9489_s0 + $0x8] sm:$0xf]  ;;  %v4258_v36 = vld [vmem:[%s9488_s1 + $0x2f0] sm:$0xf]  ;;  %v4195_v44 = vor.u32 %v5495_v33, %v4194_v32 }
  0x19   :  { %1775 = vmatpush.bf16.msra.mxu1 %v3963_v5  ;;  %v5511_v37 = vld [vmem:[%s9488_s1 + $0x2f4] sm:$0xf0]  ;;  %v5393_v40 = vld [vmem:[%s9489_s0 + $0x44] sm:$0xf0]  ;;  %v5385_v41 = vld [vmem:[%s9489_s0 + $0xc] sm:$0xf]  ;;  %v5955_v48 = vor.u32 %v5392_v29, %v3754_v28 }
  0x1a   :  { %1794 = vmatpush.bf16.msra.mxu2 %v4027_v6  ;;  %v3764_v42 = vld [vmem:[%s9489_s0 + $0x48] sm:$0xf0]  ;;  %v4322_v45 = vld [vmem:[%s9488_s1 + $0x370] sm:$0xf]  ;;  %v5527_v46 = vld [vmem:[%s9488_s1 + $0x374] sm:$0xf0]  ;;  %v4259_v49 = vor.u32 %v5511_v37, %v4258_v36  ;;  %v5968_v54 = vor.u32 %v5393_v40, %v3762_v35 }
  0x1b   :  { %1813 = vmatpush.bf16.msra.mxu3 %v4091_v10  ;;  %v4386_v47 = vld [vmem:[%s9488_s1 + $0x3f0] sm:$0xf]  ;;  %v5543_v50 = vld [vmem:[%s9488_s1 + $0x3f4] sm:$0xf0]  ;;  %v4186_v51 = vld [vmem:[%s9488_s1 + $0x260] sm:$0xf]  ;;  %v5976_v57 = vor.u32 %v5385_v41, %v3764_v42  ;;  %v4323_v58 = vor.u32 %v5527_v46, %v4322_v45 }
  0x1c   :  { %1757 = vmatpush.bf16.msra.mxu0 %v3891_v17  ;;  %v5493_v52 = vld [vmem:[%s9488_s1 + $0x264] sm:$0xf0]  ;;  %v4250_v55 = vld [vmem:[%s9488_s1 + $0x2e0] sm:$0xf]  ;;  %v4387_v59 = vor.u32 %v5543_v50, %v4386_v47  ;;  %v4178_v2 = vld [vmem:[%s9488_s1 + $0x250] sm:$0xf] }
  0x1d   :  { %1776 = vmatpush.bf16.msra.mxu1 %v3955_v21  ;;  %v5509_v56 = vld [vmem:[%s9488_s1 + $0x2e4] sm:$0xf0]  ;;  %v4187_v60 = vor.u32 %v5493_v52, %v4186_v51  ;;  %v4314_v61 = vld [vmem:[%s9488_s1 + $0x360] sm:$0xf]  ;;  %v5491_v3 = vld [vmem:[%s9488_s1 + $0x254] sm:$0xf0] }
  0x1e   :  { %1795 = vmatpush.bf16.msra.mxu2 %v4019_v22  ;;  %v5525_v62 = vld [vmem:[%s9488_s1 + $0x364] sm:$0xf0]  ;;  %v4378_v63 = vld [vmem:[%s9488_s1 + $0x3e0] sm:$0xf]  ;;  %v4251_v0 = vor.u32 %v5509_v56, %v4250_v55  ;;  %v4242_v4 = vld [vmem:[%s9488_s1 + $0x2d0] sm:$0xf]  ;;  %v4179_v8 = vor.u32 %v5491_v3, %v4178_v2 }
  0x1f   :  { %1814 = vmatpush.bf16.msra.mxu3 %v4083_v26  ;;  %v5541_v1 = vld [vmem:[%s9488_s1 + $0x3e4] sm:$0xf0]  ;;  %v5507_v5 = vld [vmem:[%s9488_s1 + $0x2d4] sm:$0xf0]  ;;  %v4315_v6 = vor.u32 %v5525_v62, %v4314_v61  ;;  %v4306_v9 = vld [vmem:[%s9488_s1 + $0x350] sm:$0xf] }
  0x20   :  { %1758 = vmatpush.bf16.msra.mxu0 %v3883_v34  ;;  %v4379_v7 = vor.u32 %v5541_v1, %v4378_v63  ;;  %v5523_v10 = vld [vmem:[%s9488_s1 + $0x354] sm:$0xf0]  ;;  %v4370_v11 = vld [vmem:[%s9488_s1 + $0x3d0] sm:$0xf]  ;;  %v4243_v12 = vor.u32 %v5507_v5, %v4242_v4  ;;  %v4170_v14 = vld [vmem:[%s9488_s1 + $0x240] sm:$0xf] }
  0x21   :  { %1777 = vmatpush.bf16.msra.mxu1 %v3947_v38  ;;  %v5539_v13 = vld [vmem:[%s9488_s1 + $0x3d4] sm:$0xf0]  ;;  %v5489_v15 = vld [vmem:[%s9488_s1 + $0x244] sm:$0xf0]  ;;  %v4234_v16 = vld [vmem:[%s9488_s1 + $0x2c0] sm:$0xf]  ;;  %v4307_v18 = vor.u32 %v5523_v10, %v4306_v9 }
  0x22   :  { %1796 = vmatpush.bf16.msra.mxu2 %v4011_v39  ;;  %v5505_v17 = vld [vmem:[%s9488_s1 + $0x2c4] sm:$0xf0]  ;;  %v4298_v19 = vld [vmem:[%s9488_s1 + $0x340] sm:$0xf]  ;;  %v4371_v22 = vor.u32 %v5539_v13, %v4370_v11  ;;  %v4171_v23 = vor.u32 %v5489_v15, %v4170_v14  ;;  %v5400_v28 = vld [vmem:[%s9489_s0 + $0x84] sm:$0xf] }
  0x23   :  { %1815 = vmatpush.bf16.msra.mxu3 %v4075_v43  ;;  %1759 = vmatmul.bf16.vlgmr.msra.gmra.mxu0 %v5955_v48  ;;  %v5521_v20 = vld [vmem:[%s9488_s1 + $0x344] sm:$0xf0]  ;;  %v4362_v21 = vld [vmem:[%s9488_s1 + $0x3c0] sm:$0xf]  ;;  %v4235_v27 = vor.u32 %v5505_v17, %v4234_v16  ;;  %v3820_v29 = vld [vmem:[%s9489_s0 + $0xc0] sm:$0xf0] }
  0x24   :  { %1827 = vmatpush.bf16.msrb.mxu0 %v4195_v44  ;;  %1778 = vmatmul.bf16.vlgmr.msra.gmra.mxu1 %v5966_v53  ;;  %v5537_v24 = vld [vmem:[%s9488_s1 + $0x3c4] sm:$0xf0]  ;;  %v3818_v25 = vld [vmem:[%s9489_s0 + $0x80] sm:$0xf]  ;;  %v4162_v30 = vld [vmem:[%s9488_s1 + $0x230] sm:$0xf]  ;;  %v4299_v35 = vor.u32 %v5521_v20, %v4298_v19  ;;  %v6098_v50 = vor.u32 %v5400_v28, %v3820_v29 }
  0x25   :  { %1846 = vmatpush.bf16.msrb.mxu1 %v4259_v49  ;;  %1797 = vmatmul.bf16.vlgmr.msra.gmra.mxu2 %v5968_v54  ;;  %v5408_v26 = vld [vmem:[%s9489_s0 + $0xbc] sm:$0xf0]  ;;  %v5487_v31 = vld [vmem:[%s9488_s1 + $0x234] sm:$0xf0]  ;;  %v3826_v32 = vld [vmem:[%s9489_s0 + $0x88] sm:$0xf]  ;;  %v4363_v39 = vor.u32 %v5537_v24, %v4362_v21 }
  0x26   :  { %1816 = vmatmul.bf16.vlgmr.msra.gmra.mxu3 %v5976_v57  ;;  %1865 = vmatpush.bf16.msrb.mxu2 %v4323_v58  ;;  %v4226_v33 = vld [vmem:[%s9488_s1 + $0x2b0] sm:$0xf]  ;;  %v5503_v34 = vld [vmem:[%s9488_s1 + $0x2b4] sm:$0xf0]  ;;  %v5409_v36 = vld [vmem:[%s9489_s0 + $0xc4] sm:$0xf0]  ;;  %v4163_v40 = vor.u32 %v5487_v31, %v4162_v30  ;;  %v6087_v44 = vor.u32 %v5408_v26, %v3818_v25 }
  0x27   :  { %1884 = vmatpush.bf16.msrb.mxu3 %v4387_v59  ;;  %v5401_v37 = vld [vmem:[%s9489_s0 + $0x8c] sm:$0xf]  ;;  %v4290_v41 = vld [vmem:[%s9488_s1 + $0x330] sm:$0xf]  ;;  %v5519_v42 = vld [vmem:[%s9488_s1 + $0x334] sm:$0xf0]  ;;  %v4227_v45 = vor.u32 %v5503_v34, %v4226_v33  ;;  %v6100_v51 = vor.u32 %v5409_v36, %v3826_v32 }
  0x28   :  { %1828 = vmatpush.bf16.msrb.mxu0 %v4187_v60  ;;  %v3828_v38 = vld [vmem:[%s9489_s0 + $0xc8] sm:$0xf0]  ;;  %v4354_v43 = vld [vmem:[%s9488_s1 + $0x3b0] sm:$0xf]  ;;  %v5535_v46 = vld [vmem:[%s9488_s1 + $0x3b4] sm:$0xf0]  ;;  %v4291_v58 = vor.u32 %v5519_v42, %v4290_v41 }
  0x29   :  { %1847 = vmatpush.bf16.msrb.mxu1 %v4251_v0  ;;  %v4154_v47 = vld [vmem:[%s9488_s1 + $0x220] sm:$0xf]  ;;  %v5485_v49 = vld [vmem:[%s9488_s1 + $0x224] sm:$0xf0]  ;;  %v6108_v56 = vor.u32 %v5401_v37, %v3828_v38  ;;  %v4355_v59 = vor.u32 %v5535_v46, %v4354_v43  ;;  %v4146_v2 = vld [vmem:[%s9488_s1 + $0x210] sm:$0xf] }
  0x2a   :  { %1866 = vmatpush.bf16.msrb.mxu2 %v4315_v6  ;;  %v4218_v52 = vld [vmem:[%s9488_s1 + $0x2a0] sm:$0xf]  ;;  %v5501_v55 = vld [vmem:[%s9488_s1 + $0x2a4] sm:$0xf0]  ;;  %v4155_v60 = vor.u32 %v5485_v49, %v4154_v47  ;;  %v5483_v3 = vld [vmem:[%s9488_s1 + $0x214] sm:$0xf0] }
  0x2b   :  { %1885 = vmatpush.bf16.msrb.mxu3 %v4379_v7  ;;  %v4282_v61 = vld [vmem:[%s9488_s1 + $0x320] sm:$0xf]  ;;  %v5517_v62 = vld [vmem:[%s9488_s1 + $0x324] sm:$0xf0]  ;;  %v4219_v0 = vor.u32 %v5501_v55, %v4218_v52  ;;  %v4210_v4 = vld [vmem:[%s9488_s1 + $0x290] sm:$0xf]  ;;  %v4147_v10 = vor.u32 %v5483_v3, %v4146_v2 }
  0x2c   :  { %1829 = vmatpush.bf16.msrb.mxu0 %v4179_v8  ;;  %v4346_v63 = vld [vmem:[%s9488_s1 + $0x3a0] sm:$0xf]  ;;  %v5533_v1 = vld [vmem:[%s9488_s1 + $0x3a4] sm:$0xf0]  ;;  %v5499_v5 = vld [vmem:[%s9488_s1 + $0x294] sm:$0xf0]  ;;  %v4283_v6 = vor.u32 %v5517_v62, %v4282_v61 }
  0x2d   :  { %1848 = vmatpush.bf16.msrb.mxu1 %v4243_v12  ;;  %v4274_v7 = vld [vmem:[%s9488_s1 + $0x310] sm:$0xf]  ;;  %v5515_v8 = vld [vmem:[%s9488_s1 + $0x314] sm:$0xf0]  ;;  %v4347_v9 = vor.u32 %v5533_v1, %v4346_v63  ;;  %v4138_v13 = vld [vmem:[%s9488_s1 + $0x200] sm:$0xf]  ;;  %v4211_v14 = vor.u32 %v5499_v5, %v4210_v4 }
  0x2e   :  { %1867 = vmatpush.bf16.msrb.mxu2 %v4307_v18  ;;  %v4338_v11 = vld [vmem:[%s9488_s1 + $0x390] sm:$0xf]  ;;  %v5531_v12 = vld [vmem:[%s9488_s1 + $0x394] sm:$0xf0]  ;;  %v5481_v15 = vld [vmem:[%s9488_s1 + $0x204] sm:$0xf0] }
  0x2f   :  { %1886 = vmatpush.bf16.msrb.mxu3 %v4371_v22  ;;  %v4202_v16 = vld [vmem:[%s9488_s1 + $0x280] sm:$0xf]  ;;  %v5497_v17 = vld [vmem:[%s9488_s1 + $0x284] sm:$0xf0]  ;;  %v4450_v20 = vld [vmem:[%s9488_s1 + $0x470] sm:$0xf]  ;;  %v4275_v22 = vor.u32 %v5515_v8, %v4274_v7  ;;  %v4339_v26 = vor.u32 %v5531_v12, %v4338_v11 }
  0x30   :  { %1830 = vmatpush.bf16.msrb.mxu0 %v4171_v23  ;;  %v4266_v18 = vld [vmem:[%s9488_s1 + $0x300] sm:$0xf]  ;;  %v5513_v19 = vld [vmem:[%s9488_s1 + $0x304] sm:$0xf0]  ;;  %v5559_v21 = vld [vmem:[%s9488_s1 + $0x474] sm:$0xf0]  ;;  %v4203_v31 = vor.u32 %v5497_v17, %v4202_v16 }
  0x31   :  { %1849 = vmatpush.bf16.msrb.mxu1 %v4235_v27  ;;  %v4330_v23 = vld [vmem:[%s9488_s1 + $0x380] sm:$0xf]  ;;  %v4514_v24 = vld [vmem:[%s9488_s1 + $0x4f0] sm:$0xf]  ;;  %v5575_v25 = vld [vmem:[%s9488_s1 + $0x4f4] sm:$0xf0]  ;;  %v4139_v27 = vor.u32 %v5481_v15, %v4138_v13  ;;  %v4451_v34 = vor.u32 %v5559_v21, %v4450_v20  ;;  %v4267_v41 = vor.u32 %v5513_v19, %v4266_v18 }
  0x32   :  { %1868 = vmatpush.bf16.msrb.mxu2 %v4299_v35  ;;  %v5529_v28 = vld [vmem:[%s9488_s1 + $0x384] sm:$0xf0]  ;;  %v3770_v29 = vld [vmem:[%s9489_s0 + $0x10] sm:$0xf]  ;;  %v5386_v32 = vld [vmem:[%s9489_s0 + $0x14] sm:$0xf]  ;;  %v4515_v38 = vor.u32 %v5575_v25, %v4514_v24 }
  0x33   :  { %1887 = vmatpush.bf16.msrb.mxu3 %v4363_v39  ;;  %1764 = vmatmul.bf16.gmra.mxu0 %v6087_v44  ;;  %v5394_v30 = vld [vmem:[%s9489_s0 + $0x4c] sm:$0xf0]  ;;  %v3772_v33 = vld [vmem:[%s9489_s0 + $0x50] sm:$0xf0]  ;;  %v5591_v36 = vld [vmem:[%s9488_s1 + $0x574] sm:$0xf0]  ;;  %v4331_v46 = vor.u32 %v5529_v28, %v4330_v23 }
  0x34   :  { %1831 = vmatpush.bf16.msrb.mxu0 %v4163_v40  ;;  %1783 = vmatmul.bf16.gmra.mxu1 %v6098_v50  ;;  %v4578_v35 = vld [vmem:[%s9488_s1 + $0x570] sm:$0xf]  ;;  %v3778_v37 = vld [vmem:[%s9489_s0 + $0x18] sm:$0xf]  ;;  %v5387_v43 = vld [vmem:[%s9489_s0 + $0x1c] sm:$0xf]  ;;  %v6242_v63 = vor.u32 %v5386_v32, %v3772_v33 }
  0x35   :  { %1850 = vmatpush.bf16.msrb.mxu1 %v4227_v45  ;;  %1802 = vmatmul.bf16.gmra.mxu2 %v6100_v51  ;;  %v4642_v39 = vld [vmem:[%s9488_s1 + $0x5f0] sm:$0xf]  ;;  %v5607_v40 = vld [vmem:[%s9488_s1 + $0x5f4] sm:$0xf0]  ;;  %v3780_v45 = vld [vmem:[%s9489_s0 + $0x58] sm:$0xf0]  ;;  %v4579_v47 = vor.u32 %v5591_v36, %v4578_v35 }
  0x36   :  { %1821 = vmatmul.bf16.gmra.mxu3 %v6108_v56  ;;  %1869 = vmatpush.bf16.msrb.mxu2 %v4291_v58  ;;  %v5395_v42 = vld [vmem:[%s9489_s0 + $0x54] sm:$0xf0]  ;;  %v4442_v49 = vld [vmem:[%s9488_s1 + $0x460] sm:$0xf]  ;;  %v5557_v52 = vld [vmem:[%s9488_s1 + $0x464] sm:$0xf0]  ;;  %v6231_v58 = vor.u32 %v5394_v30, %v3770_v29  ;;  %v6252_v3 = vor.u32 %v5387_v43, %v3780_v45 }
  0x37   :  { %1888 = vmatpush.bf16.msrb.mxu3 %v4355_v59  ;;  %v4506_v55 = vld [vmem:[%s9488_s1 + $0x4e0] sm:$0xf]  ;;  %v4643_v59 = vor.u32 %v5607_v40, %v4642_v39  ;;  %v5589_v62 = vld [vmem:[%s9488_s1 + $0x564] sm:$0xf0]  ;;  %v4443_v4 = vor.u32 %v5557_v52, %v4442_v49  ;;  %v4434_v7 = vld [vmem:[%s9488_s1 + $0x450] sm:$0xf] }
  0x38   :  { %1832 = vmatpush.bf16.msrb.mxu0 %v4155_v60  ;;  %v5573_v60 = vld [vmem:[%s9488_s1 + $0x4e4] sm:$0xf0]  ;;  %v4570_v61 = vld [vmem:[%s9488_s1 + $0x560] sm:$0xf]  ;;  %v5555_v8 = vld [vmem:[%s9488_s1 + $0x454] sm:$0xf0] }
  0x39   :  { %1851 = vmatpush.bf16.msrb.mxu1 %v4219_v0  ;;  %v6244_v0 = vor.u32 %v5395_v42, %v3778_v37  ;;  %v4634_v1 = vld [vmem:[%s9488_s1 + $0x5e0] sm:$0xf]  ;;  %v5605_v2 = vld [vmem:[%s9488_s1 + $0x5e4] sm:$0xf0]  ;;  %v4507_v5 = vor.u32 %v5573_v60, %v4506_v55  ;;  %v5571_v11 = vld [vmem:[%s9488_s1 + $0x4d4] sm:$0xf0]  ;;  %v4435_v16 = vor.u32 %v5555_v8, %v4434_v7 }
  0x3a   :  { %1870 = vmatpush.bf16.msrb.mxu2 %v4283_v6  ;;  %v4571_v6 = vor.u32 %v5589_v62, %v4570_v61  ;;  %v4562_v12 = vld [vmem:[%s9488_s1 + $0x550] sm:$0xf]  ;;  %v5587_v13 = vld [vmem:[%s9488_s1 + $0x554] sm:$0xf0]  ;;  %v4426_v19 = vld [vmem:[%s9488_s1 + $0x440] sm:$0xf] }
  0x3b   :  { %1889 = vmatpush.bf16.msrb.mxu3 %v4347_v9  ;;  %v4498_v9 = vld [vmem:[%s9488_s1 + $0x4d0] sm:$0xf]  ;;  %v5603_v15 = vld [vmem:[%s9488_s1 + $0x5d4] sm:$0xf0]  ;;  %v4563_v18 = vor.u32 %v5587_v13, %v4562_v12  ;;  %v5553_v20 = vld [vmem:[%s9488_s1 + $0x444] sm:$0xf0] }
  0x3c   :  { %1833 = vmatpush.bf16.msrb.mxu0 %v4147_v10  ;;  %v4635_v10 = vor.u32 %v5605_v2, %v4634_v1  ;;  %v4499_v17 = vor.u32 %v5571_v11, %v4498_v9  ;;  %v4490_v21 = vld [vmem:[%s9488_s1 + $0x4c0] sm:$0xf]  ;;  %v5569_v23 = vld [vmem:[%s9488_s1 + $0x4c4] sm:$0xf0]  ;;  %v4427_v28 = vor.u32 %v5553_v20, %v4426_v19  ;;  %v5410_v32 = vld [vmem:[%s9489_s0 + $0xcc] sm:$0xf0] }
  0x3d   :  { %1852 = vmatpush.bf16.msrb.mxu1 %v4211_v14  ;;  %v4626_v14 = vld [vmem:[%s9488_s1 + $0x5d0] sm:$0xf]  ;;  %v4554_v24 = vld [vmem:[%s9488_s1 + $0x540] sm:$0xf]  ;;  %v5585_v25 = vld [vmem:[%s9488_s1 + $0x544] sm:$0xf0]  ;;  %v4491_v29 = vor.u32 %v5569_v23, %v4490_v21 }
  0x3e   :  { %1871 = vmatpush.bf16.msrb.mxu2 %v4275_v22  ;;  %v4627_v22 = vor.u32 %v5603_v15, %v4626_v14  ;;  %v4555_v30 = vor.u32 %v5585_v25, %v4554_v24  ;;  %v4418_v33 = vld [vmem:[%s9488_s1 + $0x430] sm:$0xf]  ;;  %v5402_v37 = vld [vmem:[%s9489_s0 + $0x94] sm:$0xf]  ;;  %v5567_v39 = vld [vmem:[%s9488_s1 + $0x4b4] sm:$0xf0] }
  0x3f   :  { %1890 = vmatpush.bf16.msrb.mxu3 %v4339_v26  ;;  %v4618_v26 = vld [vmem:[%s9488_s1 + $0x5c0] sm:$0xf]  ;;  %v4482_v35 = vld [vmem:[%s9488_s1 + $0x4b0] sm:$0xf]  ;;  %v3842_v42 = vld [vmem:[%s9489_s0 + $0x98] sm:$0xf] }
  0x40   :  { %1834 = vmatpush.bf16.msrb.mxu0 %v4139_v27  ;;  %v5601_v27 = vld [vmem:[%s9488_s1 + $0x5c4] sm:$0xf0]  ;;  %v4546_v40 = vld [vmem:[%s9488_s1 + $0x530] sm:$0xf]  ;;  %v5599_v45 = vld [vmem:[%s9488_s1 + $0x5b4] sm:$0xf0]  ;;  %v4483_v55 = vor.u32 %v5567_v39, %v4482_v35 }
  0x41   :  { %1853 = vmatpush.bf16.msrb.mxu1 %v4203_v31  ;;  %v3834_v31 = vld [vmem:[%s9489_s0 + $0x90] sm:$0xf]  ;;  %v4619_v36 = vor.u32 %v5601_v27, %v4618_v26  ;;  %v3844_v49 = vld [vmem:[%s9489_s0 + $0xd8] sm:$0xf0]  ;;  %v4410_v60 = vld [vmem:[%s9488_s1 + $0x420] sm:$0xf] }
  0x42   :  { %1872 = vmatpush.bf16.msrb.mxu2 %v4267_v41  ;;  %v5583_v41 = vld [vmem:[%s9488_s1 + $0x534] sm:$0xf0]  ;;  %v4610_v43 = vld [vmem:[%s9488_s1 + $0x5b0] sm:$0xf]  ;;  %v5549_v61 = vld [vmem:[%s9488_s1 + $0x424] sm:$0xf0]  ;;  %v6363_v1 = vor.u32 %v5410_v32, %v3834_v31 }
  0x43   :  { %1891 = vmatpush.bf16.msrb.mxu3 %v4331_v46  ;;  %1835 = vmatmul.bf16.vlgmr.msrb.gmra.mxu0 %v6231_v58  ;;  %v5411_v46 = vld [vmem:[%s9489_s0 + $0xd4] sm:$0xf0]  ;;  %v4474_v62 = vld [vmem:[%s9488_s1 + $0x4a0] sm:$0xf]  ;;  %v4611_v2 = vor.u32 %v5599_v45, %v4610_v43  ;;  %v4411_v12 = vor.u32 %v5549_v61, %v4410_v60  ;;  %v4402_v15 = vld [vmem:[%s9488_s1 + $0x410] sm:$0xf] }
  0x44   :  { %1903 = vmatpush.bf16.msra.mxu0 %v4451_v34  ;;  %1854 = vmatmul.bf16.vlgmr.msrb.gmra.mxu1 %v6242_v63  ;;  %v5551_v34 = vld [vmem:[%s9488_s1 + $0x434] sm:$0xf0]  ;;  %v6376_v8 = vor.u32 %v5411_v46, %v3842_v42  ;;  %v4602_v9 = vld [vmem:[%s9488_s1 + $0x5a0] sm:$0xf]  ;;  %v4530_v20 = vld [vmem:[%s9488_s1 + $0x510] sm:$0xf] }
  0x45   :  { %1922 = vmatpush.bf16.msra.mxu1 %v4515_v38  ;;  %1873 = vmatmul.bf16.vlgmr.msrb.gmra.mxu2 %v6244_v0  ;;  %v3836_v38 = vld [vmem:[%s9489_s0 + $0xd0] sm:$0xf0]  ;;  %v4419_v52 = vor.u32 %v5551_v34, %v4418_v33  ;;  %v5563_v19 = vld [vmem:[%s9488_s1 + $0x494] sm:$0xf0]  ;;  %v4394_v25 = vld [vmem:[%s9488_s1 + $0x400] sm:$0xf] }
  0x46   :  { %1941 = vmatpush.bf16.msra.mxu2 %v4579_v47  ;;  %1892 = vmatmul.bf16.vlgmr.msrb.gmra.mxu3 %v6252_v3  ;;  %v5403_v47 = vld [vmem:[%s9489_s0 + $0x9c] sm:$0xf]  ;;  %v6374_v7 = vor.u32 %v5402_v37, %v3836_v38  ;;  %v5579_v21 = vld [vmem:[%s9488_s1 + $0x514] sm:$0xf0]  ;;  %v5545_v26 = vld [vmem:[%s9488_s1 + $0x404] sm:$0xf0] }
  0x47   :  { %1960 = vmatpush.bf16.msra.mxu3 %v4643_v59  ;;  %v4547_v59 = vor.u32 %v5583_v41, %v4546_v40  ;;  %v6384_v11 = vor.u32 %v5403_v47, %v3844_v49  ;;  %v5595_v23 = vld [vmem:[%s9488_s1 + $0x594] sm:$0xf0]  ;;  %v4522_v31 = vld [vmem:[%s9488_s1 + $0x500] sm:$0xf]  ;;  %v5577_v33 = vld [vmem:[%s9488_s1 + $0x504] sm:$0xf0]  ;;  %v4395_v39 = vor.u32 %v5545_v26, %v4394_v25 }
  0x48   :  { %1904 = vmatpush.bf16.msra.mxu0 %v4443_v4  ;;  %v5565_v4 = vld [vmem:[%s9488_s1 + $0x4a4] sm:$0xf0]  ;;  %v4586_v34 = vld [vmem:[%s9488_s1 + $0x580] sm:$0xf]  ;;  %v5623_v37 = vld [vmem:[%s9488_s1 + $0x674] sm:$0xf0]  ;;  %v4523_v45 = vor.u32 %v5577_v33, %v4522_v31 }
  0x49   :  { %1923 = vmatpush.bf16.msra.mxu1 %v4507_v5  ;;  %v4538_v5 = vld [vmem:[%s9488_s1 + $0x520] sm:$0xf]  ;;  %v4475_v13 = vor.u32 %v5565_v4, %v4474_v62  ;;  %v5593_v35 = vld [vmem:[%s9488_s1 + $0x584] sm:$0xf0]  ;;  %v4770_v38 = vld [vmem:[%s9488_s1 + $0x6f0] sm:$0xf] }
  0x4a   :  { %1942 = vmatpush.bf16.msra.mxu2 %v4571_v6  ;;  %v5581_v6 = vld [vmem:[%s9488_s1 + $0x524] sm:$0xf0]  ;;  %v5639_v40 = vld [vmem:[%s9488_s1 + $0x6f4] sm:$0xf0]  ;;  %v4834_v41 = vld [vmem:[%s9488_s1 + $0x770] sm:$0xf]  ;;  %v4587_v49 = vor.u32 %v5593_v35, %v4586_v34 }
  0x4b   :  { %1961 = vmatpush.bf16.msra.mxu3 %v4635_v10  ;;  %v5597_v10 = vld [vmem:[%s9488_s1 + $0x5a4] sm:$0xf0]  ;;  %v4539_v14 = vor.u32 %v5581_v6, %v4538_v5  ;;  %v5655_v42 = vld [vmem:[%s9488_s1 + $0x774] sm:$0xf0]  ;;  %v4898_v46 = vld [vmem:[%s9488_s1 + $0x7f0] sm:$0xf] }
  0x4c   :  { %1905 = vmatpush.bf16.msra.mxu0 %v4435_v16  ;;  %v5547_v16 = vld [vmem:[%s9488_s1 + $0x414] sm:$0xf0]  ;;  %v5388_v60 = vld [vmem:[%s9489_s0 + $0x24] sm:$0xf]  ;;  %v3794_v62 = vld [vmem:[%s9489_s0 + $0x28] sm:$0xf]  ;;  %v4835_v4 = vor.u32 %v5655_v42, %v4834_v41 }
  0x4d   :  { %1924 = vmatpush.bf16.msra.mxu1 %v4499_v17  ;;  %v4466_v17 = vld [vmem:[%s9488_s1 + $0x490] sm:$0xf]  ;;  %v4403_v24 = vor.u32 %v5547_v16, %v4402_v15  ;;  %v5671_v47 = vld [vmem:[%s9488_s1 + $0x7f4] sm:$0xf0]  ;;  %v3788_v61 = vld [vmem:[%s9489_s0 + $0x60] sm:$0xf0] }
  0x4e   :  { %1943 = vmatpush.bf16.msra.mxu2 %v4563_v18  ;;  %v4603_v18 = vor.u32 %v5597_v10, %v4602_v9  ;;  %v4467_v27 = vor.u32 %v5563_v19, %v4466_v17  ;;  %v5397_v5 = vld [vmem:[%s9489_s0 + $0x64] sm:$0xf0]  ;;  %v5389_v6 = vld [vmem:[%s9489_s0 + $0x2c] sm:$0xf]  ;;  %v4899_v10 = vor.u32 %v5671_v47, %v4898_v46  ;;  %v4826_v17 = vld [vmem:[%s9488_s1 + $0x760] sm:$0xf]  ;;  %v6506_v19 = vor.u32 %v5388_v60, %v3788_v61 }
  0x4f   :  { %1962 = vmatpush.bf16.msra.mxu3 %v4627_v22  ;;  %v4594_v22 = vld [vmem:[%s9488_s1 + $0x590] sm:$0xf]  ;;  %v3796_v9 = vld [vmem:[%s9489_s0 + $0x68] sm:$0xf0]  ;;  %v5637_v16 = vld [vmem:[%s9488_s1 + $0x6e4] sm:$0xf0] }
  0x50   :  { %1906 = vmatpush.bf16.msra.mxu0 %v4427_v28  ;;  %v4531_v28 = vor.u32 %v5579_v21, %v4530_v20  ;;  %v4595_v32 = vor.u32 %v5595_v23, %v4594_v22  ;;  %v6508_v20 = vor.u32 %v5397_v5, %v3794_v62  ;;  %v4890_v21 = vld [vmem:[%s9488_s1 + $0x7e0] sm:$0xf]  ;;  %v5669_v22 = vld [vmem:[%s9488_s1 + $0x7e4] sm:$0xf0]  ;;  %v6516_v23 = vor.u32 %v5389_v6, %v3796_v9  ;;  %v5635_v31 = vld [vmem:[%s9488_s1 + $0x6d4] sm:$0xf0] }
  0x51   :  { %1925 = vmatpush.bf16.msra.mxu1 %v4491_v29  ;;  %v4458_v29 = vld [vmem:[%s9488_s1 + $0x480] sm:$0xf]  ;;  %v5651_v33 = vld [vmem:[%s9488_s1 + $0x754] sm:$0xf0]  ;;  %v4882_v34 = vld [vmem:[%s9488_s1 + $0x7d0] sm:$0xf] }
  0x52   :  { %1944 = vmatpush.bf16.msra.mxu2 %v4555_v30  ;;  %v5561_v30 = vld [vmem:[%s9488_s1 + $0x484] sm:$0xf0]  ;;  %v5667_v35 = vld [vmem:[%s9488_s1 + $0x7d4] sm:$0xf0]  ;;  %v4746_v41 = vld [vmem:[%s9488_s1 + $0x6c0] sm:$0xf] }
  0x53   :  { %1963 = vmatpush.bf16.msra.mxu3 %v4619_v36  ;;  %1840 = vmatmul.bf16.gmra.mxu0 %v6363_v1  ;;  %v4706_v36 = vld [vmem:[%s9488_s1 + $0x670] sm:$0xf]  ;;  %v4459_v43 = vor.u32 %v5561_v30, %v4458_v29  ;;  %v4891_v30 = vor.u32 %v5669_v22, %v4890_v21  ;;  %v4883_v42 = vor.u32 %v5667_v35, %v4882_v34  ;;  %v5649_v46 = vld [vmem:[%s9488_s1 + $0x744] sm:$0xf0]  ;;  %v4874_v47 = vld [vmem:[%s9488_s1 + $0x7c0] sm:$0xf] }
  0x54   :  { %1907 = vmatpush.bf16.msra.mxu0 %v4419_v52  ;;  %1859 = vmatmul.bf16.gmra.mxu1 %v6374_v7  ;;  %v3786_v52 = vld [vmem:[%s9489_s0 + $0x20] sm:$0xf]  ;;  %v4754_v29 = vld [vmem:[%s9488_s1 + $0x6d0] sm:$0xf]  ;;  %v5404_v6 = vld [vmem:[%s9489_s0 + $0xa4] sm:$0xf] }
  0x55   :  { %1926 = vmatpush.bf16.msra.mxu1 %v4483_v55  ;;  %1878 = vmatmul.bf16.gmra.mxu2 %v6376_v8  ;;  %v5396_v55 = vld [vmem:[%s9489_s0 + $0x5c] sm:$0xf0]  ;;  %v4674_v62 = vld [vmem:[%s9488_s1 + $0x630] sm:$0xf]  ;;  %v3852_v9 = vld [vmem:[%s9489_s0 + $0xe0] sm:$0xf0] }
  0x56   :  { %1945 = vmatpush.bf16.msra.mxu2 %v4547_v59  ;;  %1897 = vmatmul.bf16.gmra.mxu3 %v6384_v11  ;;  %v4707_v59 = vor.u32 %v5623_v37, %v4706_v36  ;;  %v6495_v15 = vor.u32 %v5396_v55, %v3786_v52  ;;  %v4755_v37 = vor.u32 %v5635_v31, %v4754_v29  ;;  %v3850_v60 = vld [vmem:[%s9489_s0 + $0xa0] sm:$0xf]  ;;  %v5405_v21 = vld [vmem:[%s9489_s0 + $0xac] sm:$0xf]  ;;  %v5645_v34 = vld [vmem:[%s9488_s1 + $0x724] sm:$0xf0] }
  0x57   :  { %1964 = vmatpush.bf16.msra.mxu3 %v4611_v2  ;;  %v4771_v2 = vor.u32 %v5639_v40, %v4770_v38  ;;  %v5617_v40 = vld [vmem:[%s9488_s1 + $0x644] sm:$0xf0]  ;;  %v5412_v61 = vld [vmem:[%s9489_s0 + $0xdc] sm:$0xf0]  ;;  %v3860_v22 = vld [vmem:[%s9489_s0 + $0xe8] sm:$0xf0]  ;;  %v6638_v35 = vor.u32 %v5404_v6, %v3852_v9 }
  0x58   :  { %1908 = vmatpush.bf16.msra.mxu0 %v4411_v12  ;;  %v4698_v12 = vld [vmem:[%s9488_s1 + $0x660] sm:$0xf]  ;;  %v5625_v9 = vld [vmem:[%s9488_s1 + $0x684] sm:$0xf0] }
  0x59   :  { %1927 = vmatpush.bf16.msra.mxu1 %v4475_v13  ;;  %v5621_v13 = vld [vmem:[%s9488_s1 + $0x664] sm:$0xf0]  ;;  %v4730_v29 = vld [vmem:[%s9488_s1 + $0x6a0] sm:$0xf] }
  0x5a   :  { %1946 = vmatpush.bf16.msra.mxu2 %v4539_v14  ;;  %v4762_v14 = vld [vmem:[%s9488_s1 + $0x6e0] sm:$0xf] }
  0x5b   :  { %1965 = vmatpush.bf16.msra.mxu3 %v4603_v18  ;;  %v5653_v18 = vld [vmem:[%s9488_s1 + $0x764] sm:$0xf0]  ;;  %v4763_v25 = vor.u32 %v5637_v16, %v4762_v14  ;;  %v4866_v16 = vld [vmem:[%s9488_s1 + $0x7b0] sm:$0xf]  ;;  %v4714_v6 = vld [vmem:[%s9488_s1 + $0x680] sm:$0xf] }
  0x5c   :  { %1909 = vmatpush.bf16.msra.mxu0 %v4403_v24  ;;  %v4699_v24 = vor.u32 %v5621_v13, %v4698_v12  ;;  %v4827_v26 = vor.u32 %v5653_v18, %v4826_v17  ;;  %v4802_v12 = vld [vmem:[%s9488_s1 + $0x730] sm:$0xf]  ;;  %v5647_v13 = vld [vmem:[%s9488_s1 + $0x734] sm:$0xf0]  ;;  %v3858_v14 = vld [vmem:[%s9489_s0 + $0xa8] sm:$0xf] }
  0x5d   :  { %1928 = vmatpush.bf16.msra.mxu1 %v4467_v27  ;;  %v4690_v27 = vld [vmem:[%s9488_s1 + $0x650] sm:$0xf]  ;;  %v5663_v17 = vld [vmem:[%s9488_s1 + $0x7b4] sm:$0xf0]  ;;  %v5413_v18 = vld [vmem:[%s9489_s0 + $0xe4] sm:$0xf0] }
  0x5e   :  { %1947 = vmatpush.bf16.msra.mxu2 %v4531_v28  ;;  %v5619_v28 = vld [vmem:[%s9488_s1 + $0x654] sm:$0xf0]  ;;  %v4867_v31 = vor.u32 %v5663_v17, %v4866_v16  ;;  %v5657_v16 = vld [vmem:[%s9488_s1 + $0x784] sm:$0xf0]  ;;  %v5430_v17 = vld [vmem:[%s9488_s1 + $0x74] sm:$0xf] }
  0x5f   :  { %1966 = vmatpush.bf16.msra.mxu3 %v4595_v32  ;;  %v4818_v32 = vld [vmem:[%s9488_s1 + $0x750] sm:$0xf]  ;;  %v4691_v36 = vor.u32 %v5619_v28, %v4690_v27  ;;  %v4666_v27 = vld [vmem:[%s9488_s1 + $0x620] sm:$0xf]  ;;  %v5613_v28 = vld [vmem:[%s9488_s1 + $0x624] sm:$0xf0] }
  0x60   :  { %1910 = vmatpush.bf16.msra.mxu0 %v4395_v39  ;;  %v4819_v38 = vor.u32 %v5651_v33, %v4818_v32  ;;  %v4682_v39 = vld [vmem:[%s9488_s1 + $0x640] sm:$0xf]  ;;  %v5629_v32 = vld [vmem:[%s9488_s1 + $0x6a4] sm:$0xf0] }
  0x61   :  { %1929 = vmatpush.bf16.msra.mxu1 %v4459_v43  ;;  %v5633_v43 = vld [vmem:[%s9488_s1 + $0x6c4] sm:$0xf0]  ;;  %v4683_v52 = vor.u32 %v5617_v40, %v4682_v39  ;;  %v4794_v33 = vld [vmem:[%s9488_s1 + $0x720] sm:$0xf]  ;;  %v6648_v39 = vor.u32 %v5405_v21, %v3860_v22  ;;  %v4667_v40 = vor.u32 %v5613_v28, %v4666_v27  ;;  %v5446_v21 = vld [vmem:[%s9488_s1 + $0xf4] sm:$0xf]  ;;  %v4715_v27 = vor.u32 %v5625_v9, %v4714_v6 }
  0x62   :  { %1948 = vmatpush.bf16.msra.mxu2 %v4523_v45  ;;  %v4810_v45 = vld [vmem:[%s9488_s1 + $0x740] sm:$0xf]  ;;  %v4747_v55 = vor.u32 %v5633_v43, %v4746_v41  ;;  %v4731_v41 = vor.u32 %v5629_v32, %v4730_v29  ;;  %v4658_v43 = vld [vmem:[%s9488_s1 + $0x610] sm:$0xf]  ;;  %v5478_v29 = vld [vmem:[%s9488_s1 + $0x1f4] sm:$0xf] }
  0x63   :  { %1967 = vmatpush.bf16.msra.mxu3 %v4587_v49  ;;  %1911 = vmatmul.bf16.vlgmr.msra.gmra.mxu0 %v6495_v15  ;;  %v5665_v49 = vld [vmem:[%s9488_s1 + $0x7c4] sm:$0xf0]  ;;  %v5476_v6 = vld [vmem:[%s9488_s1 + $0x1e4] sm:$0xf]  ;;  %v4124_v9 = vld [vmem:[%s9488_s1 + $0x1e8] sm:$0xf0] }
  0x64   :  { %1979 = vmatpush.bf16.msrb.mxu0 %v4707_v59  ;;  %1930 = vmatmul.bf16.vlgmr.msra.gmra.mxu1 %v6506_v19  ;;  %v4811_v59 = vor.u32 %v5649_v46, %v4810_v45  ;;  %v4875_v5 = vor.u32 %v5665_v49, %v4874_v47  ;;  %v5611_v45 = vld [vmem:[%s9488_s1 + $0x614] sm:$0xf0]  ;;  %v4722_v46 = vld [vmem:[%s9488_s1 + $0x690] sm:$0xf] }
  0x65   :  { %1998 = vmatpush.bf16.msrb.mxu1 %v4771_v2  ;;  %1949 = vmatmul.bf16.vlgmr.msra.gmra.mxu2 %v6508_v20  ;;  %v5615_v2 = vld [vmem:[%s9488_s1 + $0x634] sm:$0xf0] }
  0x66   :  { %2017 = vmatpush.bf16.msrb.mxu2 %v4835_v4  ;;  %1968 = vmatmul.bf16.vlgmr.msra.gmra.mxu3 %v6516_v23  ;;  %v4738_v4 = vld [vmem:[%s9488_s1 + $0x6b0] sm:$0xf]  ;;  %v5627_v49 = vld [vmem:[%s9488_s1 + $0x694] sm:$0xf0] }
  0x67   :  { %2036 = vmatpush.bf16.msrb.mxu3 %v4899_v10  ;;  %v5631_v10 = vld [vmem:[%s9488_s1 + $0x6b4] sm:$0xf0] }
  0x68   :  { %1980 = vmatpush.bf16.msrb.mxu0 %v4699_v24  ;;  %v4675_v24 = vor.u32 %v5615_v2, %v4674_v62  ;;  %v4650_v62 = vld [vmem:[%s9488_s1 + $0x600] sm:$0xf]  ;;  %v5609_v2 = vld [vmem:[%s9488_s1 + $0x604] sm:$0xf0] }
  0x69   :  { %1999 = vmatpush.bf16.msrb.mxu1 %v4763_v25  ;;  %v4739_v25 = vor.u32 %v5631_v10, %v4738_v4  ;;  %v4723_v4 = vor.u32 %v5627_v49, %v4722_v46  ;;  %v4778_v10 = vld [vmem:[%s9488_s1 + $0x700] sm:$0xf]  ;;  %v4651_v22 = vor.u32 %v5609_v2, %v4650_v62  ;;  %v5391_v46 = vld [vmem:[%s9489_s0 + $0x3c] sm:$0xf]  ;;  %v5460_v62 = vld [vmem:[%s9488_s1 + $0x164] sm:$0xf] }
  0x6a   :  { %2018 = vmatpush.bf16.msrb.mxu2 %v4827_v26  ;;  %v4803_v26 = vor.u32 %v5647_v13, %v4802_v12  ;;  %v5641_v13 = vld [vmem:[%s9488_s1 + $0x704] sm:$0xf0]  ;;  %v4060_v2 = vld [vmem:[%s9488_s1 + $0x168] sm:$0xf0] }
  0x6b   :  { %2037 = vmatpush.bf16.msrb.mxu3 %v4891_v30  ;;  %v6627_v30 = vor.u32 %v5412_v61, %v3850_v60  ;;  %v5659_v60 = vld [vmem:[%s9488_s1 + $0x794] sm:$0xf0]  ;;  %v4659_v61 = vor.u32 %v5611_v45, %v4658_v43  ;;  %v4779_v28 = vor.u32 %v5641_v13, %v4778_v10 }
  0x6c   :  { %1981 = vmatpush.bf16.msrb.mxu0 %v4691_v36  ;;  %v6640_v36 = vor.u32 %v5413_v18, %v3858_v14  ;;  %v4842_v14 = vld [vmem:[%s9488_s1 + $0x780] sm:$0xf]  ;;  %v3940_v18 = vld [vmem:[%s9488_s1 + $0x78] sm:$0xf0]  ;;  %v5399_v45 = vld [vmem:[%s9489_s0 + $0x74] sm:$0xf0] }
  0x6d   :  { %2000 = vmatpush.bf16.msrb.mxu1 %v4755_v37  ;;  %v4858_v37 = vld [vmem:[%s9488_s1 + $0x7a0] sm:$0xf]  ;;  %v4843_v32 = vor.u32 %v5657_v16, %v4842_v14  ;;  %v4063_v14 = vor.u32 %v5460_v62, %v4060_v2  ;;  %v5426_v16 = vld [vmem:[%s9488_s1 + $0x54] sm:$0xf] }
  0x6e   :  { %2019 = vmatpush.bf16.msrb.mxu2 %v4819_v38  ;;  %v5661_v38 = vld [vmem:[%s9488_s1 + $0x7a4] sm:$0xf0]  ;;  %v5406_v2 = vld [vmem:[%s9489_s0 + $0xb4] sm:$0xf] }
  0x6f   :  { %2038 = vmatpush.bf16.msrb.mxu3 %v4883_v42  ;;  %v4795_v42 = vor.u32 %v5645_v34, %v4794_v33  ;;  %v4859_v47 = vor.u32 %v5661_v38, %v4858_v37  ;;  %v3802_v33 = vld [vmem:[%s9489_s0 + $0x30] sm:$0xf]  ;;  %v3943_v37 = vor.u32 %v5430_v17, %v3940_v18  ;;  %v5390_v38 = vld [vmem:[%s9489_s0 + $0x34] sm:$0xf]  ;;  %v3924_v17 = vld [vmem:[%s9488_s1 + $0x58] sm:$0xf0] }
  0x70   :  { %1982 = vmatpush.bf16.msrb.mxu0 %v4683_v52  ;;  %v4786_v52 = vld [vmem:[%s9488_s1 + $0x710] sm:$0xf]  ;;  %v5442_v18 = vld [vmem:[%s9488_s1 + $0xd4] sm:$0xf] }
  0x71   :  { %2001 = vmatpush.bf16.msrb.mxu1 %v4747_v55  ;;  %v5643_v55 = vld [vmem:[%s9488_s1 + $0x714] sm:$0xf0]  ;;  %v5398_v34 = vld [vmem:[%s9489_s0 + $0x6c] sm:$0xf0] }
  0x72   :  { %2020 = vmatpush.bf16.msrb.mxu2 %v4811_v59  ;;  %v4850_v59 = vld [vmem:[%s9488_s1 + $0x790] sm:$0xf] }
  0x73   :  { %2039 = vmatpush.bf16.msrb.mxu3 %v4875_v5  ;;  %1916 = vmatmul.bf16.gmra.mxu0 %v6627_v30  ;;  %v4787_v5 = vor.u32 %v5643_v55, %v4786_v52  ;;  %v4851_v12 = vor.u32 %v5659_v60, %v4850_v59  ;;  %v5428_v52 = vld [vmem:[%s9488_s1 + $0x64] sm:$0xf]  ;;  %v3932_v55 = vld [vmem:[%s9488_s1 + $0x68] sm:$0xf0]  ;;  %v6759_v60 = vor.u32 %v5398_v34, %v3802_v33 }
  0x74   :  { %1983 = vmatpush.bf16.msrb.mxu0 %v4675_v24  ;;  %1935 = vmatmul.bf16.gmra.mxu1 %v6638_v35  ;;  %v4004_v24 = vld [vmem:[%s9488_s1 + $0xf8] sm:$0xf0]  ;;  %v5444_v59 = vld [vmem:[%s9488_s1 + $0xe4] sm:$0xf]  ;;  %v3916_v33 = vld [vmem:[%s9488_s1 + $0x48] sm:$0xf0] }
  0x75   :  { %2002 = vmatpush.bf16.msrb.mxu1 %v4739_v25  ;;  %1954 = vmatmul.bf16.gmra.mxu2 %v6640_v36  ;;  %v5462_v25 = vld [vmem:[%s9488_s1 + $0x174] sm:$0xf]  ;;  %v5440_v34 = vld [vmem:[%s9488_s1 + $0xc4] sm:$0xf] }
  0x76   :  { %2021 = vmatpush.bf16.msrb.mxu2 %v4803_v26  ;;  %1973 = vmatmul.bf16.gmra.mxu3 %v6648_v39  ;;  %v4068_v26 = vld [vmem:[%s9488_s1 + $0x178] sm:$0xf0] }
  0x77   :  { %2040 = vmatpush.bf16.msrb.mxu3 %v4867_v31  ;;  %v4132_v31 = vld [vmem:[%s9488_s1 + $0x1f8] sm:$0xf0]  ;;  %v4071_v43 = vor.u32 %v5462_v25, %v4068_v26  ;;  %v5474_v26 = vld [vmem:[%s9488_s1 + $0x1d4] sm:$0xf] }
  0x78   :  { %1984 = vmatpush.bf16.msrb.mxu0 %v4667_v40  ;;  %v3804_v40 = vld [vmem:[%s9489_s0 + $0x70] sm:$0xf0]  ;;  %v4135_v49 = vor.u32 %v5478_v29, %v4132_v31  ;;  %v4052_v25 = vld [vmem:[%s9488_s1 + $0x158] sm:$0xf0] }
  0x79   :  { %2003 = vmatpush.bf16.msrb.mxu1 %v4731_v41  ;;  %v3810_v41 = vld [vmem:[%s9489_s0 + $0x38] sm:$0xf] }
  0x7a   :  { %2022 = vmatpush.bf16.msrb.mxu2 %v4795_v42  ;;  %v4007_v42 = vor.u32 %v5446_v21, %v4004_v24  ;;  %v4127_v21 = vor.u32 %v5476_v6, %v4124_v9  ;;  %v5458_v24 = vld [vmem:[%s9488_s1 + $0x154] sm:$0xf]  ;;  %v3972_v9 = vld [vmem:[%s9488_s1 + $0xb8] sm:$0xf0] }
  0x7b   :  { %2041 = vmatpush.bf16.msrb.mxu3 %v4859_v47  ;;  %v3812_v47 = vld [vmem:[%s9489_s0 + $0x78] sm:$0xf0]  ;;  %v4055_v31 = vor.u32 %v5458_v24, %v4052_v25  ;;  %v3868_v6 = vld [vmem:[%s9489_s0 + $0xf0] sm:$0xf0] }
  0x7c   :  { %1985 = vmatpush.bf16.msrb.mxu0 %v4659_v61  ;;  %v3996_v61 = vld [vmem:[%s9488_s1 + $0xe8] sm:$0xf0]  ;;  %v6780_v10 = vor.u32 %v5391_v46, %v3812_v47 }
  0x7d   :  { %2004 = vmatpush.bf16.msrb.mxu1 %v4723_v4  ;;  %v6770_v4 = vor.u32 %v5390_v38, %v3804_v40  ;;  %v3999_v13 = vor.u32 %v5444_v59, %v3996_v61  ;;  %v3980_v38 = vld [vmem:[%s9488_s1 + $0xc8] sm:$0xf0]  ;;  %v5456_v40 = vld [vmem:[%s9488_s1 + $0x144] sm:$0xf]  ;;  %v3908_v59 = vld [vmem:[%s9488_s1 + $0x38] sm:$0xf0] }
  0x7e   :  { %2023 = vmatpush.bf16.msrb.mxu2 %v4787_v5  ;;  %v6772_v5 = vor.u32 %v5399_v45, %v3810_v41  ;;  %v4044_v41 = vld [vmem:[%s9488_s1 + $0x148] sm:$0xf0]  ;;  %v3983_v46 = vor.u32 %v5440_v34, %v3980_v38  ;;  %v5438_v61 = vld [vmem:[%s9488_s1 + $0xb4] sm:$0xf]  ;;  %v5452_v34 = vld [vmem:[%s9488_s1 + $0x124] sm:$0xf]  ;;  %v6902_v38 = vor.u32 %v5406_v2, %v3868_v6 }
  0x7f   :  { %2042 = vmatpush.bf16.msrb.mxu3 %v4851_v12  ;;  %v3935_v12 = vor.u32 %v5428_v52, %v3932_v55  ;;  %v4047_v47 = vor.u32 %v5456_v40, %v4044_v41  ;;  %v5414_v52 = vld [vmem:[%s9489_s0 + $0xec] sm:$0xf0]  ;;  %v5422_v55 = vld [vmem:[%s9488_s1 + $0x34] sm:$0xf]  ;;  %v3975_v25 = vor.u32 %v5438_v61, %v3972_v9  ;;  %v5468_v41 = vld [vmem:[%s9488_s1 + $0x1a4] sm:$0xf] }
  0x80   :  { %1986 = vmatpush.bf16.msrb.mxu0 %v4651_v22  ;;  %v3988_v22 = vld [vmem:[%s9488_s1 + $0xd8] sm:$0xf0]  ;;  %v3911_v24 = vor.u32 %v5422_v55, %v3908_v59  ;;  %v5434_v55 = vld [vmem:[%s9488_s1 + $0x94] sm:$0xf] }
  0x81   :  { %2005 = vmatpush.bf16.msrb.mxu1 %v4715_v27  ;;  %v4116_v27 = vld [vmem:[%s9488_s1 + $0x1d8] sm:$0xf0]  ;;  %v3991_v29 = vor.u32 %v5442_v18, %v3988_v22  ;;  %v5415_v18 = vld [vmem:[%s9489_s0 + $0xf4] sm:$0xf0]  ;;  %v5466_v6 = vld [vmem:[%s9488_s1 + $0x194] sm:$0xf] }
  0x82   :  { %2024 = vmatpush.bf16.msrb.mxu2 %v4779_v28  ;;  %v3927_v28 = vor.u32 %v5426_v16, %v3924_v17  ;;  %v5470_v16 = vld [vmem:[%s9488_s1 + $0x1b4] sm:$0xf]  ;;  %v4100_v17 = vld [vmem:[%s9488_s1 + $0x1b8] sm:$0xf0] }
  0x83   :  { %2043 = vmatpush.bf16.msrb.mxu3 %v4843_v32  ;;  %1987 = vmatmul.bf16.vlgmr.msrb.gmra.mxu0 %v6759_v60  ;;  %v5424_v32 = vld [vmem:[%s9488_s1 + $0x44] sm:$0xf]  ;;  %v3876_v22 = vld [vmem:[%s9489_s0 + $0xf8] sm:$0xf0] }
  0x84   :  { %2055 = vmatpush.bf16.msra.mxu0 %v3943_v37  ;;  %2006 = vmatmul.bf16.vlgmr.msrb.gmra.mxu1 %v6770_v4  ;;  %v4119_v37 = vor.u32 %v5474_v26, %v4116_v27  ;;  %v3919_v45 = vor.u32 %v5424_v32, %v3916_v33  ;;  %v5420_v27 = vld [vmem:[%s9488_s1 + $0x24] sm:$0xf]  ;;  %v4103_v32 = vor.u32 %v5470_v16, %v4100_v17  ;;  %v3964_v33 = vld [vmem:[%s9488_s1 + $0xa8] sm:$0xf0]  ;;  %v3956_v61 = vld [vmem:[%s9488_s1 + $0x98] sm:$0xf0] }
  0x85   :  { %2074 = vmatpush.bf16.msra.mxu1 %v4007_v42  ;;  %2025 = vmatmul.bf16.vlgmr.msrb.gmra.mxu2 %v6772_v5  ;;  %v5472_v42 = vld [vmem:[%s9488_s1 + $0x1c4] sm:$0xf]  ;;  %v4020_v2 = vld [vmem:[%s9488_s1 + $0x118] sm:$0xf0]  ;;  %v3959_v16 = vor.u32 %v5434_v55, %v3956_v61 }
  0x86   :  { %2093 = vmatpush.bf16.msra.mxu2 %v4071_v43  ;;  %2044 = vmatmul.bf16.vlgmr.msrb.gmra.mxu3 %v6780_v10  ;;  %v4108_v43 = vld [vmem:[%s9488_s1 + $0x1c8] sm:$0xf0]  ;;  %v4084_v9 = vld [vmem:[%s9488_s1 + $0x198] sm:$0xf0] }
  0x87   :  { %2112 = vmatpush.bf16.msra.mxu3 %v4135_v49  ;;  %v3866_v49 = vld [vmem:[%s9489_s0 + $0xb0] sm:$0xf]  ;;  %v4111_v62 = vor.u32 %v5472_v42, %v4108_v43  ;;  %v4092_v42 = vld [vmem:[%s9488_s1 + $0x1a8] sm:$0xf0] }
  0x88   :  { %2056 = vmatpush.bf16.msra.mxu0 %v3935_v12  ;;  %v5454_v12 = vld [vmem:[%s9488_s1 + $0x134] sm:$0xf]  ;;  %v4095_v59 = vor.u32 %v5468_v41, %v4092_v42  ;;  %v4324_v41 = vld [vmem:[%s9488_s1 + $0x378] sm:$0xf0] }
  0x89   :  { %2075 = vmatpush.bf16.msra.mxu1 %v3999_v13  ;;  %v4036_v13 = vld [vmem:[%s9488_s1 + $0x138] sm:$0xf0] }
  0x8a   :  { %2094 = vmatpush.bf16.msra.mxu2 %v4063_v14  ;;  %v3874_v14 = vld [vmem:[%s9489_s0 + $0xb8] sm:$0xf]  ;;  %v4039_v26 = vor.u32 %v5454_v12, %v4036_v13  ;;  %v5416_v13 = vld [vmem:[%s9488_s1 + $0x4] sm:$0xf] }
  0x8b   :  { %2113 = vmatpush.bf16.msra.mxu3 %v4127_v21  ;;  %v5407_v21 = vld [vmem:[%s9489_s0 + $0xbc] sm:$0xf]  ;;  %v6904_v40 = vor.u32 %v5415_v18, %v3874_v14  ;;  %v3884_v14 = vld [vmem:[%s9488_s1 + $0x8] sm:$0xf0]  ;;  %v5432_v18 = vld [vmem:[%s9488_s1 + $0x84] sm:$0xf] }
  0x8c   :  { %2057 = vmatpush.bf16.msra.mxu0 %v3927_v28  ;;  %v3900_v28 = vld [vmem:[%s9488_s1 + $0x28] sm:$0xf0]  ;;  %v6912_v43 = vor.u32 %v5407_v21, %v3876_v22  ;;  %v5448_v22 = vld [vmem:[%s9488_s1 + $0x104] sm:$0xf] }
  0x8d   :  { %2076 = vmatpush.bf16.msra.mxu1 %v3991_v29  ;;  %v5436_v29 = vld [vmem:[%s9488_s1 + $0xa4] sm:$0xf]  ;;  %v3948_v21 = vld [vmem:[%s9488_s1 + $0x88] sm:$0xf0] }
  0x8e   :  { %2095 = vmatpush.bf16.msra.mxu2 %v4055_v31  ;;  %v6891_v31 = vor.u32 %v5414_v52, %v3866_v49  ;;  %v5418_v49 = vld [vmem:[%s9488_s1 + $0x14] sm:$0xf]  ;;  %v3892_v52 = vld [vmem:[%s9488_s1 + $0x18] sm:$0xf0]  ;;  %v3951_v42 = vor.u32 %v5432_v18, %v3948_v21 }
  0x8f   :  { %2114 = vmatpush.bf16.msra.mxu3 %v4119_v37  ;;  %v4028_v37 = vld [vmem:[%s9488_s1 + $0x128] sm:$0xf0]  ;;  %v3895_v12 = vor.u32 %v5418_v49, %v3892_v52 }
  0x90   :  { %2058 = vmatpush.bf16.msra.mxu0 %v3919_v45  ;;  %v3903_v45 = vor.u32 %v5420_v27, %v3900_v28  ;;  %v4076_v27 = vld [vmem:[%s9488_s1 + $0x188] sm:$0xf0]  ;;  %v5494_v28 = vld [vmem:[%s9488_s1 + $0x274] sm:$0xf] }
  0x91   :  { %2077 = vmatpush.bf16.msra.mxu1 %v3983_v46  ;;  %v3967_v46 = vor.u32 %v5436_v29, %v3964_v33  ;;  %v4196_v29 = vld [vmem:[%s9488_s1 + $0x278] sm:$0xf0]  ;;  %v3887_v33 = vor.u32 %v5416_v13, %v3884_v14  ;;  %v4316_v13 = vld [vmem:[%s9488_s1 + $0x368] sm:$0xf0] }
  0x92   :  { %2096 = vmatpush.bf16.msra.mxu2 %v4047_v47  ;;  %v4031_v47 = vor.u32 %v5452_v34, %v4028_v37  ;;  %v4260_v34 = vld [vmem:[%s9488_s1 + $0x2f8] sm:$0xf0]  ;;  %v5526_v37 = vld [vmem:[%s9488_s1 + $0x374] sm:$0xf]  ;;  %v4199_v52 = vor.u32 %v5494_v28, %v4196_v29 }
  0x93   :  { %2115 = vmatpush.bf16.msra.mxu3 %v4111_v62  ;;  %1992 = vmatmul.bf16.gmra.mxu0 %v6891_v31  ;;  %v5450_v62 = vld [vmem:[%s9488_s1 + $0x114] sm:$0xf] }
  0x94   :  { %2059 = vmatpush.bf16.msra.mxu0 %v3911_v24  ;;  %2011 = vmatmul.bf16.gmra.mxu1 %v6902_v38  ;;  %v4023_v17 = vor.u32 %v5450_v62, %v4020_v2  ;;  %v4087_v24 = vor.u32 %v5466_v6, %v4084_v9  ;;  %v5492_v62 = vld [vmem:[%s9488_s1 + $0x264] sm:$0xf]  ;;  %v4188_v2 = vld [vmem:[%s9488_s1 + $0x268] sm:$0xf0]  ;;  %v5506_v28 = vld [vmem:[%s9488_s1 + $0x2d4] sm:$0xf] }
  0x95   :  { %2078 = vmatpush.bf16.msra.mxu1 %v3975_v25  ;;  %2030 = vmatmul.bf16.gmra.mxu2 %v6904_v40  ;;  %v4012_v25 = vld [vmem:[%s9488_s1 + $0x108] sm:$0xf0]  ;;  %v5508_v6 = vld [vmem:[%s9488_s1 + $0x2e4] sm:$0xf]  ;;  %v4191_v21 = vor.u32 %v5492_v62, %v4188_v2 }
  0x96   :  { %2097 = vmatpush.bf16.msra.mxu2 %v4039_v26  ;;  %2049 = vmatmul.bf16.gmra.mxu3 %v6912_v43  ;;  %v5464_v26 = vld [vmem:[%s9488_s1 + $0x184] sm:$0xf]  ;;  %v4252_v9 = vld [vmem:[%s9488_s1 + $0x2e8] sm:$0xf0] }
  0x97   :  { %2116 = vmatpush.bf16.msra.mxu3 %v4103_v32  ;;  %v5510_v32 = vld [vmem:[%s9488_s1 + $0x2f4] sm:$0xf]  ;;  %v4079_v49 = vor.u32 %v5464_v26, %v4076_v27  ;;  %v4180_v27 = vld [vmem:[%s9488_s1 + $0x258] sm:$0xf0]  ;;  %v5536_v2 = vld [vmem:[%s9488_s1 + $0x3c4] sm:$0xf] }
  0x98   :  { %2060 = vmatpush.bf16.msra.mxu0 %v3903_v45  ;;  %v4015_v45 = vor.u32 %v5448_v22, %v4012_v25  ;;  %v4263_v55 = vor.u32 %v5510_v32, %v4260_v34  ;;  %v5490_v26 = vld [vmem:[%s9488_s1 + $0x254] sm:$0xf]  ;;  %v4244_v32 = vld [vmem:[%s9488_s1 + $0x2d8] sm:$0xf0] }
  0x99   :  { %2079 = vmatpush.bf16.msra.mxu1 %v3967_v46  ;;  %v5542_v46 = vld [vmem:[%s9488_s1 + $0x3f4] sm:$0xf]  ;;  %v4308_v34 = vld [vmem:[%s9488_s1 + $0x358] sm:$0xf0] }
  0x9a   :  { %2098 = vmatpush.bf16.msra.mxu2 %v4031_v47  ;;  %v4388_v47 = vld [vmem:[%s9488_s1 + $0x3f8] sm:$0xf0] }
  0x9b   :  { %2117 = vmatpush.bf16.msra.mxu3 %v4095_v59  ;;  %v4327_v59 = vor.u32 %v5526_v37, %v4324_v41  ;;  %v4391_v61 = vor.u32 %v5542_v46, %v4388_v47  ;;  %v4372_v37 = vld [vmem:[%s9488_s1 + $0x3d8] sm:$0xf0]  ;;  %v4183_v41 = vor.u32 %v5490_v26, %v4180_v27  ;;  %v5504_v46 = vld [vmem:[%s9488_s1 + $0x2c4] sm:$0xf]  ;;  %v5518_v26 = vld [vmem:[%s9488_s1 + $0x334] sm:$0xf] }
  0x9c   :  { %2061 = vmatpush.bf16.msra.mxu0 %v3895_v12  ;;  %v5524_v12 = vld [vmem:[%s9488_s1 + $0x364] sm:$0xf]  ;;  %v4292_v27 = vld [vmem:[%s9488_s1 + $0x338] sm:$0xf0] }
  0x9d   :  { %2080 = vmatpush.bf16.msra.mxu1 %v3959_v16  ;;  %v5540_v16 = vld [vmem:[%s9488_s1 + $0x3e4] sm:$0xf]  ;;  %v4319_v25 = vor.u32 %v5524_v12, %v4316_v13 }
  0x9e   :  { %2099 = vmatpush.bf16.msra.mxu2 %v4023_v17  ;;  %v4380_v17 = vld [vmem:[%s9488_s1 + $0x3e8] sm:$0xf0] }
  0x9f   :  { %2118 = vmatpush.bf16.msra.mxu3 %v4087_v24  ;;  %v4255_v24 = vor.u32 %v5508_v6, %v4252_v9  ;;  %v4383_v29 = vor.u32 %v5540_v16, %v4380_v17  ;;  %v4364_v6 = vld [vmem:[%s9488_s1 + $0x3c8] sm:$0xf0] }
  0xa0   :  { %2062 = vmatpush.bf16.msra.mxu0 %v3887_v33  ;;  %v1760_v14 = vpop.f32.mrf.mxu0  ;;  %v5522_v33 = vld [vmem:[%s9488_s1 + $0x354] sm:$0xf] }
  0xa1   :  { %2081 = vmatpush.bf16.msra.mxu1 %v3951_v42  ;;  %v1779_v18 = vpop.f32.mrf.mxu1  ;;  %v5488_v42 = vld [vmem:[%s9488_s1 + $0x244] sm:$0xf] }
  0xa2   :  { %2100 = vmatpush.bf16.msra.mxu2 %v4015_v45  ;;  %v1780_v22 = vadd.f32 %v1779_v18, %v1760_v14  ;;  %v4172_v45 = vld [vmem:[%s9488_s1 + $0x248] sm:$0xf0]  ;;  %v5486_v18 = vld [vmem:[%s9488_s1 + $0x234] sm:$0xf] }
  0xa3   :  { %2119 = vmatpush.bf16.msra.mxu3 %v4079_v49  ;;  %2063 = vmatmul.bf16.vlgmr.msra.gmra.mxu0 %v5955_v48  ;;  %v5538_v48 = vld [vmem:[%s9488_s1 + $0x3d4] sm:$0xf]  ;;  %v4175_v12 = vor.u32 %v5488_v42, %v4172_v45  ;;  %v4220_v42 = vld [vmem:[%s9488_s1 + $0x2a8] sm:$0xf0]  ;;  %v5516_v45 = vld [vmem:[%s9488_s1 + $0x324] sm:$0xf] }
  0xa4   :  { %2131 = vmatpush.bf16.msrb.mxu0 %v4199_v52  ;;  %2082 = vmatmul.bf16.vlgmr.msra.gmra.mxu1 %v5966_v53  ;;  %v4247_v53 = vor.u32 %v5506_v28, %v4244_v32  ;;  %v4375_v49 = vor.u32 %v5538_v48, %v4372_v37  ;;  %v5520_v52 = vld [vmem:[%s9488_s1 + $0x344] sm:$0xf]  ;;  %v5534_v28 = vld [vmem:[%s9488_s1 + $0x3b4] sm:$0xf]  ;;  %v4295_v48 = vor.u32 %v5518_v26, %v4292_v27  ;;  %v4156_v37 = vld [vmem:[%s9488_s1 + $0x228] sm:$0xf0] }
  0xa5   :  { %2150 = vmatpush.bf16.msrb.mxu1 %v4263_v55  ;;  %2101 = vmatmul.bf16.vlgmr.msra.gmra.mxu2 %v5968_v54  ;;  %v4311_v54 = vor.u32 %v5522_v33, %v4308_v34  ;;  %v4300_v55 = vld [vmem:[%s9488_s1 + $0x348] sm:$0xf0]  ;;  %v5484_v33 = vld [vmem:[%s9488_s1 + $0x224] sm:$0xf] }
  0xa6   :  { %2169 = vmatpush.bf16.msrb.mxu2 %v4327_v59  ;;  %2120 = vmatmul.bf16.vlgmr.msra.gmra.mxu3 %v5976_v57  ;;  %v4236_v57 = vld [vmem:[%s9488_s1 + $0x2c8] sm:$0xf0]  ;;  %v4303_v17 = vor.u32 %v5520_v52, %v4300_v55  ;;  %v5532_v52 = vld [vmem:[%s9488_s1 + $0x3a4] sm:$0xf] }
  0xa7   :  { %2188 = vmatpush.bf16.msrb.mxu3 %v4391_v61  ;;  %v4239_v13 = vor.u32 %v5504_v46, %v4236_v57  ;;  %v4284_v46 = vld [vmem:[%s9488_s1 + $0x328] sm:$0xf0]  ;;  %v5480_v26 = vld [vmem:[%s9488_s1 + $0x204] sm:$0xf] }
  0xa8   :  { %2132 = vmatpush.bf16.msrb.mxu0 %v4191_v21  ;;  %v1798_v47 = vpop.f32.mrf.mxu2  ;;  %v1762_v62 = vpop.f32.mrf.mxu0  ;;  %v4164_v21 = vld [vmem:[%s9488_s1 + $0x238] sm:$0xf0]  ;;  %v4348_v55 = vld [vmem:[%s9488_s1 + $0x3a8] sm:$0xf0] }
  0xa9   :  { %2151 = vmatpush.bf16.msrb.mxu1 %v4255_v24  ;;  %v1799_v59 = vadd.f32 %v1798_v47, %v1780_v22  ;;  %v1817_v61 = vpop.f32.mrf.mxu3  ;;  %v1781_v9 = vpop.f32.mrf.mxu1  ;;  %v5502_v22 = vld [vmem:[%s9488_s1 + $0x2b4] sm:$0xf]  ;;  %v4367_v24 = vor.u32 %v5536_v2, %v4364_v6  ;;  %v4167_v32 = vor.u32 %v5486_v18, %v4164_v21  ;;  %v4212_v18 = vld [vmem:[%s9488_s1 + $0x298] sm:$0xf0] }
  0xaa   :  { %2170 = vmatpush.bf16.msrb.mxu2 %v4319_v25  ;;  %v1782_v16 = vadd.f32 %v1781_v9, %v1762_v62  ;;  %v4228_v25 = vld [vmem:[%s9488_s1 + $0x2b8] sm:$0xf0]  ;;  %v4287_v9 = vor.u32 %v5516_v45, %v4284_v46  ;;  %v5514_v21 = vld [vmem:[%s9488_s1 + $0x314] sm:$0xf] }
  0xab   :  { %2189 = vmatpush.bf16.msrb.mxu3 %v4383_v29  ;;  %v7066_v14 = vadd.f32 %v1817_v61, %v1799_v59  ;;  %v4356_v29 = vld [vmem:[%s9488_s1 + $0x3b8] sm:$0xf0]  ;;  %v4231_v34 = vor.u32 %v5502_v22, %v4228_v25  ;;  %v4159_v61 = vor.u32 %v5484_v33, %v4156_v37  ;;  %v4332_v37 = vld [vmem:[%s9488_s1 + $0x388] sm:$0xf0]  ;;  %v5574_v46 = vld [vmem:[%s9488_s1 + $0x4f4] sm:$0xf] }
  0xac   :  { %2133 = vmatpush.bf16.msrb.mxu0 %v4183_v41  ;;  %v5500_v41 = vld [vmem:[%s9488_s1 + $0x2a4] sm:$0xf]  ;;  %v4276_v22 = vld [vmem:[%s9488_s1 + $0x318] sm:$0xf0] }
  0xad   :  { %2152 = vmatpush.bf16.msrb.mxu1 %v4247_v53  ;;  %v4223_v62 = vor.u32 %v5500_v41, %v4220_v42  ;;  %v4279_v27 = vor.u32 %v5514_v21, %v4276_v22  ;;  %v4452_v45 = vld [vmem:[%s9488_s1 + $0x478] sm:$0xf0]  ;;  %v5556_v22 = vld [vmem:[%s9488_s1 + $0x464] sm:$0xf] }
  0xae   :  { %2171 = vmatpush.bf16.msrb.mxu2 %v4311_v54  ;;  %v4359_v54 = vor.u32 %v5534_v28, %v4356_v29  ;;  %v5496_v28 = vld [vmem:[%s9488_s1 + $0x284] sm:$0xf] }
  0xaf   :  { %2190 = vmatpush.bf16.msrb.mxu3 %v4375_v49  ;;  %v5512_v29 = vld [vmem:[%s9488_s1 + $0x304] sm:$0xf] }
  0xb0   :  { %2134 = vmatpush.bf16.msrb.mxu0 %v4175_v12  ;;  %v1800_v53 = vpop.f32.mrf.mxu2  ;;  %v1765_v49 = vpop.f32.mrf.mxu0  ;;  %v5482_v12 = vld [vmem:[%s9488_s1 + $0x214] sm:$0xf] }
  0xb1   :  { %2153 = vmatpush.bf16.msrb.mxu1 %v4239_v13  ;;  %v1801_v57 = vadd.f32 %v1800_v53, %v1782_v16  ;;  %v1819_v47 = vpop.f32.mrf.mxu3  ;;  %v1784_v59 = vpop.f32.mrf.mxu1  ;;  %v4148_v13 = vld [vmem:[%s9488_s1 + $0x218] sm:$0xf0]  ;;  %v5498_v16 = vld [vmem:[%s9488_s1 + $0x294] sm:$0xf] }
  0xb2   :  { %2172 = vmatpush.bf16.msrb.mxu2 %v4303_v17  ;;  %v1785_v6 = vadd.f32 %v1784_v59, %v1765_v49  ;;  %v4351_v17 = vor.u32 %v5532_v52, %v4348_v55  ;;  %v4151_v25 = vor.u32 %v5482_v12, %v4148_v13  ;;  %v4516_v52 = vld [vmem:[%s9488_s1 + $0x4f8] sm:$0xf0]  ;;  %v5590_v55 = vld [vmem:[%s9488_s1 + $0x574] sm:$0xf] }
  0xb3   :  { %2191 = vmatpush.bf16.msrb.mxu3 %v4367_v24  ;;  %v7116_v2 = vadd.f32 %v1819_v47, %v1801_v57  ;;  %2068 = vmatmul.bf16.gmra.mxu0 %v6087_v44  ;;  %v5530_v44 = vld [vmem:[%s9488_s1 + $0x394] sm:$0xf]  ;;  %v4340_v24 = vld [vmem:[%s9488_s1 + $0x398] sm:$0xf0] }
  0xb4   :  { %2135 = vmatpush.bf16.msrb.mxu0 %v4167_v32  ;;  %2087 = vmatmul.bf16.gmra.mxu1 %v6098_v50  ;;  %v4140_v50 = vld [vmem:[%s9488_s1 + $0x208] sm:$0xf0]  ;;  %v4343_v33 = vor.u32 %v5530_v44, %v4340_v24  ;;  %v4580_v59 = vld [vmem:[%s9488_s1 + $0x578] sm:$0xf0]  ;;  %v5572_v24 = vld [vmem:[%s9488_s1 + $0x4e4] sm:$0xf] }
  0xb5   :  { %2154 = vmatpush.bf16.msrb.mxu1 %v4231_v34  ;;  %2106 = vmatmul.bf16.gmra.mxu2 %v6100_v51  ;;  %v4215_v51 = vor.u32 %v5498_v16, %v4212_v18  ;;  %v4268_v34 = vld [vmem:[%s9488_s1 + $0x308] sm:$0xf0]  ;;  %v4143_v47 = vor.u32 %v5480_v26, %v4140_v50  ;;  %v4644_v12 = vld [vmem:[%s9488_s1 + $0x5f8] sm:$0xf0]  ;;  %v4583_v18 = vor.u32 %v5590_v55, %v4580_v59  ;;  %v5588_v50 = vld [vmem:[%s9488_s1 + $0x564] sm:$0xf] }
  0xb6   :  { %2173 = vmatpush.bf16.msrb.mxu2 %v4295_v48  ;;  %2125 = vmatmul.bf16.gmra.mxu3 %v6108_v56  ;;  %v4204_v56 = vld [vmem:[%s9488_s1 + $0x288] sm:$0xf0]  ;;  %v5528_v48 = vld [vmem:[%s9488_s1 + $0x384] sm:$0xf] }
  0xb7   :  { %2192 = vmatpush.bf16.msrb.mxu3 %v4359_v54  ;;  %v5558_v54 = vld [vmem:[%s9488_s1 + $0x474] sm:$0xf]  ;;  %v4207_v49 = vor.u32 %v5496_v28, %v4204_v56  ;;  %v4335_v13 = vor.u32 %v5528_v48, %v4332_v37  ;;  %v4444_v44 = vld [vmem:[%s9488_s1 + $0x468] sm:$0xf0] }
  0xb8   :  { %2136 = vmatpush.bf16.msrb.mxu0 %v4159_v61  ;;  %v1803_v32 = vpop.f32.mrf.mxu2  ;;  %v1767_v53 = vpop.f32.mrf.mxu0  ;;  %v4455_v16 = vor.u32 %v5558_v54, %v4452_v45  ;;  %v4508_v26 = vld [vmem:[%s9488_s1 + $0x4e8] sm:$0xf0]  ;;  %v4447_v48 = vor.u32 %v5556_v22, %v4444_v44  ;;  %v4436_v54 = vld [vmem:[%s9488_s1 + $0x458] sm:$0xf0]  ;;  %v5570_v45 = vld [vmem:[%s9488_s1 + $0x4d4] sm:$0xf] }
  0xb9   :  { %2155 = vmatpush.bf16.msrb.mxu1 %v4223_v62  ;;  %v1804_v41 = vadd.f32 %v1803_v32, %v1785_v6  ;;  %v1822_v42 = vpop.f32.mrf.mxu3  ;;  %v1786_v57 = vpop.f32.mrf.mxu1  ;;  %v4271_v6 = vor.u32 %v5512_v29, %v4268_v34  ;;  %v5604_v29 = vld [vmem:[%s9488_s1 + $0x5e4] sm:$0xf]  ;;  %v4636_v32 = vld [vmem:[%s9488_s1 + $0x5e8] sm:$0xf0] }
  0xba   :  { %2174 = vmatpush.bf16.msrb.mxu2 %v4287_v9  ;;  %v1787_v62 = vadd.f32 %v1786_v57, %v1767_v53  ;;  %v5606_v9 = vld [vmem:[%s9488_s1 + $0x5f4] sm:$0xf]  ;;  %v4500_v57 = vld [vmem:[%s9488_s1 + $0x4d8] sm:$0xf0]  ;;  %v5600_v22 = vld [vmem:[%s9488_s1 + $0x5c4] sm:$0xf] }
  0xbb   :  { %2193 = vmatpush.bf16.msrb.mxu3 %v4351_v17  ;;  %v7188_v61 = vadd.f32 %v1822_v42, %v1804_v41  ;;  %v4519_v17 = vor.u32 %v5574_v46, %v4516_v52  ;;  %v4647_v21 = vor.u32 %v5606_v9, %v4644_v12  ;;  %v4511_v41 = vor.u32 %v5572_v24, %v4508_v26  ;;  %v5554_v53 = vld [vmem:[%s9488_s1 + $0x454] sm:$0xf]  ;;  %v4628_v52 = vld [vmem:[%s9488_s1 + $0x5d8] sm:$0xf0]  ;;  %v4492_v12 = vld [vmem:[%s9488_s1 + $0x4c8] sm:$0xf0] }
  0xbc   :  { %2137 = vmatpush.bf16.msrb.mxu0 %v4151_v25  ;;  %v4639_v46 = vor.u32 %v5604_v29, %v4636_v32  ;;  %v4439_v55 = vor.u32 %v5554_v53, %v4436_v54  ;;  %v4503_v59 = vor.u32 %v5570_v45, %v4500_v57  ;;  %v4620_v44 = vld [vmem:[%s9488_s1 + $0x5c8] sm:$0xf0]  ;;  %v4484_v32 = vld [vmem:[%s9488_s1 + $0x4b8] sm:$0xf0]  ;;  %v5548_v45 = vld [vmem:[%s9488_s1 + $0x424] sm:$0xf] }
  0xbd   :  { %2156 = vmatpush.bf16.msrb.mxu1 %v4215_v51  ;;  %v4572_v51 = vld [vmem:[%s9488_s1 + $0x568] sm:$0xf0]  ;;  %v4623_v29 = vor.u32 %v5600_v22, %v4620_v44  ;;  %v5578_v22 = vld [vmem:[%s9488_s1 + $0x514] sm:$0xf]  ;;  %v4532_v44 = vld [vmem:[%s9488_s1 + $0x518] sm:$0xf0] }
  0xbe   :  { %2175 = vmatpush.bf16.msrb.mxu2 %v4279_v27  ;;  %v4575_v42 = vor.u32 %v5588_v50, %v4572_v51 }
  0xbf   :  { %2194 = vmatpush.bf16.msrb.mxu3 %v4343_v33 }
  0xc0   :  { %2138 = vmatpush.bf16.msrb.mxu0 %v4143_v47  ;;  %v1805_v25 = vpop.f32.mrf.mxu2  ;;  %v1836_v56 = vpop.f32.mrf.mxu0  ;;  %v5586_v47 = vld [vmem:[%s9488_s1 + $0x554] sm:$0xf] }
  0xc1   :  { %2157 = vmatpush.bf16.msrb.mxu1 %v4207_v49  ;;  %v1806_v27 = vadd.f32 %v1805_v25, %v1787_v62  ;;  %v1824_v28 = vpop.f32.mrf.mxu3  ;;  %v1837_v33 = vadd.f32 %v1836_v56, %v7066_v14  ;;  %v1855_v34 = vpop.f32.mrf.mxu1  ;;  %v4564_v49 = vld [vmem:[%s9488_s1 + $0x558] sm:$0xf0]  ;;  %v5566_v56 = vld [vmem:[%s9488_s1 + $0x4b4] sm:$0xf] }
  0xc2   :  { %2176 = vmatpush.bf16.msrb.mxu2 %v4271_v6  ;;  %v4567_v62 = vor.u32 %v5586_v47, %v4564_v49  ;;  %v5568_v6 = vld [vmem:[%s9488_s1 + $0x4c4] sm:$0xf]  ;;  %v4487_v53 = vor.u32 %v5566_v56, %v4484_v32  ;;  %v4476_v49 = vld [vmem:[%s9488_s1 + $0x4a8] sm:$0xf0] }
  0xc3   :  { %2195 = vmatpush.bf16.msrb.mxu3 %v4335_v13  ;;  %v7221_v37 = vadd.f32 %v1824_v28, %v1806_v27  ;;  %v1856_v14 = vadd.f32 %v1855_v34, %v1837_v33  ;;  %2139 = vmatmul.bf16.vlgmr.msrb.gmra.mxu0 %v6231_v58  ;;  %v5602_v58 = vld [vmem:[%s9488_s1 + $0x5d4] sm:$0xf]  ;;  %v5584_v13 = vld [vmem:[%s9488_s1 + $0x544] sm:$0xf]  ;;  %v4495_v50 = vor.u32 %v5568_v6, %v4492_v12  ;;  %v4420_v28 = vld [vmem:[%s9488_s1 + $0x438] sm:$0xf0] }
  0xc4   :  { %2207 = vmatpush.bf16.msra.mxu0 %v4455_v16  ;;  %2158 = vmatmul.bf16.vlgmr.msrb.gmra.mxu1 %v6242_v63  ;;  %v5552_v63 = vld [vmem:[%s9488_s1 + $0x444] sm:$0xf]  ;;  %v4556_v16 = vld [vmem:[%s9488_s1 + $0x548] sm:$0xf0]  ;;  %v5550_v27 = vld [vmem:[%s9488_s1 + $0x434] sm:$0xf] }
  0xc5   :  { %2226 = vmatpush.bf16.msra.mxu1 %v4519_v17  ;;  %2177 = vmatmul.bf16.vlgmr.msrb.gmra.mxu2 %v6244_v0  ;;  %v4428_v0 = vld [vmem:[%s9488_s1 + $0x448] sm:$0xf0]  ;;  %v4559_v51 = vor.u32 %v5584_v13, %v4556_v16  ;;  %v5582_v33 = vld [vmem:[%s9488_s1 + $0x534] sm:$0xf]  ;;  %v4548_v34 = vld [vmem:[%s9488_s1 + $0x538] sm:$0xf0] }
  0xc6   :  { %2245 = vmatpush.bf16.msra.mxu2 %v4583_v18  ;;  %2196 = vmatmul.bf16.vlgmr.msrb.gmra.mxu3 %v6252_v3  ;;  %v4631_v3 = vor.u32 %v5602_v58, %v4628_v52  ;;  %v4431_v25 = vor.u32 %v5552_v63, %v4428_v0  ;;  %v4551_v54 = vor.u32 %v5582_v33, %v4548_v34  ;;  %v5580_v58 = vld [vmem:[%s9488_s1 + $0x524] sm:$0xf]  ;;  %v4540_v52 = vld [vmem:[%s9488_s1 + $0x528] sm:$0xf0]  ;;  %v5546_v12 = vld [vmem:[%s9488_s1 + $0x414] sm:$0xf] }
  0xc7   :  { %2264 = vmatpush.bf16.msra.mxu3 %v4647_v21  ;;  %v4604_v63 = vld [vmem:[%s9488_s1 + $0x5a8] sm:$0xf0]  ;;  %v4404_v13 = vld [vmem:[%s9488_s1 + $0x418] sm:$0xf0]  ;;  %v5562_v16 = vld [vmem:[%s9488_s1 + $0x494] sm:$0xf] }
  0xc8   :  { %2208 = vmatpush.bf16.msra.mxu0 %v4447_v48  ;;  %v1874_v9 = vpop.f32.mrf.mxu2  ;;  %v7269_v21 = vpop.f32.mrf.mxu0  ;;  %v5598_v48 = vld [vmem:[%s9488_s1 + $0x5b4] sm:$0xf]  ;;  %v5576_v56 = vld [vmem:[%s9488_s1 + $0x504] sm:$0xf]  ;;  %v4524_v33 = vld [vmem:[%s9488_s1 + $0x508] sm:$0xf0] }
  0xc9   :  { %2227 = vmatpush.bf16.msra.mxu1 %v4511_v41  ;;  %v1875_v17 = vadd.f32 %v1874_v9, %v1856_v14  ;;  %v1893_v18 = vpop.f32.mrf.mxu3  ;;  %v7277_v24 = vpop.f32.mrf.mxu1  ;;  %v4612_v41 = vld [vmem:[%s9488_s1 + $0x5b8] sm:$0xf0]  ;;  %v4412_v14 = vld [vmem:[%s9488_s1 + $0x428] sm:$0xf0]  ;;  %v5592_v34 = vld [vmem:[%s9488_s1 + $0x584] sm:$0xf] }
  0xca   :  { %2246 = vmatpush.bf16.msra.mxu2 %v4575_v42  ;;  %v4423_v42 = vor.u32 %v5550_v27, %v4420_v28  ;;  %v4615_v47 = vor.u32 %v5598_v48, %v4612_v41  ;;  %v4415_v6 = vor.u32 %v5548_v45, %v4412_v14  ;;  %v4535_v27 = vor.u32 %v5578_v22, %v4532_v44  ;;  %v5560_v28 = vld [vmem:[%s9488_s1 + $0x484] sm:$0xf]  ;;  %v4588_v48 = vld [vmem:[%s9488_s1 + $0x588] sm:$0xf0]  ;;  %v5638_v45 = vld [vmem:[%s9488_s1 + $0x6f4] sm:$0xf] }
  0xcb   :  { %2265 = vmatpush.bf16.msra.mxu3 %v4639_v46  ;;  %v7279_v26 = vadd.f32 %v1893_v18, %v1875_v17  ;;  %v5564_v46 = vld [vmem:[%s9488_s1 + $0x4a4] sm:$0xf]  ;;  %v4468_v18 = vld [vmem:[%s9488_s1 + $0x498] sm:$0xf0] }
  0xcc   :  { %2209 = vmatpush.bf16.msra.mxu0 %v4439_v55  ;;  %v4479_v9 = vor.u32 %v5564_v46, %v4476_v49  ;;  %v5654_v49 = vld [vmem:[%s9488_s1 + $0x774] sm:$0xf]  ;;  %v5636_v22 = vld [vmem:[%s9488_s1 + $0x6e4] sm:$0xf] }
  0xcd   :  { %2228 = vmatpush.bf16.msra.mxu1 %v4503_v59 }
  0xce   :  { %2247 = vmatpush.bf16.msra.mxu2 %v4567_v62  ;;  %v5596_v62 = vld [vmem:[%s9488_s1 + $0x5a4] sm:$0xf] }
  0xcf   :  { %2266 = vmatpush.bf16.msra.mxu3 %v4631_v3  ;;  %v4543_v3 = vor.u32 %v5580_v58, %v4540_v52  ;;  %v4607_v17 = vor.u32 %v5596_v62, %v4604_v63  ;;  %v4836_v58 = vld [vmem:[%s9488_s1 + $0x778] sm:$0xf0]  ;;  %v4527_v62 = vor.u32 %v5576_v56, %v4524_v33  ;;  %v5670_v63 = vld [vmem:[%s9488_s1 + $0x7f4] sm:$0xf] }
  0xd0   :  { %2210 = vmatpush.bf16.msra.mxu0 %v4431_v25  ;;  %v7314_v57 = vpop.f32.mrf.mxu2  ;;  %v7327_v59 = vpop.f32.mrf.mxu0  ;;  %v4596_v25 = vld [vmem:[%s9488_s1 + $0x598] sm:$0xf0]  ;;  %v5618_v33 = vld [vmem:[%s9488_s1 + $0x654] sm:$0xf] }
  0xd1   :  { %2229 = vmatpush.bf16.msra.mxu1 %v4495_v50  ;;  %v7325_v55 = vpop.f32.mrf.mxu3  ;;  %v7335_v0 = vpop.f32.mrf.mxu1  ;;  %v4407_v50 = vor.u32 %v5546_v12, %v4404_v13  ;;  %v4839_v13 = vor.u32 %v5654_v49, %v4836_v58 }
  0xd2   :  { %2248 = vmatpush.bf16.msra.mxu2 %v4559_v51  ;;  %v5544_v51 = vld [vmem:[%s9488_s1 + $0x404] sm:$0xf] }
  0xd3   :  { %2267 = vmatpush.bf16.msra.mxu3 %v4623_v29  ;;  %2144 = vmatmul.bf16.gmra.mxu0 %v6363_v1  ;;  %v5594_v1 = vld [vmem:[%s9488_s1 + $0x594] sm:$0xf] }
  0xd4   :  { %2211 = vmatpush.bf16.msra.mxu0 %v4423_v42  ;;  %2163 = vmatmul.bf16.gmra.mxu1 %v6374_v7  ;;  %v4396_v7 = vld [vmem:[%s9488_s1 + $0x408] sm:$0xf0]  ;;  %v4599_v32 = vor.u32 %v5594_v1, %v4596_v25  ;;  %v5652_v25 = vld [vmem:[%s9488_s1 + $0x764] sm:$0xf] }
  0xd5   :  { %2230 = vmatpush.bf16.msra.mxu1 %v4487_v53  ;;  %2182 = vmatmul.bf16.gmra.mxu2 %v6376_v8  ;;  %v4471_v8 = vor.u32 %v5562_v16, %v4468_v18  ;;  %v5622_v53 = vld [vmem:[%s9488_s1 + $0x674] sm:$0xf]  ;;  %v4399_v46 = vor.u32 %v5544_v51, %v4396_v7  ;;  %v4700_v18 = vld [vmem:[%s9488_s1 + $0x668] sm:$0xf0] }
  0xd6   :  { %2249 = vmatpush.bf16.msra.mxu2 %v4551_v54  ;;  %2201 = vmatmul.bf16.gmra.mxu3 %v6384_v11  ;;  %v4460_v11 = vld [vmem:[%s9488_s1 + $0x488] sm:$0xf0]  ;;  %v4708_v54 = vld [vmem:[%s9488_s1 + $0x678] sm:$0xf0] }
  0xd7   :  { %2268 = vmatpush.bf16.msra.mxu3 %v4615_v47  ;;  %v4772_v47 = vld [vmem:[%s9488_s1 + $0x6f8] sm:$0xf0]  ;;  %v4463_v52 = vor.u32 %v5560_v28, %v4460_v11  ;;  %v4764_v1 = vld [vmem:[%s9488_s1 + $0x6e8] sm:$0xf0] }
  0xd8   :  { %2212 = vmatpush.bf16.msra.mxu0 %v4415_v6  ;;  %v7380_v29 = vpop.f32.mrf.mxu2  ;;  %v7393_v42 = vpop.f32.mrf.mxu0  ;;  %v4900_v6 = vld [vmem:[%s9488_s1 + $0x7f8] sm:$0xf0]  ;;  %v4775_v12 = vor.u32 %v5638_v45, %v4772_v47  ;;  %v4767_v56 = vor.u32 %v5636_v22, %v4764_v1  ;;  %v5650_v45 = vld [vmem:[%s9488_s1 + $0x754] sm:$0xf] }
  0xd9   :  { %2231 = vmatpush.bf16.msra.mxu1 %v4479_v9  ;;  %v7391_v41 = vpop.f32.mrf.mxu3  ;;  %v7404_v14 = vpop.f32.mrf.mxu1  ;;  %v4591_v9 = vor.u32 %v5592_v34, %v4588_v48  ;;  %v4903_v16 = vor.u32 %v5670_v63, %v4900_v6  ;;  %v4692_v34 = vld [vmem:[%s9488_s1 + $0x658] sm:$0xf0]  ;;  %v5634_v48 = vld [vmem:[%s9488_s1 + $0x6d4] sm:$0xf]  ;;  %v4748_v6 = vld [vmem:[%s9488_s1 + $0x6c8] sm:$0xf0] }
  0xda   :  { %2250 = vmatpush.bf16.msra.mxu2 %v4543_v3  ;;  %v4711_v3 = vor.u32 %v5622_v53, %v4708_v54  ;;  %v4756_v54 = vld [vmem:[%s9488_s1 + $0x6d8] sm:$0xf0]  ;;  %v4695_v49 = vor.u32 %v5618_v33, %v4692_v34  ;;  %v5662_v34 = vld [vmem:[%s9488_s1 + $0x7b4] sm:$0xf] }
  0xdb   :  { %2269 = vmatpush.bf16.msra.mxu3 %v4607_v17  ;;  %v5620_v17 = vld [vmem:[%s9488_s1 + $0x664] sm:$0xf]  ;;  %v4884_v47 = vld [vmem:[%s9488_s1 + $0x7d8] sm:$0xf0]  ;;  %v4759_v58 = vor.u32 %v5634_v48, %v4756_v54 }
  0xdc   :  { %2213 = vmatpush.bf16.msra.mxu0 %v4407_v50  ;;  %v4828_v50 = vld [vmem:[%s9488_s1 + $0x768] sm:$0xf0]  ;;  %v4703_v11 = vor.u32 %v5620_v17, %v4700_v18  ;;  %v4804_v33 = vld [vmem:[%s9488_s1 + $0x738] sm:$0xf0] }
  0xdd   :  { %2232 = vmatpush.bf16.msra.mxu1 %v4471_v8  ;;  %v5668_v8 = vld [vmem:[%s9488_s1 + $0x7e4] sm:$0xf]  ;;  %v4876_v17 = vld [vmem:[%s9488_s1 + $0x7c8] sm:$0xf0]  ;;  %v4868_v48 = vld [vmem:[%s9488_s1 + $0x7b8] sm:$0xf0] }
  0xde   :  { %2251 = vmatpush.bf16.msra.mxu2 %v4535_v27  ;;  %v4892_v27 = vld [vmem:[%s9488_s1 + $0x7e8] sm:$0xf0] }
  0xdf   :  { %2270 = vmatpush.bf16.msra.mxu3 %v4599_v32  ;;  %v4831_v32 = vor.u32 %v5652_v25, %v4828_v50  ;;  %v4895_v53 = vor.u32 %v5668_v8, %v4892_v27  ;;  %v5614_v50 = vld [vmem:[%s9488_s1 + $0x634] sm:$0xf]  ;;  %v4676_v8 = vld [vmem:[%s9488_s1 + $0x638] sm:$0xf0] }
  0xe0   :  { %2214 = vmatpush.bf16.msra.mxu0 %v4399_v46  ;;  %v7430_v44 = vpop.f32.mrf.mxu2  ;;  %v7443_v7 = vpop.f32.mrf.mxu0  ;;  %v4820_v46 = vld [vmem:[%s9488_s1 + $0x758] sm:$0xf0]  ;;  %v5630_v27 = vld [vmem:[%s9488_s1 + $0x6b4] sm:$0xf] }
  0xe1   :  { %2233 = vmatpush.bf16.msra.mxu1 %v4463_v52  ;;  %v7441_v51 = vpop.f32.mrf.mxu3  ;;  %v7451_v28 = vpop.f32.mrf.mxu1  ;;  %v4823_v52 = vor.u32 %v5650_v45, %v4820_v46  ;;  %v5612_v46 = vld [vmem:[%s9488_s1 + $0x624] sm:$0xf] }
  0xe2   :  { %2252 = vmatpush.bf16.msra.mxu2 %v4527_v62  ;;  %v5632_v62 = vld [vmem:[%s9488_s1 + $0x6c4] sm:$0xf] }
  0xe3   :  { %2271 = vmatpush.bf16.msra.mxu3 %v4591_v9  ;;  %2215 = vmatmul.bf16.vlgmr.msra.gmra.mxu0 %v6495_v15  ;;  %v5666_v15 = vld [vmem:[%s9488_s1 + $0x7d4] sm:$0xf]  ;;  %v5648_v9 = vld [vmem:[%s9488_s1 + $0x744] sm:$0xf]  ;;  %v4751_v1 = vor.u32 %v5632_v62, %v4748_v6 }
  0xe4   :  { %2283 = vmatpush.bf16.msrb.mxu0 %v4711_v3  ;;  %2234 = vmatmul.bf16.vlgmr.msra.gmra.mxu1 %v6506_v19  ;;  %v5616_v19 = vld [vmem:[%s9488_s1 + $0x644] sm:$0xf]  ;;  %v4812_v3 = vld [vmem:[%s9488_s1 + $0x748] sm:$0xf0] }
  0xe5   :  { %2302 = vmatpush.bf16.msrb.mxu1 %v4775_v12  ;;  %2253 = vmatmul.bf16.vlgmr.msra.gmra.mxu2 %v6508_v20  ;;  %v4684_v20 = vld [vmem:[%s9488_s1 + $0x648] sm:$0xf0]  ;;  %v4815_v25 = vor.u32 %v5648_v9, %v4812_v3  ;;  %v5660_v6 = vld [vmem:[%s9488_s1 + $0x7a4] sm:$0xf] }
  0xe6   :  { %2321 = vmatpush.bf16.msrb.mxu2 %v4839_v13  ;;  %2272 = vmatmul.bf16.vlgmr.msra.gmra.mxu3 %v6516_v23  ;;  %v4887_v23 = vor.u32 %v5666_v15, %v4884_v47  ;;  %v4687_v22 = vor.u32 %v5616_v19, %v4684_v20  ;;  %v4668_v15 = vld [vmem:[%s9488_s1 + $0x628] sm:$0xf0]  ;;  %v5628_v47 = vld [vmem:[%s9488_s1 + $0x6a4] sm:$0xf] }
  0xe7   :  { %2340 = vmatpush.bf16.msrb.mxu3 %v4903_v16  ;;  %v5664_v16 = vld [vmem:[%s9488_s1 + $0x7c4] sm:$0xf]  ;;  %v4796_v20 = vld [vmem:[%s9488_s1 + $0x728] sm:$0xf0] }
  0xe8   :  { %2284 = vmatpush.bf16.msrb.mxu0 %v4703_v11  ;;  %v7490_v63 = vpop.f32.mrf.mxu2  ;;  %v7503_v13 = vpop.f32.mrf.mxu0  ;;  %v4879_v11 = vor.u32 %v5664_v16, %v4876_v17  ;;  %v5644_v19 = vld [vmem:[%s9488_s1 + $0x724] sm:$0xf]  ;;  %v4860_v9 = vld [vmem:[%s9488_s1 + $0x7a8] sm:$0xf0]  ;;  %v4671_v16 = vor.u32 %v5612_v46, %v4668_v15  ;;  %v1839_v17 = vadd.f32 %v7269_v21, %v7116_v2  ;;  %v4724_v21 = vld [vmem:[%s9488_s1 + $0x698] sm:$0xf0] }
  0xe9   :  { %2303 = vmatpush.bf16.msrb.mxu1 %v4767_v56  ;;  %v7501_v12 = vpop.f32.mrf.mxu3  ;;  %v7511_v18 = vpop.f32.mrf.mxu1  ;;  %v4740_v56 = vld [vmem:[%s9488_s1 + $0x6b8] sm:$0xf0]  ;;  %v4863_v2 = vor.u32 %v5660_v6, %v4860_v9  ;;  %v4780_v46 = vld [vmem:[%s9488_s1 + $0x708] sm:$0xf0]  ;;  %v1842_v9 = vadd.f32 %v7327_v59, %v7188_v61 }
  0xea   :  { %2322 = vmatpush.bf16.msrb.mxu2 %v4831_v32  ;;  %v5646_v32 = vld [vmem:[%s9488_s1 + $0x734] sm:$0xf]  ;;  %v4743_v54 = vor.u32 %v5630_v27, %v4740_v56  ;;  %v4852_v56 = vld [vmem:[%s9488_s1 + $0x798] sm:$0xf0] }
  0xeb   :  { %2341 = vmatpush.bf16.msrb.mxu3 %v4895_v53  ;;  %v4679_v53 = vor.u32 %v5614_v50, %v4676_v8  ;;  %v4807_v45 = vor.u32 %v5646_v32, %v4804_v33  ;;  %v4660_v50 = vld [vmem:[%s9488_s1 + $0x618] sm:$0xf0]  ;;  %v5626_v8 = vld [vmem:[%s9488_s1 + $0x694] sm:$0xf]  ;;  %v1858_v33 = vadd.f32 %v7277_v24, %v1839_v17  ;;  %v4716_v24 = vld [vmem:[%s9488_s1 + $0x688] sm:$0xf0] }
  0xec   :  { %2285 = vmatpush.bf16.msrb.mxu0 %v4695_v49  ;;  %v5642_v27 = vld [vmem:[%s9488_s1 + $0x714] sm:$0xf] }
  0xed   :  { %2304 = vmatpush.bf16.msrb.mxu1 %v4759_v58  ;;  %v4871_v58 = vor.u32 %v5662_v34, %v4868_v48  ;;  %v4727_v34 = vor.u32 %v5626_v8, %v4724_v21  ;;  %v4652_v48 = vld [vmem:[%s9488_s1 + $0x608] sm:$0xf0]  ;;  %v1877_v15 = vadd.f32 %v7314_v57, %v1858_v33 }
  0xee   :  { %2323 = vmatpush.bf16.msrb.mxu2 %v4823_v52  ;;  %v4732_v52 = vld [vmem:[%s9488_s1 + $0x6a8] sm:$0xf0] }
  0xef   :  { %2342 = vmatpush.bf16.msrb.mxu3 %v4887_v23  ;;  %v2517_v33 = vld [vmem:[%s9490_s4 + $0x68] sm:$0xff] }
  0xf0   :  { %2286 = vmatpush.bf16.msrb.mxu0 %v4687_v22  ;;  %v7546_v49 = vpop.f32.mrf.mxu2  ;;  %v7559_v23 = vpop.f32.mrf.mxu0  ;;  %v4735_v22 = vor.u32 %v5628_v47, %v4732_v52  ;;  %v5656_v52 = vld [vmem:[%s9488_s1 + $0x784] sm:$0xf] }
  0xf1   :  { %2305 = vmatpush.bf16.msrb.mxu1 %v4751_v1  ;;  %v7557_v62 = vpop.f32.mrf.mxu3  ;;  %v7567_v3 = vpop.f32.mrf.mxu1  ;;  %v4799_v1 = vor.u32 %v5644_v19, %v4796_v20  ;;  %v4844_v19 = vld [vmem:[%s9488_s1 + $0x788] sm:$0xf0] }
  0xf2   :  { %2324 = vmatpush.bf16.msrb.mxu2 %v4815_v25  ;;  %v5610_v25 = vld [vmem:[%s9488_s1 + $0x614] sm:$0xf]  ;;  %v4847_v17 = vor.u32 %v5656_v52, %v4844_v19 }
  0xf3   :  { %2343 = vmatpush.bf16.msrb.mxu3 %v4879_v11  ;;  %2220 = vmatmul.bf16.gmra.mxu0 %v6627_v30  ;;  %v4788_v11 = vld [vmem:[%s9488_s1 + $0x718] sm:$0xf0]  ;;  %v5658_v30 = vld [vmem:[%s9488_s1 + $0x794] sm:$0xf]  ;;  %v4663_v32 = vor.u32 %v5610_v25, %v4660_v50  ;;  %v1861_v25 = vadd.f32 %v7335_v0, %v1842_v9  ;;  %v5682_v9 = vmov 32.0  }
  0xf4   :  { %2287 = vmatpush.bf16.msrb.mxu0 %v4679_v53  ;;  %2239 = vmatmul.bf16.gmra.mxu1 %v6638_v35  ;;  %v4791_v35 = vor.u32 %v5642_v27, %v4788_v11  ;;  %5674 = vrcp.f32 %v5682_v9 }
  0xf5   :  { %2306 = vmatpush.bf16.msrb.mxu1 %v4743_v54  ;;  %2258 = vmatmul.bf16.gmra.mxu2 %v6640_v36  ;;  %v5608_v36 = vld [vmem:[%s9488_s1 + $0x604] sm:$0xf]  ;;  %v4855_v54 = vor.u32 %v5658_v30, %v4852_v56  ;;  %v1880_v61 = vadd.f32 %v7380_v29, %v1861_v25  ;;  %v2518_v30 = vld [vmem:[%s9490_s4 + $0x70] sm:$0xff]  ;;  %v4913_v25 = vld [vmem:[%s9490_s4 + $0x148] sm:$0xff] }
  0xf6   :  { %2325 = vmatpush.bf16.msrb.mxu2 %v4807_v45  ;;  %2277 = vmatmul.bf16.gmra.mxu3 %v6648_v39  ;;  %v5624_v39 = vld [vmem:[%s9488_s1 + $0x684] sm:$0xf]  ;;  %v4655_v6 = vor.u32 %v5608_v36, %v4652_v48 }
  0xf7   :  { %2344 = vmatpush.bf16.msrb.mxu3 %v4871_v58  ;;  %v5640_v45 = vld [vmem:[%s9488_s1 + $0x704] sm:$0xf]  ;;  %v4719_v57 = vor.u32 %v5624_v39, %v4716_v24 }
  0xf8   :  { %2288 = vmatpush.bf16.msrb.mxu0 %v4671_v16  ;;  %v1955_v53 = vpop.f32.mrf.mxu2  ;;  %v1919_v58 = vpop.f32.mrf.mxu0  ;;  %v4783_v16 = vor.u32 %v5640_v45, %v4780_v46  ;;  %v2516_v24 = vld [vmem:[%s9490_s4 + $0x60] sm:$0xff] }
  0xf9   :  { %2307 = vmatpush.bf16.msrb.mxu1 %v4735_v22  ;;  %v7619_v47 = vpop.f32.mrf.mxu3  ;;  %v7627_v20 = vpop.f32.mrf.mxu1  ;;  %v1896_v22 = vadd.f32 %v7325_v55, %v1877_v15  ;;  %v1844_v55 = vadd.f32 %v7393_v42, %v7221_v37 }
  0xfa   :  { %2326 = vmatpush.bf16.msrb.mxu2 %v4799_v1  ;;  %v1913_v1 = vadd.f32 %v7443_v7, %v7279_v26 }
  0xfb   :  { %2345 = vmatpush.bf16.msrb.mxu3 %v4863_v2  ;;  %v1915_v50 = vadd.f32 %v7503_v13, %v1896_v22  ;;  %v1899_v13 = vadd.f32 %v7391_v41, %v1880_v61  ;;  %v1863_v29 = vadd.f32 %v7404_v14, %v1844_v55 }
  0xfc   :  { %2289 = vmatpush.bf16.msrb.mxu0 %v4663_v32  ;;  %v1932_v59 = vadd.f32 %v7451_v28, %v1913_v1  ;;  %v4918_v32 = vld [vmem:[%s9490_s4 + $0x170] sm:$0xff] }
  0xfd   :  { %2308 = vmatpush.bf16.msrb.mxu1 %v4727_v34  ;;  %v1934_v0 = vadd.f32 %v7511_v18, %v1915_v50  ;;  %v1918_v42 = vadd.f32 %v7559_v23, %v1899_v13  ;;  %v1882_v28 = vadd.f32 %v7430_v44, %v1863_v29  ;;  %v2512_v50 = vld [vmem:[%s9490_s4 + $0x40] sm:$0xff]  ;;  %v4910_v29 = vld [vmem:[%s9490_s4 + $0x130] sm:$0xff] }
  0xfe   :  { %2327 = vmatpush.bf16.msrb.mxu2 %v4791_v35  ;;  %v1951_v7 = vadd.f32 %v7490_v63, %v1932_v59  ;;  %v4912_v59 = vld [vmem:[%s9490_s4 + $0x140] sm:$0xff] }
  0xff   :  { %2346 = vmatpush.bf16.msrb.mxu3 %v4855_v54  ;;  %v1953_v27 = vadd.f32 %v7546_v49, %v1934_v0  ;;  %v1901_v14 = vadd.f32 %v7441_v51, %v1882_v28  ;;  %v4917_v54 = vld [vmem:[%s9490_s4 + $0x168] sm:$0xff] }
 0x100   :  { %2290 = vmatpush.bf16.msrb.mxu0 %v4655_v6  ;;  %v1957_v8 = vpop.f32.mrf.mxu2  ;;  %v1988_v21 = vpop.f32.mrf.mxu0  ;;  %v1970_v37 = vadd.f32 %v7501_v12, %v1951_v7  ;;  %v2510_v7 = vld [vmem:[%s9490_s4 + $0x30] sm:$0xff] }
 0x101   :  { %2309 = vmatpush.bf16.msrb.mxu1 %v4719_v57  ;;  %v7638_v2 = vpop.f32.mrf.mxu3  ;;  %v2007_v26 = vpop.f32.mrf.mxu1  ;;  %v1920_v44 = vadd.f32 %v1919_v58, %v1901_v14  ;;  %v2515_v58 = vld [vmem:[%s9490_s4 + $0x58] sm:$0xff] }
 0x102   :  { %2328 = vmatpush.bf16.msrb.mxu2 %v4783_v16  ;;  %v1989_v41 = vadd.f32 %v1988_v21, %v1970_v37  ;;  %v7723_v21 = vpop.eup %5674  ;;  %v2509_v37 = vld [vmem:[%s9490_s4 + $0x28] sm:$0xff]  ;;  %v2507_v14 = vld [vmem:[%s9490_s4 + $0x18] sm:$0xff] }
 0x103   :  { %2347 = vmatpush.bf16.msrb.mxu3 %v4847_v17  ;;  %2291 = vmatmul.bf16.vlgmr.msrb.gmra.mxu0 %v6759_v60  ;;  %v1972_v60 = vadd.f32 %v7557_v62, %v1953_v27  ;;  %v4919_v62 = vld [vmem:[%s9490_s4 + $0x178] sm:$0xff]  ;;  %v1939_v39 = vadd.f32 %v7627_v20, %v1920_v44  ;;  %v2514_v20 = vld [vmem:[%s9490_s4 + $0x50] sm:$0xff]  ;;  %v2380_v27 = vmul.f32 32.0, %v7723_v21  ;;  %vm2384_vm0 = vweird.f32 %v7723_v21 }
 0x104   :  { %2310 = vmatmul.bf16.vlgmr.msrb.gmra.mxu1 %v6770_v4  ;;  %v1937_v4 = vadd.f32 %v7567_v3, %v1918_v42  ;;  %v2008_v23 = vadd.f32 %v2007_v26, %v1989_v41  ;;  %2575 = vmatpush.msra.mxu0 %v4919_v62  ;;  %v4911_v26 = vld [vmem:[%s9490_s4 + $0x138] sm:$0xff]  ;;  %v4909_v41 = vld [vmem:[%s9490_s4 + $0x128] sm:$0xff] }
 0x105   :  { %2329 = vmatmul.bf16.vlgmr.msrb.gmra.mxu2 %v6772_v5  ;;  %v1958_v52 = vadd.f32 %v1957_v8, %v1939_v39 }
 0x106   :  { %2348 = vmatmul.bf16.vlgmr.msrb.gmra.mxu3 %v6780_v10  ;;  %v2519_v10 = vld [vmem:[%s9490_s4 + $0x78] sm:$0xff]  ;;  %v1956_v12 = vadd.f32 %v1955_v53, %v1937_v4  ;;  %2576 = vmatpush.msra.mxu0 %v4918_v32  ;;  %v2381_v4 = vsub.f32 1.0, %v2380_v27  ;;  %v4977_v27 = vld [vmem:[%s9490_s4 + $0x348] sm:$0xff] }
 0x107   :  { %2615 = vmatpush.msra.mxu2 %v2519_v10 }
 0x108   :  { %v2026_v63 = vpop.f32.mrf.mxu2  ;;  %v1990_v49 = vpop.f32.mrf.mxu0  ;;  %v1975_v34 = vadd.f32 %v7619_v47, %v1956_v12  ;;  %2577 = vmatpush.msra.mxu0 %v4917_v54  ;;  %v4916_v47 = vld [vmem:[%s9490_s4 + $0x160] sm:$0xff]  ;;  %v4907_v12 = vld [vmem:[%s9490_s4 + $0x118] sm:$0xff]  ;;  %v2382_v62 = vmul.f32 %v7723_v21, %v2381_v4 }
 0x109   :  { %v2045_v18 = vpop.f32.mrf.mxu3  ;;  %v2009_v11 = vpop.f32.mrf.mxu1  ;;  %v1991_v5 = vadd.f32 %v1990_v49, %v1972_v60  ;;  %v2027_v3 = vadd.f32 %v2026_v63, %v2008_v23  ;;  %2616 = vmatpush.msra.mxu2 %v2518_v30  ;;  %v2506_v23 = vld [vmem:[%s9490_s4 + $0x10] sm:$0xff] }
 0x10a   :  { %2578 = vmatpush.msra.mxu0 %v4916_v47  ;;  %v4904_v47 = vld [vmem:[%s9490_s4 + $0x100] sm:$0xff] }
 0x10b   :  { %v2010_v56 = vadd.f32 %v2009_v11, %v1991_v5  ;;  %2617 = vmatpush.msra.mxu2 %v2517_v33  ;;  %v7680_v45 = vadd.f32 %v2045_v18, %v2027_v3  ;;  %v2508_v18 = vld [vmem:[%s9490_s4 + $0x20] sm:$0xff]  ;;  %v4906_v3 = vld [vmem:[%s9490_s4 + $0x110] sm:$0xff] }
 0x10c   :  { %v4908_v5 = vld [vmem:[%s9490_s4 + $0x120] sm:$0xff] }
 0x10d   :  { %2618 = vmatpush.msra.mxu2 %v2516_v24  ;;  %v4983_v24 = vld [vmem:[%s9490_s4 + $0x378] sm:$0xff] }
 0x10f   :  { %2619 = vmatpush.msra.mxu2 %v2515_v58 }
 0x110   :  { %v2028_v51 = vpop.f32.mrf.mxu2  ;;  %v1993_v48 = vpop.f32.mrf.mxu0 }
 0x111   :  { %v2029_v35 = vadd.f32 %v2028_v51, %v2010_v56  ;;  %v2047_v36 = vpop.f32.mrf.mxu3  ;;  %v2012_v53 = vpop.f32.mrf.mxu1  ;;  %v1994_v15 = vadd.f32 %v1993_v48, %v1975_v34  ;;  %2620 = vmatpush.msra.mxu2 %v2514_v20  ;;  %v2505_v56 = vld [vmem:[%s9490_s4 + $0x8] sm:$0xff]  ;;  %v2504_v48 = vld [vmem:[%s9490_s4] sm:$0xff]  ;;  %v4950_v20 = vld [vmem:[%s9490_s4 + $0x270] sm:$0xff] }
 0x113   :  { %v7682_v46 = vadd.f32 %v2047_v36, %v2029_v35  ;;  %2296 = vmatmul.bf16.gmra.mxu0 %v6891_v31  ;;  %v4915_v31 = vld [vmem:[%s9490_s4 + $0x158] sm:$0xff]  ;;  %v2013_v6 = vadd.f32 %v2012_v53, %v1994_v15  ;;  %v4905_v36 = vld [vmem:[%s9490_s4 + $0x108] sm:$0xff]  ;;  %v2383_v15 = vadd.f32 %v7723_v21, %v2382_v62  ;;  %v4974_v62 = vld [vmem:[%s9490_s4 + $0x330] sm:$0xff] }
 0x114   :  { %2315 = vmatmul.bf16.gmra.mxu1 %v6902_v38  ;;  %2579 = vmatpush.msra.mxu0 %v4915_v31  ;;  %v4914_v38 = vld [vmem:[%s9490_s4 + $0x150] sm:$0xff] }
 0x115   :  { %v2361_v19 = vadd.f32 %v7682_v46, %v7680_v45  ;;  %2334 = vmatmul.bf16.gmra.mxu2 %v6904_v40  ;;  %v2513_v40 = vld [vmem:[%s9490_s4 + $0x48] sm:$0xff]  ;;  %v7796_v9 = vsel %vm2384_vm0, %v7723_v21, %v2383_v15 }
 0x116   :  { %2353 = vmatmul.bf16.gmra.mxu3 %v6912_v43  ;;  %v1977_v43 = vadd.f32 %v7638_v2, %v1958_v52  ;;  %2580 = vmatpush.msra.mxu0 %v4914_v38  ;;  %v2511_v2 = vld [vmem:[%s9490_s4 + $0x38] sm:$0xff] }
 0x117   :  { %2621 = vmatpush.msra.mxu2 %v2513_v40  ;;  %v4951_v52 = vld [vmem:[%s9490_s4 + $0x278] sm:$0xff] }
 0x118   :  { %v2031_v57 = vpop.f32.mrf.mxu2  ;;  %v1995_v22 = vpop.f32.mrf.mxu0  ;;  %2581 = vmatpush.msra.mxu0 %v4913_v25 }
 0x119   :  { %v2032_v16 = vadd.f32 %v2031_v57, %v2013_v6  ;;  %v2050_v17 = vpop.f32.mrf.mxu3  ;;  %v2014_v1 = vpop.f32.mrf.mxu1  ;;  %v1996_v61 = vadd.f32 %v1995_v22, %v1977_v43  ;;  %2622 = vmatpush.msra.mxu2 %v2512_v50  ;;  %v4981_v6 = vld [vmem:[%s9490_s4 + $0x368] sm:$0xff]  ;;  %v4980_v22 = vld [vmem:[%s9490_s4 + $0x360] sm:$0xff] }
 0x11a   :  { %2582 = vmatpush.msra.mxu0 %v4912_v59  ;;  %v4948_v59 = vld [vmem:[%s9490_s4 + $0x260] sm:$0xff] }
 0x11b   :  { %v7715_v8 = vadd.f32 %v2050_v17, %v2032_v16  ;;  %v2015_v0 = vadd.f32 %v2014_v1, %v1996_v61  ;;  %2623 = vmatpush.msra.mxu2 %v2511_v2  ;;  %v4949_v17 = vld [vmem:[%s9490_s4 + $0x268] sm:$0xff]  ;;  %v4979_v2 = vld [vmem:[%s9490_s4 + $0x358] sm:$0xff] }
 0x11c   :  { %2583 = vmatpush.msra.mxu0 %v4911_v26 }
 0x11d   :  { %v2362_v55 = vadd.f32 %v2361_v19, %v7715_v8  ;;  %2624 = vmatpush.msra.mxu2 %v2510_v7  ;;  %v4982_v19 = vld [vmem:[%s9490_s4 + $0x370] sm:$0xff] }
 0x11e   :  { %2584 = vmatpush.msra.mxu0 %v4910_v29 }
 0x11f   :  { %2625 = vmatpush.msra.mxu2 %v2509_v37 }
 0x120   :  { %v2033_v13 = vpop.f32.mrf.mxu2  ;;  %v2064_v63 = vpop.f32.mrf.mxu0  ;;  %2585 = vmatpush.msra.mxu0 %v4909_v41  ;;  %v4945_v41 = vld [vmem:[%s9490_s4 + $0x248] sm:$0xff] }
 0x121   :  { %v2034_v42 = vadd.f32 %v2033_v13, %v2015_v0  ;;  %v2052_v28 = vpop.f32.mrf.mxu3  ;;  %v2083_v60 = vpop.f32.mrf.mxu1  ;;  %2626 = vmatpush.msra.mxu2 %v2508_v18  ;;  %v4947_v0 = vld [vmem:[%s9490_s4 + $0x258] sm:$0xff]  ;;  %v4978_v13 = vld [vmem:[%s9490_s4 + $0x350] sm:$0xff]  ;;  %v4976_v18 = vld [vmem:[%s9490_s4 + $0x340] sm:$0xff] }
 0x122   :  { %v2084_v11 = vadd.f32 %v2083_v60, %v2064_v63  ;;  %2586 = vmatpush.msra.mxu0 %v4908_v5 }
 0x123   :  { %v7745_v49 = vadd.f32 %v2052_v28, %v2034_v42  ;;  %2627 = vmatpush.msra.mxu2 %v2507_v14 }
 0x124   :  { %2587 = vmatpush.msra.mxu0 %v4907_v12  ;;  %v4975_v12 = vld [vmem:[%s9490_s4 + $0x338] sm:$0xff] }
 0x125   :  { %v2363_v10 = vadd.f32 %v2362_v55, %v7745_v49  ;;  %2628 = vmatpush.msra.mxu2 %v2506_v23 }
 0x126   :  { %2588 = vmatpush.msra.mxu0 %v4906_v3  ;;  %v4942_v3 = vld [vmem:[%s9490_s4 + $0x230] sm:$0xff] }
 0x127   :  { %v2364_v44 = vrot.slane %v2363_v10, 4  ;;  %2629 = vmatpush.msra.mxu2 %v2505_v56  ;;  %v4973_v56 = vld [vmem:[%s9490_s4 + $0x328] sm:$0xff] }
 0x128   :  { %v2102_v30 = vpop.f32.mrf.mxu2  ;;  %v2066_v34 = vpop.f32.mrf.mxu0  ;;  %2589 = vmatpush.msra.mxu0 %v4905_v36  ;;  %v4941_v36 = vld [vmem:[%s9490_s4 + $0x228] sm:$0xff] }
 0x129   :  { %v2365_v51 = vadd.f32 %v2364_v44, %v2363_v10  ;;  %v2103_v32 = vadd.f32 %v2102_v30, %v2084_v11  ;;  %v2121_v33 = vpop.f32.mrf.mxu3  ;;  %v2085_v35 = vpop.f32.mrf.mxu1  ;;  %2630 = vmatpush.msra.mxu2 %v2504_v48  ;;  %v4944_v10 = vld [vmem:[%s9490_s4 + $0x240] sm:$0xff]  ;;  %v4943_v44 = vld [vmem:[%s9490_s4 + $0x238] sm:$0xff] }
 0x12a   :  { %v2086_v54 = vadd.f32 %v2085_v35, %v2066_v34  ;;  %2590 = vmatpush.msra.mxu0 %v4904_v47  ;;  %v4972_v48 = vld [vmem:[%s9490_s4 + $0x320] sm:$0xff] }
 0x12b   :  { %v2366_v39 = vrot.slane %v2365_v51, 2  ;;  %v7773_v53 = vadd.f32 %v2121_v33, %v2103_v32  ;;  %2770 = vmatpush.msrb.mxu2 %v4983_v24  ;;  %v4940_v47 = vld [vmem:[%s9490_s4 + $0x220] sm:$0xff] }
 0x12c   :  { %2692 = vmatpush.msrb.mxu0 %v4951_v52 }
 0x12d   :  { %v2367_v58 = vadd.f32 %v2366_v39, %v2365_v51  ;;  %2771 = vmatpush.msrb.mxu2 %v4982_v19 }
 0x12e   :  { %2693 = vmatpush.msrb.mxu0 %v4950_v20 }
 0x12f   :  { %v2368_v31 = vrot.slane %v2367_v58, 1  ;;  %2772 = vmatpush.msrb.mxu2 %v4981_v6  ;;  %v4938_v6 = vld [vmem:[%s9490_s4 + $0x210] sm:$0xff] }
 0x130   :  { %v2104_v57 = vpop.f32.mrf.mxu2  ;;  %v2069_v16 = vpop.f32.mrf.mxu0  ;;  %2694 = vmatpush.msrb.mxu0 %v4949_v17 }
 0x131   :  { %v2369_v38 = vadd.f32 %v2368_v31, %v2367_v58  ;;  %v2105_v40 = vadd.f32 %v2104_v57, %v2086_v54  ;;  %v2123_v43 = vpop.f32.mrf.mxu3  ;;  %v2088_v1 = vpop.f32.mrf.mxu1  ;;  %2773 = vmatpush.msrb.mxu2 %v4980_v22  ;;  %v4971_v58 = vld [vmem:[%s9490_s4 + $0x318] sm:$0xff]  ;;  %v4970_v31 = vld [vmem:[%s9490_s4 + $0x310] sm:$0xff]  ;;  %v4969_v57 = vld [vmem:[%s9490_s4 + $0x308] sm:$0xff] }
 0x132   :  { %v2089_v61 = vadd.f32 %v2088_v1, %v2069_v16  ;;  %2695 = vmatpush.msrb.mxu0 %v4948_v59  ;;  %v4937_v22 = vld [vmem:[%s9490_s4 + $0x208] sm:$0xff]  ;;  %v4968_v1 = vld [vmem:[%s9490_s4 + $0x300] sm:$0xff] }
 0x133   :  { %v2386_v25 = vmul.f32 %v7796_v9, %v2369_v38  ;;  %v7805_v50 = vadd.f32 %v2123_v43, %v2105_v40  ;;  %2774 = vmatpush.msrb.mxu2 %v4979_v2  ;;  %v4936_v2 = vld [vmem:[%s9490_s4 + $0x200] sm:$0xff] }
 0x134   :  { %2696 = vmatpush.msrb.mxu0 %v4947_v0 }
 0x135   :  { %v7814_v21 = vsub.f32 %v7680_v45, %v2386_v25  ;;  %v7817_v55 = vsub.f32 %v7682_v46, %v2386_v25  ;;  %v7820_v26 = vsub.f32 %v7715_v8, %v2386_v25  ;;  %v7823_v7 = vsub.f32 %v7745_v49, %v2386_v25  ;;  %v4946_v8 = vld [vmem:[%s9490_s4 + $0x250] sm:$0xff]  ;;  %2775 = vmatpush.msrb.mxu2 %v4978_v13 }
 0x136   :  { %2697 = vmatpush.msrb.mxu0 %v4946_v8 }
 0x137   :  { %v2396_v45 = vmul.f32 %v7814_v21, %v7814_v21  ;;  %v2398_v46 = vmul.f32 %v7817_v55, %v7817_v55  ;;  %v2400_v37 = vmul.f32 %v7820_v26, %v7820_v26  ;;  %2776 = vmatpush.msrb.mxu2 %v4977_v27  ;;  %v2402_v11 = vmul.f32 %v7823_v7, %v7823_v7 }
 0x138   :  { %v2107_v29 = vpop.f32.mrf.mxu2  ;;  %v2071_v60 = vpop.f32.mrf.mxu0  ;;  %2698 = vmatpush.msrb.mxu0 %v4945_v41 }
 0x139   :  { %v2404_v42 = vadd.f32 %v2398_v46, %v2396_v45  ;;  %v2108_v28 = vadd.f32 %v2107_v29, %v2089_v61  ;;  %v2126_v63 = vpop.f32.mrf.mxu3  ;;  %v2090_v49 = vpop.f32.mrf.mxu1  ;;  %2777 = vmatpush.msrb.mxu2 %v4976_v18  ;;  %v2359_v18 = vld [vmem:[%s9491_s2] sm:$0x3] }
 0x13a   :  { %v2091_v14 = vadd.f32 %v2090_v49, %v2071_v60  ;;  %2699 = vmatpush.msrb.mxu0 %v4944_v10 }
 0x13b   :  { %v2405_v4 = vadd.f32 %v2404_v42, %v2400_v37  ;;  %v7851_v5 = vadd.f32 %v2126_v63, %v2108_v28  ;;  %2778 = vmatpush.msrb.mxu2 %v4975_v12 }
 0x13c   :  { %2700 = vmatpush.msrb.mxu0 %v4943_v44 }
 0x13d   :  { %v2406_v23 = vadd.f32 %v2405_v4, %v2402_v11  ;;  %2779 = vmatpush.msrb.mxu2 %v4974_v62  ;;  %v2360_v11 = vld [vmem:[%s9492_s3] sm:$0x3] }
 0x13e   :  { %2701 = vmatpush.msrb.mxu0 %v4942_v3  ;;  %v7938_v12 = vperm.slane %v2360_v11, 0  ;;  %v5039_v11 = vld [vmem:[%s9490_s4 + $0x538] sm:$0xff] }
 0x13f   :  { %v2407_v30 = vrot.slane %v2406_v23, 4  ;;  %2780 = vmatpush.msrb.mxu2 %v4973_v56 }
 0x140   :  { %v2109_v51 = vpop.f32.mrf.mxu2  ;;  %v2140_v35 = vpop.f32.mrf.mxu0  ;;  %2702 = vmatpush.msrb.mxu0 %v4941_v36 }
 0x141   :  { %v2408_v32 = vadd.f32 %v2407_v30, %v2406_v23  ;;  %v2110_v33 = vadd.f32 %v2109_v51, %v2091_v14  ;;  %v2128_v34 = vpop.f32.mrf.mxu3  ;;  %v2141_v39 = vadd.f32 %v2140_v35, %v7773_v53  ;;  %v2159_v54 = vpop.f32.mrf.mxu1  ;;  %2781 = vmatpush.msrb.mxu2 %v4972_v48  ;;  %v4939_v53 = vld [vmem:[%s9490_s4 + $0x218] sm:$0xff]  ;;  %v7936_v14 = vperm.slane %v2359_v18, 0 }
 0x142   :  { %2703 = vmatpush.msrb.mxu0 %v4940_v47  ;;  %v5047_v48 = vld [vmem:[%s9490_s4 + $0x578] sm:$0xff] }
 0x143   :  { %v2409_v24 = vrot.slane %v2408_v32, 2  ;;  %v7878_v15 = vadd.f32 %v2128_v34, %v2110_v33  ;;  %v2160_v52 = vadd.f32 %v2159_v54, %v2141_v39  ;;  %2782 = vmatpush.msrb.mxu2 %v4971_v58 }
 0x144   :  { %2704 = vmatpush.msrb.mxu0 %v4939_v53  ;;  %v5014_v53 = vld [vmem:[%s9490_s4 + $0x470] sm:$0xff] }
 0x145   :  { %v2410_v19 = vadd.f32 %v2409_v24, %v2408_v32  ;;  %2783 = vmatpush.msrb.mxu2 %v4970_v31  ;;  %v5045_v31 = vld [vmem:[%s9490_s4 + $0x568] sm:$0xff] }
 0x146   :  { %2705 = vmatpush.msrb.mxu0 %v4938_v6  ;;  %v5044_v6 = vld [vmem:[%s9490_s4 + $0x560] sm:$0xff] }
 0x147   :  { %v2411_v20 = vrot.slane %v2410_v19, 1  ;;  %2784 = vmatpush.msrb.mxu2 %v4969_v57 }
 0x148   :  { %v2178_v38 = vpop.f32.mrf.mxu2  ;;  %v7898_v17 = vpop.f32.mrf.mxu0  ;;  %2706 = vmatpush.msrb.mxu0 %v4937_v22 }
 0x149   :  { %v2412_v40 = vadd.f32 %v2411_v20, %v2410_v19  ;;  %v2179_v43 = vadd.f32 %v2178_v38, %v2160_v52  ;;  %v2197_v16 = vpop.f32.mrf.mxu3  ;;  %v7906_v25 = vpop.f32.mrf.mxu1  ;;  %2785 = vmatpush.msrb.mxu2 %v4968_v1  ;;  %v5015_v52 = vld [vmem:[%s9490_s4 + $0x478] sm:$0xff]  ;;  %v5046_v19 = vld [vmem:[%s9490_s4 + $0x570] sm:$0xff]  ;;  %v5013_v20 = vld [vmem:[%s9490_s4 + $0x468] sm:$0xff] }
 0x14a   :  { %2707 = vmatpush.msrb.mxu0 %v4936_v2  ;;  %v5011_v2 = vld [vmem:[%s9490_s4 + $0x458] sm:$0xff] }
 0x14b   :  { %v2422_v61 = vmul.f32 %v2412_v40, %v7796_v9  ;;  %v7909_v59 = vadd.f32 %v2197_v16, %v2179_v43  ;;  %v5012_v40 = vld [vmem:[%s9490_s4 + $0x460] sm:$0xff]  ;;  %v5043_v43 = vld [vmem:[%s9490_s4 + $0x558] sm:$0xff] }
 0x14d   :  { %v2424_v0 = vadd.f32 1e-05, %v2422_v61 }
 0x14f   :  { %5676 = vrsqrt.f32 %v2424_v0  ;;  %vm2432_vm2 = vweird.f32 %v2424_v0 }
 0x150   :  { %v7914_v13 = vpop.f32.mrf.mxu2  ;;  %v7918_v46 = vpop.f32.mrf.mxu0 }
 0x151   :  { %v7916_v45 = vpop.f32.mrf.mxu3  ;;  %v7920_v8 = vpop.f32.mrf.mxu1 }
 0x155   :  { %v5677_v27 = vpop.eup %5676 }
 0x156   :  { %v2427_v29 = vmul.f32 %v5677_v27, %v2424_v0  ;;  %vm2433_vm1 = vweird.f32 %v5677_v27  ;;  %v5042_v0 = vld [vmem:[%s9490_s4 + $0x550] sm:$0xff] }
 0x157   :  { %vm2434_vm3 = vmor %vm2432_vm2, %vm2433_vm1 }
 0x158   :  { %v2428_v37 = vmul.f32 %v5677_v27, %v2427_v29  ;;  %v7922_v42 = vpop.f32.mrf.mxu2  ;;  %v7926_v63 = vpop.f32.mrf.mxu0  ;;  %v5010_v29 = vld [vmem:[%s9490_s4 + $0x450] sm:$0xff] }
 0x159   :  { %v7924_v28 = vpop.f32.mrf.mxu3  ;;  %v7928_v41 = vpop.f32.mrf.mxu1 }
 0x15a   :  { %v2429_v60 = vmul.f32 0.5, %v2428_v37  ;;  %v5041_v37 = vld [vmem:[%s9490_s4 + $0x548] sm:$0xff] }
 0x15c   :  { %v2430_v49 = vsub.f32 1.5, %v2429_v60  ;;  %v5009_v60 = vld [vmem:[%s9490_s4 + $0x448] sm:$0xff] }
 0x15e   :  { %v2431_v4 = vmul.f32 %v5677_v27, %v2430_v49  ;;  %v5008_v49 = vld [vmem:[%s9490_s4 + $0x440] sm:$0xff] }
 0x160   :  { %v2435_v10 = vsel %vm2434_vm3, %v5677_v27, %v2431_v4  ;;  %v7940_v23 = vpop.f32.mrf.mxu2  ;;  %v7950_v51 = vpop.f32.mrf.mxu0  ;;  %v2143_v27 = vadd.f32 %v7898_v17, %v7805_v50  ;;  %v5040_v50 = vld [vmem:[%s9490_s4 + $0x540] sm:$0xff] }
 0x161   :  { %v2446_v44 = vmul.f32 %v2435_v10, %v7814_v21  ;;  %v7944_v62 = vmul.f32 %v2435_v10, %v7817_v55  ;;  %v2450_v30 = vmul.f32 %v2435_v10, %v7820_v26  ;;  %v2452_v3 = vmul.f32 %v2435_v10, %v7823_v7  ;;  %v7948_v56 = vpop.f32.mrf.mxu3  ;;  %v7952_v32 = vpop.f32.mrf.mxu1 }
 0x162   :  { %v2162_v17 = vadd.f32 %v7906_v25, %v2143_v27 }
 0x163   :  { %v2463_v33 = vmul.f32 %v7936_v14, %v2450_v30  ;;  %v2465_v34 = vmul.f32 %v7936_v14, %v2452_v3  ;;  %v2459_v35 = vmul.f32 %v7936_v14, %v2446_v44  ;;  %v2461_v4 = vmul.f32 %v7936_v14, %v7944_v62  ;;  %v5007_v3 = vld [vmem:[%s9490_s4 + $0x438] sm:$0xff]  ;;  %v5037_v62 = vld [vmem:[%s9490_s4 + $0x528] sm:$0xff] }
 0x164   :  { %v2181_v10 = vadd.f32 %v7914_v13, %v2162_v17  ;;  %v2146_v14 = vadd.f32 %v7918_v46, %v7851_v5  ;;  %v5006_v13 = vld [vmem:[%s9490_s4 + $0x430] sm:$0xff]  ;;  %v5005_v5 = vld [vmem:[%s9490_s4 + $0x428] sm:$0xff]  ;;  %v5036_v46 = vld [vmem:[%s9490_s4 + $0x520] sm:$0xff] }
 0x165   :  { %v7958_v21 = vadd.f32 %v7938_v12, %v2463_v33  ;;  %v7961_v55 = vadd.f32 %v7938_v12, %v2465_v34  ;;  %v2472_v26 = vadd.f32 %v7938_v12, %v2459_v35  ;;  %v5038_v33 = vld [vmem:[%s9490_s4 + $0x530] sm:$0xff]  ;;  %v2474_v34 = vadd.f32 %v7938_v12, %v2461_v4  ;;  %v5035_v12 = vld [vmem:[%s9490_s4 + $0x518] sm:$0xff] }
 0x166   :  { %v2200_v35 = vadd.f32 %v7916_v45, %v2181_v10 }
 0x167   :  { %vm2480_vm4 = vcmp.gt.f32.partialorder %v2472_v26, 0.0  ;;  %v2488_v7 = vmul.f32 0.2, %v2472_v26  ;;  %vm2482_vm5 = vcmp.gt.f32.partialorder %v2474_v34, 0.0  ;;  %vm2484_vm6 = vcmp.gt.f32.partialorder %v7958_v21, 0.0 }
 0x168   :  { %v7964_v36 = vpop.f32.mrf.mxu2  ;;  %v7971_v54 = vpop.f32.mrf.mxu0  ;;  %vm2486_vm11 = vcmp.gt.f32.partialorder %v7961_v55, 0.0 }
 0x169   :  { %v7969_v39 = vpop.f32.mrf.mxu3  ;;  %v2496_v24 = vsel %vm2480_vm4, %v2472_v26, %v2488_v7  ;;  %v7973_v47 = vpop.f32.mrf.mxu1  ;;  %v2217_v26 = vadd.f32 %v7950_v51, %v7909_v59  ;;  %v2165_v7 = vadd.f32 %v7920_v8, %v2146_v14  ;;  %v5004_v59 = vld [vmem:[%s9490_s4 + $0x420] sm:$0xff] }
 0x16a   :  { %v2571_v58 = vrot.slane %v2496_v24, 2  ;;  %2631 = vmatmul.f32.vlgmr.msra.gmra.mxu2 %v2496_v24  ;;  %v2766_v57 = vrot.slane %v2496_v24, 6  ;;  %v2688_v1 = vrot.slane %v2496_v24, 4 }
 0x16b   :  { %2924 = vmatpush.msra.mxu2 %v5047_v48  ;;  %v2219_v48 = vadd.f32 %v7971_v54, %v2200_v35  ;;  %v2184_v51 = vadd.f32 %v7922_v42, %v2165_v7  ;;  %v2236_v24 = vadd.f32 %v7952_v32, %v2217_v26  ;;  %v2490_v54 = vmul.f32 0.2, %v2474_v34  ;;  %v5034_v42 = vld [vmem:[%s9490_s4 + $0x510] sm:$0xff] }
 0x16c   :  { %2591 = vmatmul.f32.vlgmr.msra.gmra.mxu0 %v2571_v58  ;;  %v2534_v35 = vld [vmem:[%s9490_s4 + $0xf0] sm:$0xff] }
 0x16d   :  { %2844 = vmatpush.msra.mxu0 %v5015_v52  ;;  %2925 = vmatpush.msra.mxu2 %v5046_v19  ;;  %v2148_v52 = vadd.f32 %v7926_v63, %v7878_v15  ;;  %v2255_v32 = vadd.f32 %v7964_v36, %v2236_v24  ;;  %v5002_v15 = vld [vmem:[%s9490_s4 + $0x410] sm:$0xff]  ;;  %v5033_v63 = vld [vmem:[%s9490_s4 + $0x508] sm:$0xff] }
 0x16f   :  { %2845 = vmatpush.msra.mxu0 %v5014_v53  ;;  %2926 = vmatpush.msra.mxu2 %v5045_v31  ;;  %v5003_v53 = vld [vmem:[%s9490_s4 + $0x418] sm:$0xff]  ;;  %v2238_v31 = vadd.f32 %v7973_v47, %v2219_v48  ;;  %v2167_v36 = vadd.f32 %v7928_v41, %v2148_v52  ;;  %v5001_v47 = vld [vmem:[%s9490_s4 + $0x408] sm:$0xff] }
 0x170   :  { %v7993_v38 = vpop.f32.mrf.mxu2  ;;  %v8003_v22 = vpop.f32.mrf.mxu0  ;;  %v5111_v41 = vld [vmem:[%s9490_s4 + $0x778] sm:$0xff] }
 0x171   :  { %v8001_v16 = vpop.f32.mrf.mxu3  ;;  %2846 = vmatpush.msra.mxu0 %v5013_v20  ;;  %2927 = vmatpush.msra.mxu2 %v5044_v6  ;;  %v8005_v61 = vpop.f32.mrf.mxu1  ;;  %v2203_v20 = vadd.f32 %v7924_v28, %v2184_v51  ;;  %v2257_v6 = vadd.f32 %v7993_v38, %v2238_v31  ;;  %v2186_v38 = vadd.f32 %v7940_v23, %v2167_v36  ;;  %v5075_v48 = vld [vmem:[%s9490_s4 + $0x658] sm:$0xff]  ;;  %v2533_v51 = vld [vmem:[%s9490_s4 + $0xe8] sm:$0xff] }
 0x172   :  { %2786 = vmatmul.f32.vlgmr.msrb.gmra.mxu2 %v2766_v57  ;;  %v8101_v57 = vsel %vm2482_vm5, %v2474_v34, %v2490_v54  ;;  %v4935_v34 = vld [vmem:[%s9490_s4 + $0x1f8] sm:$0xff]  ;;  %v5074_v54 = vld [vmem:[%s9490_s4 + $0x650] sm:$0xff] }
 0x173   :  { %2847 = vmatpush.msra.mxu0 %v5012_v40  ;;  %2928 = vmatpush.msra.mxu2 %v5043_v43  ;;  %v5032_v40 = vld [vmem:[%s9490_s4 + $0x500] sm:$0xff]  ;;  %v2274_v43 = vadd.f32 %v7969_v39, %v2255_v32  ;;  %v2222_v28 = vadd.f32 %v8003_v22, %v2203_v20  ;;  %v2276_v27 = vadd.f32 %v8001_v16, %v2257_v6  ;;  %v2531_v6 = vld [vmem:[%s9490_s4 + $0xd8] sm:$0xff] }
 0x174   :  { %2708 = vmatmul.f32.vlgmr.msrb.gmra.mxu0 %v2688_v1  ;;  %v2205_v16 = vadd.f32 %v7948_v56, %v2186_v38  ;;  %v5077_v56 = vld [vmem:[%s9490_s4 + $0x668] sm:$0xff]  ;;  %2595 = vmatpush.msra.mxu1 %v4935_v34  ;;  %v5098_v34 = vld [vmem:[%s9490_s4 + $0x710] sm:$0xff] }
 0x175   :  { %2848 = vmatpush.msra.mxu0 %v5011_v2  ;;  %2929 = vmatpush.msra.mxu2 %v5042_v0  ;;  %v2920_v2 = vrot.slane %v8101_v57, 2  ;;  %v5000_v0 = vld [vmem:[%s9490_s4 + $0x400] sm:$0xff] }
 0x177   :  { %2849 = vmatpush.msra.mxu0 %v5010_v29  ;;  %2930 = vmatpush.msra.mxu2 %v5041_v37  ;;  %v5079_v37 = vld [vmem:[%s9490_s4 + $0x678] sm:$0xff] }
 0x178   :  { %v8028_v18 = vpop.f32.mrf.mxu2  ;;  %v8041_v25 = vpop.f32.mrf.mxu0 }
 0x179   :  { %v8039_v44 = vpop.f32.mrf.mxu3  ;;  %2850 = vmatpush.msra.mxu0 %v5009_v60  ;;  %2931 = vmatpush.msra.mxu2 %v5040_v50  ;;  %v8043_v30 = vpop.f32.mrf.mxu1  ;;  %v5110_v60 = vld [vmem:[%s9490_s4 + $0x770] sm:$0xff]  ;;  %v2241_v50 = vadd.f32 %v8005_v61, %v2222_v28  ;;  %v2224_v61 = vadd.f32 %v8041_v25, %v2205_v16 }
 0x17b   :  { %2851 = vmatpush.msra.mxu0 %v5008_v49  ;;  %2932 = vmatpush.msra.mxu2 %v5039_v11  ;;  %v5078_v49 = vld [vmem:[%s9490_s4 + $0x670] sm:$0xff]  ;;  %v5109_v11 = vld [vmem:[%s9490_s4 + $0x768] sm:$0xff]  ;;  %v2260_v4 = vadd.f32 %v8028_v18, %v2241_v50  ;;  %v5076_v18 = vld [vmem:[%s9490_s4 + $0x660] sm:$0xff] }
 0x17c   :  { %v4929_v50 = vld [vmem:[%s9490_s4 + $0x1c8] sm:$0xff] }
 0x17d   :  { %2852 = vmatpush.msra.mxu0 %v5007_v3  ;;  %2933 = vmatpush.msra.mxu2 %v5038_v33  ;;  %v5108_v3 = vld [vmem:[%s9490_s4 + $0x760] sm:$0xff]  ;;  %v2535_v33 = vld [vmem:[%s9490_s4 + $0xf8] sm:$0xff]  ;;  %v2279_v26 = vadd.f32 %v8039_v44, %v2260_v4  ;;  %v4934_v44 = vld [vmem:[%s9490_s4 + $0x1f0] sm:$0xff] }
 0x17e   :  { %2635 = vmatpush.msra.mxu3 %v2535_v33  ;;  %2596 = vmatpush.msra.mxu1 %v4934_v44  ;;  %v5099_v33 = vld [vmem:[%s9490_s4 + $0x718] sm:$0xff]  ;;  %v5065_v44 = vld [vmem:[%s9490_s4 + $0x608] sm:$0xff] }
 0x17f   :  { %2853 = vmatpush.msra.mxu0 %v5006_v13  ;;  %2934 = vmatpush.msra.mxu2 %v5037_v62  ;;  %v5107_v62 = vld [vmem:[%s9490_s4 + $0x758] sm:$0xff] }
 0x180   :  { %v8071_v45 = vpop.f32.mrf.mxu2  ;;  %v2292_v8 = vpop.f32.mrf.mxu0  ;;  %2636 = vmatpush.msra.mxu3 %v2534_v35 }
 0x181   :  { %v8081_v58 = vpop.f32.mrf.mxu3  ;;  %2854 = vmatpush.msra.mxu0 %v5005_v5  ;;  %2935 = vmatpush.msra.mxu2 %v5036_v46  ;;  %v2311_v19 = vpop.f32.mrf.mxu1  ;;  %v2293_v39 = vadd.f32 %v2292_v8, %v2274_v43 }
 0x182   :  { %2637 = vmatpush.msra.mxu3 %v2533_v51  ;;  %v5096_v51 = vld [vmem:[%s9490_s4 + $0x700] sm:$0xff] }
 0x183   :  { %2855 = vmatpush.msra.mxu0 %v5004_v59  ;;  %2936 = vmatpush.msra.mxu2 %v5035_v12  ;;  %v2312_v10 = vadd.f32 %v2311_v19, %v2293_v39  ;;  %v2243_v59 = vadd.f32 %v8043_v30, %v2224_v61  ;;  %v5106_v12 = vld [vmem:[%s9490_s4 + $0x750] sm:$0xff]  ;;  %v5105_v19 = vld [vmem:[%s9490_s4 + $0x748] sm:$0xff]  ;;  %v2527_v61 = vld [vmem:[%s9490_s4 + $0xb8] sm:$0xff] }
 0x185   :  { %2856 = vmatpush.msra.mxu0 %v5003_v53  ;;  %2937 = vmatpush.msra.mxu2 %v5034_v42  ;;  %v4933_v53 = vld [vmem:[%s9490_s4 + $0x1e8] sm:$0xff]  ;;  %v2532_v42 = vld [vmem:[%s9490_s4 + $0xe0] sm:$0xff]  ;;  %v2262_v32 = vadd.f32 %v8071_v45, %v2243_v59 }
 0x186   :  { %2597 = vmatpush.msra.mxu1 %v4933_v53  ;;  %2638 = vmatpush.msra.mxu3 %v2532_v42  ;;  %v4932_v45 = vld [vmem:[%s9490_s4 + $0x1e0] sm:$0xff]  ;;  %v4925_v59 = vld [vmem:[%s9490_s4 + $0x1a8] sm:$0xff]  ;;  %v5175_v53 = vld [vmem:[%s9490_s4 + $0x978] sm:$0xff] }
 0x187   :  { %2857 = vmatpush.msra.mxu0 %v5002_v15  ;;  %2938 = vmatpush.msra.mxu2 %v5033_v63  ;;  %v5073_v15 = vld [vmem:[%s9490_s4 + $0x648] sm:$0xff]  ;;  %v5104_v63 = vld [vmem:[%s9490_s4 + $0x740] sm:$0xff]  ;;  %v2281_v43 = vadd.f32 %v8081_v58, %v2262_v32  ;;  %v5102_v58 = vld [vmem:[%s9490_s4 + $0x730] sm:$0xff] }
 0x188   :  { %v2330_v1 = vpop.f32.mrf.mxu2  ;;  %v2294_v22 = vpop.f32.mrf.mxu0  ;;  %2598 = vmatpush.msra.mxu1 %v4932_v45  ;;  %2639 = vmatpush.msra.mxu3 %v2531_v6  ;;  %v5064_v42 = vld [vmem:[%s9490_s4 + $0x600] sm:$0xff]  ;;  %v5174_v45 = vld [vmem:[%s9490_s4 + $0x970] sm:$0xff] }
 0x189   :  { %v2349_v29 = vpop.f32.mrf.mxu3  ;;  %2858 = vmatpush.msra.mxu0 %v5001_v47  ;;  %2939 = vmatpush.msra.mxu2 %v5032_v40  ;;  %v2313_v23 = vpop.f32.mrf.mxu1  ;;  %v2295_v17 = vadd.f32 %v2294_v22, %v2276_v27  ;;  %v2331_v14 = vadd.f32 %v2330_v1, %v2312_v10  ;;  %v5072_v47 = vld [vmem:[%s9490_s4 + $0x640] sm:$0xff]  ;;  %v5103_v40 = vld [vmem:[%s9490_s4 + $0x738] sm:$0xff]  ;;  %v2529_v22 = vld [vmem:[%s9490_s4 + $0xc8] sm:$0xff] }
 0x18a   :  { %2940 = vmatmul.f32.vlgmr.msra.gmra.mxu2 %v2920_v2  ;;  %v4931_v2 = vld [vmem:[%s9490_s4 + $0x1d8] sm:$0xff]  ;;  %v4928_v10 = vld [vmem:[%s9490_s4 + $0x1c0] sm:$0xff] }
 0x18b   :  { %3080 = vmatpush.msrb.mxu2 %v5111_v41  ;;  %2859 = vmatpush.msra.mxu0 %v5000_v0  ;;  %v2314_v13 = vadd.f32 %v2313_v23, %v2295_v17  ;;  %v8173_v24 = vadd.f32 %v2349_v29, %v2331_v14  ;;  %v2530_v41 = vld [vmem:[%s9490_s4 + $0xd0] sm:$0xff]  ;;  %v5071_v0 = vld [vmem:[%s9490_s4 + $0x638] sm:$0xff]  ;;  %v2528_v17 = vld [vmem:[%s9490_s4 + $0xc0] sm:$0xff] }
 0x18c   :  { %2860 = vmatmul.f32.vlgmr.msra.gmra.mxu0 %v8101_v57  ;;  %2599 = vmatpush.msra.mxu1 %v4931_v2  ;;  %v4930_v29 = vld [vmem:[%s9490_s4 + $0x1d0] sm:$0xff]  ;;  %v2520_v2 = vld [vmem:[%s9490_s4 + $0x80] sm:$0xff] }
 0x18d   :  { %3002 = vmatpush.msrb.mxu0 %v5079_v37  ;;  %3081 = vmatpush.msrb.mxu2 %v5110_v60  ;;  %v5070_v23 = vld [vmem:[%s9490_s4 + $0x630] sm:$0xff]  ;;  %v5101_v37 = vld [vmem:[%s9490_s4 + $0x728] sm:$0xff] }
 0x18e   :  { %2640 = vmatpush.msra.mxu3 %v2530_v41  ;;  %2600 = vmatpush.msra.mxu1 %v4930_v29  ;;  %v4920_v29 = vld [vmem:[%s9490_s4 + $0x180] sm:$0xff] }
 0x18f   :  { %3003 = vmatpush.msrb.mxu0 %v5078_v49  ;;  %3082 = vmatpush.msrb.mxu2 %v5109_v11  ;;  %v5069_v49 = vld [vmem:[%s9490_s4 + $0x628] sm:$0xff]  ;;  %v5100_v11 = vld [vmem:[%s9490_s4 + $0x720] sm:$0xff] }
 0x190   :  { %v2332_v25 = vpop.f32.mrf.mxu2  ;;  %v2297_v7 = vpop.f32.mrf.mxu0  ;;  %2641 = vmatpush.msra.mxu3 %v2529_v22  ;;  %2601 = vmatpush.msra.mxu1 %v4929_v50 }
 0x191   :  { %3004 = vmatpush.msrb.mxu0 %v5077_v56  ;;  %3083 = vmatpush.msrb.mxu2 %v5108_v3  ;;  %v2333_v5 = vadd.f32 %v2332_v25, %v2314_v13  ;;  %v2351_v46 = vpop.f32.mrf.mxu3  ;;  %v2298_v30 = vadd.f32 %v2297_v7, %v2279_v26  ;;  %v2316_v52 = vpop.f32.mrf.mxu1  ;;  %v5068_v3 = vld [vmem:[%s9490_s4 + $0x620] sm:$0xff]  ;;  %v4927_v13 = vld [vmem:[%s9490_s4 + $0x1b8] sm:$0xff]  ;;  %v4926_v26 = vld [vmem:[%s9490_s4 + $0x1b0] sm:$0xff] }
 0x192   :  { %2642 = vmatpush.msra.mxu3 %v2528_v17  ;;  %2602 = vmatpush.msra.mxu1 %v4928_v10  ;;  %v5097_v7 = vld [vmem:[%s9490_s4 + $0x708] sm:$0xff]  ;;  %v5170_v17 = vld [vmem:[%s9490_s4 + $0x950] sm:$0xff] }
 0x193   :  { %v8175_v8 = vadd.f32 %v2351_v46, %v2333_v5  ;;  %3005 = vmatpush.msrb.mxu0 %v5076_v18  ;;  %3084 = vmatpush.msrb.mxu2 %v5107_v62  ;;  %v2317_v20 = vadd.f32 %v2316_v52, %v2298_v30  ;;  %v2526_v18 = vld [vmem:[%s9490_s4 + $0xb0] sm:$0xff]  ;;  %v5067_v62 = vld [vmem:[%s9490_s4 + $0x618] sm:$0xff]  ;;  %v2525_v5 = vld [vmem:[%s9490_s4 + $0xa8] sm:$0xff] }
 0x194   :  { %2643 = vmatpush.msra.mxu3 %v2527_v61  ;;  %2603 = vmatpush.msra.mxu1 %v4927_v13  ;;  %v5066_v46 = vld [vmem:[%s9490_s4 + $0x610] sm:$0xff]  ;;  %v2523_v52 = vld [vmem:[%s9490_s4 + $0x98] sm:$0xff]  ;;  %v4996_v13 = vld [vmem:[%s9490_s4 + $0x3e0] sm:$0xff] }
 0x195   :  { %v2370_v31 = vadd.f32 %v8175_v8, %v8173_v24  ;;  %3006 = vmatpush.msrb.mxu0 %v5075_v48  ;;  %3085 = vmatpush.msrb.mxu2 %v5106_v12  ;;  %v2524_v12 = vld [vmem:[%s9490_s4 + $0xa0] sm:$0xff] }
 0x196   :  { %2644 = vmatpush.msra.mxu3 %v2526_v18  ;;  %2604 = vmatpush.msra.mxu1 %v4926_v26  ;;  %v5136_v18 = vld [vmem:[%s9490_s4 + $0x840] sm:$0xff]  ;;  %v4995_v26 = vld [vmem:[%s9490_s4 + $0x3d8] sm:$0xff] }
 0x197   :  { %3007 = vmatpush.msrb.mxu0 %v5074_v54  ;;  %3086 = vmatpush.msrb.mxu2 %v5105_v19  ;;  %v4924_v54 = vld [vmem:[%s9490_s4 + $0x1a0] sm:$0xff]  ;;  %v3076_v19 = vrot.slane %v8101_v57, 6 }
 0x198   :  { %v2335_v36 = vpop.f32.mrf.mxu2  ;;  %v2299_v1 = vpop.f32.mrf.mxu0  ;;  %2645 = vmatpush.msra.mxu3 %v2525_v5  ;;  %2605 = vmatpush.msra.mxu1 %v4925_v59  ;;  %v5135_v5 = vld [vmem:[%s9490_s4 + $0x838] sm:$0xff]  ;;  %v5166_v59 = vld [vmem:[%s9490_s4 + $0x930] sm:$0xff] }
 0x199   :  { %3008 = vmatpush.msrb.mxu0 %v5073_v15  ;;  %3087 = vmatpush.msrb.mxu2 %v5104_v63  ;;  %v2336_v28 = vadd.f32 %v2335_v36, %v2317_v20  ;;  %v2354_v38 = vpop.f32.mrf.mxu3  ;;  %v2300_v39 = vadd.f32 %v2299_v1, %v2281_v43  ;;  %v2318_v16 = vpop.f32.mrf.mxu1  ;;  %v2522_v15 = vld [vmem:[%s9490_s4 + $0x90] sm:$0xff]  ;;  %v2998_v63 = vrot.slane %v8101_v57, 4  ;;  %v5143_v20 = vld [vmem:[%s9490_s4 + $0x878] sm:$0xff]  ;;  %v5173_v57 = vld [vmem:[%s9490_s4 + $0x968] sm:$0xff] }
 0x19a   :  { %2646 = vmatpush.msra.mxu3 %v2524_v12  ;;  %2606 = vmatpush.msra.mxu1 %v4924_v54  ;;  %v5142_v36 = vld [vmem:[%s9490_s4 + $0x870] sm:$0xff]  ;;  %v4921_v1 = vld [vmem:[%s9490_s4 + $0x188] sm:$0xff] }
 0x19b   :  { %v8223_v27 = vadd.f32 %v2354_v38, %v2336_v28  ;;  %3009 = vmatpush.msrb.mxu0 %v5072_v47  ;;  %3088 = vmatpush.msrb.mxu2 %v5103_v40  ;;  %v2319_v4 = vadd.f32 %v2318_v16, %v2300_v39  ;;  %v4922_v47 = vld [vmem:[%s9490_s4 + $0x190] sm:$0xff]  ;;  %v2521_v40 = vld [vmem:[%s9490_s4 + $0x88] sm:$0xff]  ;;  %v5172_v38 = vld [vmem:[%s9490_s4 + $0x960] sm:$0xff] }
 0x19c   :  { %2647 = vmatpush.msra.mxu3 %v2523_v52  ;;  %v5141_v28 = vld [vmem:[%s9490_s4 + $0x868] sm:$0xff]  ;;  %v5171_v39 = vld [vmem:[%s9490_s4 + $0x958] sm:$0xff]  ;;  %v4966_v16 = vld [vmem:[%s9490_s4 + $0x2f0] sm:$0xff] }
 0x19d   :  { %v2371_v60 = vadd.f32 %v2370_v31, %v8223_v27  ;;  %3010 = vmatpush.msrb.mxu0 %v5071_v0  ;;  %3089 = vmatpush.msrb.mxu2 %v5102_v58  ;;  %v4923_v31 = vld [vmem:[%s9490_s4 + $0x198] sm:$0xff]  ;;  %v5140_v58 = vld [vmem:[%s9490_s4 + $0x860] sm:$0xff]  ;;  %v4994_v12 = vld [vmem:[%s9490_s4 + $0x3d0] sm:$0xff] }
 0x19e   :  { %2607 = vmatpush.msra.mxu1 %v4923_v31  ;;  %2648 = vmatpush.msra.mxu3 %v2522_v15  ;;  %v4999_v0 = vld [vmem:[%s9490_s4 + $0x3f8] sm:$0xff]  ;;  %v5165_v54 = vld [vmem:[%s9490_s4 + $0x928] sm:$0xff]  ;;  %v4992_v31 = vld [vmem:[%s9490_s4 + $0x3c0] sm:$0xff] }
 0x19f   :  { %3011 = vmatpush.msrb.mxu0 %v5070_v23  ;;  %3090 = vmatpush.msrb.mxu2 %v5101_v37  ;;  %v4967_v23 = vld [vmem:[%s9490_s4 + $0x2f8] sm:$0xff]  ;;  %v4998_v37 = vld [vmem:[%s9490_s4 + $0x3f0] sm:$0xff]  ;;  %v4993_v52 = vld [vmem:[%s9490_s4 + $0x3c8] sm:$0xff] }
 0x1a0   :  { %v2337_v56 = vpop.f32.mrf.mxu2  ;;  %2608 = vmatpush.msra.mxu1 %v4922_v47  ;;  %2649 = vmatpush.msra.mxu3 %v2521_v40  ;;  %v5132_v15 = vld [vmem:[%s9490_s4 + $0x820] sm:$0xff]  ;;  %v4959_v47 = vld [vmem:[%s9490_s4 + $0x2b8] sm:$0xff] }
 0x1a1   :  { %3012 = vmatpush.msrb.mxu0 %v5069_v49  ;;  %3091 = vmatpush.msrb.mxu2 %v5100_v11  ;;  %v2338_v14 = vadd.f32 %v2337_v56, %v2319_v4  ;;  %v2356_v25 = vpop.f32.mrf.mxu3  ;;  %v5138_v49 = vld [vmem:[%s9490_s4 + $0x850] sm:$0xff]  ;;  %v5169_v56 = vld [vmem:[%s9490_s4 + $0x948] sm:$0xff] }
 0x1a2   :  { %2609 = vmatpush.msra.mxu1 %v4921_v1  ;;  %2650 = vmatpush.msra.mxu3 %v2520_v2  ;;  %v4958_v1 = vld [vmem:[%s9490_s4 + $0x2b0] sm:$0xff] }
 0x1a3   :  { %v8274_v35 = vadd.f32 %v2356_v25, %v2338_v14  ;;  %3013 = vmatpush.msrb.mxu0 %v5068_v3  ;;  %3092 = vmatpush.msrb.mxu2 %v5099_v33  ;;  %v4997_v3 = vld [vmem:[%s9490_s4 + $0x3e8] sm:$0xff]  ;;  %v5168_v14 = vld [vmem:[%s9490_s4 + $0x940] sm:$0xff] }
 0x1a4   :  { %2790 = vmatpush.msrb.mxu3 %v4999_v0  ;;  %2610 = vmatpush.msra.mxu1 %v4920_v29  ;;  %v4964_v25 = vld [vmem:[%s9490_s4 + $0x2e0] sm:$0xff]  ;;  %v4989_v0 = vld [vmem:[%s9490_s4 + $0x3a8] sm:$0xff] }
 0x1a5   :  { %v2372_v48 = vadd.f32 %v2371_v60, %v8274_v35  ;;  %3014 = vmatpush.msrb.mxu0 %v5067_v62  ;;  %3093 = vmatpush.msrb.mxu2 %v5098_v34  ;;  %v5139_v60 = vld [vmem:[%s9490_s4 + $0x858] sm:$0xff]  ;;  %v4957_v29 = vld [vmem:[%s9490_s4 + $0x2a8] sm:$0xff] }
 0x1a6   :  { %2712 = vmatpush.msrb.mxu1 %v4967_v23  ;;  %2791 = vmatpush.msrb.mxu3 %v4998_v37  ;;  %v5160_v23 = vld [vmem:[%s9490_s4 + $0x900] sm:$0xff] }
 0x1a7   :  { %v2373_v30 = vrot.slane %v2372_v48, 4  ;;  %3015 = vmatpush.msrb.mxu0 %v5066_v46  ;;  %3094 = vmatpush.msrb.mxu2 %v5097_v7  ;;  %v4963_v46 = vld [vmem:[%s9490_s4 + $0x2d8] sm:$0xff]  ;;  %v4988_v37 = vld [vmem:[%s9490_s4 + $0x3a0] sm:$0xff] }
 0x1a8   :  { %2713 = vmatpush.msrb.mxu1 %v4966_v16  ;;  %2792 = vmatpush.msrb.mxu3 %v4997_v3  ;;  %v5207_v16 = vld [vmem:[%s9490_s4 + $0xa78] sm:$0xff]  ;;  %v5238_v3 = vld [vmem:[%s9490_s4 + $0xb70] sm:$0xff] }
 0x1a9   :  { %v2374_v32 = vadd.f32 %v2373_v30, %v2372_v48  ;;  %3016 = vmatpush.msrb.mxu0 %v5065_v44  ;;  %3095 = vmatpush.msrb.mxu2 %v5096_v51  ;;  %v5134_v44 = vld [vmem:[%s9490_s4 + $0x830] sm:$0xff] }
 0x1aa   :  { %3096 = vmatmul.f32.vlgmr.msrb.gmra.mxu2 %v3076_v19  ;;  %2793 = vmatpush.msrb.mxu3 %v4996_v13  ;;  %v4962_v51 = vld [vmem:[%s9490_s4 + $0x2d0] sm:$0xff]  ;;  %v5133_v19 = vld [vmem:[%s9490_s4 + $0x828] sm:$0xff] }
 0x1ab   :  { %v2375_v6 = vrot.slane %v2374_v32, 2  ;;  %3234 = vmatpush.msra.mxu2 %v5175_v53  ;;  %3017 = vmatpush.msrb.mxu0 %v5064_v42  ;;  %v4961_v53 = vld [vmem:[%s9490_s4 + $0x2c8] sm:$0xff] }
 0x1ac   :  { %3018 = vmatmul.f32.vlgmr.msrb.gmra.mxu0 %v2998_v63  ;;  %2794 = vmatpush.msrb.mxu3 %v4995_v26  ;;  %v4960_v63 = vld [vmem:[%s9490_s4 + $0x2c0] sm:$0xff]  ;;  %v5205_v13 = vld [vmem:[%s9490_s4 + $0xa68] sm:$0xff]  ;;  %v5235_v26 = vld [vmem:[%s9490_s4 + $0xb58] sm:$0xff] }
 0x1ad   :  { %v2376_v43 = vadd.f32 %v2375_v6, %v2374_v32  ;;  %3154 = vmatpush.msra.mxu0 %v5143_v20  ;;  %3235 = vmatpush.msra.mxu2 %v5174_v45  ;;  %v5164_v32 = vld [vmem:[%s9490_s4 + $0x920] sm:$0xff]  ;;  %v5163_v45 = vld [vmem:[%s9490_s4 + $0x918] sm:$0xff] }
 0x1ae   :  { %2795 = vmatpush.msrb.mxu3 %v4994_v12  ;;  %v4991_v6 = vld [vmem:[%s9490_s4 + $0x3b8] sm:$0xff] }
 0x1af   :  { %v2377_v41 = vrot.slane %v2376_v43, 1  ;;  %3155 = vmatpush.msra.mxu0 %v5142_v36  ;;  %3236 = vmatpush.msra.mxu2 %v5173_v57  ;;  %v5131_v36 = vld [vmem:[%s9490_s4 + $0x818] sm:$0xff]  ;;  %v2492_v57 = vmul.f32 0.2, %v7958_v21 }
 0x1b0   :  { %2796 = vmatpush.msrb.mxu3 %v4993_v52 }
 0x1b1   :  { %v2378_v22 = vadd.f32 %v2377_v41, %v2376_v43  ;;  %3156 = vmatpush.msra.mxu0 %v5141_v28  ;;  %3237 = vmatpush.msra.mxu2 %v5172_v38  ;;  %v5162_v43 = vld [vmem:[%s9490_s4 + $0x910] sm:$0xff]  ;;  %v5161_v41 = vld [vmem:[%s9490_s4 + $0x908] sm:$0xff] }
 0x1b2   :  { %2797 = vmatpush.msrb.mxu3 %v4992_v31  ;;  %v4990_v28 = vld [vmem:[%s9490_s4 + $0x3b0] sm:$0xff] }
 0x1b3   :  { %v2387_v50 = vmul.f32 %v7796_v9, %v2378_v22  ;;  %3157 = vmatpush.msra.mxu0 %v5140_v58  ;;  %3238 = vmatpush.msra.mxu2 %v5171_v39  ;;  %v5130_v38 = vld [vmem:[%s9490_s4 + $0x810] sm:$0xff]  ;;  %v5129_v58 = vld [vmem:[%s9490_s4 + $0x808] sm:$0xff]  ;;  %v8510_v39 = vsel %vm2484_vm6, %v7958_v21, %v2492_v57  ;;  %v5128_v21 = vld [vmem:[%s9490_s4 + $0x800] sm:$0xff] }
 0x1b4   :  { %2798 = vmatpush.msrb.mxu3 %v4991_v6  ;;  %v5230_v31 = vld [vmem:[%s9490_s4 + $0xb30] sm:$0xff]  ;;  %v5197_v6 = vld [vmem:[%s9490_s4 + $0xa28] sm:$0xff] }
 0x1b5   :  { %v8383_v11 = vsub.f32 %v8173_v24, %v2387_v50  ;;  %v8386_v4 = vsub.f32 %v8175_v8, %v2387_v50  ;;  %v8389_v10 = vsub.f32 %v8223_v27, %v2387_v50  ;;  %v8392_v61 = vsub.f32 %v8274_v35, %v2387_v50  ;;  %3158 = vmatpush.msra.mxu0 %v5139_v60  ;;  %v5137_v24 = vld [vmem:[%s9490_s4 + $0x848] sm:$0xff]  ;;  %v5167_v35 = vld [vmem:[%s9490_s4 + $0x938] sm:$0xff] }
 0x1b6   :  { %3239 = vmatpush.msra.mxu2 %v5170_v17  ;;  %v4965_v8 = vld [vmem:[%s9490_s4 + $0x2e8] sm:$0xff]  ;;  %2799 = vmatpush.msrb.mxu3 %v4990_v28  ;;  %v3230_v50 = vrot.slane %v8510_v39, 2  ;;  %v5239_v17 = vld [vmem:[%s9490_s4 + $0xb78] sm:$0xff] }
 0x1b7   :  { %v2397_v27 = vmul.f32 %v8383_v11, %v8383_v11  ;;  %v2399_v33 = vmul.f32 %v8386_v4, %v8386_v4  ;;  %3159 = vmatpush.msra.mxu0 %v5138_v49  ;;  %v2401_v62 = vmul.f32 %v8389_v10, %v8389_v10  ;;  %2714 = vmatpush.msrb.mxu1 %v4965_v8  ;;  %v4956_v49 = vld [vmem:[%s9490_s4 + $0x2a0] sm:$0xff]  ;;  %v5206_v8 = vld [vmem:[%s9490_s4 + $0xa70] sm:$0xff] }
 0x1b8   :  { %3240 = vmatpush.msra.mxu2 %v5169_v56  ;;  %v2403_v7 = vmul.f32 %v8392_v61, %v8392_v61  ;;  %2800 = vmatpush.msrb.mxu3 %v4989_v0 }
 0x1b9   :  { %v2413_v34 = vadd.f32 %v2399_v33, %v2397_v27  ;;  %3160 = vmatpush.msra.mxu0 %v5137_v24  ;;  %2715 = vmatpush.msrb.mxu1 %v4964_v25  ;;  %v4987_v24 = vld [vmem:[%s9490_s4 + $0x398] sm:$0xff]  ;;  %v5237_v33 = vld [vmem:[%s9490_s4 + $0xb68] sm:$0xff]  ;;  %v5236_v25 = vld [vmem:[%s9490_s4 + $0xb60] sm:$0xff] }
 0x1ba   :  { %3241 = vmatpush.msra.mxu2 %v5168_v14  ;;  %2801 = vmatpush.msrb.mxu3 %v4988_v37  ;;  %v4986_v14 = vld [vmem:[%s9490_s4 + $0x390] sm:$0xff] }
 0x1bb   :  { %v2414_v48 = vadd.f32 %v2413_v34, %v2401_v62  ;;  %3161 = vmatpush.msra.mxu0 %v5136_v18  ;;  %2716 = vmatpush.msrb.mxu1 %v4963_v46  ;;  %v4954_v18 = vld [vmem:[%s9490_s4 + $0x290] sm:$0xff]  ;;  %v4985_v62 = vld [vmem:[%s9490_s4 + $0x388] sm:$0xff]  ;;  %v5204_v34 = vld [vmem:[%s9490_s4 + $0xa60] sm:$0xff] }
 0x1bc   :  { %3242 = vmatpush.msra.mxu2 %v5167_v35  ;;  %2802 = vmatpush.msrb.mxu3 %v4987_v24  ;;  %v4953_v35 = vld [vmem:[%s9490_s4 + $0x288] sm:$0xff]  ;;  %v5203_v46 = vld [vmem:[%s9490_s4 + $0xa58] sm:$0xff] }
 0x1bd   :  { %v2415_v30 = vadd.f32 %v2414_v48, %v2403_v7  ;;  %3162 = vmatpush.msra.mxu0 %v5135_v5  ;;  %2717 = vmatpush.msrb.mxu1 %v4962_v51  ;;  %v4984_v5 = vld [vmem:[%s9490_s4 + $0x380] sm:$0xff]  ;;  %v5234_v48 = vld [vmem:[%s9490_s4 + $0xb50] sm:$0xff] }
 0x1be   :  { %3243 = vmatpush.msra.mxu2 %v5166_v59  ;;  %2803 = vmatpush.msrb.mxu3 %v4986_v14  ;;  %v4952_v7 = vld [vmem:[%s9490_s4 + $0x280] sm:$0xff]  ;;  %v5202_v59 = vld [vmem:[%s9490_s4 + $0xa50] sm:$0xff] }
 0x1bf   :  { %v2416_v42 = vrot.slane %v2415_v30, 4  ;;  %3163 = vmatpush.msra.mxu0 %v5134_v44  ;;  %2718 = vmatpush.msrb.mxu1 %v4961_v53  ;;  %v5233_v44 = vld [vmem:[%s9490_s4 + $0xb48] sm:$0xff]  ;;  %v5231_v53 = vld [vmem:[%s9490_s4 + $0xb38] sm:$0xff]  ;;  %v5302_v14 = vld [vmem:[%s9490_s4 + $0xd70] sm:$0xff] }
 0x1c0   :  { %3244 = vmatpush.msra.mxu2 %v5165_v54  ;;  %2804 = vmatpush.msrb.mxu3 %v4985_v62  ;;  %v5232_v54 = vld [vmem:[%s9490_s4 + $0xb40] sm:$0xff]  ;;  %v5269_v62 = vld [vmem:[%s9490_s4 + $0xc68] sm:$0xff] }
 0x1c1   :  { %v2417_v20 = vadd.f32 %v2416_v42, %v2415_v30  ;;  %3164 = vmatpush.msra.mxu0 %v5133_v19  ;;  %2719 = vmatpush.msrb.mxu1 %v4960_v63  ;;  %v5201_v30 = vld [vmem:[%s9490_s4 + $0xa48] sm:$0xff]  ;;  %v5200_v19 = vld [vmem:[%s9490_s4 + $0xa40] sm:$0xff]  ;;  %v5198_v63 = vld [vmem:[%s9490_s4 + $0xa30] sm:$0xff] }
 0x1c2   :  { %3245 = vmatpush.msra.mxu2 %v5164_v32  ;;  %2805 = vmatpush.msrb.mxu3 %v4984_v5  ;;  %v5199_v32 = vld [vmem:[%s9490_s4 + $0xa38] sm:$0xff]  ;;  %v5268_v5 = vld [vmem:[%s9490_s4 + $0xc60] sm:$0xff] }
 0x1c3   :  { %v2418_v40 = vrot.slane %v2417_v20, 2  ;;  %3165 = vmatpush.msra.mxu0 %v5132_v15  ;;  %2720 = vmatpush.msrb.mxu1 %v4959_v47  ;;  %v5228_v47 = vld [vmem:[%s9490_s4 + $0xb20] sm:$0xff] }
 0x1c4   :  { %3246 = vmatpush.msra.mxu2 %v5163_v45 }
 0x1c5   :  { %v2419_v2 = vadd.f32 %v2418_v40, %v2417_v20  ;;  %3166 = vmatpush.msra.mxu0 %v5131_v36  ;;  %2721 = vmatpush.msrb.mxu1 %v4958_v1  ;;  %v5229_v20 = vld [vmem:[%s9490_s4 + $0xb28] sm:$0xff]  ;;  %v5680_v36 = vld [vmem:[%s9491_s2] sm:$0x3] }
 0x1c6   :  { %3247 = vmatpush.msra.mxu2 %v5162_v43  ;;  %v8623_v57 = vperm.slane %v5680_v36, 1  ;;  %v5681_v43 = vld [vmem:[%s9492_s3] sm:$0x3] }
 0x1c7   :  { %v2420_v22 = vrot.slane %v2419_v2, 1  ;;  %3167 = vmatpush.msra.mxu0 %v5130_v38  ;;  %2722 = vmatpush.msrb.mxu1 %v4957_v29  ;;  %v8631_v28 = vperm.slane %v5681_v43, 1  ;;  %v5196_v38 = vld [vmem:[%s9490_s4 + $0xa20] sm:$0xff]  ;;  %v5195_v29 = vld [vmem:[%s9490_s4 + $0xa18] sm:$0xff] }
 0x1c8   :  { %3248 = vmatpush.msra.mxu2 %v5161_v41  ;;  %v5056_v36 = vld [vmem:[%s9490_s4 + $0x5c0] sm:$0xff] }
 0x1c9   :  { %v2421_v60 = vadd.f32 %v2420_v22, %v2419_v2  ;;  %3168 = vmatpush.msra.mxu0 %v5129_v58  ;;  %2723 = vmatpush.msrb.mxu1 %v4956_v49  ;;  %v5227_v58 = vld [vmem:[%s9490_s4 + $0xb18] sm:$0xff]  ;;  %v5192_v49 = vld [vmem:[%s9490_s4 + $0xa00] sm:$0xff] }
 0x1ca   :  { %3249 = vmatpush.msra.mxu2 %v5160_v23  ;;  %v5024_v43 = vld [vmem:[%s9490_s4 + $0x4c0] sm:$0xff] }
 0x1cb   :  { %v2423_v56 = vmul.f32 %v2421_v60, %v7796_v9  ;;  %3250 = vmatmul.f32.vlgmr.msra.gmra.mxu2 %v3230_v50  ;;  %3169 = vmatpush.msra.mxu0 %v5128_v21  ;;  %v4955_v9 = vld [vmem:[%s9490_s4 + $0x298] sm:$0xff]  ;;  %v5225_v21 = vld [vmem:[%s9490_s4 + $0xb08] sm:$0xff] }
 0x1cc   :  { %3390 = vmatpush.msrb.mxu2 %v5239_v17  ;;  %3170 = vmatmul.f32.vlgmr.msra.gmra.mxu0 %v8510_v39  ;;  %v5193_v50 = vld [vmem:[%s9490_s4 + $0xa08] sm:$0xff]  ;;  %v5224_v17 = vld [vmem:[%s9490_s4 + $0xb00] sm:$0xff] }
 0x1cd   :  { %v2425_v27 = vadd.f32 1e-05, %v2423_v56  ;;  %3312 = vmatpush.msrb.mxu0 %v5207_v16  ;;  %2724 = vmatpush.msrb.mxu1 %v4955_v9  ;;  %v3386_v56 = vrot.slane %v8510_v39, 6  ;;  %v5271_v9 = vld [vmem:[%s9490_s4 + $0xc78] sm:$0xff] }
 0x1ce   :  { %3391 = vmatpush.msrb.mxu2 %v5238_v3  ;;  %v5303_v3 = vld [vmem:[%s9490_s4 + $0xd78] sm:$0xff] }
 0x1cf   :  { %5678 = vrsqrt.f32 %v2425_v27  ;;  %3313 = vmatpush.msrb.mxu0 %v5206_v8  ;;  %2725 = vmatpush.msrb.mxu1 %v4954_v18  ;;  %vm2442_vm8 = vweird.f32 %v2425_v27  ;;  %v3308_v8 = vrot.slane %v8510_v39, 4  ;;  %v5270_v39 = vld [vmem:[%s9490_s4 + $0xc70] sm:$0xff]  ;;  %v5301_v18 = vld [vmem:[%s9490_s4 + $0xd68] sm:$0xff] }
 0x1d0   :  { %3392 = vmatpush.msrb.mxu2 %v5237_v33  ;;  %v5063_v33 = vld [vmem:[%s9490_s4 + $0x5f8] sm:$0xff] }
 0x1d1   :  { %3314 = vmatpush.msrb.mxu0 %v5205_v13  ;;  %2726 = vmatpush.msrb.mxu1 %v4953_v35  ;;  %v5031_v13 = vld [vmem:[%s9490_s4 + $0x4f8] sm:$0xff]  ;;  %v5300_v35 = vld [vmem:[%s9490_s4 + $0xd60] sm:$0xff] }
 0x1d2   :  { %3393 = vmatpush.msrb.mxu2 %v5236_v25  ;;  %v5062_v25 = vld [vmem:[%s9490_s4 + $0x5f0] sm:$0xff] }
 0x1d3   :  { %3315 = vmatpush.msrb.mxu0 %v5204_v34  ;;  %2727 = vmatpush.msrb.mxu1 %v4952_v7  ;;  %v5030_v34 = vld [vmem:[%s9490_s4 + $0x4f0] sm:$0xff]  ;;  %v5299_v7 = vld [vmem:[%s9490_s4 + $0xd58] sm:$0xff] }
 0x1d4   :  { %3394 = vmatpush.msrb.mxu2 %v5235_v26  ;;  %v5061_v26 = vld [vmem:[%s9490_s4 + $0x5e8] sm:$0xff] }
 0x1d5   :  { %v5679_v12 = vpop.eup %5678  ;;  %3316 = vmatpush.msrb.mxu0 %v5203_v46  ;;  %v5029_v46 = vld [vmem:[%s9490_s4 + $0x4e8] sm:$0xff] }
 0x1d6   :  { %v2437_v51 = vmul.f32 %v5679_v12, %v2425_v27  ;;  %3395 = vmatpush.msrb.mxu2 %v5234_v48  ;;  %vm2443_vm7 = vweird.f32 %v5679_v12  ;;  %v5060_v48 = vld [vmem:[%s9490_s4 + $0x5e0] sm:$0xff] }
 0x1d7   :  { %3317 = vmatpush.msrb.mxu0 %v5202_v59  ;;  %vm2444_vm9 = vmor %vm2442_vm8, %vm2443_vm7  ;;  %v5267_v59 = vld [vmem:[%s9490_s4 + $0xc58] sm:$0xff] }
 0x1d8   :  { %v2438_v52 = vmul.f32 %v5679_v12, %v2437_v51  ;;  %3396 = vmatpush.msrb.mxu2 %v5233_v44  ;;  %v5298_v44 = vld [vmem:[%s9490_s4 + $0xd50] sm:$0xff]  ;;  %v5028_v51 = vld [vmem:[%s9490_s4 + $0x4e0] sm:$0xff] }
 0x1d9   :  { %3318 = vmatpush.msrb.mxu0 %v5201_v30  ;;  %v5059_v30 = vld [vmem:[%s9490_s4 + $0x5d8] sm:$0xff] }
 0x1da   :  { %v2439_v42 = vmul.f32 0.5, %v2438_v52  ;;  %3397 = vmatpush.msrb.mxu2 %v5232_v54  ;;  %v5266_v54 = vld [vmem:[%s9490_s4 + $0xc50] sm:$0xff]  ;;  %v5297_v52 = vld [vmem:[%s9490_s4 + $0xd48] sm:$0xff] }
 0x1db   :  { %3319 = vmatpush.msrb.mxu0 %v5200_v19 }
 0x1dc   :  { %v2440_v15 = vsub.f32 1.5, %v2439_v42  ;;  %3398 = vmatpush.msrb.mxu2 %v5231_v53  ;;  %v5027_v53 = vld [vmem:[%s9490_s4 + $0x4d8] sm:$0xff]  ;;  %v5058_v42 = vld [vmem:[%s9490_s4 + $0x5d0] sm:$0xff] }
 0x1dd   :  { %3320 = vmatpush.msrb.mxu0 %v5199_v32  ;;  %v5265_v32 = vld [vmem:[%s9490_s4 + $0xc48] sm:$0xff] }
 0x1de   :  { %v2441_v45 = vmul.f32 %v5679_v12, %v2440_v15  ;;  %3399 = vmatpush.msrb.mxu2 %v5230_v31  ;;  %v5296_v31 = vld [vmem:[%s9490_s4 + $0xd40] sm:$0xff]  ;;  %v5026_v15 = vld [vmem:[%s9490_s4 + $0x4d0] sm:$0xff] }
 0x1df   :  { %3321 = vmatpush.msrb.mxu0 %v5198_v63  ;;  %v5057_v63 = vld [vmem:[%s9490_s4 + $0x5c8] sm:$0xff] }
 0x1e0   :  { %v2445_v40 = vsel %vm2444_vm9, %v5679_v12, %v2441_v45  ;;  %3400 = vmatpush.msrb.mxu2 %v5229_v20  ;;  %v5264_v20 = vld [vmem:[%s9490_s4 + $0xc40] sm:$0xff]  ;;  %v5295_v45 = vld [vmem:[%s9490_s4 + $0xd38] sm:$0xff] }
 0x1e1   :  { %v2447_v1 = vmul.f32 %v2445_v40, %v8383_v11  ;;  %v8638_v2 = vmul.f32 %v2445_v40, %v8386_v4  ;;  %v2451_v41 = vmul.f32 %v2445_v40, %v8389_v10  ;;  %v2453_v0 = vmul.f32 %v2445_v40, %v8392_v61  ;;  %3322 = vmatpush.msrb.mxu0 %v5197_v6  ;;  %v5226_v4 = vld [vmem:[%s9490_s4 + $0xb10] sm:$0xff]  ;;  %v5025_v6 = vld [vmem:[%s9490_s4 + $0x4c8] sm:$0xff] }
 0x1e2   :  { %3401 = vmatpush.msrb.mxu2 %v5228_v47  ;;  %v5194_v61 = vld [vmem:[%s9490_s4 + $0xa10] sm:$0xff]  ;;  %v5263_v47 = vld [vmem:[%s9490_s4 + $0xc38] sm:$0xff] }
 0x1e3   :  { %v2464_v22 = vmul.f32 %v8623_v57, %v2451_v41  ;;  %v2466_v11 = vmul.f32 %v8623_v57, %v2453_v0  ;;  %3323 = vmatpush.msrb.mxu0 %v5196_v38  ;;  %v2460_v10 = vmul.f32 %v8623_v57, %v2447_v1  ;;  %v5294_v40 = vld [vmem:[%s9490_s4 + $0xd30] sm:$0xff]  ;;  %v5055_v38 = vld [vmem:[%s9490_s4 + $0x5b8] sm:$0xff]  ;;  %v5293_v41 = vld [vmem:[%s9490_s4 + $0xd28] sm:$0xff] }
 0x1e4   :  { %3402 = vmatpush.msrb.mxu2 %v5227_v58  ;;  %v5262_v1 = vld [vmem:[%s9490_s4 + $0xc30] sm:$0xff]  ;;  %v5023_v0 = vld [vmem:[%s9490_s4 + $0x4b8] sm:$0xff] }
 0x1e5   :  { %v8658_v23 = vadd.f32 %v8631_v28, %v2464_v22  ;;  %v8661_v37 = vadd.f32 %v8631_v28, %v2466_v11  ;;  %3324 = vmatpush.msrb.mxu0 %v5195_v29  ;;  %v2473_v60 = vadd.f32 %v8631_v28, %v2460_v10  ;;  %v5054_v58 = vld [vmem:[%s9490_s4 + $0x5b0] sm:$0xff]  ;;  %v2462_v29 = vmul.f32 %v8623_v57, %v8638_v2  ;;  %v5261_v22 = vld [vmem:[%s9490_s4 + $0xc28] sm:$0xff]  ;;  %v5292_v11 = vld [vmem:[%s9490_s4 + $0xd20] sm:$0xff] }
 0x1e6   :  { %3403 = vmatpush.msrb.mxu2 %v5226_v4  ;;  %v5022_v4 = vld [vmem:[%s9490_s4 + $0x4b0] sm:$0xff]  ;;  %v5053_v57 = vld [vmem:[%s9490_s4 + $0x5a8] sm:$0xff]  ;;  %v5260_v2 = vld [vmem:[%s9490_s4 + $0xc20] sm:$0xff] }
 0x1e7   :  { %3325 = vmatpush.msrb.mxu0 %v5194_v61  ;;  %vm2481_vm10 = vcmp.gt.f32.partialorder %v2473_v60, 0.0  ;;  %v2489_v16 = vmul.f32 0.2, %v2473_v60  ;;  %v5291_v10 = vld [vmem:[%s9490_s4 + $0xd18] sm:$0xff]  ;;  %v2494_v61 = vmul.f32 0.2, %v7961_v55 }
 0x1e8   :  { %3404 = vmatpush.msrb.mxu2 %v5225_v21  ;;  %v5021_v21 = vld [vmem:[%s9490_s4 + $0x4a8] sm:$0xff]  ;;  %vm2485_vm13 = vcmp.gt.f32.partialorder %v8658_v23, 0.0  ;;  %vm2487_vm14 = vcmp.gt.f32.partialorder %v8661_v37, 0.0 }
 0x1e9   :  { %3326 = vmatpush.msrb.mxu0 %v5193_v50  ;;  %v2497_v24 = vsel %vm2481_vm10, %v2473_v60, %v2489_v16  ;;  %v5052_v60 = vld [vmem:[%s9490_s4 + $0x5a0] sm:$0xff]  ;;  %v2475_v50 = vadd.f32 %v8631_v28, %v2462_v29  ;;  %v5290_v16 = vld [vmem:[%s9490_s4 + $0xd10] sm:$0xff]  ;;  %v5051_v28 = vld [vmem:[%s9490_s4 + $0x598] sm:$0xff] }
 0x1ea   :  { %3405 = vmatpush.msrb.mxu2 %v5224_v17  ;;  %v2572_v27 = vrot.slane %v2497_v24, 2  ;;  %2651 = vmatmul.f32.vlgmr.msra.gmra.mxu3 %v2497_v24  ;;  %v2767_v12 = vrot.slane %v2497_v24, 6  ;;  %v2689_v19 = vrot.slane %v2497_v24, 4  ;;  %v5259_v17 = vld [vmem:[%s9490_s4 + $0xc18] sm:$0xff]  ;;  %v8846_v24 = vsel %vm2486_vm11, %v7961_v55, %v2494_v61  ;;  %v5288_v55 = vld [vmem:[%s9490_s4 + $0xd00] sm:$0xff]  ;;  %v5326_v61 = vld [vmem:[%s9490_s4 + $0xe30] sm:$0xff] }
 0x1eb   :  { %3406 = vmatmul.f32.vlgmr.msrb.gmra.mxu2 %v3386_v56  ;;  %3327 = vmatpush.msrb.mxu0 %v5192_v49  ;;  %v5020_v49 = vld [vmem:[%s9490_s4 + $0x4a0] sm:$0xff]  ;;  %v5258_v56 = vld [vmem:[%s9490_s4 + $0xc10] sm:$0xff]  ;;  %vm2483_vm12 = vcmp.gt.f32.partialorder %v2475_v50, 0.0 }
 0x1ec   :  { %3544 = vmatpush.msra.mxu2 %v5303_v3  ;;  %3328 = vmatmul.f32.vlgmr.msrb.gmra.mxu0 %v3308_v8  ;;  %v5289_v3 = vld [vmem:[%s9490_s4 + $0xd08] sm:$0xff]  ;;  %v5019_v8 = vld [vmem:[%s9490_s4 + $0x498] sm:$0xff]  ;;  %v5120_v29 = vld [vmem:[%s9490_s4 + $0x7c0] sm:$0xff] }
 0x1ed   :  { %3464 = vmatpush.msra.mxu0 %v5271_v9  ;;  %2944 = vmatpush.msra.mxu3 %v5063_v33  ;;  %v5050_v9 = vld [vmem:[%s9490_s4 + $0x590] sm:$0xff]  ;;  %v2491_v33 = vmul.f32 0.2, %v2475_v50 }
 0x1ee   :  { %3545 = vmatpush.msra.mxu2 %v5302_v14  ;;  %2611 = vmatmul.f32.vlgmr.msra.gmra.mxu1 %v2572_v27  ;;  %v5257_v27 = vld [vmem:[%s9490_s4 + $0xc08] sm:$0xff]  ;;  %v5018_v14 = vld [vmem:[%s9490_s4 + $0x490] sm:$0xff] }
 0x1ef   :  { %3465 = vmatpush.msra.mxu0 %v5270_v39  ;;  %2864 = vmatpush.msra.mxu1 %v5031_v13  ;;  %v3540_v39 = vrot.slane %v8846_v24, 2  ;;  %v5367_v13 = vld [vmem:[%s9490_s4 + $0xf78] sm:$0xff] }
 0x1f0   :  { %3546 = vmatpush.msra.mxu2 %v5301_v18  ;;  %2945 = vmatpush.msra.mxu3 %v5062_v25  ;;  %v5049_v18 = vld [vmem:[%s9490_s4 + $0x588] sm:$0xff]  ;;  %v5256_v25 = vld [vmem:[%s9490_s4 + $0xc00] sm:$0xff] }
 0x1f1   :  { %3466 = vmatpush.msra.mxu0 %v5269_v62  ;;  %2865 = vmatpush.msra.mxu1 %v5030_v34  ;;  %v5017_v62 = vld [vmem:[%s9490_s4 + $0x488] sm:$0xff]  ;;  %v5366_v34 = vld [vmem:[%s9490_s4 + $0xf70] sm:$0xff] }
 0x1f2   :  { %3547 = vmatpush.msra.mxu2 %v5300_v35  ;;  %2946 = vmatpush.msra.mxu3 %v5061_v26  ;;  %v8879_v35 = vsel %vm2483_vm12, %v2475_v50, %v2491_v33  ;;  %v5335_v26 = vld [vmem:[%s9490_s4 + $0xe78] sm:$0xff]  ;;  %v5353_v33 = vld [vmem:[%s9490_s4 + $0xf08] sm:$0xff] }
 0x1f3   :  { %3467 = vmatpush.msra.mxu0 %v5268_v5  ;;  %2866 = vmatpush.msra.mxu1 %v5029_v46  ;;  %v5048_v5 = vld [vmem:[%s9490_s4 + $0x580] sm:$0xff]  ;;  %v5365_v46 = vld [vmem:[%s9490_s4 + $0xf68] sm:$0xff]  ;;  %v5087_v50 = vld [vmem:[%s9490_s4 + $0x6b8] sm:$0xff] }
 0x1f4   :  { %3548 = vmatpush.msra.mxu2 %v5299_v7  ;;  %2947 = vmatpush.msra.mxu3 %v5060_v48  ;;  %v2921_v7 = vrot.slane %v8879_v35, 2  ;;  %v5127_v48 = vld [vmem:[%s9490_s4 + $0x7f8] sm:$0xff] }
 0x1f5   :  { %3468 = vmatpush.msra.mxu0 %v5267_v59  ;;  %2806 = vmatmul.f32.vlgmr.msrb.gmra.mxu3 %v2767_v12  ;;  %v5334_v59 = vld [vmem:[%s9490_s4 + $0xe70] sm:$0xff]  ;;  %v5016_v12 = vld [vmem:[%s9490_s4 + $0x480] sm:$0xff] }
 0x1f6   :  { %3549 = vmatpush.msra.mxu2 %v5298_v44  ;;  %2867 = vmatpush.msra.mxu1 %v5028_v51  ;;  %v5364_v44 = vld [vmem:[%s9490_s4 + $0xf60] sm:$0xff]  ;;  %v5126_v51 = vld [vmem:[%s9490_s4 + $0x7f0] sm:$0xff] }
 0x1f7   :  { %2948 = vmatpush.msra.mxu3 %v5059_v30  ;;  %3469 = vmatpush.msra.mxu0 %v5266_v54  ;;  %v5095_v30 = vld [vmem:[%s9490_s4 + $0x6f8] sm:$0xff]  ;;  %v5333_v54 = vld [vmem:[%s9490_s4 + $0xe68] sm:$0xff] }
 0x1f8   :  { %3550 = vmatpush.msra.mxu2 %v5297_v52  ;;  %2728 = vmatmul.f32.vlgmr.msrb.gmra.mxu1 %v2689_v19  ;;  %v5125_v52 = vld [vmem:[%s9490_s4 + $0x7e8] sm:$0xff]  ;;  %v5363_v19 = vld [vmem:[%s9490_s4 + $0xf58] sm:$0xff] }
 0x1f9   :  { %2868 = vmatpush.msra.mxu1 %v5027_v53  ;;  %2949 = vmatpush.msra.mxu3 %v5058_v42  ;;  %v5094_v53 = vld [vmem:[%s9490_s4 + $0x6f0] sm:$0xff]  ;;  %v5332_v42 = vld [vmem:[%s9490_s4 + $0xe60] sm:$0xff] }
 0x1fa   :  { %3470 = vmatpush.msra.mxu0 %v5265_v32  ;;  %3551 = vmatpush.msra.mxu2 %v5296_v31  ;;  %v5124_v32 = vld [vmem:[%s9490_s4 + $0x7e0] sm:$0xff]  ;;  %v5362_v31 = vld [vmem:[%s9490_s4 + $0xf50] sm:$0xff] }
 0x1fb   :  { %2869 = vmatpush.msra.mxu1 %v5026_v15  ;;  %2950 = vmatpush.msra.mxu3 %v5057_v63  ;;  %v5093_v15 = vld [vmem:[%s9490_s4 + $0x6e8] sm:$0xff]  ;;  %v5331_v63 = vld [vmem:[%s9490_s4 + $0xe58] sm:$0xff] }
 0x1fc   :  { %3471 = vmatpush.msra.mxu0 %v5264_v20  ;;  %3552 = vmatpush.msra.mxu2 %v5295_v45  ;;  %v5123_v20 = vld [vmem:[%s9490_s4 + $0x7d8] sm:$0xff]  ;;  %v5361_v45 = vld [vmem:[%s9490_s4 + $0xf48] sm:$0xff] }
 0x1fd   :  { %2870 = vmatpush.msra.mxu1 %v5025_v6  ;;  %2951 = vmatpush.msra.mxu3 %v5056_v36  ;;  %v5092_v6 = vld [vmem:[%s9490_s4 + $0x6e0] sm:$0xff]  ;;  %v5330_v36 = vld [vmem:[%s9490_s4 + $0xe50] sm:$0xff] }
 0x1fe   :  { %3472 = vmatpush.msra.mxu0 %v5263_v47  ;;  %3553 = vmatpush.msra.mxu2 %v5294_v40  ;;  %v5122_v47 = vld [vmem:[%s9490_s4 + $0x7d0] sm:$0xff]  ;;  %v5360_v40 = vld [vmem:[%s9490_s4 + $0xf40] sm:$0xff] }
 0x1ff   :  { %2871 = vmatpush.msra.mxu1 %v5024_v43  ;;  %2952 = vmatpush.msra.mxu3 %v5055_v38  ;;  %v5091_v43 = vld [vmem:[%s9490_s4 + $0x6d8] sm:$0xff]  ;;  %v5329_v38 = vld [vmem:[%s9490_s4 + $0xe48] sm:$0xff] }
 0x200   :  { %3473 = vmatpush.msra.mxu0 %v5262_v1  ;;  %3554 = vmatpush.msra.mxu2 %v5293_v41  ;;  %v5121_v1 = vld [vmem:[%s9490_s4 + $0x7c8] sm:$0xff]  ;;  %v5359_v41 = vld [vmem:[%s9490_s4 + $0xf38] sm:$0xff] }
 0x201   :  { %2872 = vmatpush.msra.mxu1 %v5023_v0  ;;  %2953 = vmatpush.msra.mxu3 %v5054_v58  ;;  %v5090_v0 = vld [vmem:[%s9490_s4 + $0x6d0] sm:$0xff]  ;;  %v5328_v58 = vld [vmem:[%s9490_s4 + $0xe40] sm:$0xff] }
 0x202   :  { %3474 = vmatpush.msra.mxu0 %v5261_v22  ;;  %3555 = vmatpush.msra.mxu2 %v5292_v11  ;;  %v5358_v22 = vld [vmem:[%s9490_s4 + $0xf30] sm:$0xff]  ;;  %v5089_v11 = vld [vmem:[%s9490_s4 + $0x6c8] sm:$0xff] }
 0x203   :  { %2873 = vmatpush.msra.mxu1 %v5022_v4  ;;  %2954 = vmatpush.msra.mxu3 %v5053_v57  ;;  %v5327_v4 = vld [vmem:[%s9490_s4 + $0xe38] sm:$0xff] }
 0x204   :  { %3475 = vmatpush.msra.mxu0 %v5260_v2  ;;  %3556 = vmatpush.msra.mxu2 %v5291_v10  ;;  %v5119_v57 = vld [vmem:[%s9490_s4 + $0x7b8] sm:$0xff]  ;;  %v5357_v2 = vld [vmem:[%s9490_s4 + $0xf28] sm:$0xff]  ;;  %v5088_v10 = vld [vmem:[%s9490_s4 + $0x6c0] sm:$0xff] }
 0x205   :  { %2874 = vmatpush.msra.mxu1 %v5021_v21  ;;  %2955 = vmatpush.msra.mxu3 %v5052_v60  ;;  %v5118_v21 = vld [vmem:[%s9490_s4 + $0x7b0] sm:$0xff]  ;;  %v5356_v60 = vld [vmem:[%s9490_s4 + $0xf20] sm:$0xff] }
 0x206   :  { %3476 = vmatpush.msra.mxu0 %v5259_v17  ;;  %3557 = vmatpush.msra.mxu2 %v5290_v16  ;;  %v5325_v17 = vld [vmem:[%s9490_s4 + $0xe28] sm:$0xff] }
 0x207   :  { %2875 = vmatpush.msra.mxu1 %v5020_v49  ;;  %2956 = vmatpush.msra.mxu3 %v5051_v28  ;;  %v5117_v16 = vld [vmem:[%s9490_s4 + $0x7a8] sm:$0xff]  ;;  %v5355_v49 = vld [vmem:[%s9490_s4 + $0xf18] sm:$0xff]  ;;  %v5086_v28 = vld [vmem:[%s9490_s4 + $0x6b0] sm:$0xff] }
 0x208   :  { %3477 = vmatpush.msra.mxu0 %v5258_v56  ;;  %3558 = vmatpush.msra.mxu2 %v5289_v3  ;;  %v5324_v56 = vld [vmem:[%s9490_s4 + $0xe20] sm:$0xff] }
 0x209   :  { %2876 = vmatpush.msra.mxu1 %v5019_v8  ;;  %2957 = vmatpush.msra.mxu3 %v5050_v9  ;;  %v5116_v3 = vld [vmem:[%s9490_s4 + $0x7a0] sm:$0xff]  ;;  %v5354_v8 = vld [vmem:[%s9490_s4 + $0xf10] sm:$0xff]  ;;  %v5085_v9 = vld [vmem:[%s9490_s4 + $0x6a8] sm:$0xff] }
 0x20a   :  { %3478 = vmatpush.msra.mxu0 %v5257_v27  ;;  %3559 = vmatpush.msra.mxu2 %v5288_v55  ;;  %v5323_v27 = vld [vmem:[%s9490_s4 + $0xe18] sm:$0xff] }
 0x20b   :  { %3560 = vmatmul.f32.vlgmr.msra.gmra.mxu2 %v3540_v39  ;;  %2877 = vmatpush.msra.mxu1 %v5018_v14  ;;  %v5115_v55 = vld [vmem:[%s9490_s4 + $0x798] sm:$0xff]  ;;  %v5084_v14 = vld [vmem:[%s9490_s4 + $0x6a0] sm:$0xff]  ;;  %v5322_v39 = vld [vmem:[%s9490_s4 + $0xe10] sm:$0xff] }
 0x20c   :  { %3700 = vmatpush.msrb.mxu2 %v5367_v13  ;;  %2958 = vmatpush.msra.mxu3 %v5049_v18  ;;  %v5114_v13 = vld [vmem:[%s9490_s4 + $0x790] sm:$0xff]  ;;  %v5352_v18 = vld [vmem:[%s9490_s4 + $0xf00] sm:$0xff] }
 0x20d   :  { %3479 = vmatpush.msra.mxu0 %v5256_v25  ;;  %2878 = vmatpush.msra.mxu1 %v5017_v62  ;;  %v5083_v25 = vld [vmem:[%s9490_s4 + $0x698] sm:$0xff]  ;;  %v5321_v62 = vld [vmem:[%s9490_s4 + $0xe08] sm:$0xff] }
 0x20e   :  { %3480 = vmatmul.f32.vlgmr.msra.gmra.mxu0 %v8846_v24  ;;  %3701 = vmatpush.msrb.mxu2 %v5366_v34  ;;  %v5113_v34 = vld [vmem:[%s9490_s4 + $0x788] sm:$0xff] }
 0x20f   :  { %3622 = vmatpush.msrb.mxu0 %v5335_v26  ;;  %2959 = vmatpush.msra.mxu3 %v5048_v5  ;;  %v3696_v26 = vrot.slane %v8846_v24, 6  ;;  %v5082_v5 = vld [vmem:[%s9490_s4 + $0x690] sm:$0xff] }
 0x210   :  { %2960 = vmatmul.f32.vlgmr.msra.gmra.mxu3 %v2921_v7  ;;  %3702 = vmatpush.msrb.mxu2 %v5365_v46  ;;  %v5320_v46 = vld [vmem:[%s9490_s4 + $0xe00] sm:$0xff] }
 0x211   :  { %3100 = vmatpush.msrb.mxu3 %v5127_v48  ;;  %3623 = vmatpush.msrb.mxu0 %v5334_v59  ;;  %v5112_v7 = vld [vmem:[%s9490_s4 + $0x780] sm:$0xff]  ;;  %v3618_v48 = vrot.slane %v8846_v24, 4  ;;  %v5081_v59 = vld [vmem:[%s9490_s4 + $0x688] sm:$0xff]  ;;  %v5190_v24 = vld [vmem:[%s9490_s4 + $0x9f0] sm:$0xff] }
 0x212   :  { %2879 = vmatpush.msra.mxu1 %v5016_v12  ;;  %3703 = vmatpush.msrb.mxu2 %v5364_v44  ;;  %v3077_v12 = vrot.slane %v8879_v35, 6  ;;  %v5191_v44 = vld [vmem:[%s9490_s4 + $0x9f8] sm:$0xff] }
 0x213   :  { %2880 = vmatmul.f32.vlgmr.msra.gmra.mxu1 %v8879_v35  ;;  %3101 = vmatpush.msrb.mxu3 %v5126_v51  ;;  %v5080_v51 = vld [vmem:[%s9490_s4 + $0x680] sm:$0xff] }
 0x214   :  { %3022 = vmatpush.msrb.mxu1 %v5095_v30  ;;  %3624 = vmatpush.msrb.mxu0 %v5333_v54  ;;  %v2999_v30 = vrot.slane %v8879_v35, 4  ;;  %v5159_v54 = vld [vmem:[%s9490_s4 + $0x8f8] sm:$0xff]  ;;  %v5188_v35 = vld [vmem:[%s9490_s4 + $0x9e0] sm:$0xff] }
 0x215   :  { %3102 = vmatpush.msrb.mxu3 %v5125_v52  ;;  %3704 = vmatpush.msrb.mxu2 %v5363_v19  ;;  %v5189_v52 = vld [vmem:[%s9490_s4 + $0x9e8] sm:$0xff]  ;;  %v5158_v19 = vld [vmem:[%s9490_s4 + $0x8f0] sm:$0xff] }
 0x216   :  { %3023 = vmatpush.msrb.mxu1 %v5094_v53  ;;  %3625 = vmatpush.msrb.mxu0 %v5332_v42  ;;  %v5157_v53 = vld [vmem:[%s9490_s4 + $0x8e8] sm:$0xff]  ;;  %v5187_v42 = vld [vmem:[%s9490_s4 + $0x9d8] sm:$0xff] }
 0x217   :  { %3103 = vmatpush.msrb.mxu3 %v5124_v32  ;;  %3705 = vmatpush.msrb.mxu2 %v5362_v31  ;;  %v5156_v32 = vld [vmem:[%s9490_s4 + $0x8e0] sm:$0xff]  ;;  %v5186_v31 = vld [vmem:[%s9490_s4 + $0x9d0] sm:$0xff] }
 0x218   :  { %3024 = vmatpush.msrb.mxu1 %v5093_v15  ;;  %3626 = vmatpush.msrb.mxu0 %v5331_v63  ;;  %v5155_v15 = vld [vmem:[%s9490_s4 + $0x8d8] sm:$0xff]  ;;  %v5185_v63 = vld [vmem:[%s9490_s4 + $0x9c8] sm:$0xff] }
 0x219   :  { %3104 = vmatpush.msrb.mxu3 %v5123_v20  ;;  %3706 = vmatpush.msrb.mxu2 %v5361_v45  ;;  %v5154_v20 = vld [vmem:[%s9490_s4 + $0x8d0] sm:$0xff]  ;;  %v5184_v45 = vld [vmem:[%s9490_s4 + $0x9c0] sm:$0xff] }
 0x21a   :  { %3025 = vmatpush.msrb.mxu1 %v5092_v6  ;;  %3627 = vmatpush.msrb.mxu0 %v5330_v36  ;;  %v5153_v6 = vld [vmem:[%s9490_s4 + $0x8c8] sm:$0xff]  ;;  %v5183_v36 = vld [vmem:[%s9490_s4 + $0x9b8] sm:$0xff] }
 0x21b   :  { %3105 = vmatpush.msrb.mxu3 %v5122_v47  ;;  %3707 = vmatpush.msrb.mxu2 %v5360_v40  ;;  %v5152_v47 = vld [vmem:[%s9490_s4 + $0x8c0] sm:$0xff]  ;;  %v5182_v40 = vld [vmem:[%s9490_s4 + $0x9b0] sm:$0xff] }
 0x21c   :  { %3026 = vmatpush.msrb.mxu1 %v5091_v43  ;;  %3628 = vmatpush.msrb.mxu0 %v5329_v38  ;;  %v5151_v43 = vld [vmem:[%s9490_s4 + $0x8b8] sm:$0xff]  ;;  %v5181_v38 = vld [vmem:[%s9490_s4 + $0x9a8] sm:$0xff] }
 0x21d   :  { %3106 = vmatpush.msrb.mxu3 %v5121_v1  ;;  %3708 = vmatpush.msrb.mxu2 %v5359_v41  ;;  %v5150_v1 = vld [vmem:[%s9490_s4 + $0x8b0] sm:$0xff]  ;;  %v5180_v41 = vld [vmem:[%s9490_s4 + $0x9a0] sm:$0xff] }
 0x21e   :  { %3027 = vmatpush.msrb.mxu1 %v5090_v0  ;;  %3629 = vmatpush.msrb.mxu0 %v5328_v58  ;;  %v5149_v0 = vld [vmem:[%s9490_s4 + $0x8a8] sm:$0xff]  ;;  %v5179_v58 = vld [vmem:[%s9490_s4 + $0x998] sm:$0xff] }
 0x21f   :  { %3107 = vmatpush.msrb.mxu3 %v5120_v29  ;;  %3709 = vmatpush.msrb.mxu2 %v5358_v22  ;;  %v5148_v29 = vld [vmem:[%s9490_s4 + $0x8a0] sm:$0xff]  ;;  %v2493_v22 = vmul.f32 0.2, %v8658_v23 }
 0x220   :  { %3028 = vmatpush.msrb.mxu1 %v5089_v11  ;;  %3630 = vmatpush.msrb.mxu0 %v5327_v4  ;;  %v5178_v11 = vld [vmem:[%s9490_s4 + $0x990] sm:$0xff]  ;;  %v5147_v4 = vld [vmem:[%s9490_s4 + $0x898] sm:$0xff] }
 0x221   :  { %3108 = vmatpush.msrb.mxu3 %v5119_v57  ;;  %3710 = vmatpush.msrb.mxu2 %v5357_v2  ;;  %v5177_v57 = vld [vmem:[%s9490_s4 + $0x988] sm:$0xff]  ;;  %v5146_v2 = vld [vmem:[%s9490_s4 + $0x890] sm:$0xff] }
 0x222   :  { %3029 = vmatpush.msrb.mxu1 %v5088_v10  ;;  %3631 = vmatpush.msrb.mxu0 %v5326_v61  ;;  %v9170_v10 = vsel %vm2485_vm13, %v8658_v23, %v2493_v22  ;;  %v5176_v61 = vld [vmem:[%s9490_s4 + $0x980] sm:$0xff]  ;;  %v5309_v22 = vld [vmem:[%s9490_s4 + $0xda8] sm:$0xff] }
 0x223   :  { %3109 = vmatpush.msrb.mxu3 %v5118_v21  ;;  %3711 = vmatpush.msrb.mxu2 %v5356_v60  ;;  %v5145_v21 = vld [vmem:[%s9490_s4 + $0x888] sm:$0xff]  ;;  %v3231_v60 = vrot.slane %v9170_v10, 2  ;;  %v5144_v23 = vld [vmem:[%s9490_s4 + $0x880] sm:$0xff] }
 0x224   :  { %3030 = vmatpush.msrb.mxu1 %v5087_v50  ;;  %3632 = vmatpush.msrb.mxu0 %v5325_v17  ;;  %v5255_v50 = vld [vmem:[%s9490_s4 + $0xbf8] sm:$0xff]  ;;  %v5254_v17 = vld [vmem:[%s9490_s4 + $0xbf0] sm:$0xff] }
 0x225   :  { %3110 = vmatpush.msrb.mxu3 %v5117_v16  ;;  %3712 = vmatpush.msrb.mxu2 %v5355_v49  ;;  %v5223_v16 = vld [vmem:[%s9490_s4 + $0xaf8] sm:$0xff]  ;;  %v5253_v49 = vld [vmem:[%s9490_s4 + $0xbe8] sm:$0xff] }
 0x226   :  { %3031 = vmatpush.msrb.mxu1 %v5086_v28  ;;  %3633 = vmatpush.msrb.mxu0 %v5324_v56  ;;  %v5222_v28 = vld [vmem:[%s9490_s4 + $0xaf0] sm:$0xff]  ;;  %v5252_v56 = vld [vmem:[%s9490_s4 + $0xbe0] sm:$0xff] }
 0x227   :  { %3111 = vmatpush.msrb.mxu3 %v5116_v3  ;;  %3713 = vmatpush.msrb.mxu2 %v5354_v8  ;;  %v5221_v3 = vld [vmem:[%s9490_s4 + $0xae8] sm:$0xff]  ;;  %v5251_v8 = vld [vmem:[%s9490_s4 + $0xbd8] sm:$0xff] }
 0x228   :  { %3032 = vmatpush.msrb.mxu1 %v5085_v9  ;;  %3634 = vmatpush.msrb.mxu0 %v5323_v27  ;;  %v5220_v9 = vld [vmem:[%s9490_s4 + $0xae0] sm:$0xff]  ;;  %v5250_v27 = vld [vmem:[%s9490_s4 + $0xbd0] sm:$0xff] }
 0x229   :  { %3112 = vmatpush.msrb.mxu3 %v5115_v55  ;;  %3714 = vmatpush.msrb.mxu2 %v5353_v33  ;;  %v5219_v55 = vld [vmem:[%s9490_s4 + $0xad8] sm:$0xff]  ;;  %v5249_v33 = vld [vmem:[%s9490_s4 + $0xbc8] sm:$0xff] }
 0x22a   :  { %3033 = vmatpush.msrb.mxu1 %v5084_v14  ;;  %3635 = vmatpush.msrb.mxu0 %v5322_v39  ;;  %v5218_v14 = vld [vmem:[%s9490_s4 + $0xad0] sm:$0xff]  ;;  %v5248_v39 = vld [vmem:[%s9490_s4 + $0xbc0] sm:$0xff] }
 0x22b   :  { %3113 = vmatpush.msrb.mxu3 %v5114_v13  ;;  %3715 = vmatpush.msrb.mxu2 %v5352_v18  ;;  %v5217_v13 = vld [vmem:[%s9490_s4 + $0xac8] sm:$0xff]  ;;  %v5247_v18 = vld [vmem:[%s9490_s4 + $0xbb8] sm:$0xff] }
 0x22c   :  { %3034 = vmatpush.msrb.mxu1 %v5083_v25  ;;  %3636 = vmatpush.msrb.mxu0 %v5321_v62  ;;  %v5216_v25 = vld [vmem:[%s9490_s4 + $0xac0] sm:$0xff]  ;;  %v5246_v62 = vld [vmem:[%s9490_s4 + $0xbb0] sm:$0xff] }
 0x22d   :  { %3716 = vmatmul.f32.vlgmr.msrb.gmra.mxu2 %v3696_v26  ;;  %3114 = vmatpush.msrb.mxu3 %v5113_v34  ;;  %v5215_v34 = vld [vmem:[%s9490_s4 + $0xab8] sm:$0xff]  ;;  %v5245_v26 = vld [vmem:[%s9490_s4 + $0xba8] sm:$0xff] }
 0x22e   :  { %3035 = vmatpush.msrb.mxu1 %v5082_v5  ;;  %3637 = vmatpush.msrb.mxu0 %v5320_v46  ;;  %v5214_v5 = vld [vmem:[%s9490_s4 + $0xab0] sm:$0xff]  ;;  %v5244_v46 = vld [vmem:[%s9490_s4 + $0xba0] sm:$0xff] }
 0x22f   :  { %3638 = vmatmul.f32.vlgmr.msrb.gmra.mxu0 %v3618_v48  ;;  %3115 = vmatpush.msrb.mxu3 %v5112_v7  ;;  %v5213_v7 = vld [vmem:[%s9490_s4 + $0xaa8] sm:$0xff]  ;;  %v5243_v48 = vld [vmem:[%s9490_s4 + $0xb98] sm:$0xff] }
 0x230   :  { %3036 = vmatpush.msrb.mxu1 %v5081_v59  ;;  %3116 = vmatmul.f32.vlgmr.msrb.gmra.mxu3 %v3077_v12  ;;  %v5212_v59 = vld [vmem:[%s9490_s4 + $0xaa0] sm:$0xff]  ;;  %v5242_v12 = vld [vmem:[%s9490_s4 + $0xb90] sm:$0xff] }
 0x231   :  { %3254 = vmatpush.msra.mxu3 %v5191_v44  ;;  %v5211_v44 = vld [vmem:[%s9490_s4 + $0xa98] sm:$0xff] }
 0x232   :  { %3037 = vmatpush.msrb.mxu1 %v5080_v51  ;;  %v5241_v51 = vld [vmem:[%s9490_s4 + $0xb88] sm:$0xff] }
 0x233   :  { %3038 = vmatmul.f32.vlgmr.msrb.gmra.mxu1 %v2999_v30  ;;  %3255 = vmatpush.msra.mxu3 %v5190_v24  ;;  %v5210_v24 = vld [vmem:[%s9490_s4 + $0xa90] sm:$0xff]  ;;  %v5240_v30 = vld [vmem:[%s9490_s4 + $0xb80] sm:$0xff] }
 0x234   :  { %3174 = vmatpush.msra.mxu1 %v5159_v54  ;;  %v5209_v54 = vld [vmem:[%s9490_s4 + $0xa88] sm:$0xff] }
 0x235   :  { %3256 = vmatpush.msra.mxu3 %v5189_v52  ;;  %v3387_v52 = vrot.slane %v9170_v10, 6 }
 0x236   :  { %3175 = vmatpush.msra.mxu1 %v5158_v19  ;;  %v5319_v19 = vld [vmem:[%s9490_s4 + $0xdf8] sm:$0xff] }
 0x237   :  { %3257 = vmatpush.msra.mxu3 %v5188_v35  ;;  %v5208_v35 = vld [vmem:[%s9490_s4 + $0xa80] sm:$0xff] }
 0x238   :  { %3176 = vmatpush.msra.mxu1 %v5157_v53  ;;  %v5318_v53 = vld [vmem:[%s9490_s4 + $0xdf0] sm:$0xff] }
 0x239   :  { %3258 = vmatpush.msra.mxu3 %v5187_v42  ;;  %v3309_v42 = vrot.slane %v9170_v10, 4 }
 0x23a   :  { %3177 = vmatpush.msra.mxu1 %v5156_v32  ;;  %v5287_v32 = vld [vmem:[%s9490_s4 + $0xcf8] sm:$0xff] }
 0x23b   :  { %3259 = vmatpush.msra.mxu3 %v5186_v31  ;;  %v5317_v31 = vld [vmem:[%s9490_s4 + $0xde8] sm:$0xff] }
 0x23c   :  { %3178 = vmatpush.msra.mxu1 %v5155_v15  ;;  %v5286_v15 = vld [vmem:[%s9490_s4 + $0xcf0] sm:$0xff] }
 0x23d   :  { %3260 = vmatpush.msra.mxu3 %v5185_v63  ;;  %v5316_v63 = vld [vmem:[%s9490_s4 + $0xde0] sm:$0xff] }
 0x23e   :  { %3179 = vmatpush.msra.mxu1 %v5154_v20  ;;  %v5285_v20 = vld [vmem:[%s9490_s4 + $0xce8] sm:$0xff] }
 0x23f   :  { %3261 = vmatpush.msra.mxu3 %v5184_v45  ;;  %v5315_v45 = vld [vmem:[%s9490_s4 + $0xdd8] sm:$0xff] }
 0x240   :  { %3180 = vmatpush.msra.mxu1 %v5153_v6  ;;  %v5284_v6 = vld [vmem:[%s9490_s4 + $0xce0] sm:$0xff] }
 0x241   :  { %3262 = vmatpush.msra.mxu3 %v5183_v36  ;;  %v5314_v36 = vld [vmem:[%s9490_s4 + $0xdd0] sm:$0xff] }
 0x242   :  { %3181 = vmatpush.msra.mxu1 %v5152_v47  ;;  %v5283_v47 = vld [vmem:[%s9490_s4 + $0xcd8] sm:$0xff] }
 0x243   :  { %3263 = vmatpush.msra.mxu3 %v5182_v40  ;;  %v5313_v40 = vld [vmem:[%s9490_s4 + $0xdc8] sm:$0xff] }
 0x244   :  { %3182 = vmatpush.msra.mxu1 %v5151_v43  ;;  %v5282_v43 = vld [vmem:[%s9490_s4 + $0xcd0] sm:$0xff] }
 0x245   :  { %3264 = vmatpush.msra.mxu3 %v5181_v38  ;;  %v5312_v38 = vld [vmem:[%s9490_s4 + $0xdc0] sm:$0xff] }
 0x246   :  { %3183 = vmatpush.msra.mxu1 %v5150_v1  ;;  %v5281_v1 = vld [vmem:[%s9490_s4 + $0xcc8] sm:$0xff] }
 0x247   :  { %3265 = vmatpush.msra.mxu3 %v5180_v41  ;;  %v5311_v41 = vld [vmem:[%s9490_s4 + $0xdb8] sm:$0xff] }
 0x248   :  { %3184 = vmatpush.msra.mxu1 %v5149_v0  ;;  %v5280_v0 = vld [vmem:[%s9490_s4 + $0xcc0] sm:$0xff] }
 0x249   :  { %3266 = vmatpush.msra.mxu3 %v5179_v58  ;;  %v5310_v58 = vld [vmem:[%s9490_s4 + $0xdb0] sm:$0xff] }
 0x24a   :  { %3185 = vmatpush.msra.mxu1 %v5148_v29  ;;  %v5279_v29 = vld [vmem:[%s9490_s4 + $0xcb8] sm:$0xff] }
 0x24b   :  { %3267 = vmatpush.msra.mxu3 %v5178_v11  ;;  %v5278_v11 = vld [vmem:[%s9490_s4 + $0xcb0] sm:$0xff] }
 0x24c   :  { %3186 = vmatpush.msra.mxu1 %v5147_v4  ;;  %v5308_v4 = vld [vmem:[%s9490_s4 + $0xda0] sm:$0xff] }
 0x24d   :  { %3268 = vmatpush.msra.mxu3 %v5177_v57  ;;  %v5277_v57 = vld [vmem:[%s9490_s4 + $0xca8] sm:$0xff] }
 0x24e   :  { %3187 = vmatpush.msra.mxu1 %v5146_v2  ;;  %v5307_v2 = vld [vmem:[%s9490_s4 + $0xd98] sm:$0xff] }
 0x24f   :  { %3269 = vmatpush.msra.mxu3 %v5176_v61  ;;  %v5276_v61 = vld [vmem:[%s9490_s4 + $0xca0] sm:$0xff] }
 0x250   :  { %3188 = vmatpush.msra.mxu1 %v5145_v21  ;;  %3270 = vmatmul.f32.vlgmr.msra.gmra.mxu3 %v3231_v60  ;;  %v5306_v21 = vld [vmem:[%s9490_s4 + $0xd90] sm:$0xff]  ;;  %v5275_v60 = vld [vmem:[%s9490_s4 + $0xc98] sm:$0xff] }
 0x251   :  { %3410 = vmatpush.msrb.mxu3 %v5255_v50  ;;  %v5305_v50 = vld [vmem:[%s9490_s4 + $0xd88] sm:$0xff] }
 0x252   :  { %3189 = vmatpush.msra.mxu1 %v5144_v23 }
 0x253   :  { %3190 = vmatmul.f32.vlgmr.msra.gmra.mxu1 %v9170_v10  ;;  %3411 = vmatpush.msrb.mxu3 %v5254_v17  ;;  %v2495_v10 = vmul.f32 0.2, %v8661_v37  ;;  %v5274_v17 = vld [vmem:[%s9490_s4 + $0xc90] sm:$0xff] }
 0x254   :  { %3332 = vmatpush.msrb.mxu1 %v5223_v16  ;;  %v5304_v16 = vld [vmem:[%s9490_s4 + $0xd80] sm:$0xff] }
 0x255   :  { %3412 = vmatpush.msrb.mxu3 %v5253_v49  ;;  %v9368_v23 = vsel %vm2487_vm14, %v8661_v37, %v2495_v10  ;;  %v5273_v49 = vld [vmem:[%s9490_s4 + $0xc88] sm:$0xff]  ;;  %v5383_v37 = vld [vmem:[%s9490_s4 + $0xff8] sm:$0xff] }
 0x256   :  { %3333 = vmatpush.msrb.mxu1 %v5222_v28  ;;  %v3541_v28 = vrot.slane %v9368_v23, 2 }
 0x257   :  { %3413 = vmatpush.msrb.mxu3 %v5252_v56  ;;  %v5272_v56 = vld [vmem:[%s9490_s4 + $0xc80] sm:$0xff] }
 0x258   :  { %3334 = vmatpush.msrb.mxu1 %v5221_v3  ;;  %v5382_v3 = vld [vmem:[%s9490_s4 + $0xff0] sm:$0xff] }
 0x259   :  { %3414 = vmatpush.msrb.mxu3 %v5251_v8  ;;  %v5351_v8 = vld [vmem:[%s9490_s4 + $0xef8] sm:$0xff] }
 0x25a   :  { %3335 = vmatpush.msrb.mxu1 %v5220_v9  ;;  %v5381_v9 = vld [vmem:[%s9490_s4 + $0xfe8] sm:$0xff] }
 0x25b   :  { %3415 = vmatpush.msrb.mxu3 %v5250_v27  ;;  %v5350_v27 = vld [vmem:[%s9490_s4 + $0xef0] sm:$0xff] }
 0x25c   :  { %3336 = vmatpush.msrb.mxu1 %v5219_v55  ;;  %v5380_v55 = vld [vmem:[%s9490_s4 + $0xfe0] sm:$0xff] }
 0x25d   :  { %3416 = vmatpush.msrb.mxu3 %v5249_v33  ;;  %v5349_v33 = vld [vmem:[%s9490_s4 + $0xee8] sm:$0xff] }
 0x25e   :  { %3337 = vmatpush.msrb.mxu1 %v5218_v14  ;;  %v5379_v14 = vld [vmem:[%s9490_s4 + $0xfd8] sm:$0xff] }
 0x25f   :  { %3417 = vmatpush.msrb.mxu3 %v5248_v39  ;;  %v5348_v39 = vld [vmem:[%s9490_s4 + $0xee0] sm:$0xff] }
 0x260   :  { %3338 = vmatpush.msrb.mxu1 %v5217_v13  ;;  %v5378_v13 = vld [vmem:[%s9490_s4 + $0xfd0] sm:$0xff] }
 0x261   :  { %3418 = vmatpush.msrb.mxu3 %v5247_v18  ;;  %v5347_v18 = vld [vmem:[%s9490_s4 + $0xed8] sm:$0xff] }
 0x262   :  { %3339 = vmatpush.msrb.mxu1 %v5216_v25  ;;  %v5377_v25 = vld [vmem:[%s9490_s4 + $0xfc8] sm:$0xff] }
 0x263   :  { %3419 = vmatpush.msrb.mxu3 %v5246_v62  ;;  %v5346_v62 = vld [vmem:[%s9490_s4 + $0xed0] sm:$0xff] }
 0x264   :  { %3340 = vmatpush.msrb.mxu1 %v5215_v34  ;;  %v5376_v34 = vld [vmem:[%s9490_s4 + $0xfc0] sm:$0xff] }
 0x265   :  { %3420 = vmatpush.msrb.mxu3 %v5245_v26  ;;  %v5345_v26 = vld [vmem:[%s9490_s4 + $0xec8] sm:$0xff] }
 0x266   :  { %3341 = vmatpush.msrb.mxu1 %v5214_v5  ;;  %v5375_v5 = vld [vmem:[%s9490_s4 + $0xfb8] sm:$0xff] }
 0x267   :  { %3421 = vmatpush.msrb.mxu3 %v5244_v46  ;;  %v5344_v46 = vld [vmem:[%s9490_s4 + $0xec0] sm:$0xff] }
 0x268   :  { %3342 = vmatpush.msrb.mxu1 %v5213_v7  ;;  %v5374_v7 = vld [vmem:[%s9490_s4 + $0xfb0] sm:$0xff] }
 0x269   :  { %3422 = vmatpush.msrb.mxu3 %v5243_v48  ;;  %v5343_v48 = vld [vmem:[%s9490_s4 + $0xeb8] sm:$0xff] }
 0x26a   :  { %3343 = vmatpush.msrb.mxu1 %v5212_v59  ;;  %v5373_v59 = vld [vmem:[%s9490_s4 + $0xfa8] sm:$0xff] }
 0x26b   :  { %3423 = vmatpush.msrb.mxu3 %v5242_v12  ;;  %v5342_v12 = vld [vmem:[%s9490_s4 + $0xeb0] sm:$0xff] }
 0x26c   :  { %3344 = vmatpush.msrb.mxu1 %v5211_v44  ;;  %v5372_v44 = vld [vmem:[%s9490_s4 + $0xfa0] sm:$0xff] }
 0x26d   :  { %3424 = vmatpush.msrb.mxu3 %v5241_v51  ;;  %v5341_v51 = vld [vmem:[%s9490_s4 + $0xea8] sm:$0xff] }
 0x26e   :  { %3345 = vmatpush.msrb.mxu1 %v5210_v24  ;;  %v5371_v24 = vld [vmem:[%s9490_s4 + $0xf98] sm:$0xff] }
 0x26f   :  { %3425 = vmatpush.msrb.mxu3 %v5240_v30  ;;  %v5340_v30 = vld [vmem:[%s9490_s4 + $0xea0] sm:$0xff] }
 0x270   :  { %3346 = vmatpush.msrb.mxu1 %v5209_v54  ;;  %3426 = vmatmul.f32.vlgmr.msrb.gmra.mxu3 %v3387_v52  ;;  %v5370_v54 = vld [vmem:[%s9490_s4 + $0xf90] sm:$0xff]  ;;  %v5339_v52 = vld [vmem:[%s9490_s4 + $0xe98] sm:$0xff] }
 0x271   :  { %3564 = vmatpush.msra.mxu3 %v5319_v19  ;;  %v5369_v19 = vld [vmem:[%s9490_s4 + $0xf88] sm:$0xff] }
 0x272   :  { %3347 = vmatpush.msrb.mxu1 %v5208_v35  ;;  %v5338_v35 = vld [vmem:[%s9490_s4 + $0xe90] sm:$0xff] }
 0x273   :  { %3348 = vmatmul.f32.vlgmr.msrb.gmra.mxu1 %v3309_v42  ;;  %3565 = vmatpush.msra.mxu3 %v5318_v53  ;;  %v5368_v53 = vld [vmem:[%s9490_s4 + $0xf80] sm:$0xff]  ;;  %v5337_v42 = vld [vmem:[%s9490_s4 + $0xe88] sm:$0xff] }
 0x274   :  { %3484 = vmatpush.msra.mxu1 %v5287_v32  ;;  %v3697_v32 = vrot.slane %v9368_v23, 6 }
 0x275   :  { %3566 = vmatpush.msra.mxu3 %v5317_v31  ;;  %v5336_v31 = vld [vmem:[%s9490_s4 + $0xe80] sm:$0xff] }
 0x276   :  { %3485 = vmatpush.msra.mxu1 %v5286_v15  ;;  %v3619_v15 = vrot.slane %v9368_v23, 4 }
 0x277   :  { %3567 = vmatpush.msra.mxu3 %v5316_v63  ;;  %v2592_v63 = vpop.f32.mrf.mxu0 }
 0x278   :  { %3486 = vmatpush.msra.mxu1 %v5285_v20  ;;  %v2612_v20 = vpop.f32.mrf.mxu1 }
 0x279   :  { %3568 = vmatpush.msra.mxu3 %v5315_v45  ;;  %v2632_v45 = vpop.f32.mrf.mxu2 }
 0x27a   :  { %3487 = vmatpush.msra.mxu1 %v5284_v6  ;;  %v2652_v6 = vpop.f32.mrf.mxu3 }
 0x27b   :  { %3569 = vmatpush.msra.mxu3 %v5314_v36 }
 0x27c   :  { %3488 = vmatpush.msra.mxu1 %v5283_v47 }
 0x27d   :  { %3570 = vmatpush.msra.mxu3 %v5313_v40 }
 0x27e   :  { %3489 = vmatpush.msra.mxu1 %v5282_v43 }
 0x27f   :  { %3571 = vmatpush.msra.mxu3 %v5312_v38  ;;  %v2709_v36 = vpop.f32.mrf.mxu0 }
 0x280   :  { %3490 = vmatpush.msra.mxu1 %v5281_v1  ;;  %v2729_v47 = vpop.f32.mrf.mxu1 }
 0x281   :  { %3572 = vmatpush.msra.mxu3 %v5311_v41  ;;  %v2787_v40 = vpop.f32.mrf.mxu2  ;;  %v2730_v10 = vadd.f32 %v2729_v47, %v2709_v36 }
 0x282   :  { %3491 = vmatpush.msra.mxu1 %v5280_v0  ;;  %v2807_v43 = vpop.f32.mrf.mxu3 }
 0x283   :  { %3573 = vmatpush.msra.mxu3 %v5310_v58 }
 0x284   :  { %3492 = vmatpush.msra.mxu1 %v5279_v29 }
 0x285   :  { %3574 = vmatpush.msra.mxu3 %v5309_v22  ;;  %v2613_v22 = vadd.f32 %v2612_v20, %v2592_v63 }
 0x286   :  { %3493 = vmatpush.msra.mxu1 %v5278_v11 }
 0x287   :  { %3575 = vmatpush.msra.mxu3 %v5308_v4  ;;  %v2861_v38 = vpop.f32.mrf.mxu0 }
 0x288   :  { %3494 = vmatpush.msra.mxu1 %v5277_v57  ;;  %v2633_v57 = vadd.f32 %v2632_v45, %v2613_v22 }
 0x289   :  { %3576 = vmatpush.msra.mxu3 %v5307_v2  ;;  %v2941_v41 = vpop.f32.mrf.mxu2 }
 0x28a   :  { %3495 = vmatpush.msra.mxu1 %v5276_v61 }
 0x28b   :  { %3577 = vmatpush.msra.mxu3 %v5306_v21  ;;  %v2653_v21 = vadd.f32 %v2652_v6, %v2633_v57 }
 0x28c   :  { %3496 = vmatpush.msra.mxu1 %v5275_v60  ;;  %v2808_v60 = vadd.f32 %v2807_v43, %v2787_v40 }
 0x28d   :  { %3578 = vmatpush.msra.mxu3 %v5305_v50 }
 0x28e   :  { %3497 = vmatpush.msra.mxu1 %v5274_v17  ;;  %v2732_v17 = vadd.f32 %v2730_v10, %v2653_v21 }
 0x28f   :  { %3579 = vmatpush.msra.mxu3 %v5304_v16  ;;  %v3019_v58 = vpop.f32.mrf.mxu0 }
 0x290   :  { %3498 = vmatpush.msra.mxu1 %v5273_v49  ;;  %3580 = vmatmul.f32.vlgmr.msra.gmra.mxu3 %v3541_v28  ;;  %v2881_v1 = vpop.f32.mrf.mxu1  ;;  %v2810_v49 = vadd.f32 %v2808_v60, %v2732_v17 }
 0x291   :  { %3720 = vmatpush.msrb.mxu3 %v5383_v37  ;;  %v3097_v11 = vpop.f32.mrf.mxu2  ;;  %v2882_v16 = vadd.f32 %v2881_v1, %v2861_v38 }
 0x292   :  { %3499 = vmatpush.msra.mxu1 %v5272_v56 }
 0x293   :  { %3500 = vmatmul.f32.vlgmr.msra.gmra.mxu1 %v9368_v23  ;;  %3721 = vmatpush.msrb.mxu3 %v5382_v3  ;;  %v2961_v0 = vpop.f32.mrf.mxu3  ;;  %v2884_v56 = vadd.f32 %v2882_v16, %v2810_v49 }
 0x294   :  { %3642 = vmatpush.msrb.mxu1 %v5351_v8  ;;  %v2962_v28 = vadd.f32 %v2961_v0, %v2941_v41 }
 0x295   :  { %3722 = vmatpush.msrb.mxu3 %v5381_v9 }
 0x296   :  { %3643 = vmatpush.msrb.mxu1 %v5350_v27  ;;  %v2964_v9 = vadd.f32 %v2962_v28, %v2884_v56 }
 0x297   :  { %3723 = vmatpush.msrb.mxu3 %v5380_v55  ;;  %v3171_v2 = vpop.f32.mrf.mxu0 }
 0x298   :  { %3644 = vmatpush.msrb.mxu1 %v5349_v33 }
 0x299   :  { %3724 = vmatpush.msrb.mxu3 %v5379_v14  ;;  %v3251_v50 = vpop.f32.mrf.mxu2 }
 0x29a   :  { %3645 = vmatpush.msrb.mxu1 %v5348_v39 }
 0x29b   :  { %3725 = vmatpush.msrb.mxu3 %v5378_v13 }
 0x29c   :  { %3646 = vmatpush.msrb.mxu1 %v5347_v18 }
 0x29d   :  { %3726 = vmatpush.msrb.mxu3 %v5377_v25 }
 0x29e   :  { %3647 = vmatpush.msrb.mxu1 %v5346_v62 }
 0x29f   :  { %3727 = vmatpush.msrb.mxu3 %v5376_v34  ;;  %v3329_v37 = vpop.f32.mrf.mxu0 }
 0x2a0   :  { %3648 = vmatpush.msrb.mxu1 %v5345_v26 }
 0x2a1   :  { %3728 = vmatpush.msrb.mxu3 %v5375_v5  ;;  %v3407_v55 = vpop.f32.mrf.mxu2 }
 0x2a2   :  { %3649 = vmatpush.msrb.mxu1 %v5344_v46 }
 0x2a3   :  { %3729 = vmatpush.msrb.mxu3 %v5374_v7 }
 0x2a4   :  { %3650 = vmatpush.msrb.mxu1 %v5343_v48 }
 0x2a5   :  { %3730 = vmatpush.msrb.mxu3 %v5373_v59 }
 0x2a6   :  { %3651 = vmatpush.msrb.mxu1 %v5342_v12 }
 0x2a7   :  { %3731 = vmatpush.msrb.mxu3 %v5372_v44  ;;  %v3481_v25 = vpop.f32.mrf.mxu0 }
 0x2a8   :  { %3652 = vmatpush.msrb.mxu1 %v5341_v51 }
 0x2a9   :  { %3732 = vmatpush.msrb.mxu3 %v5371_v24  ;;  %v3561_v7 = vpop.f32.mrf.mxu2 }
 0x2aa   :  { %3653 = vmatpush.msrb.mxu1 %v5340_v30 }
 0x2ab   :  { %3733 = vmatpush.msrb.mxu3 %v5370_v54 }
 0x2ac   :  { %3654 = vmatpush.msrb.mxu1 %v5339_v52 }
 0x2ad   :  { %3734 = vmatpush.msrb.mxu3 %v5369_v19 }
 0x2ae   :  { %3655 = vmatpush.msrb.mxu1 %v5338_v35 }
 0x2af   :  { %3735 = vmatpush.msrb.mxu3 %v5368_v53  ;;  %v3639_v24 = vpop.f32.mrf.mxu0 }
 0x2b0   :  { %3656 = vmatpush.msrb.mxu1 %v5337_v42  ;;  %3736 = vmatmul.f32.vlgmr.msrb.gmra.mxu3 %v3697_v32  ;;  %v3039_v29 = vpop.f32.mrf.mxu1 }
 0x2b1   :  { %v3040_v3 = vadd.f32 %v3039_v29, %v3019_v58  ;;  %v3717_v35 = vpop.f32.mrf.mxu2 }
 0x2b2   :  { %3657 = vmatpush.msrb.mxu1 %v5336_v31  ;;  %v5673_v31 = vld [vmem:[%s9493_s5] ss:$0 sm:$0xff] }
 0x2b3   :  { %3658 = vmatmul.f32.vlgmr.msrb.gmra.mxu1 %v3619_v15  ;;  %v3117_v4 = vpop.f32.mrf.mxu3  ;;  %v3042_v14 = vadd.f32 %v3040_v3, %v2964_v9 }
 0x2b4   :  { %v3118_v27 = vadd.f32 %v3117_v4, %v3097_v11 }
 0x2b6   :  { %v3120_v13 = vadd.f32 %v3118_v27, %v3042_v14 }
 0x2d0   :  { %v3191_v61 = vpop.f32.mrf.mxu1 }
 0x2d1   :  { %v3192_v39 = vadd.f32 %v3191_v61, %v3171_v2 }
 0x2d3   :  { %v3271_v23 = vpop.f32.mrf.mxu3  ;;  %v3194_v62 = vadd.f32 %v3192_v39, %v3120_v13 }
 0x2d4   :  { %v3272_v18 = vadd.f32 %v3271_v23, %v3251_v50 }
 0x2d6   :  { %v3274_v5 = vadd.f32 %v3272_v18, %v3194_v62 }
 0x2f0   :  { %v3349_v8 = vpop.f32.mrf.mxu1 }
 0x2f1   :  { %v3350_v34 = vadd.f32 %v3349_v8, %v3329_v37 }
 0x2f3   :  { %v3427_v33 = vpop.f32.mrf.mxu3  ;;  %v3352_v59 = vadd.f32 %v3350_v34, %v3274_v5 }
 0x2f4   :  { %v3428_v46 = vadd.f32 %v3427_v33, %v3407_v55 }
 0x2f6   :  { %v3430_v44 = vadd.f32 %v3428_v46, %v3352_v59 }
 0x310   :  { %v3501_v26 = vpop.f32.mrf.mxu1 }
 0x311   :  { %v3502_v12 = vadd.f32 %v3501_v26, %v3481_v25 }
 0x313   :  { %v3581_v48 = vpop.f32.mrf.mxu3  ;;  %v3504_v30 = vadd.f32 %v3502_v12, %v3430_v44 }
 0x314   :  { %v3582_v51 = vadd.f32 %v3581_v48, %v3561_v7 }
 0x316   :  { %v3584_v19 = vadd.f32 %v3582_v51, %v3504_v30 }
 0x330   :  { %v3659_v54 = vpop.f32.mrf.mxu1 }
 0x331   :  { %v3660_v52 = vadd.f32 %v3659_v54, %v3639_v24 }
 0x333   :  { %v3737_v53 = vpop.f32.mrf.mxu3  ;;  %v3662_v42 = vadd.f32 %v3660_v52, %v3584_v19 }
 0x334   :  { %v3738_v32 = vadd.f32 %v3737_v53, %v3717_v35 }
 0x336   :  { %v3740_v15 = vadd.f32 %v3738_v32, %v3662_v42 }
 0x338   :  { %v3745_v63 = vadd.f32 %v5673_v31, %v3740_v15 }
 0x33a   :  { %3747 = vst.msk [vmem:[%s9494_s6] sm:$0x3] %vm3746_vm15, %v3745_v63 }

</bundles_post_ra>
